<compile_context>
chip_gen: v7x
topology: tpu7x:2x2x1
jax: 0.10.0
libtpu: 0.0.40
codegen_flags: <defaults>
</compile_context>

<pallas_src>
import functools

import jax
import jax.numpy as jnp
from jax import lax
from jax.experimental import pallas as pl
from jax.experimental.pallas import tpu as pltpu


# MXU operand dtype.  f32 keeps 1e-3 parity with the f32 reference; switch to
# jnp.bfloat16 on v6e/v7x after re-validating tolerances (accumulation stays
# f32 via preferred_element_type).
_MXU_DTYPE = jnp.float32


def _frm_kernel(x_ref, w1, b1, w2, b2, w3, b3, w4, b4, out_ref,
                pad64, pad128, *, H, W, Cin):
    """Fused FRM forward for one image.

    x_ref:   (1, H, W, Cin)              input image (unpadded)
    w*:      (3, 3*cin, cout)            conv weights, kx folded into K
    b*:      (1, cout)                   conv biases
    out_ref: (1, H, W, 128)              output
    pad64:   (H+2, W+2, 64)   scratch    zero-halo padded 64-ch activations
    pad128:  (H+2, W+2, 128)  scratch    zero-halo padded 128-ch activations
    """
    f32 = jnp.float32

    # ---- halo-only zero fill (every step; megacore-safe, see header) -------
    # Interiors [1:H+1, 1:W+1, :] are fully overwritten below; only the halo
    # rows/columns must be (re)established as zeros.
    for ref in (pad64, pad128):
        c = ref.shape[-1]
        ref[0:1, :, :] = jnp.zeros((1, W + 2, c), f32)           # top row
        ref[H + 1:H + 2, :, :] = jnp.zeros((1, W + 2, c), f32)   # bottom row
        ref[:, 0:1, :] = jnp.zeros((H + 2, 1, c), f32)           # left column
        ref[:, W + 1:W + 2, :] = jnp.zeros((H + 2, 1, c), f32)   # right column

    def conv3x3(xp, w_ref, b_ref, extra=None):
        """3x3 same-conv as 3 MXU dots (kx taps folded into the K dim).

        xp:     (H+2, W+2, cin) padded activation value (zero halo).
        w_ref:  (3, 3*cin, cout) weight ref; w_ref[ky] is kx-major flattened.
        b_ref:  (1, cout) bias ref.
        extra:  optional (H*W, cout) residual fused into the accumulator init.
        Returns (H*W, cout) f32.
        """
        cin = xp.shape[-1]
        cout = w_ref.shape[-1]
        # kx = -1 / 0 / +1 column views (value slices), concatenated along
        # channels so each dot sees K = 3*cin.  Order matches the kx-major
        # flattening of the weights.
        xcat = jnp.concatenate(
            [xp[:, 0:W, :], xp[:, 1:W + 1, :], xp[:, 2:W + 2, :]],
            axis=-1)                                            # (H+2, W, 3*cin)
        acc = b_ref[...] if extra is None else b_ref[...] + extra
        for ky in range(3):                                     # ky slices: major-dim, free
            lhs = xcat[ky:ky + H].reshape(H * W, 3 * cin)
            acc = acc + jnp.dot(lhs.astype(_MXU_DTYPE),
                                w_ref[ky].astype(_MXU_DTYPE),
                                preferred_element_type=f32)
        return acc                                              # (H*W, cout)

    # ---- x1 = conv1(x) ------------------------------------------------------
    # conv1's padded input lives in the first Cin lanes of pad128.  The extra
    # lanes are zero-filled so the interior store stays full-lane/unmasked;
    # the load is value-sliced back down to Cin channels for the dot.
    xin = x_ref[0].astype(f32)                                  # (H, W, Cin)
    if Cin < 128:
        xin = jnp.concatenate(
            [xin, jnp.zeros((H, W, 128 - Cin), f32)], axis=-1)  # (H, W, 128)
    pad128[1:H + 1, 1:W + 1, :] = xin
    x1 = conv3x3(pad128[...][:, :, :Cin], w1, b1)               # (H*W, 64)

    # ---- x2 = conv2(sigmoid(x1)) + x1 ---------------------------------------
    pad64[1:H + 1, 1:W + 1, :] = jax.nn.sigmoid(x1).reshape(H, W, 64)
    x2 = conv3x3(pad64[...], w2, b2, extra=x1)                  # (H*W, 64)

    # ---- x3 = conv3(x2)  (reuse the 64-lane buffer) -------------------------
    pad64[1:H + 1, 1:W + 1, :] = x2.reshape(H, W, 64)
    x3 = conv3x3(pad64[...], w3, b3)                            # (H*W, 128)

    # ---- x4 = conv4(relu(x3)) + x3 ------------------------------------------
    pad128[1:H + 1, 1:W + 1, :] = jnp.maximum(x3, 0.0).reshape(H, W, 128)
    x4 = conv3x3(pad128[...], w4, b4, extra=x3)                 # (H*W, 128)

    out_ref[0] = x4.reshape(H, W, 128).astype(out_ref.dtype)


def _round_up(x, m):
    return (x + m - 1) // m * m


def _vmem_bytes(shape, itemsize=4):
    """f32 VMEM footprint of an array/block, with (8, 128) lane/sublane padding."""
    if len(shape) == 1:
        return _round_up(shape[0], 128) * itemsize
    *major, sub, lane = shape
    n = 1
    for d in major:
        n *= d
    return n * _round_up(sub, 8) * _round_up(lane, 128) * itemsize


def frm_forward_nhwc(x_nhwc, params):
    """FRM forward, NHWC in / NHWC out (preferred, hot-path entry point)."""
    N, H, W, Cin = map(int, x_nhwc.shape)
    assert Cin <= 128, "conv1 input channels must fit the 128-lane pad buffer"

    # Host-side weight prep: fold kx into the contraction dim.
    flat_ws, flat_bs = [], []
    for (w, b) in params:
        kh, kw, cin, cout = w.shape
        assert (kh, kw) == (3, 3)
        flat_ws.append(w.reshape(3, 3 * cin, cout))             # kx-major flatten
        flat_bs.append(b.reshape(1, cout))
    assert flat_ws[0].shape == (3, 3 * Cin, 64)

    kernel = functools.partial(_frm_kernel, H=H, W=W, Cin=Cin)

    in_specs = [pl.BlockSpec((1, H, W, Cin), lambda n: (n, 0, 0, 0))]
    operands = [x_nhwc]
    for wf_, bf_ in zip(flat_ws, flat_bs):
        in_specs.append(pl.BlockSpec(wf_.shape, lambda n: (0, 0, 0)))
        in_specs.append(pl.BlockSpec(bf_.shape, lambda n: (0, 0)))
        operands += [wf_, bf_]

    scratch_shapes = [
        pltpu.VMEM((H + 2, W + 2, 64), jnp.float32),
        pltpu.VMEM((H + 2, W + 2, 128), jnp.float32),
    ]

    # Derive the scoped-VMEM limit from actual padded buffer sizes (double
    # buffered I/O blocks + weights, scratch, plus headroom for in-kernel
    # temporaries: xcat slabs, accumulators, live x1..x3 values).
    scratch_bytes = sum(_vmem_bytes(s) for s in
                        [(H + 2, W + 2, 64), (H + 2, W + 2, 128)])
    io_bytes = 2 * (_vmem_bytes((1, H, W, Cin)) + _vmem_bytes((1, H, W, 128)))
    wb_bytes = 2 * sum(_vmem_bytes(tuple(a.shape)) for a in (*flat_ws, *flat_bs))
    tmp_bytes = 6 * (_vmem_bytes((H + 2, W, 3 * 128)) + _vmem_bytes((H * W, 128)))
    est = scratch_bytes + io_bytes + wb_bytes + tmp_bytes + (2 << 20)
    vmem_limit = int(min(64 * 2 ** 20, max(32 * 2 ** 20, est)))

    out = pl.pallas_call(
        kernel,
        out_shape=jax.ShapeDtypeStruct((N, H, W, 128), jnp.float32),
        grid_spec=pltpu.PrefetchScalarGridSpec(
            num_scalar_prefetch=0,
            grid=(N,),
            in_specs=in_specs,
            out_specs=pl.BlockSpec((1, H, W, 128), lambda n: (n, 0, 0, 0)),
            scratch_shapes=scratch_shapes,
        ),
        compiler_params=pltpu.CompilerParams(
            dimension_semantics=("parallel",),
            vmem_limit_bytes=vmem_limit,
        ),
    )(*operands)
    return out


def frm_forward(x_nchw, params):
    """NCHW drop-in wrapper matching the PyTorch module's layout.

    Prefer frm_forward_nhwc in an NHWC model: the two transposes here are
    full-tensor HBM round trips outside the kernel.
    """
    x = jnp.transpose(x_nchw, (0, 2, 3, 1))                     # NCHW -> NHWC
    out = frm_forward_nhwc(x, params)
    return jnp.transpose(out, (0, 3, 1, 2))                     # NHWC -> NCHW


# ---------------------------------------------------------------------------
# Pure-JAX reference (NCHW, mirrors the PyTorch module) for verification.
# ---------------------------------------------------------------------------
def _ref_conv(x_nchw, w_hwio, b):
    y = lax.conv_general_dilated(
        x_nchw, w_hwio, window_strides=(1, 1), padding="SAME",
        dimension_numbers=("NCHW", "HWIO", "NCHW"))
    return y + b.reshape(1, -1, 1, 1)


def frm_reference(x_nchw, params):
    (w1, b1), (w2, b2), (w3, b3), (w4, b4) = params
    x1 = _ref_conv(x_nchw, w1, b1)
    x2 = _ref_conv(jax.nn.sigmoid(x1), w2, b2) + x1
    x3 = _ref_conv(x2, w3, b3)
    x4 = _ref_conv(jnp.maximum(x3, 0.0), w4, b4) + x3
    return x4


def init_params(key, in_ch=32):
    """Deterministic synthetic weights (kaiming-ish scale), HWIO layout."""
    dims = [(in_ch, 64), (64, 64), (64, 128), (128, 128)]
    params = []
    for i, (cin, cout) in enumerate(dims):
        kw, kb = jax.random.split(jax.random.fold_in(key, i))
        scale = (2.0 / (9 * cin)) ** 0.5
        w = jax.random.normal(kw, (3, 3, cin, cout), jnp.float32) * scale
        b = jax.random.normal(kb, (cout,), jnp.float32) * 0.01
        params.append((w, b))
    return params


if __name__ == "__main__":
    key = jax.random.PRNGKey(0)
    kx, kp = jax.random.split(key)

    N, IN_CH, H, W = 2, 32, 16, 16
    x = jax.random.normal(kx, (N, IN_CH, H, W), jnp.float32)    # NCHW, like PyTorch
    params = init_params(kp, in_ch=IN_CH)

    out = frm_forward(x, params)
    out = jax.block_until_ready(out)
    assert out.shape == (N, 128, H, W), out.shape

    ref = jax.block_until_ready(frm_reference(x, params))
    assert jnp.allclose(out, ref, rtol=1e-3, atol=1e-3), (
        float(jnp.max(jnp.abs(out - ref))))

    print("KERNEL_OK")
</pallas_src>

<mosaic_0001>
module attributes {stable_mosaic.version = 11 : i64} {
  func.func @_frm_kernel(%arg0: i32, %arg1: memref<1x16x16x32xf32, #tpu.memory_space<vmem>>, %arg2: memref<3x96x64xf32, #tpu.memory_space<vmem>>, %arg3: memref<1x64xf32, #tpu.memory_space<vmem>>, %arg4: memref<3x192x64xf32, #tpu.memory_space<vmem>>, %arg5: memref<1x64xf32, #tpu.memory_space<vmem>>, %arg6: memref<3x192x128xf32, #tpu.memory_space<vmem>>, %arg7: memref<1x128xf32, #tpu.memory_space<vmem>>, %arg8: memref<3x384x128xf32, #tpu.memory_space<vmem>>, %arg9: memref<1x128xf32, #tpu.memory_space<vmem>>, %arg10: memref<1x16x16x128xf32, #tpu.memory_space<vmem>>, %arg11: memref<18x18x64xf32, #tpu.memory_space<vmem>>, %arg12: memref<18x18x128xf32, #tpu.memory_space<vmem>>) attributes {dimension_semantics = [#tpu.dimension_semantics<parallel>], iteration_bounds = array<i64: 2>, scalar_prefetch = 0 : i64, scratch_operands = 2 : i64, tpu.core_type = #tpu.core_type<tc>, window_params = [{transform_indices = @transform_0, window_bounds = array<i64: 1, 16, 16, 32>}, {pipeline_mode = #tpu.pipeline_mode<synchronous>, transform_indices = @transform_1, window_bounds = array<i64: 3, 96, 64>}, {pipeline_mode = #tpu.pipeline_mode<synchronous>, transform_indices = @transform_2, window_bounds = array<i64: 1, 64>}, {pipeline_mode = #tpu.pipeline_mode<synchronous>, transform_indices = @transform_3, window_bounds = array<i64: 3, 192, 64>}, {pipeline_mode = #tpu.pipeline_mode<synchronous>, transform_indices = @transform_4, window_bounds = array<i64: 1, 64>}, {pipeline_mode = #tpu.pipeline_mode<synchronous>, transform_indices = @transform_5, window_bounds = array<i64: 3, 192, 128>}, {pipeline_mode = #tpu.pipeline_mode<synchronous>, transform_indices = @transform_6, window_bounds = array<i64: 1, 128>}, {pipeline_mode = #tpu.pipeline_mode<synchronous>, transform_indices = @transform_7, window_bounds = array<i64: 3, 384, 128>}, {pipeline_mode = #tpu.pipeline_mode<synchronous>, transform_indices = @transform_8, window_bounds = array<i64: 1, 128>}, {transform_indices = @transform_9, window_bounds = array<i64: 1, 16, 16, 128>}]} {
    %cst = arith.constant 0.000000e+00 : f32
    %0 = vector.broadcast %cst : f32 to vector<1x18x64xf32>
    %c0 = arith.constant 0 : index
    %c0_0 = arith.constant 0 : index
    %c0_1 = arith.constant 0 : index
    %1 = vector.load %arg11[%c0, %c0_0, %c0_1] : memref<18x18x64xf32, #tpu.memory_space<vmem>>, vector<1x18x64xf32>
    tpu.vector_store %arg11[%c0, %c0_0, %c0_1], %0 {strides = array<i32>} : memref<18x18x64xf32, #tpu.memory_space<vmem>>, vector<1x18x64xf32>,
    %cst_2 = arith.constant 0.000000e+00 : f32
    %2 = vector.broadcast %cst_2 : f32 to vector<1x18x64xf32>
    %c17 = arith.constant 17 : index
    %c0_3 = arith.constant 0 : index
    %c0_4 = arith.constant 0 : index
    %3 = vector.load %arg11[%c17, %c0_3, %c0_4] : memref<18x18x64xf32, #tpu.memory_space<vmem>>, vector<1x18x64xf32>
    tpu.vector_store %arg11[%c17, %c0_3, %c0_4], %2 {strides = array<i32>} : memref<18x18x64xf32, #tpu.memory_space<vmem>>, vector<1x18x64xf32>,
    %cst_5 = arith.constant 0.000000e+00 : f32
    %4 = vector.broadcast %cst_5 : f32 to vector<18x1x64xf32>
    %c0_6 = arith.constant 0 : index
    %c0_7 = arith.constant 0 : index
    %c0_8 = arith.constant 0 : index
    %5 = vector.load %arg11[%c0_6, %c0_7, %c0_8] : memref<18x18x64xf32, #tpu.memory_space<vmem>>, vector<18x1x64xf32>
    tpu.vector_store %arg11[%c0_6, %c0_7, %c0_8], %4 {strides = array<i32>} : memref<18x18x64xf32, #tpu.memory_space<vmem>>, vector<18x1x64xf32>,
    %cst_9 = arith.constant 0.000000e+00 : f32
    %6 = vector.broadcast %cst_9 : f32 to vector<18x1x64xf32>
    %c0_10 = arith.constant 0 : index
    %c17_11 = arith.constant 17 : index
    %c0_12 = arith.constant 0 : index
    %7 = vector.load %arg11[%c0_10, %c17_11, %c0_12] : memref<18x18x64xf32, #tpu.memory_space<vmem>>, vector<18x1x64xf32>
    tpu.vector_store %arg11[%c0_10, %c17_11, %c0_12], %6 {strides = array<i32>} : memref<18x18x64xf32, #tpu.memory_space<vmem>>, vector<18x1x64xf32>,
    %cst_13 = arith.constant 0.000000e+00 : f32
    %8 = vector.broadcast %cst_13 : f32 to vector<1x18x128xf32>
    %c0_14 = arith.constant 0 : index
    %c0_15 = arith.constant 0 : index
    %c0_16 = arith.constant 0 : index
    %9 = vector.load %arg12[%c0_14, %c0_15, %c0_16] : memref<18x18x128xf32, #tpu.memory_space<vmem>>, vector<1x18x128xf32>
    tpu.vector_store %arg12[%c0_14, %c0_15, %c0_16], %8 {strides = array<i32>} : memref<18x18x128xf32, #tpu.memory_space<vmem>>, vector<1x18x128xf32>,
    %cst_17 = arith.constant 0.000000e+00 : f32
    %10 = vector.broadcast %cst_17 : f32 to vector<1x18x128xf32>
    %c17_18 = arith.constant 17 : index
    %c0_19 = arith.constant 0 : index
    %c0_20 = arith.constant 0 : index
    %11 = vector.load %arg12[%c17_18, %c0_19, %c0_20] : memref<18x18x128xf32, #tpu.memory_space<vmem>>, vector<1x18x128xf32>
    tpu.vector_store %arg12[%c17_18, %c0_19, %c0_20], %10 {strides = array<i32>} : memref<18x18x128xf32, #tpu.memory_space<vmem>>, vector<1x18x128xf32>,
    %cst_21 = arith.constant 0.000000e+00 : f32
    %12 = vector.broadcast %cst_21 : f32 to vector<18x1x128xf32>
    %c0_22 = arith.constant 0 : index
    %c0_23 = arith.constant 0 : index
    %c0_24 = arith.constant 0 : index
    %13 = vector.load %arg12[%c0_22, %c0_23, %c0_24] : memref<18x18x128xf32, #tpu.memory_space<vmem>>, vector<18x1x128xf32>
    tpu.vector_store %arg12[%c0_22, %c0_23, %c0_24], %12 {strides = array<i32>} : memref<18x18x128xf32, #tpu.memory_space<vmem>>, vector<18x1x128xf32>,
    %cst_25 = arith.constant 0.000000e+00 : f32
    %14 = vector.broadcast %cst_25 : f32 to vector<18x1x128xf32>
    %c0_26 = arith.constant 0 : index
    %c17_27 = arith.constant 17 : index
    %c0_28 = arith.constant 0 : index
    %15 = vector.load %arg12[%c0_26, %c17_27, %c0_28] : memref<18x18x128xf32, #tpu.memory_space<vmem>>, vector<18x1x128xf32>
    tpu.vector_store %arg12[%c0_26, %c17_27, %c0_28], %14 {strides = array<i32>} : memref<18x18x128xf32, #tpu.memory_space<vmem>>, vector<18x1x128xf32>,
    %c0_29 = arith.constant 0 : index
    %c0_30 = arith.constant 0 : index
    %c0_31 = arith.constant 0 : index
    %c0_32 = arith.constant 0 : index
    %16 = vector.load %arg1[%c0_29, %c0_30, %c0_31, %c0_32] : memref<1x16x16x32xf32, #tpu.memory_space<vmem>>, vector<1x16x16x32xf32>
    %17 = vector.shape_cast %16 : vector<1x16x16x32xf32> to vector<16x16x32xf32>
    %cst_33 = arith.constant 0.000000e+00 : f32
    %18 = vector.broadcast %cst_33 : f32 to vector<16x16x96xf32>
    %19 = tpu.concatenate %17, %18 in 2 : vector<16x16x32xf32>, vector<16x16x96xf32> -> vector<16x16x128xf32>
    %c1 = arith.constant 1 : index
    %c1_34 = arith.constant 1 : index
    %c0_35 = arith.constant 0 : index
    %20 = vector.load %arg12[%c1, %c1_34, %c0_35] : memref<18x18x128xf32, #tpu.memory_space<vmem>>, vector<16x16x128xf32>
    tpu.vector_store %arg12[%c1, %c1_34, %c0_35], %19 {strides = array<i32>} : memref<18x18x128xf32, #tpu.memory_space<vmem>>, vector<16x16x128xf32>,
    %c0_36 = arith.constant 0 : index
    %c0_37 = arith.constant 0 : index
    %c0_38 = arith.constant 0 : index
    %21 = vector.load %arg12[%c0_36, %c0_37, %c0_38] : memref<18x18x128xf32, #tpu.memory_space<vmem>>, vector<18x18x128xf32>
    %22 = vector.extract_strided_slice %21 {offsets = [0, 0, 0], sizes = [18, 18, 32], strides = [1, 1, 1]} : vector<18x18x128xf32> to vector<18x18x32xf32>
    %23 = vector.extract_strided_slice %22 {offsets = [0, 0, 0], sizes = [18, 16, 32], strides = [1, 1, 1]} : vector<18x18x32xf32> to vector<18x16x32xf32>
    %24 = vector.extract_strided_slice %22 {offsets = [0, 1, 0], sizes = [18, 16, 32], strides = [1, 1, 1]} : vector<18x18x32xf32> to vector<18x16x32xf32>
    %25 = vector.extract_strided_slice %22 {offsets = [0, 2, 0], sizes = [18, 16, 32], strides = [1, 1, 1]} : vector<18x18x32xf32> to vector<18x16x32xf32>
    %26 = tpu.concatenate %23, %24, %25 in 2 : vector<18x16x32xf32>, vector<18x16x32xf32>, vector<18x16x32xf32> -> vector<18x16x96xf32>
    %c0_39 = arith.constant 0 : index
    %c0_40 = arith.constant 0 : index
    %27 = vector.load %arg3[%c0_39, %c0_40] : memref<1x64xf32, #tpu.memory_space<vmem>>, vector<1x64xf32>
    %28 = vector.extract_strided_slice %26 {offsets = [0, 0, 0], sizes = [16, 16, 96], strides = [1, 1, 1]} : vector<18x16x96xf32> to vector<16x16x96xf32>
    %29 = vector.shape_cast %28 : vector<16x16x96xf32> to vector<256x96xf32>
    %c0_41 = arith.constant 0 : index
    %c0_42 = arith.constant 0 : index
    %c0_43 = arith.constant 0 : index
    %30 = vector.load %arg2[%c0_41, %c0_42, %c0_43] : memref<3x96x64xf32, #tpu.memory_space<vmem>>, vector<1x96x64xf32>
    %31 = vector.shape_cast %30 : vector<1x96x64xf32> to vector<96x64xf32>
    %cst_44 = arith.constant dense<0.000000e+00> : vector<256x64xf32>
    %32 = tpu.matmul %29, %31, %cst_44 {dimension_numbers = #tpu.dot_dimension_numbers<[1], [0], [0], [1], [0, 0, 1, 1], [], []>} : vector<256x96xf32>, vector<96x64xf32>, vector<256x64xf32> -> vector<256x64xf32>
    %33 = vector.broadcast %27 : vector<1x64xf32> to vector<256x64xf32>
    %34 = arith.addf %33, %32 : vector<256x64xf32>
    %35 = vector.extract_strided_slice %26 {offsets = [1, 0, 0], sizes = [16, 16, 96], strides = [1, 1, 1]} : vector<18x16x96xf32> to vector<16x16x96xf32>
    %36 = vector.shape_cast %35 : vector<16x16x96xf32> to vector<256x96xf32>
    %c1_45 = arith.constant 1 : index
    %c0_46 = arith.constant 0 : index
    %c0_47 = arith.constant 0 : index
    %37 = vector.load %arg2[%c1_45, %c0_46, %c0_47] : memref<3x96x64xf32, #tpu.memory_space<vmem>>, vector<1x96x64xf32>
    %38 = vector.shape_cast %37 : vector<1x96x64xf32> to vector<96x64xf32>
    %cst_48 = arith.constant dense<0.000000e+00> : vector<256x64xf32>
    %39 = tpu.matmul %36, %38, %cst_48 {dimension_numbers = #tpu.dot_dimension_numbers<[1], [0], [0], [1], [0, 0, 1, 1], [], []>} : vector<256x96xf32>, vector<96x64xf32>, vector<256x64xf32> -> vector<256x64xf32>
    %40 = arith.addf %34, %39 : vector<256x64xf32>
    %41 = vector.extract_strided_slice %26 {offsets = [2, 0, 0], sizes = [16, 16, 96], strides = [1, 1, 1]} : vector<18x16x96xf32> to vector<16x16x96xf32>
    %42 = vector.shape_cast %41 : vector<16x16x96xf32> to vector<256x96xf32>
    %c2 = arith.constant 2 : index
    %c0_49 = arith.constant 0 : index
    %c0_50 = arith.constant 0 : index
    %43 = vector.load %arg2[%c2, %c0_49, %c0_50] : memref<3x96x64xf32, #tpu.memory_space<vmem>>, vector<1x96x64xf32>
    %44 = vector.shape_cast %43 : vector<1x96x64xf32> to vector<96x64xf32>
    %cst_51 = arith.constant dense<0.000000e+00> : vector<256x64xf32>
    %45 = tpu.matmul %42, %44, %cst_51 {dimension_numbers = #tpu.dot_dimension_numbers<[1], [0], [0], [1], [0, 0, 1, 1], [], []>} : vector<256x96xf32>, vector<96x64xf32>, vector<256x64xf32> -> vector<256x64xf32>
    %46 = arith.addf %40, %45 : vector<256x64xf32>
    %47 = arith.negf %46 : vector<256x64xf32>
    %48 = math.exp %47 : vector<256x64xf32>
    %cst_52 = arith.constant 1.000000e+00 : f32
    %49 = vector.broadcast %cst_52 : f32 to vector<256x64xf32>
    %50 = arith.addf %49, %48 : vector<256x64xf32>
    %51 = arith.divf %49, %50 : vector<256x64xf32>
    %52 = vector.shape_cast %51 : vector<256x64xf32> to vector<16x16x64xf32>
    %c1_53 = arith.constant 1 : index
    %c1_54 = arith.constant 1 : index
    %c0_55 = arith.constant 0 : index
    %53 = vector.load %arg11[%c1_53, %c1_54, %c0_55] : memref<18x18x64xf32, #tpu.memory_space<vmem>>, vector<16x16x64xf32>
    tpu.vector_store %arg11[%c1_53, %c1_54, %c0_55], %52 {strides = array<i32>} : memref<18x18x64xf32, #tpu.memory_space<vmem>>, vector<16x16x64xf32>,
    %c0_56 = arith.constant 0 : index
    %c0_57 = arith.constant 0 : index
    %c0_58 = arith.constant 0 : index
    %54 = vector.load %arg11[%c0_56, %c0_57, %c0_58] : memref<18x18x64xf32, #tpu.memory_space<vmem>>, vector<18x18x64xf32>
    %55 = vector.extract_strided_slice %54 {offsets = [0, 0, 0], sizes = [18, 16, 64], strides = [1, 1, 1]} : vector<18x18x64xf32> to vector<18x16x64xf32>
    %56 = vector.extract_strided_slice %54 {offsets = [0, 1, 0], sizes = [18, 16, 64], strides = [1, 1, 1]} : vector<18x18x64xf32> to vector<18x16x64xf32>
    %57 = vector.extract_strided_slice %54 {offsets = [0, 2, 0], sizes = [18, 16, 64], strides = [1, 1, 1]} : vector<18x18x64xf32> to vector<18x16x64xf32>
    %58 = tpu.concatenate %55, %56, %57 in 2 : vector<18x16x64xf32>, vector<18x16x64xf32>, vector<18x16x64xf32> -> vector<18x16x192xf32>
    %c0_59 = arith.constant 0 : index
    %c0_60 = arith.constant 0 : index
    %59 = vector.load %arg5[%c0_59, %c0_60] : memref<1x64xf32, #tpu.memory_space<vmem>>, vector<1x64xf32>
    %60 = vector.broadcast %59 : vector<1x64xf32> to vector<256x64xf32>
    %61 = arith.addf %60, %46 : vector<256x64xf32>
    %62 = vector.extract_strided_slice %58 {offsets = [0, 0, 0], sizes = [16, 16, 192], strides = [1, 1, 1]} : vector<18x16x192xf32> to vector<16x16x192xf32>
    %63 = vector.shape_cast %62 : vector<16x16x192xf32> to vector<256x192xf32>
    %c0_61 = arith.constant 0 : index
    %c0_62 = arith.constant 0 : index
    %c0_63 = arith.constant 0 : index
    %64 = vector.load %arg4[%c0_61, %c0_62, %c0_63] : memref<3x192x64xf32, #tpu.memory_space<vmem>>, vector<1x192x64xf32>
    %65 = vector.shape_cast %64 : vector<1x192x64xf32> to vector<192x64xf32>
    %cst_64 = arith.constant dense<0.000000e+00> : vector<256x64xf32>
    %66 = tpu.matmul %63, %65, %cst_64 {dimension_numbers = #tpu.dot_dimension_numbers<[1], [0], [0], [1], [0, 0, 1, 1], [], []>} : vector<256x192xf32>, vector<192x64xf32>, vector<256x64xf32> -> vector<256x64xf32>
    %67 = arith.addf %61, %66 : vector<256x64xf32>
    %68 = vector.extract_strided_slice %58 {offsets = [1, 0, 0], sizes = [16, 16, 192], strides = [1, 1, 1]} : vector<18x16x192xf32> to vector<16x16x192xf32>
    %69 = vector.shape_cast %68 : vector<16x16x192xf32> to vector<256x192xf32>
    %c1_65 = arith.constant 1 : index
    %c0_66 = arith.constant 0 : index
    %c0_67 = arith.constant 0 : index
    %70 = vector.load %arg4[%c1_65, %c0_66, %c0_67] : memref<3x192x64xf32, #tpu.memory_space<vmem>>, vector<1x192x64xf32>
    %71 = vector.shape_cast %70 : vector<1x192x64xf32> to vector<192x64xf32>
    %cst_68 = arith.constant dense<0.000000e+00> : vector<256x64xf32>
    %72 = tpu.matmul %69, %71, %cst_68 {dimension_numbers = #tpu.dot_dimension_numbers<[1], [0], [0], [1], [0, 0, 1, 1], [], []>} : vector<256x192xf32>, vector<192x64xf32>, vector<256x64xf32> -> vector<256x64xf32>
    %73 = arith.addf %67, %72 : vector<256x64xf32>
    %74 = vector.extract_strided_slice %58 {offsets = [2, 0, 0], sizes = [16, 16, 192], strides = [1, 1, 1]} : vector<18x16x192xf32> to vector<16x16x192xf32>
    %75 = vector.shape_cast %74 : vector<16x16x192xf32> to vector<256x192xf32>
    %c2_69 = arith.constant 2 : index
    %c0_70 = arith.constant 0 : index
    %c0_71 = arith.constant 0 : index
    %76 = vector.load %arg4[%c2_69, %c0_70, %c0_71] : memref<3x192x64xf32, #tpu.memory_space<vmem>>, vector<1x192x64xf32>
    %77 = vector.shape_cast %76 : vector<1x192x64xf32> to vector<192x64xf32>
    %cst_72 = arith.constant dense<0.000000e+00> : vector<256x64xf32>
    %78 = tpu.matmul %75, %77, %cst_72 {dimension_numbers = #tpu.dot_dimension_numbers<[1], [0], [0], [1], [0, 0, 1, 1], [], []>} : vector<256x192xf32>, vector<192x64xf32>, vector<256x64xf32> -> vector<256x64xf32>
    %79 = arith.addf %73, %78 : vector<256x64xf32>
    %80 = vector.shape_cast %79 : vector<256x64xf32> to vector<16x16x64xf32>
    %c1_73 = arith.constant 1 : index
    %c1_74 = arith.constant 1 : index
    %c0_75 = arith.constant 0 : index
    %81 = vector.load %arg11[%c1_73, %c1_74, %c0_75] : memref<18x18x64xf32, #tpu.memory_space<vmem>>, vector<16x16x64xf32>
    tpu.vector_store %arg11[%c1_73, %c1_74, %c0_75], %80 {strides = array<i32>} : memref<18x18x64xf32, #tpu.memory_space<vmem>>, vector<16x16x64xf32>,
    %c0_76 = arith.constant 0 : index
    %c0_77 = arith.constant 0 : index
    %c0_78 = arith.constant 0 : index
    %82 = vector.load %arg11[%c0_76, %c0_77, %c0_78] : memref<18x18x64xf32, #tpu.memory_space<vmem>>, vector<18x18x64xf32>
    %83 = vector.extract_strided_slice %82 {offsets = [0, 0, 0], sizes = [18, 16, 64], strides = [1, 1, 1]} : vector<18x18x64xf32> to vector<18x16x64xf32>
    %84 = vector.extract_strided_slice %82 {offsets = [0, 1, 0], sizes = [18, 16, 64], strides = [1, 1, 1]} : vector<18x18x64xf32> to vector<18x16x64xf32>
    %85 = vector.extract_strided_slice %82 {offsets = [0, 2, 0], sizes = [18, 16, 64], strides = [1, 1, 1]} : vector<18x18x64xf32> to vector<18x16x64xf32>
    %86 = tpu.concatenate %83, %84, %85 in 2 : vector<18x16x64xf32>, vector<18x16x64xf32>, vector<18x16x64xf32> -> vector<18x16x192xf32>
    %c0_79 = arith.constant 0 : index
    %c0_80 = arith.constant 0 : index
    %87 = vector.load %arg7[%c0_79, %c0_80] : memref<1x128xf32, #tpu.memory_space<vmem>>, vector<1x128xf32>
    %88 = vector.extract_strided_slice %86 {offsets = [0, 0, 0], sizes = [16, 16, 192], strides = [1, 1, 1]} : vector<18x16x192xf32> to vector<16x16x192xf32>
    %89 = vector.shape_cast %88 : vector<16x16x192xf32> to vector<256x192xf32>
    %c0_81 = arith.constant 0 : index
    %c0_82 = arith.constant 0 : index
    %c0_83 = arith.constant 0 : index
    %90 = vector.load %arg6[%c0_81, %c0_82, %c0_83] : memref<3x192x128xf32, #tpu.memory_space<vmem>>, vector<1x192x128xf32>
    %91 = vector.shape_cast %90 : vector<1x192x128xf32> to vector<192x128xf32>
    %cst_84 = arith.constant dense<0.000000e+00> : vector<256x128xf32>
    %92 = tpu.matmul %89, %91, %cst_84 {dimension_numbers = #tpu.dot_dimension_numbers<[1], [0], [0], [1], [0, 0, 1, 1], [], []>} : vector<256x192xf32>, vector<192x128xf32>, vector<256x128xf32> -> vector<256x128xf32>
    %93 = vector.broadcast %87 : vector<1x128xf32> to vector<256x128xf32>
    %94 = arith.addf %93, %92 : vector<256x128xf32>
    %95 = vector.extract_strided_slice %86 {offsets = [1, 0, 0], sizes = [16, 16, 192], strides = [1, 1, 1]} : vector<18x16x192xf32> to vector<16x16x192xf32>
    %96 = vector.shape_cast %95 : vector<16x16x192xf32> to vector<256x192xf32>
    %c1_85 = arith.constant 1 : index
    %c0_86 = arith.constant 0 : index
    %c0_87 = arith.constant 0 : index
    %97 = vector.load %arg6[%c1_85, %c0_86, %c0_87] : memref<3x192x128xf32, #tpu.memory_space<vmem>>, vector<1x192x128xf32>
    %98 = vector.shape_cast %97 : vector<1x192x128xf32> to vector<192x128xf32>
    %cst_88 = arith.constant dense<0.000000e+00> : vector<256x128xf32>
    %99 = tpu.matmul %96, %98, %cst_88 {dimension_numbers = #tpu.dot_dimension_numbers<[1], [0], [0], [1], [0, 0, 1, 1], [], []>} : vector<256x192xf32>, vector<192x128xf32>, vector<256x128xf32> -> vector<256x128xf32>
    %100 = arith.addf %94, %99 : vector<256x128xf32>
    %101 = vector.extract_strided_slice %86 {offsets = [2, 0, 0], sizes = [16, 16, 192], strides = [1, 1, 1]} : vector<18x16x192xf32> to vector<16x16x192xf32>
    %102 = vector.shape_cast %101 : vector<16x16x192xf32> to vector<256x192xf32>
    %c2_89 = arith.constant 2 : index
    %c0_90 = arith.constant 0 : index
    %c0_91 = arith.constant 0 : index
    %103 = vector.load %arg6[%c2_89, %c0_90, %c0_91] : memref<3x192x128xf32, #tpu.memory_space<vmem>>, vector<1x192x128xf32>
    %104 = vector.shape_cast %103 : vector<1x192x128xf32> to vector<192x128xf32>
    %cst_92 = arith.constant dense<0.000000e+00> : vector<256x128xf32>
    %105 = tpu.matmul %102, %104, %cst_92 {dimension_numbers = #tpu.dot_dimension_numbers<[1], [0], [0], [1], [0, 0, 1, 1], [], []>} : vector<256x192xf32>, vector<192x128xf32>, vector<256x128xf32> -> vector<256x128xf32>
    %106 = arith.addf %100, %105 : vector<256x128xf32>
    %cst_93 = arith.constant 0.000000e+00 : f32
    %107 = vector.broadcast %cst_93 : f32 to vector<256x128xf32>
    %108 = arith.maximumf %106, %107 : vector<256x128xf32>
    %109 = vector.shape_cast %108 : vector<256x128xf32> to vector<16x16x128xf32>
    %c1_94 = arith.constant 1 : index
    %c1_95 = arith.constant 1 : index
    %c0_96 = arith.constant 0 : index
    %110 = vector.load %arg12[%c1_94, %c1_95, %c0_96] : memref<18x18x128xf32, #tpu.memory_space<vmem>>, vector<16x16x128xf32>
    tpu.vector_store %arg12[%c1_94, %c1_95, %c0_96], %109 {strides = array<i32>} : memref<18x18x128xf32, #tpu.memory_space<vmem>>, vector<16x16x128xf32>,
    %c0_97 = arith.constant 0 : index
    %c0_98 = arith.constant 0 : index
    %c0_99 = arith.constant 0 : index
    %111 = vector.load %arg12[%c0_97, %c0_98, %c0_99] : memref<18x18x128xf32, #tpu.memory_space<vmem>>, vector<18x18x128xf32>
    %112 = vector.extract_strided_slice %111 {offsets = [0, 0, 0], sizes = [18, 16, 128], strides = [1, 1, 1]} : vector<18x18x128xf32> to vector<18x16x128xf32>
    %113 = vector.extract_strided_slice %111 {offsets = [0, 1, 0], sizes = [18, 16, 128], strides = [1, 1, 1]} : vector<18x18x128xf32> to vector<18x16x128xf32>
    %114 = vector.extract_strided_slice %111 {offsets = [0, 2, 0], sizes = [18, 16, 128], strides = [1, 1, 1]} : vector<18x18x128xf32> to vector<18x16x128xf32>
    %115 = tpu.concatenate %112, %113, %114 in 2 : vector<18x16x128xf32>, vector<18x16x128xf32>, vector<18x16x128xf32> -> vector<18x16x384xf32>
    %c0_100 = arith.constant 0 : index
    %c0_101 = arith.constant 0 : index
    %116 = vector.load %arg9[%c0_100, %c0_101] : memref<1x128xf32, #tpu.memory_space<vmem>>, vector<1x128xf32>
    %117 = vector.broadcast %116 : vector<1x128xf32> to vector<256x128xf32>
    %118 = arith.addf %117, %106 : vector<256x128xf32>
    %119 = vector.extract_strided_slice %115 {offsets = [0, 0, 0], sizes = [16, 16, 384], strides = [1, 1, 1]} : vector<18x16x384xf32> to vector<16x16x384xf32>
    %120 = vector.shape_cast %119 : vector<16x16x384xf32> to vector<256x384xf32>
    %c0_102 = arith.constant 0 : index
    %c0_103 = arith.constant 0 : index
    %c0_104 = arith.constant 0 : index
    %121 = vector.load %arg8[%c0_102, %c0_103, %c0_104] : memref<3x384x128xf32, #tpu.memory_space<vmem>>, vector<1x384x128xf32>
    %122 = vector.shape_cast %121 : vector<1x384x128xf32> to vector<384x128xf32>
    %cst_105 = arith.constant dense<0.000000e+00> : vector<256x128xf32>
    %123 = tpu.matmul %120, %122, %cst_105 {dimension_numbers = #tpu.dot_dimension_numbers<[1], [0], [0], [1], [0, 0, 1, 1], [], []>} : vector<256x384xf32>, vector<384x128xf32>, vector<256x128xf32> -> vector<256x128xf32>
    %124 = arith.addf %118, %123 : vector<256x128xf32>
    %125 = vector.extract_strided_slice %115 {offsets = [1, 0, 0], sizes = [16, 16, 384], strides = [1, 1, 1]} : vector<18x16x384xf32> to vector<16x16x384xf32>
    %126 = vector.shape_cast %125 : vector<16x16x384xf32> to vector<256x384xf32>
    %c1_106 = arith.constant 1 : index
    %c0_107 = arith.constant 0 : index
    %c0_108 = arith.constant 0 : index
    %127 = vector.load %arg8[%c1_106, %c0_107, %c0_108] : memref<3x384x128xf32, #tpu.memory_space<vmem>>, vector<1x384x128xf32>
    %128 = vector.shape_cast %127 : vector<1x384x128xf32> to vector<384x128xf32>
    %cst_109 = arith.constant dense<0.000000e+00> : vector<256x128xf32>
    %129 = tpu.matmul %126, %128, %cst_109 {dimension_numbers = #tpu.dot_dimension_numbers<[1], [0], [0], [1], [0, 0, 1, 1], [], []>} : vector<256x384xf32>, vector<384x128xf32>, vector<256x128xf32> -> vector<256x128xf32>
    %130 = arith.addf %124, %129 : vector<256x128xf32>
    %131 = vector.extract_strided_slice %115 {offsets = [2, 0, 0], sizes = [16, 16, 384], strides = [1, 1, 1]} : vector<18x16x384xf32> to vector<16x16x384xf32>
    %132 = vector.shape_cast %131 : vector<16x16x384xf32> to vector<256x384xf32>
    %c2_110 = arith.constant 2 : index
    %c0_111 = arith.constant 0 : index
    %c0_112 = arith.constant 0 : index
    %133 = vector.load %arg8[%c2_110, %c0_111, %c0_112] : memref<3x384x128xf32, #tpu.memory_space<vmem>>, vector<1x384x128xf32>
    %134 = vector.shape_cast %133 : vector<1x384x128xf32> to vector<384x128xf32>
    %cst_113 = arith.constant dense<0.000000e+00> : vector<256x128xf32>
    %135 = tpu.matmul %132, %134, %cst_113 {dimension_numbers = #tpu.dot_dimension_numbers<[1], [0], [0], [1], [0, 0, 1, 1], [], []>} : vector<256x384xf32>, vector<384x128xf32>, vector<256x128xf32> -> vector<256x128xf32>
    %136 = arith.addf %130, %135 : vector<256x128xf32>
    %137 = vector.shape_cast %136 : vector<256x128xf32> to vector<16x16x128xf32>
    %c0_114 = arith.constant 0 : index
    %c0_115 = arith.constant 0 : index
    %c0_116 = arith.constant 0 : index
    %c0_117 = arith.constant 0 : index
    %138 = vector.load %arg10[%c0_114, %c0_115, %c0_116, %c0_117] : memref<1x16x16x128xf32, #tpu.memory_space<vmem>>, vector<1x16x16x128xf32>
    %139 = vector.shape_cast %138 : vector<1x16x16x128xf32> to vector<16x16x128xf32>
    %140 = vector.shape_cast %137 : vector<16x16x128xf32> to vector<1x16x16x128xf32>
    tpu.vector_store %arg10[%c0_114, %c0_115, %c0_116, %c0_117], %140 {strides = array<i32>} : memref<1x16x16x128xf32, #tpu.memory_space<vmem>>, vector<1x16x16x128xf32>,
    return
  }
  func.func @transform_0(%arg0: i32) -> (i32, i32, i32, i32) {
    %c0_i32 = arith.constant 0 : i32
    %c0_i32_0 = arith.constant 0 : i32
    %c0_i32_1 = arith.constant 0 : i32
    %c0_i32_2 = arith.constant 0 : i32
    return %arg0, %c0_i32, %c0_i32_0, %c0_i32_1 : i32, i32, i32, i32
  }
  func.func @transform_1(%arg0: i32) -> (i32, i32, i32) {
    %c0_i32 = arith.constant 0 : i32
    %c0_i32_0 = arith.constant 0 : i32
    %c0_i32_1 = arith.constant 0 : i32
    %c0_i32_2 = arith.constant 0 : i32
    return %c0_i32, %c0_i32_0, %c0_i32_1 : i32, i32, i32
  }
  func.func @transform_2(%arg0: i32) -> (i32, i32) {
    %c0_i32 = arith.constant 0 : i32
    %c0_i32_0 = arith.constant 0 : i32
    %c0_i32_1 = arith.constant 0 : i32
    return %c0_i32, %c0_i32_0 : i32, i32
  }
  func.func @transform_3(%arg0: i32) -> (i32, i32, i32) {
    %c0_i32 = arith.constant 0 : i32
    %c0_i32_0 = arith.constant 0 : i32
    %c0_i32_1 = arith.constant 0 : i32
    %c0_i32_2 = arith.constant 0 : i32
    return %c0_i32, %c0_i32_0, %c0_i32_1 : i32, i32, i32
  }
  func.func @transform_4(%arg0: i32) -> (i32, i32) {
    %c0_i32 = arith.constant 0 : i32
    %c0_i32_0 = arith.constant 0 : i32
    %c0_i32_1 = arith.constant 0 : i32
    return %c0_i32, %c0_i32_0 : i32, i32
  }
  func.func @transform_5(%arg0: i32) -> (i32, i32, i32) {
    %c0_i32 = arith.constant 0 : i32
    %c0_i32_0 = arith.constant 0 : i32
    %c0_i32_1 = arith.constant 0 : i32
    %c0_i32_2 = arith.constant 0 : i32
    return %c0_i32, %c0_i32_0, %c0_i32_1 : i32, i32, i32
  }
  func.func @transform_6(%arg0: i32) -> (i32, i32) {
    %c0_i32 = arith.constant 0 : i32
    %c0_i32_0 = arith.constant 0 : i32
    %c0_i32_1 = arith.constant 0 : i32
    return %c0_i32, %c0_i32_0 : i32, i32
  }
  func.func @transform_7(%arg0: i32) -> (i32, i32, i32) {
    %c0_i32 = arith.constant 0 : i32
    %c0_i32_0 = arith.constant 0 : i32
    %c0_i32_1 = arith.constant 0 : i32
    %c0_i32_2 = arith.constant 0 : i32
    return %c0_i32, %c0_i32_0, %c0_i32_1 : i32, i32, i32
  }
  func.func @transform_8(%arg0: i32) -> (i32, i32) {
    %c0_i32 = arith.constant 0 : i32
    %c0_i32_0 = arith.constant 0 : i32
    %c0_i32_1 = arith.constant 0 : i32
    return %c0_i32, %c0_i32_0 : i32, i32
  }
  func.func @transform_9(%arg0: i32) -> (i32, i32, i32, i32) {
    %c0_i32 = arith.constant 0 : i32
    %c0_i32_0 = arith.constant 0 : i32
    %c0_i32_1 = arith.constant 0 : i32
    %c0_i32_2 = arith.constant 0 : i32
    return %arg0, %c0_i32, %c0_i32_0, %c0_i32_1 : i32, i32, i32, i32
  }
}

</mosaic_0001>

<bundles_post_ra>
// kernel: tpu_custom_call.1
= control target key start
LH: loop header
LB: loop body
LE: loop exit
PB: predicated region body
PF: predicated region fallthrough
CT: control target
= control target key end

     0   :  { %14 = vsyncpa [#allocation5], 0  ;;  %s14956_s0 = inlined_call_operand.hbm [shape: f32[2,16,16,32], index: 0, kind: input, shape index: {}]   ;;  %s14957_s1 = inlined_call_operand.vmem [shape: f32[3,96,64], index: 1, kind: input, shape index: {}]   ;;  %s14958_s2 = inlined_call_operand.vmem [shape: f32[1,64], index: 2, kind: input, shape index: {}]   ;;  %s14959_s3 = inlined_call_operand.vmem [shape: f32[3,192,64], index: 3, kind: input, shape index: {}]   ;;  %s14960_s4 = inlined_call_operand.vmem [shape: f32[1,64], index: 4, kind: input, shape index: {}]   ;;  %s14961_s5 = inlined_call_operand.hbm [shape: f32[3,192,128], index: 5, kind: input, shape index: {}]   ;;  %s14962_s6 = inlined_call_operand.vmem [shape: f32[1,128], index: 6, kind: input, shape index: {}]   ;;  %s14963_s7 = inlined_call_operand.vmem [shape: f32[3,384,128], index: 7, kind: input, shape index: {}]   ;;  %s14964_s8 = inlined_call_operand.vmem [shape: f32[1,128], index: 8, kind: input, shape index: {}]   ;;  %s14965_s9 = inlined_call_operand.hbm [shape: f32[2,16,16,128], index: 9, kind: output, shape index: {}]  }
   0x1   :  { %16 = vsyncpa [#allocation5 + $0x1], 0 }
   0x2   :  { %17 = vsyncpa [#allocation8], 0 }
   0x3   :  { %18 = vsyncpa [#allocation6], 0 }
   0x4   :  { %20 = vsyncpa [#allocation6 + $0x1], 0  ;;  %s9847_s30 = smov 0   ;;  %s9849_s10 = smov 0  }
   0x5   :  { %s9851_s11 = smov 0   ;;  %s9853_s12 = smov 0  }
   0x6 LB: > { %s9868_s13 = sadd.s32 4294967295, %s9784_s12   ;;  %s7241_s14 = sadd.s32 4294967294, %s9784_s12   ;;  %s9784_s12 = sphi %s9853_s12, %s15486_s12   ;;  %s9780_s11 = sphi %s9851_s11, %s15489_s11   ;;  %s9776_s10 = sphi %s9849_s10, %s15488_s10   ;;  %s9772_s30 = sphi %s9847_s30, %s15487_s30  }
   0x7   : > { %p46_p0 = scmp.ne.s32.totalorder %s9776_s10, %s9772_s30  ;;  %p14966_p1 = scmp.eq.s32.totalorder %s9868_s13, 0 }
   0x8   : > { %p244_p3 = scmp.eq.s32.totalorder %s7241_s14, 1  ;;  %p7242_p5 = scmp.ge.s32.totalorder %s9784_s12, 1 }
   0x9   : > { %p9877_p4 = por %p14966_p1, %p46_p0  ;;  %p251_p7 = scmp.lt.s32.totalorder %s9784_s12, 3 }
   0xa   : > { %p9882_p6 = por %p244_p3, %p46_p0  ;;  %s9786_s18 = smov [#allocation7]  }
   0xb   : > { %s15123_s15 = scalar_select %p9877_p4, 1, 0 }
   0xc   : > { %s15124_s16 = scalar_select %p9882_p6, 1, 0 }
   0xd   : > { %p9887_p8 = pnand %p7242_p5, %p251_p7  ;;  %s275_s19 = sshll.u32 %s9786_s18, 4  ;;  %s9891_s19 = int_to_ptr.vmem [resolvable:$true] %s275_s19 }
   0xe   : > { %15125 = sst [smem:[#allocation13_spill]] %s15124_s16  ;;  %s9903_s21 = sadd.s32 1, %s9784_s12  }
   0xf   : > { %s15126_s17 = scalar_select %p9887_p8, 1, 0 }
  0x10   : > { %p9435_p9 = pneg %p9887_p8  ;;  %15128 = sst [smem:[#allocation14_spill]] %s9903_s21 }
  0x11   : > { %s33_s22 = sadd.s32 1, %s9780_s11  ;;  %s30_s23 = ssub.s32 %s9784_s12, %s9903_s21 }
  0x12   : > { %p9898_p11 = pnand %p9435_p9, %p14966_p1  ;;  %s9656_s26 = scalar_lea.hbm %s14961_s5, 9216 }
  0x13   : > { %p9657_p12 = scmp.ne.s32.totalorder %s14961_s5, %s9656_s26  ;;  %p9663_p5 = scmp.lt.u32.totalorder %s9656_s26, %s14961_s5 }
  0x14   : > { %p9658_p13 = pneg %p9898_p11 }
  0x16   : > { %p9659_p0 = pnand %p9658_p13, %p9657_p12 }
  0x18   : > { %p9660_p3 = pneg %p9659_p0 }
  0x1a   : > { %p9665_p7 = pnand %p9663_p5, %p9660_p3 }
  0x1c   : > { %9668 = shalt.err (!%p9665_p7)
}
  0x1d   : > { %s9669_s18 = scalar_lea.vmem %s9891_s19, 9216  ;;  %p9677_p2 = scmp.lt.s32.totalorder %s9891_s19, %s9891_s19 }
  0x1e   : > { %p9670_p9 = scmp.ne.s32.totalorder %s9891_s19, %s9669_s18  ;;  %p9678_p6 = scmp.lt.s32.totalorder %s9669_s18, %s9669_s18 }
  0x20   : > { %p9672_p10 = pnand %p9670_p9, %p9658_p13  ;;  %p9679_p4 = por %p9678_p6, %p9677_p2 }
  0x22   : > { %p9673_p1 = pneg %p9672_p10 }
  0x24   : > { %p9680_p8 = pnand %p9679_p4, %p9673_p1 }
  0x26   : > { %9683 = shalt.err (!%p9680_p8)
}
  0x27   : > { %s14972_s24 = smov 128   ;;  %s9788_s25 = smov 8  }
  0x28   : > { %9438 = dma.hbm_to_vmem [thread:$0]  (!%p9898_p11), %s14961_s5, 9216, %s9891_s19, [#allocation8], %s14972_s24, %s14972_s24, %s9788_s25  }
  0x29   : > { %p31_p1 = scmp.eq.s32.totalorder %s30_s23, 0  ;;  %p40_p2 = scmp.ne.s32.totalorder %s9780_s11, %s9776_s10 }
  0x2a   : > { %p41_p4 = scmp.eq.s32.totalorder %s9784_s12, 0  ;;  %p9448_p6 = scmp.lt.s32.totalorder %s9784_s12, 2 }
  0x2b   : > { %s9937_s28 = scalar_select %p31_p1, %s9780_s11, %s33_s22  }
  0x2c   : > { %p42_p8 = por %p41_p4, %p40_p2  ;;  %p15129_p10 = scmp.eq.s32.totalorder %s9868_s13, 1 }
  0x2d   : > { %s298_s20 = sand.u32 1, %s9780_s11   ;;  %s7749_s14 = sshll.u32 %s9784_s12, 12 }
  0x2e   : > { %p9941_p12 = por %p15129_p10, %p40_p2  ;;  %s7245_s18 = sshll.u32 %s298_s20, 8 }
  0x2f   : > { %s9950_s26 = scalar_lea.hbm %s14956_s0, %s7749_s14  ;;  %s302_s19 = scalar_lea.vmem [#allocation4], %s7245_s18 }
  0x30   : > { %s309_s22 = sshll.u32 %s302_s19, 4  ;;  %p9952_p11 = pnand %p9448_p6, %p42_p8  ;;  %s9956_s22 = int_to_ptr.vmem [resolvable:$true] %s309_s22 }
  0x31   : > { %s9958_s27 = scalar_lea.sflag [#allocation5], %s298_s20  ;;  %s9684_s24 = scalar_lea.hbm %s9950_s26, 4096 }
  0x32   : > { %p9685_p13 = scmp.ne.s32.totalorder %s9950_s26, %s9684_s24  ;;  %p9686_p0 = pneg %p9952_p11 }
  0x33   : > { %s9689_s14 = scalar_lea.hbm %s14956_s0, 8192  ;;  %p9690_p7 = scmp.lt.u32.totalorder %s9950_s26, %s14956_s0 }
  0x34   : > { %p9687_p3 = pnand %p9686_p0, %p9685_p13  ;;  %p9691_p9 = scmp.lt.u32.totalorder %s9689_s14, %s9684_s24 }
  0x35   : > { %p9693_p2 = scmp.lt.u32.totalorder %s9684_s24, %s9950_s26 }
  0x36   : > { %p9688_p5 = pneg %p9687_p3  ;;  %p9692_p1 = por %p9691_p9, %p9690_p7 }
  0x38   : > { %p9694_p4 = por %p9693_p2, %p9692_p1 }
  0x3a   : > { %p9695_p6 = pnand %p9694_p4, %p9688_p5 }
  0x3c   : > { %9698 = shalt.err (!%p9695_p6)
}
  0x3d   : > { %s9699_s20 = scalar_lea.vmem %s9956_s22, 4096  ;;  %s9789_s16 = smov [#allocation4]  }
  0x3e   : > { %p9700_p8 = scmp.ne.s32.totalorder %s9956_s22, %s9699_s20  ;;  %s9704_s21 = sshll.u32 %s9789_s16, 4  ;;  %s9705_s21 = int_to_ptr.vmem [resolvable:$false] %s9704_s21 }
  0x3f   : > { %s9706_s18 = scalar_lea.vmem %s9705_s21, 8192  ;;  %p9707_p3 = scmp.lt.s32.totalorder %s9956_s22, %s9705_s21 }
  0x40   : > { %p9702_p10 = pnand %p9700_p8, %p9686_p0  ;;  %p9708_p7 = scmp.lt.s32.totalorder %s9706_s18, %s9699_s20 }
  0x42   : > { %p9703_p13 = pneg %p9702_p10  ;;  %p9709_p9 = por %p9708_p7, %p9707_p3 }
  0x44   : > { %p9710_p1 = pnand %p9709_p9, %p9703_p13 }
  0x46   : > { %9713 = shalt.err (!%p9710_p1)
}
  0x47   : > { %s15132_s24 = smov 128   ;;  %p15133_p0 = scmp.ne.s32.totalorder %s15126_s17, 0 }
  0x48   : > { %9442 = dma.hbm_to_vmem [thread:$0]  (!%p9952_p11), %s9950_s26, 4096, %s9956_s22, %s9958_s27, %s15132_s24, %s15132_s24, %s9788_s25  }
  0x49   : > { %321 = sbr.rel (%p15133_p0) target bundleno = 2473 (0x9a9), region = 56 }
  0x50   : > { %s9992_s14 = sand.u32 1, %s9776_s10   ;;  %p15134_p5 = scmp.ne.s32.totalorder %s15123_s15, 0 }
  0x51   : > { %s7249_s19 = sshll.u32 %s9992_s14, 8  ;;  %s324_s20 = scalar_lea.sflag [#allocation5], %s9992_s14 }
  0x52   : > { %s9998_s23 = scalar_lea.vmem [#allocation4], %s7249_s19 }
  0x53   : > { %9759 = dma.done.wait (%p15134_p5), %s324_s20, 4096  }
  0x54   : > { %9761 = vsyncadd (%p15134_p5), %s324_s20, 4294963200  ;;  %p15135_p11 = scmp.eq.s32.totalorder %s9868_s13, 0 }
  0x56   : > { %9763 = dma.done.wait (%p15135_p11), [#allocation8], 9216   ;;  %p15136_p2 = pmov %p15135_p11 }
  0x57   : > { %v9790_v0 = vmov 0.0   ;;  %vm366_vm0 = vcmask 523264   ;;  %vm487_vm1 = vcmask 261120   ;;  %vm860_vm2 = vcmask 1045504   ;;  %v455_v3 = vld [vmem:[%s9998_s23] sm:$0xff]  ;;  %v456_v4 = vld [vmem:[%s9998_s23 + $0x8] sm:$0xff] }
  0x58   : > { %9765 = vsyncadd (%p15136_p2), [#allocation8], 4294958080  ;;  %412 = vst [vmem:[#allocation3] sm:$0xff] %v9790_v0  ;;  %vm661_vm3 = vcmask 1046528   ;;  %v862_v1 = vrot.slane %v9790_v0, 2  ;;  %v10012_v2 = vrot.slane %v9790_v0, 1 }
  0x59   : > { %413 = vst [vmem:[#allocation3 + $0x8] sm:$0xff] %v9790_v0  ;;  %414 = vst [vmem:[#allocation3 + $0x10] sm:$0x3] %v9790_v0  ;;  %v457_v5 = vld [vmem:[%s9998_s23 + $0x10] sm:$0xff]  ;;  %v488_v6 = vsel %vm487_vm1, %v455_v3, 0.0  ;;  %v489_v7 = vsel %vm487_vm1, %v456_v4, 0.0 }
  0x5a   : > { %416 = vst [vmem:[#allocation3 + $0x198] sm:$0xff] %v9790_v0  ;;  %418 = vst [vmem:[#allocation3 + $0x1a8] sm:$0x3] %v9790_v0  ;;  %v458_v8 = vld [vmem:[%s9998_s23 + $0x18] sm:$0xff]  ;;  %v490_v9 = vsel %vm487_vm1, %v457_v5, 0.0  ;;  %v459_v10 = vld [vmem:[%s9998_s23 + $0x20] sm:$0xff] }
  0x5b   : > { %420 = vst [vmem:[#allocation3 + $0x18] sm:$0x1] %v9790_v0  ;;  %421 = vst [vmem:[#allocation3 + $0x30] sm:$0x1] %v9790_v0  ;;  %v460_v11 = vld [vmem:[%s9998_s23 + $0x28] sm:$0xff]  ;;  %v491_v14 = vsel %vm487_vm1, %v458_v8, 0.0 }
  0x5c   : > { %422 = vst [vmem:[#allocation3 + $0x48] sm:$0x1] %v9790_v0  ;;  %423 = vst [vmem:[#allocation3 + $0x60] sm:$0x1] %v9790_v0  ;;  %v492_v15 = vsel %vm487_vm1, %v459_v10, 0.0  ;;  %v493_v16 = vsel %vm487_vm1, %v460_v11, 0.0 }
  0x5d   : > { %424 = vst [vmem:[#allocation3 + $0x78] sm:$0x1] %v9790_v0  ;;  %425 = vst [vmem:[#allocation3 + $0x90] sm:$0x1] %v9790_v0  ;;  %v461_v21 = vld [vmem:[%s9998_s23 + $0x30] sm:$0xff]  ;;  %v462_v22 = vld [vmem:[%s9998_s23 + $0x38] sm:$0xff] }
  0x5e   : > { %426 = vst [vmem:[#allocation3 + $0xa8] sm:$0x1] %v9790_v0  ;;  %427 = vst [vmem:[#allocation3 + $0xc0] sm:$0x1] %v9790_v0  ;;  %v494_v23 = vsel %vm487_vm1, %v461_v21, 0.0  ;;  %v495_v24 = vsel %vm487_vm1, %v462_v22, 0.0 }
  0x5f   : > { %428 = vst [vmem:[#allocation3 + $0xd8] sm:$0x1] %v9790_v0  ;;  %429 = vst [vmem:[#allocation3 + $0xf0] sm:$0x1] %v9790_v0  ;;  %v463_v25 = vld [vmem:[%s9998_s23 + $0x40] sm:$0xff]  ;;  %v464_v26 = vld [vmem:[%s9998_s23 + $0x48] sm:$0xff] }
  0x60   : > { %430 = vst [vmem:[#allocation3 + $0x108] sm:$0x1] %v9790_v0  ;;  %431 = vst [vmem:[#allocation3 + $0x120] sm:$0x1] %v9790_v0  ;;  %v465_v27 = vld [vmem:[%s9998_s23 + $0x50] sm:$0xff]  ;;  %v466_v32 = vld [vmem:[%s9998_s23 + $0x58] sm:$0xff] }
  0x61   : > { %432 = vst [vmem:[#allocation3 + $0x138] sm:$0x1] %v9790_v0  ;;  %433 = vst [vmem:[#allocation3 + $0x150] sm:$0x1] %v9790_v0  ;;  %v467_v33 = vld [vmem:[%s9998_s23 + $0x60] sm:$0xff]  ;;  %v468_v34 = vld [vmem:[%s9998_s23 + $0x68] sm:$0xff] }
  0x62   : > { %434 = vst [vmem:[#allocation3 + $0x168] sm:$0x1] %v9790_v0  ;;  %435 = vst [vmem:[#allocation3 + $0x180] sm:$0x1] %v9790_v0  ;;  %s9791_s15 = smov 64   ;;  %s9792_s17 = smov 32  }
  0x63   : > { %438 = vst [vmem:[#allocation3 + $0x29] sm:$0x1] %v9790_v0  ;;  %439 = vst [vmem:[#allocation3 + $0x41] sm:$0x1] %v9790_v0  ;;  %v496_v35 = vsel %vm487_vm1, %v463_v25, 0.0  ;;  %v497_v36 = vsel %vm487_vm1, %v464_v26, 0.0 }
  0x64   : > { %440 = vst [vmem:[#allocation3 + $0x59] sm:$0x1] %v9790_v0  ;;  %441 = vst [vmem:[#allocation3 + $0x71] sm:$0x1] %v9790_v0  ;;  %v498_v37 = vsel %vm487_vm1, %v465_v27, 0.0  ;;  %v499_v38 = vsel %vm487_vm1, %v466_v32, 0.0 }
  0x65   : > { %442 = vst [vmem:[#allocation3 + $0x89] sm:$0x1] %v9790_v0  ;;  %443 = vst [vmem:[#allocation3 + $0xa1] sm:$0x1] %v9790_v0  ;;  %v469_v39 = vld [vmem:[%s9998_s23 + $0x70] sm:$0xff]  ;;  %v470_v40 = vld [vmem:[%s9998_s23 + $0x78] sm:$0xff] }
  0x66   : > { %444 = vst [vmem:[#allocation3 + $0xb9] sm:$0x1] %v9790_v0  ;;  %445 = vst [vmem:[#allocation3 + $0xd1] sm:$0x1] %v9790_v0  ;;  %v500_v41 = vsel %vm487_vm1, %v467_v33, 0.0  ;;  %v501_v42 = vsel %vm487_vm1, %v468_v34, 0.0 }
  0x67   : > { %446 = vst [vmem:[#allocation3 + $0xe9] sm:$0x1] %v9790_v0  ;;  %447 = vst [vmem:[#allocation3 + $0x101] sm:$0x1] %v9790_v0  ;;  %v502_v43 = vsel %vm487_vm1, %v469_v39, 0.0  ;;  %v503_v44 = vsel %vm487_vm1, %v470_v40, 0.0 }
  0x68   : > { %448 = vst [vmem:[#allocation3 + $0x119] sm:$0x1] %v9790_v0  ;;  %449 = vst [vmem:[#allocation3 + $0x131] sm:$0x1] %v9790_v0  ;;  %v471_v45 = vld [vmem:[%s9998_s23 + $0x80] sm:$0xff]  ;;  %v472_v46 = vld [vmem:[%s9998_s23 + $0x88] sm:$0xff] }
  0x69   : > { %450 = vst [vmem:[#allocation3 + $0x149] sm:$0x1] %v9790_v0  ;;  %451 = vst [vmem:[#allocation3 + $0x161] sm:$0x1] %v9790_v0  ;;  %v504_v47 = vsel %vm487_vm1, %v471_v45, 0.0  ;;  %v505_v48 = vsel %vm487_vm1, %v472_v46, 0.0 }
  0x6a   : > { %452 = vst [vmem:[#allocation3 + $0x179] sm:$0x1] %v9790_v0  ;;  %453 = vst [vmem:[#allocation3 + $0x191] sm:$0x1] %v9790_v0  ;;  %v473_v49 = vld [vmem:[%s9998_s23 + $0x90] sm:$0xff]  ;;  %v474_v50 = vld [vmem:[%s9998_s23 + $0x98] sm:$0xff] }
  0x6b   : > { %419 = vst [vmem:[#allocation3] sm:$0x1] %v9790_v0  ;;  %436 = vst [vmem:[#allocation3 + $0x198] sm:$0x1] %v9790_v0  ;;  %v506_v54 = vsel %vm487_vm1, %v473_v49, 0.0  ;;  %v507_v55 = vsel %vm487_vm1, %v474_v50, 0.0 }
  0x6c   : > { %437 = vst [vmem:[#allocation3 + $0x11] sm:$0x1] %v9790_v0  ;;  %454 = vst [vmem:[#allocation3 + $0x1a9] sm:$0x1] %v9790_v0  ;;  %v475_v32 = vld [vmem:[%s9998_s23 + $0xa0] sm:$0xff]  ;;  %v478_v39 = vld [vmem:[%s9998_s23 + $0xb8] sm:$0xff] }
  0x6d   : > { %367 = vst.msk [vmem:[#allocation2] sm:$0xff] %vm366_vm0, %v9790_v0  ;;  %368 = vst.msk [vmem:[#allocation2 + $0x8] sm:$0xff] %vm366_vm0, %v9790_v0  ;;  %v1132_v40 = vld [vmem:[%s14957_s1] sm:$0xff]  ;;  %v480_v46 = vld [vmem:[%s9998_s23 + $0xc8] sm:$0xff]  ;;  %v508_v49 = vsel %vm487_vm1, %v475_v32, 0.0  ;;  %vm1144_vm4 = vcmask 785408  }
  0x6e   : > { %372 = vst.msk [vmem:[#allocation2 + $0x198] sm:$0xff] %vm366_vm0, %v9790_v0  ;;  %373 = vst.msk [vmem:[#allocation2 + $0x1a0] sm:$0xff] %vm366_vm0, %v9790_v0  ;;  %v479_v45 = vld [vmem:[%s9998_s23 + $0xc0] sm:$0xff]  ;;  %vm375_vm5 = vcmask 516096   ;;  %vm369_vm6 = vcmask 517120   ;;  %s14809_s20 = scalar_lea.vmem [#allocation9], %s7249_s19 }
  0x6f   : > { %521 = vst [vmem:[#allocation3 + $0x19] sm:$0xff] %v488_v6  ;;  %522 = vst [vmem:[#allocation3 + $0x21] sm:$0xff] %v489_v7  ;;  %s7750_s19 = sshll.u32 %s9868_s13, 12  ;;  %s7158_s25 = sshll.u32 %s14809_s20, 4  ;;  %s14910_s25 = int_to_ptr.vmem [resolvable:$true] %s7158_s25 }
  0x70   : > { %523 = vst [vmem:[#allocation3 + $0x31] sm:$0xff] %v490_v9  ;;  %524 = vst [vmem:[#allocation3 + $0x39] sm:$0xff] %v491_v14  ;;  %s14908_s27 = scalar_lea.hbm %s14965_s9, %s7750_s19  ;;  %s7145_s13 = scalar_lea.sflag [#allocation6], %s9992_s14 }
  0x71   : > { %525 = vst [vmem:[#allocation3 + $0x49] sm:$0xff] %v492_v15  ;;  %526 = vst [vmem:[#allocation3 + $0x51] sm:$0xff] %v493_v16  ;;  %s9794_s16 = smov [#allocation9]  }
  0x72   : > { %v10023_v12 = vld [vmem:[#allocation3] sm:$0xff]  ;;  %527 = vst [vmem:[#allocation3 + $0x61] sm:$0xff] %v494_v23  ;;  %528 = vst [vmem:[#allocation3 + $0x69] sm:$0xff] %v495_v24  ;;  %s9718_s21 = sshll.u32 %s9794_s16, 4  ;;  %s9719_s21 = int_to_ptr.vmem [resolvable:$false] %s9718_s21 }
  0x73   : > { %v555_v13 = vld [vmem:[#allocation3 + $0x10] sm:$0x3]  ;;  %v861_v17 = vrot.slane %v10023_v12, 2  ;;  %v662_v18 = vrot.slane %v10023_v12, 1  ;;  %529 = vst [vmem:[#allocation3 + $0x79] sm:$0xff] %v496_v35  ;;  %530 = vst [vmem:[#allocation3 + $0x81] sm:$0xff] %v497_v36  ;;  %p9721_p10 = scmp.lt.s32.totalorder %s14910_s25, %s9719_s21 }
  0x74   : > { %v864_v19 = vrot.slane %v555_v13, 2  ;;  %v665_v20 = vrot.slane %v555_v13, 1  ;;  %531 = vst [vmem:[#allocation3 + $0x91] sm:$0xff] %v498_v37  ;;  %532 = vst [vmem:[#allocation3 + $0x99] sm:$0xff] %v499_v38  ;;  %v476_v37 = vld [vmem:[%s9998_s23 + $0xa8] sm:$0xff]  ;;  %v477_v38 = vld [vmem:[%s9998_s23 + $0xb0] sm:$0xff] }
  0x75   : > { %v863_v28 = vsel %vm860_vm2, %v861_v17, %v862_v1  ;;  %v664_v29 = vsel %vm661_vm3, %v662_v18, %v10012_v2  ;;  %533 = vst [vmem:[#allocation3 + $0xa9] sm:$0xff] %v500_v41  ;;  %534 = vst [vmem:[#allocation3 + $0xb1] sm:$0xff] %v501_v42  ;;  %v1133_v41 = vld [vmem:[%s14957_s1 + $0x8] sm:$0xff]  ;;  %v1134_v42 = vld [vmem:[%s14957_s1 + $0x10] sm:$0xff]  ;;  %v509_v50 = vsel %vm487_vm1, %v476_v37, 0.0 }
  0x76   : > { %v865_v30 = vsel %vm860_vm2, %v862_v1, %v864_v19  ;;  %v666_v31 = vsel %vm661_vm3, %v10012_v2, %v665_v20  ;;  %951 = vrot.lane.b32.xlu1 %v863_v28, %s9791_s15  ;;  %752 = vrot.lane.b32.xlu0 %v664_v29, %s9792_s17  ;;  %535 = vst [vmem:[#allocation3 + $0xc1] sm:$0xff] %v502_v43  ;;  %536 = vst [vmem:[#allocation3 + $0xc9] sm:$0xff] %v503_v44  ;;  %v10064_v51 = vld [vmem:[#allocation3 + $0x20] sm:$0xff]  ;;  %v558_v52 = vld [vmem:[#allocation3 + $0x28] sm:$0x3] }
  0x77   : > { %v10066_v53 = vld [vmem:[#allocation3 + $0x18] sm:$0xff]  ;;  %537 = vst [vmem:[#allocation3 + $0xd9] sm:$0xff] %v504_v47  ;;  %538 = vst [vmem:[#allocation3 + $0xe1] sm:$0xff] %v505_v48  ;;  %v668_v56 = vrot.slane %v10064_v51, 1  ;;  %v670_v57 = vrot.slane %v558_v52, 1  ;;  %v867_v59 = vrot.slane %v10064_v51, 2 }
  0x78   : > { %v667_v58 = vrot.slane %v10066_v53, 1  ;;  %539 = vst [vmem:[#allocation3 + $0xf1] sm:$0xff] %v506_v54  ;;  %540 = vst [vmem:[#allocation3 + $0xf9] sm:$0xff] %v507_v55  ;;  %v869_v60 = vrot.slane %v558_v52, 2  ;;  %v866_v61 = vrot.slane %v10066_v53, 2  ;;  %v10076_v62 = vld [vmem:[#allocation3 + $0x38] sm:$0xff] }
  0x79   : > { %v671_v63 = vsel %vm661_vm3, %v668_v56, %v670_v57  ;;  %v561_v1 = vld [vmem:[#allocation3 + $0x40] sm:$0x3]  ;;  %v10080_v3 = vld [vmem:[#allocation3 + $0x30] sm:$0xff]  ;;  %v673_v4 = vrot.slane %v10076_v62, 1  ;;  %v872_v9 = vrot.slane %v10076_v62, 2  ;;  %v10096_v17 = vld [vmem:[#allocation3 + $0x48] sm:$0xff] }
  0x7a   : > { %953 = vrot.lane.b32.xlu1 %v865_v30, %s9791_s15  ;;  %754 = vrot.lane.b32.xlu0 %v666_v31, %s9792_s17  ;;  %v669_v0 = vsel %vm661_vm3, %v667_v58, %v668_v56  ;;  %v870_v5 = vsel %vm860_vm2, %v867_v59, %v869_v60  ;;  %v868_v6 = vsel %vm860_vm2, %v866_v61, %v867_v59  ;;  %v675_v7 = vrot.slane %v561_v1, 1  ;;  %v10094_v15 = vld [vmem:[#allocation3 + $0x50] sm:$0xff]  ;;  %v564_v16 = vld [vmem:[#allocation3 + $0x58] sm:$0x3]  ;;  %v10110_v28 = vld [vmem:[#allocation3 + $0x68] sm:$0xff] }
  0x7b   : > { %v672_v8 = vrot.slane %v10080_v3, 1  ;;  %v874_v13 = vrot.slane %v561_v1, 2  ;;  %v871_v14 = vrot.slane %v10080_v3, 2  ;;  %v678_v18 = vrot.slane %v10094_v15, 1  ;;  %v567_v29 = vld [vmem:[#allocation3 + $0x70] sm:$0x3] }
  0x7c   : > { %v676_v10 = vsel %vm661_vm3, %v673_v4, %v675_v7  ;;  %v680_v21 = vrot.slane %v564_v16, 1  ;;  %v677_v22 = vrot.slane %v10096_v17, 1  ;;  %v877_v23 = vrot.slane %v10094_v15, 2  ;;  %v10112_v30 = vld [vmem:[#allocation3 + $0x60] sm:$0xff]  ;;  %v1135_v44 = vld [vmem:[%s14957_s1 + $0x18] sm:$0xff]  ;;  %541 = vst [vmem:[#allocation3 + $0x109] sm:$0xff] %v508_v49 }
  0x7d   : > { %v674_v11 = vsel %vm661_vm3, %v672_v8, %v673_v4  ;;  %v875_v19 = vsel %vm860_vm2, %v872_v9, %v874_v13  ;;  %v873_v20 = vsel %vm860_vm2, %v871_v14, %v872_v9  ;;  %v879_v26 = vrot.slane %v564_v16, 2  ;;  %v481_v52 = vld [vmem:[%s9998_s23 + $0xd0] sm:$0xff]  ;;  %v482_v54 = vld [vmem:[%s9998_s23 + $0xd8] sm:$0xff]  ;;  %542 = vst [vmem:[#allocation3 + $0x111] sm:$0xff] %v509_v50  ;;  %v483_v60 = vld [vmem:[%s9998_s23 + $0xe0] sm:$0xff] }
  0x7e   : > { %758 = vrot.lane.b32.xlu1 %v671_v63, %s9792_s17  ;;  %756 = vrot.lane.b32.xlu0 %v669_v0, %s9792_s17  ;;  %v681_v24 = vsel %vm661_vm3, %v678_v18, %v680_v21  ;;  %v679_v25 = vsel %vm661_vm3, %v677_v22, %v678_v18  ;;  %v876_v27 = vrot.slane %v10096_v17, 2  ;;  %v683_v31 = vrot.slane %v10110_v28, 1  ;;  %v10148_v57 = vld [vmem:[#allocation3 + $0x80] sm:$0xff]  ;;  %v484_v61 = vld [vmem:[%s9998_s23 + $0xe8] sm:$0xff]  ;;  %v570_v63 = vld [vmem:[#allocation3 + $0x88] sm:$0x3] }
  0x7f   : > { %v880_v33 = vsel %vm860_vm2, %v877_v23, %v879_v26  ;;  %v685_v35 = vrot.slane %v567_v29, 1  ;;  %v682_v36 = vrot.slane %v10112_v30, 1  ;;  %v882_v43 = vrot.slane %v10110_v28, 2  ;;  %v10154_v0 = vld [vmem:[#allocation3 + $0x78] sm:$0xff]  ;;  %v573_v32 = vld [vmem:[#allocation3 + $0xa0] sm:$0x3] }
  0x80   : > { %v878_v34 = vsel %vm860_vm2, %v876_v27, %v877_v23  ;;  %v884_v47 = vrot.slane %v567_v29, 2  ;;  %v881_v48 = vrot.slane %v10112_v30, 2  ;;  %v510_v58 = vsel %vm487_vm1, %v477_v38, 0.0  ;;  %v1138_v23 = vld [vmem:[%s14957_s1 + $0x30] sm:$0xff]  ;;  %v1141_v37 = vld [vmem:[%s14957_s1 + $0x48] sm:$0xff]  ;;  %v10214_v50 = vld [vmem:[#allocation3 + $0xb0] sm:$0xff] }
  0x81   : > { %v686_v55 = vsel %vm661_vm3, %v683_v31, %v685_v35  ;;  %v684_v56 = vsel %vm661_vm3, %v682_v36, %v683_v31  ;;  %v511_v59 = vsel %vm487_vm1, %v478_v39, 0.0  ;;  %543 = vst [vmem:[#allocation3 + $0x121] sm:$0xff] %v510_v58  ;;  %v8483_v1 = vpack.c.bf16 %v1133_v41, %v1132_v40  ;;  %v10186_v31 = vld [vmem:[#allocation3 + $0x98] sm:$0xff]  ;;  %v1140_v36 = vld [vmem:[%s14957_s1 + $0x40] sm:$0xff] }
  0x82   : > { %957 = vrot.lane.b32.xlu1 %v870_v5, %s9791_s15  ;;  %955 = vrot.lane.b32.xlu0 %v868_v6, %s9791_s15  ;;  %544 = vst [vmem:[#allocation3 + $0x129] sm:$0xff] %v511_v59  ;;  %v512_v4 = vsel %vm487_vm1, %v479_v45, 0.0  ;;  %v513_v5 = vsel %vm487_vm1, %v480_v46, 0.0  ;;  %v8487_v6 = vpack.c.bf16 %v1135_v44, %v1134_v42  ;;  %v514_v7 = vsel %vm487_vm1, %v481_v52, 0.0  ;;  %v1142_v44 = vld [vmem:[%s14957_s1 + $0x50] sm:$0xff]  ;;  %v1143_v45 = vld [vmem:[%s14957_s1 + $0x58] sm:$0xff] }
  0x83   : > { %545 = vst [vmem:[#allocation3 + $0x139] sm:$0xff] %v512_v4  ;;  %546 = vst [vmem:[#allocation3 + $0x141] sm:$0xff] %v513_v5  ;;  %v515_v8 = vsel %vm487_vm1, %v482_v54, 0.0  ;;  %v688_v9 = vrot.slane %v10148_v57, 1  ;;  %v516_v13 = vsel %vm487_vm1, %v483_v60, 0.0  ;;  %v517_v14 = vsel %vm487_vm1, %v484_v61, 0.0  ;;  %8484 = vmatprep.subr.bf16.mxu0 %v8483_v1 }
  0x84   : > { %547 = vst [vmem:[#allocation3 + $0x151] sm:$0xff] %v514_v7  ;;  %548 = vst [vmem:[#allocation3 + $0x159] sm:$0xff] %v515_v8  ;;  %v885_v16 = vsel %vm860_vm2, %v882_v43, %v884_v47  ;;  %v883_v18 = vsel %vm860_vm2, %v881_v48, %v882_v43  ;;  %8486 = vmatpush3.bf16.msra.mxu0 %v8483_v1  ;;  %v887_v22 = vrot.slane %v10148_v57, 2  ;;  %v889_v27 = vrot.slane %v570_v63, 2  ;;  %v576_v52 = vld [vmem:[#allocation3 + $0xb8] sm:$0x3] }
  0x85   : > { %549 = vst [vmem:[#allocation3 + $0x169] sm:$0xff] %v516_v13  ;;  %550 = vst [vmem:[#allocation3 + $0x171] sm:$0xff] %v517_v14  ;;  %8488 = vmatprep.subr.bf16.mxu0 %v8487_v6  ;;  %v886_v29 = vrot.slane %v10154_v0, 2  ;;  %v693_v35 = vrot.slane %v10186_v31, 1  ;;  %v695_v40 = vrot.slane %v573_v32, 1  ;;  %v8499_v42 = vpack.c.bf16 %v1141_v37, %v1140_v36  ;;  %v485_v54 = vld [vmem:[%s9998_s23 + $0xf0] sm:$0xff] }
  0x86   : > { %762 = vrot.lane.b32.xlu1 %v676_v10, %s9792_s17  ;;  %760 = vrot.lane.b32.xlu0 %v674_v11, %s9792_s17  ;;  %v1136_v10 = vld [vmem:[%s14957_s1 + $0x20] sm:$0xff]  ;;  %v1137_v11 = vld [vmem:[%s14957_s1 + $0x28] sm:$0xff]  ;;  %v890_v38 = vsel %vm860_vm2, %v887_v22, %v889_v27  ;;  %v892_v43 = vrot.slane %v10186_v31, 2  ;;  %v894_v48 = vrot.slane %v573_v32, 2  ;;  %v8503_v58 = vpack.c.bf16 %v1143_v45, %v1142_v44 }
  0x87   : > { %v8491_v21 = vpack.c.bf16 %v1137_v11, %v1136_v10  ;;  %v888_v39 = vsel %vm860_vm2, %v886_v29, %v887_v22  ;;  %v696_v46 = vsel %vm661_vm3, %v693_v35, %v695_v40  ;;  %v698_v59 = vrot.slane %v10214_v50, 1  ;;  %v7286_v7 = vld [vmem:[%s14957_s1 + $0x68] sm:$0xff] }
  0x88   : > { %8490 = vmatpush3.bf16.msra.mxu0 %v8487_v6  ;;  %v700_v60 = vrot.slane %v576_v52, 1  ;;  %v518_v61 = vsel %vm487_vm1, %v485_v54, 0.0  ;;  %v7285_v6 = vld [vmem:[%s14957_s1 + $0x60] sm:$0xff]  ;;  %v897_v8 = vrot.slane %v10214_v50, 2  ;;  %v899_v13 = vrot.slane %v576_v52, 2  ;;  %v10261_v36 = vld [vmem:[#allocation3 + $0xd8] sm:$0xff] }
  0x89   : > { %8492 = vmatprep.subr.bf16.mxu0 %v8491_v21  ;;  %551 = vst [vmem:[#allocation3 + $0x181] sm:$0xff] %v518_v61 }
  0x8a   : > { %961 = vrot.lane.b32.xlu1 %v875_v19, %s9791_s15  ;;  %959 = vrot.lane.b32.xlu0 %v873_v20, %s9791_s15  ;;  %v690_v19 = vrot.slane %v570_v63, 1  ;;  %v687_v20 = vrot.slane %v10154_v0, 1  ;;  %v895_v63 = vsel %vm860_vm2, %v892_v43, %v894_v48  ;;  %v701_v10 = vsel %vm661_vm3, %v698_v59, %v700_v60  ;;  %v585_v48 = vld [vmem:[#allocation3 + $0x100] sm:$0x3] }
  0x8b   : > { %v914_v61 = vrot.slane %v585_v48, 2 }
  0x8c   : > { %v689_v26 = vsel %vm661_vm3, %v687_v20, %v688_v9  ;;  %8494 = vmatpush3.bf16.msra.mxu0 %v8491_v21  ;;  %v900_v21 = vsel %vm860_vm2, %v897_v8, %v899_v13 }
  0x8e   : > { %766 = vrot.lane.b32.xlu1 %v681_v24, %s9792_s17  ;;  %764 = vrot.lane.b32.xlu0 %v679_v25, %s9792_s17  ;;  %v1139_v24 = vld [vmem:[%s14957_s1 + $0x38] sm:$0xff]  ;;  %v691_v25 = vsel %vm661_vm3, %v688_v9, %v690_v19  ;;  %v10237_v9 = vpack.c.bf16 %v7286_v7, %v7285_v6  ;;  %v10244_v19 = vld [vmem:[#allocation3 + $0xc0] sm:$0xff]  ;;  %v588_v6 = vld [vmem:[#allocation3 + $0x118] sm:$0x3] }
  0x8f   : > { %v901_v32 = vrot.slane %v10244_v19, 2  ;;  %v10293_v7 = vld [vmem:[#allocation3 + $0x108] sm:$0xff]  ;;  %v720_v13 = vrot.slane %v588_v6, 1 }
  0x92   : > { %965 = vrot.lane.b32.xlu1 %v880_v33, %s9791_s15  ;;  %963 = vrot.lane.b32.xlu0 %v878_v34, %s9791_s15  ;;  %v10188_v33 = vld [vmem:[#allocation3 + $0x90] sm:$0xff]  ;;  %v8495_v34 = vpack.c.bf16 %v1139_v24, %v1138_v23  ;;  %v702_v24 = vrot.slane %v10244_v19, 1 }
  0x93   : > { %v692_v41 = vrot.slane %v10188_v33, 1  ;;  %v891_v49 = vrot.slane %v10188_v33, 2 }
  0x94   : > { %8496 = vmatprep.subr.bf16.mxu0 %v8495_v34 }
  0x95   : > { %v694_v47 = vsel %vm661_vm3, %v692_v41, %v693_v35  ;;  %8498 = vmatpush3.bf16.msra.mxu0 %v8495_v34  ;;  %v893_v1 = vsel %vm860_vm2, %v891_v49, %v892_v43  ;;  %v10259_v34 = vld [vmem:[#allocation3 + $0xe0] sm:$0xff]  ;;  %v582_v35 = vld [vmem:[#allocation3 + $0xe8] sm:$0x3]  ;;  %v707_v41 = vrot.slane %v10261_v36, 1  ;;  %v10277_v49 = vld [vmem:[#allocation3 + $0xf0] sm:$0xff] }
  0x96   : > { %770 = vrot.lane.b32.xlu1 %v686_v55, %s9792_s17  ;;  %768 = vrot.lane.b32.xlu0 %v684_v56, %s9792_s17  ;;  %v10217_v55 = vld [vmem:[#allocation3 + $0xa8] sm:$0xff]  ;;  %v708_v37 = vrot.slane %v10259_v34, 1  ;;  %v710_v40 = vrot.slane %v582_v35, 1  ;;  %v909_v45 = vrot.slane %v582_v35, 2 }
  0x97   : > { %v486_v56 = vld [vmem:[%s9998_s23 + $0xf8] sm:$0xff]  ;;  %8500 = vmatprep.subr.bf16.mxu0 %v8499_v42  ;;  %v697_v4 = vrot.slane %v10217_v55, 1  ;;  %v896_v14 = vrot.slane %v10217_v55, 2 }
  0x98   : > { %v519_v5 = vsel %vm487_vm1, %v486_v56, 0.0  ;;  %v711_v43 = vsel %vm661_vm3, %v708_v37, %v710_v40  ;;  %v709_v44 = vsel %vm661_vm3, %v707_v41, %v708_v37 }
  0x99   : > { %8502 = vmatpush3.bf16.msra.mxu0 %v8499_v42  ;;  %552 = vst [vmem:[#allocation3 + $0x189] sm:$0xff] %v519_v5  ;;  %v699_v11 = vsel %vm661_vm3, %v697_v4, %v698_v59  ;;  %v898_v22 = vsel %vm860_vm2, %v896_v14, %v897_v8  ;;  %v907_v42 = vrot.slane %v10259_v34, 2  ;;  %v712_v59 = vrot.slane %v10277_v49, 1  ;;  %v10291_v5 = vld [vmem:[#allocation3 + $0x110] sm:$0xff] }
  0x9a   : > { %969 = vrot.lane.b32.xlu1 %v885_v16, %s9791_s15  ;;  %967 = vrot.lane.b32.xlu0 %v883_v18, %s9791_s15  ;;  %v10242_v16 = vld [vmem:[#allocation3 + $0xc8] sm:$0xff]  ;;  %v579_v18 = vld [vmem:[#allocation3 + $0xd0] sm:$0x3]  ;;  %v911_v4 = vrot.slane %v10277_v49, 2  ;;  %v717_v14 = vrot.slane %v10293_v7, 1 }
  0x9b   : > { %8504 = vmatprep.subr.bf16.mxu0 %v8503_v58  ;;  %v703_v20 = vrot.slane %v10242_v16, 1  ;;  %v705_v23 = vrot.slane %v579_v18, 1  ;;  %v904_v29 = vrot.slane %v579_v18, 2  ;;  %v910_v54 = vsel %vm860_vm2, %v907_v42, %v909_v45  ;;  %v10325_v45 = vld [vmem:[#allocation3 + $0x138] sm:$0xff] }
  0x9c   : > { %v917_v18 = vrot.slane %v10291_v5, 2 }
  0x9d   : > { %8506 = vmatpush3.bf16.msra.mxu0 %v8503_v58  ;;  %v704_v27 = vsel %vm661_vm3, %v702_v24, %v703_v20  ;;  %v715_v58 = vrot.slane %v585_v48, 1  ;;  %v10307_v24 = vld [vmem:[#allocation3 + $0x128] sm:$0xff] }
  0x9e   : > { %774 = vrot.lane.b32.xlu1 %v691_v25, %s9792_s17  ;;  %772 = vrot.lane.b32.xlu0 %v689_v26, %s9792_s17  ;;  %v902_v25 = vrot.slane %v10242_v16, 2  ;;  %v706_v26 = vsel %vm661_vm3, %v703_v20, %v705_v23  ;;  %v916_v23 = vrot.slane %v10293_v7, 2 }
  0x9f   : > { %8508 = vmatprep.subr.bf16.mxu0 %v10237_v9 }
  0xa2   : > { %973 = vrot.lane.b32.xlu1 %v890_v38, %s9791_s15  ;;  %971 = vrot.lane.b32.xlu0 %v888_v39, %s9791_s15  ;;  %v905_v38 = vsel %vm860_vm2, %v902_v25, %v904_v29  ;;  %v903_v39 = vsel %vm860_vm2, %v901_v32, %v902_v25  ;;  %v591_v25 = vld [vmem:[#allocation3 + $0x130] sm:$0x3]  ;;  %v918_v32 = vsel %vm860_vm2, %v916_v23, %v917_v18 }
  0xa3   : > { %v725_v35 = vrot.slane %v591_v25, 1  ;;  %v924_v41 = vrot.slane %v591_v25, 2  ;;  %v10355_v25 = vld [vmem:[#allocation3 + $0x170] sm:$0xff] }
  0xa6   : > { %778 = vrot.lane.b32.xlu1 %v696_v46, %s9792_s17  ;;  %776 = vrot.lane.b32.xlu0 %v694_v47, %s9792_s17  ;;  %v906_v46 = vrot.slane %v10261_v36, 2  ;;  %v10275_v47 = vld [vmem:[#allocation3 + $0xf8] sm:$0xff] }
  0xa7   : > { %v713_v52 = vrot.slane %v10275_v47, 1  ;;  %v912_v60 = vrot.slane %v10275_v47, 2 }
  0xa8   : > { %v908_v56 = vsel %vm860_vm2, %v906_v46, %v907_v42 }
  0xa9   : > { %v915_v8 = vsel %vm860_vm2, %v912_v60, %v914_v61 }
  0xaa   : > { %977 = vrot.lane.b32.xlu1 %v895_v63, %s9791_s15  ;;  %975 = vrot.lane.b32.xlu0 %v893_v1, %s9791_s15  ;;  %v716_v63 = vsel %vm661_vm3, %v713_v52, %v715_v58  ;;  %v714_v1 = vsel %vm661_vm3, %v712_v59, %v713_v52 }
  0xae   : > { %782 = vrot.lane.b32.xlu1 %v701_v10, %s9792_s17  ;;  %780 = vrot.lane.b32.xlu0 %v699_v11, %s9792_s17  ;;  %v913_v10 = vsel %vm860_vm2, %v911_v4, %v912_v60  ;;  %v718_v11 = vrot.slane %v10291_v5, 1  ;;  %v597_v4 = vld [vmem:[#allocation3 + $0x160] sm:$0x3] }
  0xb0   : > { %v721_v20 = vsel %vm661_vm3, %v718_v11, %v720_v13  ;;  %v735_v13 = vrot.slane %v597_v4, 1 }
  0xb2   : > { %981 = vrot.lane.b32.xlu1 %v900_v21, %s9791_s15  ;;  %979 = vrot.lane.b32.xlu0 %v898_v22, %s9791_s15  ;;  %v719_v21 = vsel %vm661_vm3, %v717_v14, %v718_v11  ;;  %v919_v22 = vrot.slane %v588_v6, 2  ;;  %v10341_v6 = vld [vmem:[#allocation3 + $0x150] sm:$0xff] }
  0xb3   : > { %v732_v14 = vrot.slane %v10341_v6, 1  ;;  %v931_v23 = vrot.slane %v10341_v6, 2 }
  0xb4   : > { %v920_v29 = vsel %vm860_vm2, %v917_v18, %v919_v22  ;;  %v934_v22 = vrot.slane %v597_v4, 2 }
  0xb6   : > { %786 = vrot.lane.b32.xlu1 %v706_v26, %s9792_s17  ;;  %784 = vrot.lane.b32.xlu0 %v704_v27, %s9792_s17  ;;  %v10309_v26 = vld [vmem:[#allocation3 + $0x120] sm:$0xff]  ;;  %v723_v27 = vrot.slane %v10307_v24, 1 }
  0xb7   : > { %v722_v37 = vrot.slane %v10309_v26, 1  ;;  %v921_v42 = vrot.slane %v10309_v26, 2 }
  0xb9   : > { %v724_v40 = vsel %vm661_vm3, %v722_v37, %v723_v27 }
  0xba   : > { %985 = vrot.lane.b32.xlu1 %v905_v38, %s9791_s15  ;;  %983 = vrot.lane.b32.xlu0 %v903_v39, %s9791_s15  ;;  %v922_v38 = vrot.slane %v10307_v24, 2  ;;  %v726_v39 = vsel %vm661_vm3, %v723_v27, %v725_v35  ;;  %v600_v27 = vld [vmem:[#allocation3 + $0x178] sm:$0x3] }
  0xbc   : > { %v925_v48 = vsel %vm860_vm2, %v922_v38, %v924_v41  ;;  %v923_v52 = vsel %vm860_vm2, %v921_v42, %v922_v38  ;;  %v740_v38 = vrot.slane %v600_v27, 1 }
  0xbe   : > { %790 = vrot.lane.b32.xlu1 %v711_v43, %s9792_s17  ;;  %788 = vrot.lane.b32.xlu0 %v709_v44, %s9792_s17  ;;  %v10323_v43 = vld [vmem:[#allocation3 + $0x140] sm:$0xff]  ;;  %v594_v44 = vld [vmem:[#allocation3 + $0x148] sm:$0x3] }
  0xbf   : > { %v728_v46 = vrot.slane %v10323_v43, 1  ;;  %v927_v58 = vrot.slane %v10323_v43, 2  ;;  %v929_v61 = vrot.slane %v594_v44, 2 }
  0xc2   : > { %989 = vrot.lane.b32.xlu1 %v910_v54, %s9791_s15  ;;  %987 = vrot.lane.b32.xlu0 %v908_v56, %s9791_s15  ;;  %v730_v54 = vrot.slane %v594_v44, 1  ;;  %v727_v56 = vrot.slane %v10325_v45, 1 }
  0xc4   : > { %v731_v59 = vsel %vm661_vm3, %v728_v46, %v730_v54  ;;  %v729_v60 = vsel %vm661_vm3, %v727_v56, %v728_v46  ;;  %v937_v46 = vrot.slane %v10355_v25, 2  ;;  %v939_v56 = vrot.slane %v600_v27, 2 }
  0xc6   : > { %794 = vrot.lane.b32.xlu1 %v716_v63, %s9792_s17  ;;  %792 = vrot.lane.b32.xlu0 %v714_v1, %s9792_s17  ;;  %v926_v63 = vrot.slane %v10325_v45, 2  ;;  %v10339_v1 = vld [vmem:[#allocation3 + $0x158] sm:$0xff] }
  0xc7   : > { %v932_v18 = vrot.slane %v10339_v1, 2 }
  0xc8   : > { %v928_v11 = vsel %vm860_vm2, %v926_v63, %v927_v58  ;;  %v10383_v63 = vld [vmem:[#allocation3 + $0x188] sm:$0xff] }
  0xc9   : > { %v935_v35 = vsel %vm860_vm2, %v932_v18, %v934_v22  ;;  %v933_v37 = vsel %vm860_vm2, %v931_v23, %v932_v18  ;;  %v940_v18 = vsel %vm860_vm2, %v937_v46, %v939_v56  ;;  %v743_v22 = vrot.slane %v10383_v63, 1 }
  0xca   : > { %993 = vrot.lane.b32.xlu1 %v915_v8, %s9791_s15  ;;  %991 = vrot.lane.b32.xlu0 %v913_v10, %s9791_s15  ;;  %v733_v8 = vrot.slane %v10339_v1, 1  ;;  %v930_v10 = vsel %vm860_vm2, %v927_v58, %v929_v61  ;;  %v10381_v61 = vld [vmem:[#allocation3 + $0x180] sm:$0xff] }
  0xce   : > { %798 = vrot.lane.b32.xlu1 %v721_v20, %s9792_s17  ;;  %796 = vrot.lane.b32.xlu0 %v719_v21, %s9792_s17  ;;  %v736_v20 = vsel %vm661_vm3, %v733_v8, %v735_v13  ;;  %v734_v21 = vsel %vm661_vm3, %v732_v14, %v733_v8  ;;  %v603_v8 = vld [vmem:[#allocation3 + $0x190] sm:$0x3]  ;;  %v7290_v14 = vld [vmem:[%s14957_s1 + $0x88] sm:$0xff] }
  0xcf   : > { %v7289_v13 = vld [vmem:[%s14957_s1 + $0x80] sm:$0xff] }
  0xd2   : > { %997 = vrot.lane.b32.xlu1 %v920_v29, %s9791_s15  ;;  %995 = vrot.lane.b32.xlu0 %v918_v32, %s9791_s15  ;;  %v10357_v29 = vld [vmem:[#allocation3 + $0x168] sm:$0xff]  ;;  %v738_v32 = vrot.slane %v10355_v25, 1 }
  0xd3   : > { %v936_v58 = vrot.slane %v10357_v29, 2 }
  0xd6   : > { %802 = vrot.lane.b32.xlu1 %v726_v39, %s9792_s17  ;;  %800 = vrot.lane.b32.xlu0 %v724_v40, %s9792_s17  ;;  %v737_v39 = vrot.slane %v10357_v29, 1 }
  0xd8   : > { %v739_v54 = vsel %vm661_vm3, %v737_v39, %v738_v32 }
  0xda   : > { %1001 = vrot.lane.b32.xlu1 %v925_v48, %s9791_s15  ;;  %999 = vrot.lane.b32.xlu0 %v923_v52, %s9791_s15  ;;  %v7287_v48 = vld [vmem:[%s14957_s1 + $0x70] sm:$0xff]  ;;  %v7288_v52 = vld [vmem:[%s14957_s1 + $0x78] sm:$0xff] }
  0xde   : > { %806 = vrot.lane.b32.xlu1 %v731_v59, %s9792_s17  ;;  %804 = vrot.lane.b32.xlu0 %v729_v60, %s9792_s17 }
  0xe2   : > { %1005 = vrot.lane.b32.xlu1 %v930_v10, %s9791_s15  ;;  %1003 = vrot.lane.b32.xlu0 %v928_v11, %s9791_s15  ;;  %v8511_v10 = vpack.c.bf16 %v7288_v52, %v7287_v48  ;;  %v944_v52 = vrot.slane %v603_v8, 2 }
  0xe6   : > { %810 = vrot.lane.b32.xlu1 %v736_v20, %s9792_s17  ;;  %808 = vrot.lane.b32.xlu0 %v734_v21, %s9792_s17  ;;  %v938_v20 = vsel %vm860_vm2, %v936_v58, %v937_v46  ;;  %v742_v21 = vrot.slane %v10381_v61, 1 }
  0xe8   : > { %v952_v40 = vpop.permute.xlu1 %951  ;;  %v753_v41 = vpop.permute.xlu0 %752  ;;  %v744_v39 = vsel %vm661_vm3, %v742_v21, %v743_v22 }
  0xe9   : > { %v1059_v42 = vsel %vm487_vm1, %v10023_v12, %v753_v41  ;;  %v741_v12 = vsel %vm661_vm3, %v738_v32, %v740_v38  ;;  %v745_v32 = vrot.slane %v603_v8, 1  ;;  %v7292_v38 = vld [vmem:[%s14957_s1 + $0x98] sm:$0xff] }
  0xea   : > { %1009 = vrot.lane.b32.xlu1 %v935_v35, %s9791_s15  ;;  %1007 = vrot.lane.b32.xlu0 %v933_v37, %s9791_s15  ;;  %v1095_v44 = vsel %vm366_vm0, %v1059_v42, %v952_v40  ;;  %v8515_v35 = vpack.c.bf16 %v7290_v14, %v7289_v13  ;;  %v7291_v37 = vld [vmem:[%s14957_s1 + $0x90] sm:$0xff]  ;;  %v941_v40 = vrot.slane %v10381_v61, 2 }
  0xeb   : > { %8051 = vmatprep.mubr.msk.f32.mxu0 %vm1144_vm4, %v1095_v44  ;;  %v746_v48 = vsel %vm661_vm3, %v743_v22, %v745_v32  ;;  %v8519_v58 = vpack.c.bf16 %v7292_v38, %v7291_v37 }
  0xec   : > { %v954_v59 = vpop.permute.xlu1 %953  ;;  %v755_v60 = vpop.permute.xlu0 %754 }
  0xed   : > { %v1060_v4 = vsel %vm487_vm1, 0.0, %v755_v60 }
  0xee   : > { %814 = vrot.lane.b32.xlu1 %v741_v12, %s9792_s17  ;;  %812 = vrot.lane.b32.xlu0 %v739_v54, %s9792_s17  ;;  %v1096_v11 = vsel %vm366_vm0, %v1060_v4, %v954_v59  ;;  %v10417_v12 = vld [vmem:[#allocation3 + $0x198] sm:$0xff] }
  0xef   : > { %8052 = vmatmul.mubr.msk.f32.vlgmr.msra.gmra.mrb[0].mxu0 %vm1144_vm4, %v1096_v11  ;;  %v7294_v59 = vld [vmem:[%s14957_s1 + $0xa8] sm:$0xff]  ;;  %v747_v4 = vrot.slane %v10417_v12, 1  ;;  %v946_v22 = vrot.slane %v10417_v12, 2 }
  0xf0   : > { %v759_v23 = vpop.permute.xlu1 %758  ;;  %v757_v27 = vpop.permute.xlu0 %756  ;;  %8510 = vmatpush3.bf16.msra.mxu0 %v10237_v9  ;;  %v942_v9 = vrot.slane %v10383_v63, 2 }
  0xf1   : > { %8512 = vmatprep.subr.bf16.mxu0 %v8511_v10  ;;  %v1062_v41 = vsel %vm487_vm1, %v10064_v51, %v759_v23  ;;  %v1061_v42 = vsel %vm487_vm1, %v10066_v53, %v757_v27  ;;  %v606_v51 = vld [vmem:[#allocation3 + $0x1a8] sm:$0x3]  ;;  %v7293_v53 = vld [vmem:[%s14957_s1 + $0xa0] sm:$0xff]  ;;  %v749_v21 = vsel %vm661_vm3, %v747_v4, %v10012_v2 }
  0xf2   : > { %1013 = vrot.lane.b32.xlu1 %v940_v18, %s9791_s15  ;;  %1011 = vrot.lane.b32.xlu0 %v938_v20, %s9791_s15  ;;  %v943_v60 = vsel %vm860_vm2, %v941_v40, %v942_v9  ;;  %v945_v11 = vsel %vm860_vm2, %v942_v9, %v944_v52  ;;  %v750_v13 = vrot.slane %v606_v51, 1  ;;  %v8523_v14 = vpack.c.bf16 %v7294_v59, %v7293_v53  ;;  %v7295_v18 = vld [vmem:[%s14957_s1 + $0xb0] sm:$0xff]  ;;  %v7296_v20 = vld [vmem:[%s14957_s1 + $0xb8] sm:$0xff] }
  0xf3   : > { %v10451_v23 = vld [vmem:[#allocation3 + $0x8] sm:$0xff]  ;;  %v949_v40 = vrot.slane %v606_v51, 2 }
  0xf4   : > { %v958_v44 = vpop.permute.xlu1 %957  ;;  %v956_v46 = vpop.permute.xlu0 %955  ;;  %8514 = vmatpush3.bf16.msra.mxu0 %v8511_v10  ;;  %v947_v27 = vrot.slane %v10451_v23, 2  ;;  %376 = vst.msk [vmem:[#allocation2] sm:$0x1] %vm375_vm5, %v10451_v23  ;;  %377 = vst.msk [vmem:[#allocation2 + $0x18] sm:$0x1] %vm375_vm5, %v10451_v23 }
  0xf5   : > { %v10420_v54 = vsel %vm366_vm0, %v1062_v41, %v958_v44  ;;  %v10423_v56 = vsel %vm366_vm0, %v1061_v42, %v956_v46  ;;  %8516 = vmatprep.subr.bf16.mxu0 %v8515_v35  ;;  %v8527_v42 = vpack.c.bf16 %v7296_v20, %v7295_v18  ;;  %378 = vst.msk [vmem:[#allocation2 + $0x30] sm:$0x1] %vm375_vm5, %v10451_v23  ;;  %379 = vst.msk [vmem:[#allocation2 + $0x48] sm:$0x1] %vm375_vm5, %v10451_v23 }
  0xf6   : > { %8054 = vmatprep.mubr.msk.f32.mxu0 %vm1144_vm4, %v10423_v56  ;;  %816 = vrot.lane.b32.xlu0 %v744_v39, %s9792_s17  ;;  %v751_v39 = vsel %vm661_vm3, %v10012_v2, %v750_v13  ;;  %v7330_v2 = vld [vmem:[%s14957_s1 + $0xc8] sm:$0xff]  ;;  %380 = vst.msk [vmem:[#allocation2 + $0x60] sm:$0x1] %vm375_vm5, %v10451_v23  ;;  %381 = vst.msk [vmem:[#allocation2 + $0x78] sm:$0x1] %vm375_vm5, %v10451_v23 }
  0xf7   : > { %8055 = vmatmul.mubr.msk.f32.gmra.mrb[2].mxu0 %vm1144_vm4, %v10420_v54  ;;  %818 = vrot.lane.b32.xlu1 %v746_v48, %s9792_s17  ;;  %v950_v48 = vsel %vm860_vm2, %v947_v27, %v949_v40  ;;  %382 = vst.msk [vmem:[#allocation2 + $0x90] sm:$0x1] %vm375_vm5, %v10451_v23  ;;  %383 = vst.msk [vmem:[#allocation2 + $0xa8] sm:$0x1] %vm375_vm5, %v10451_v23 }
  0xf8   : > { %v763_v8 = vpop.permute.xlu1 %762  ;;  %v761_v10 = vpop.permute.xlu0 %760  ;;  %8518 = vmatpush3.bf16.msra.mxu0 %v8515_v35  ;;  %384 = vst.msk [vmem:[#allocation2 + $0xc0] sm:$0x1] %vm375_vm5, %v10451_v23  ;;  %385 = vst.msk [vmem:[#allocation2 + $0xd8] sm:$0x1] %vm375_vm5, %v10451_v23 }
  0xf9   : > { %8520 = vmatprep.subr.bf16.mxu0 %v8519_v58  ;;  %v1064_v32 = vsel %vm487_vm1, %v10076_v62, %v763_v8  ;;  %v1063_v35 = vsel %vm487_vm1, %v10080_v3, %v761_v10  ;;  %v7329_v62 = vld [vmem:[%s14957_s1 + $0xc0] sm:$0xff]  ;;  %v948_v3 = vsel %vm860_vm2, %v946_v22, %v947_v27  ;;  %386 = vst.msk [vmem:[#allocation2 + $0xf0] sm:$0x1] %vm375_vm5, %v10451_v23  ;;  %387 = vst.msk [vmem:[#allocation2 + $0x108] sm:$0x1] %vm375_vm5, %v10451_v23 }
  0xfa   : > { %1015 = vrot.lane.b32.xlu0 %v943_v60, %s9791_s15  ;;  %v10480_v52 = vpack.c.bf16 %v7330_v2, %v7329_v62  ;;  %388 = vst.msk [vmem:[#allocation2 + $0x120] sm:$0x1] %vm375_vm5, %v10451_v23  ;;  %389 = vst.msk [vmem:[#allocation2 + $0x138] sm:$0x1] %vm375_vm5, %v10451_v23 }
  0xfb   : > { %1017 = vrot.lane.b32.xlu1 %v945_v11, %s9791_s15  ;;  %390 = vst.msk [vmem:[#allocation2 + $0x150] sm:$0x1] %vm375_vm5, %v10451_v23  ;;  %391 = vst.msk [vmem:[#allocation2 + $0x168] sm:$0x1] %vm375_vm5, %v10451_v23 }
  0xfc   : > { %v962_v37 = vpop.permute.xlu1 %961  ;;  %v960_v38 = vpop.permute.xlu0 %959  ;;  %8522 = vmatpush3.bf16.msra.mxu0 %v8519_v58  ;;  %392 = vst.msk [vmem:[#allocation2 + $0x180] sm:$0x1] %vm375_vm5, %v10451_v23  ;;  %393 = vst.msk [vmem:[#allocation2 + $0x198] sm:$0x1] %vm375_vm5, %v10451_v23 }
  0xfd   : > { %v10461_v9 = vsel %vm366_vm0, %v1064_v32, %v962_v37  ;;  %v10464_v41 = vsel %vm366_vm0, %v1063_v35, %v960_v38  ;;  %8524 = vmatprep.subr.bf16.mxu0 %v8523_v14  ;;  %395 = vst.msk [vmem:[#allocation2 + $0x29] sm:$0x1] %vm375_vm5, %v10451_v23  ;;  %396 = vst.msk [vmem:[#allocation2 + $0x41] sm:$0x1] %vm375_vm5, %v10451_v23 }
  0xfe   : > { %8057 = vmatprep.mubr.msk.f32.mxu0 %vm1144_vm4, %v10464_v41  ;;  %820 = vrot.lane.b32.xlu0 %v749_v21, %s9792_s17  ;;  %397 = vst.msk [vmem:[#allocation2 + $0x59] sm:$0x1] %vm375_vm5, %v10451_v23  ;;  %398 = vst.msk [vmem:[#allocation2 + $0x71] sm:$0x1] %vm375_vm5, %v10451_v23 }
  0xff   : > { %8058 = vmatmul.mubr.msk.f32.gmra.mrb[4].mxu0 %vm1144_vm4, %v10461_v9  ;;  %822 = vrot.lane.b32.xlu1 %v751_v39, %s9792_s17  ;;  %399 = vst.msk [vmem:[#allocation2 + $0x89] sm:$0x1] %vm375_vm5, %v10451_v23  ;;  %400 = vst.msk [vmem:[#allocation2 + $0xa1] sm:$0x1] %vm375_vm5, %v10451_v23  ;;  %s9714_s17 = scalar_lea.vmem %s14910_s25, 4096 }
 0x100   : > { %v767_v44 = vpop.permute.xlu1 %766  ;;  %v765_v46 = vpop.permute.xlu0 %764  ;;  %8526 = vmatpush3.bf16.msra.mxu0 %v8523_v14  ;;  %401 = vst.msk [vmem:[#allocation2 + $0xb9] sm:$0x1] %vm375_vm5, %v10451_v23  ;;  %402 = vst.msk [vmem:[#allocation2 + $0xd1] sm:$0x1] %vm375_vm5, %v10451_v23  ;;  %p9715_p4 = scmp.ne.s32.totalorder %s14910_s25, %s9714_s17 }
 0x101   : > { %8528 = vmatprep.subr.bf16.mxu0 %v8527_v42  ;;  %v1066_v58 = vsel %vm487_vm1, %v10094_v15, %v767_v44  ;;  %v1065_v51 = vsel %vm487_vm1, %v10096_v17, %v765_v46  ;;  %403 = vst.msk [vmem:[#allocation2 + $0xe9] sm:$0x1] %vm375_vm5, %v10451_v23  ;;  %404 = vst.msk [vmem:[#allocation2 + $0x101] sm:$0x1] %vm375_vm5, %v10451_v23 }
 0x102   : > { %1019 = vrot.lane.b32.xlu0 %v948_v3, %s9791_s15  ;;  %405 = vst.msk [vmem:[#allocation2 + $0x119] sm:$0x1] %vm375_vm5, %v10451_v23  ;;  %406 = vst.msk [vmem:[#allocation2 + $0x131] sm:$0x1] %vm375_vm5, %v10451_v23  ;;  %p9716_p6 = pnand %p9715_p4, %p9941_p12 }
 0x103   : > { %1021 = vrot.lane.b32.xlu1 %v950_v48, %s9791_s15  ;;  %407 = vst.msk [vmem:[#allocation2 + $0x149] sm:$0x1] %vm375_vm5, %v10451_v23  ;;  %408 = vst.msk [vmem:[#allocation2 + $0x161] sm:$0x1] %vm375_vm5, %v10451_v23 }
 0x104   : > { %v966_v53 = vpop.permute.xlu1 %965  ;;  %v964_v59 = vpop.permute.xlu0 %963  ;;  %8530 = vmatpush3.bf16.msra.mxu0 %v8527_v42  ;;  %409 = vst.msk [vmem:[#allocation2 + $0x179] sm:$0x1] %vm375_vm5, %v10451_v23  ;;  %410 = vst.msk [vmem:[#allocation2 + $0x191] sm:$0x1] %vm375_vm5, %v10451_v23  ;;  %p9717_p8 = pneg %p9716_p6 }
 0x105   : > { %v10489_v60 = vsel %vm366_vm0, %v1066_v58, %v966_v53  ;;  %v10492_v4 = vsel %vm366_vm0, %v1065_v51, %v964_v59  ;;  %8532 = vmatprep.subr.bf16.mxu0 %v10480_v52  ;;  %370 = vst.msk [vmem:[#allocation2 + $0x10] sm:$0x3] %vm369_vm6, %v10451_v23  ;;  %374 = vst.msk [vmem:[#allocation2 + $0x1a8] sm:$0x3] %vm369_vm6, %v10451_v23 }
 0x106   : > { %8060 = vmatprep.mubr.msk.f32.mxu0 %vm1144_vm4, %v10492_v4  ;;  %394 = vst.msk [vmem:[#allocation2 + $0x11] sm:$0x1] %vm375_vm5, %v10451_v23  ;;  %411 = vst.msk [vmem:[#allocation2 + $0x1a9] sm:$0x1] %vm375_vm5, %v10451_v23 }
 0x107   : > { %8061 = vmatmul.mubr.msk.f32.gmra.mrb[6].mxu0 %vm1144_vm4, %v10489_v60 }
 0x108   : > { %v771_v15 = vpop.permute.xlu1 %770  ;;  %v769_v8 = vpop.permute.xlu0 %768 }
 0x109   : > { %v1068_v17 = vsel %vm487_vm1, %v10110_v28, %v771_v15  ;;  %v1067_v10 = vsel %vm487_vm1, %v10112_v30, %v769_v8 }
 0x10c   : > { %v970_v11 = vpop.permute.xlu1 %969  ;;  %v968_v13 = vpop.permute.xlu0 %967 }
 0x10d   : > { %v10504_v14 = vsel %vm366_vm0, %v1068_v17, %v970_v11  ;;  %v10507_v18 = vsel %vm366_vm0, %v1067_v10, %v968_v13 }
 0x10e   : > { %8063 = vmatprep.mubr.msk.f32.mxu0 %vm1144_vm4, %v10507_v18 }
 0x10f   : > { %8064 = vmatmul.mubr.msk.f32.gmra.mrb[8].mxu0 %vm1144_vm4, %v10504_v14 }
 0x110   : > { %v775_v20 = vpop.permute.xlu1 %774  ;;  %v773_v21 = vpop.permute.xlu0 %772 }
 0x111   : > { %v1070_v28 = vsel %vm487_vm1, %v10148_v57, %v775_v20  ;;  %v1069_v30 = vsel %vm487_vm1, %v10154_v0, %v773_v21 }
 0x114   : > { %v974_v22 = vpop.permute.xlu1 %973  ;;  %v972_v27 = vpop.permute.xlu0 %971 }
 0x115   : > { %v10518_v32 = vsel %vm366_vm0, %v1070_v28, %v974_v22  ;;  %v10521_v35 = vsel %vm366_vm0, %v1069_v30, %v972_v27 }
 0x116   : > { %8066 = vmatprep.mubr.msk.f32.mxu0 %vm1144_vm4, %v10521_v35 }
 0x117   : > { %8067 = vmatmul.mubr.msk.f32.gmra.mrb[10].mxu0 %vm1144_vm4, %v10518_v32 }
 0x118   : > { %v779_v37 = vpop.permute.xlu1 %778  ;;  %v777_v38 = vpop.permute.xlu0 %776 }
 0x119   : > { %v1072_v57 = vsel %vm487_vm1, %v10186_v31, %v779_v37  ;;  %v1071_v0 = vsel %vm487_vm1, %v10188_v33, %v777_v38 }
 0x11c   : > { %v978_v39 = vpop.permute.xlu1 %977  ;;  %v976_v40 = vpop.permute.xlu0 %975 }
 0x11d   : > { %v10532_v42 = vsel %vm366_vm0, %v1072_v57, %v978_v39  ;;  %v10535_v62 = vsel %vm366_vm0, %v1071_v0, %v976_v40 }
 0x11e   : > { %8069 = vmatprep.mubr.msk.f32.mxu0 %vm1144_vm4, %v10535_v62 }
 0x11f   : > { %8070 = vmatmul.mubr.msk.f32.gmra.mrb[12].mxu0 %vm1144_vm4, %v10532_v42 }
 0x120   : > { %v783_v2 = vpop.permute.xlu1 %782  ;;  %v781_v3 = vpop.permute.xlu0 %780 }
 0x121   : > { %v1074_v31 = vsel %vm487_vm1, %v10214_v50, %v783_v2  ;;  %v1073_v33 = vsel %vm487_vm1, %v10217_v55, %v781_v3 }
 0x124   : > { %v982_v44 = vpop.permute.xlu1 %981  ;;  %v980_v46 = vpop.permute.xlu0 %979 }
 0x125   : > { %v10546_v48 = vsel %vm366_vm0, %v1074_v31, %v982_v44  ;;  %v10549_v58 = vsel %vm366_vm0, %v1073_v33, %v980_v46 }
 0x126   : > { %8072 = vmatprep.mubr.msk.f32.mxu0 %vm1144_vm4, %v10549_v58 }
 0x127   : > { %8073 = vmatmul.mubr.msk.f32.gmra.mrb[14].mxu0 %vm1144_vm4, %v10546_v48 }
 0x128   : > { %v787_v51 = vpop.permute.xlu1 %786  ;;  %v785_v53 = vpop.permute.xlu0 %784 }
 0x129   : > { %v1076_v50 = vsel %vm487_vm1, %v10242_v16, %v787_v51  ;;  %v1075_v55 = vsel %vm487_vm1, %v10244_v19, %v785_v53 }
 0x12c   : > { %v986_v59 = vpop.permute.xlu1 %985  ;;  %v984_v15 = vpop.permute.xlu0 %983 }
 0x12d   : > { %v10560_v8 = vsel %vm366_vm0, %v1076_v50, %v986_v59  ;;  %v10563_v17 = vsel %vm366_vm0, %v1075_v55, %v984_v15 }
 0x12e   : > { %8075 = vmatprep.mubr.msk.f32.mxu0 %vm1144_vm4, %v10563_v17 }
 0x12f   : > { %8076 = vmatmul.mubr.msk.f32.gmra.mrb[16].mxu0 %vm1144_vm4, %v10560_v8 }
 0x130   : > { %v791_v10 = vpop.permute.xlu1 %790  ;;  %v789_v11 = vpop.permute.xlu0 %788 }
 0x131   : > { %v1078_v16 = vsel %vm487_vm1, %v10259_v34, %v791_v10  ;;  %v1077_v19 = vsel %vm487_vm1, %v10261_v36, %v789_v11 }
 0x134   : > { %v990_v13 = vpop.permute.xlu1 %989  ;;  %v988_v20 = vpop.permute.xlu0 %987 }
 0x135   : > { %v10574_v21 = vsel %vm366_vm0, %v1078_v16, %v990_v13  ;;  %v10577_v28 = vsel %vm366_vm0, %v1077_v19, %v988_v20 }
 0x136   : > { %8078 = vmatprep.mubr.msk.f32.mxu0 %vm1144_vm4, %v10577_v28 }
 0x137   : > { %8079 = vmatmul.mubr.msk.f32.gmra.mrb[18].mxu0 %vm1144_vm4, %v10574_v21 }
 0x138   : > { %v795_v30 = vpop.permute.xlu1 %794  ;;  %v793_v22 = vpop.permute.xlu0 %792 }
 0x139   : > { %v1080_v34 = vsel %vm487_vm1, %v10275_v47, %v795_v30  ;;  %v1079_v36 = vsel %vm487_vm1, %v10277_v49, %v793_v22 }
 0x13c   : > { %v994_v27 = vpop.permute.xlu1 %993  ;;  %v992_v37 = vpop.permute.xlu0 %991 }
 0x13d   : > { %v10588_v38 = vsel %vm366_vm0, %v1080_v34, %v994_v27  ;;  %v10591_v57 = vsel %vm366_vm0, %v1079_v36, %v992_v37 }
 0x13e   : > { %8081 = vmatprep.mubr.msk.f32.mxu0 %vm1144_vm4, %v10591_v57 }
 0x13f   : > { %8082 = vmatmul.mubr.msk.f32.gmra.mrb[20].mxu0 %vm1144_vm4, %v10588_v38 }
 0x140   : > { %v799_v0 = vpop.permute.xlu1 %798  ;;  %v797_v39 = vpop.permute.xlu0 %796 }
 0x141   : > { %v1082_v47 = vsel %vm487_vm1, %v10291_v5, %v799_v0  ;;  %v1081_v49 = vsel %vm487_vm1, %v10293_v7, %v797_v39 }
 0x144   : > { %v998_v40 = vpop.permute.xlu1 %997  ;;  %v996_v2 = vpop.permute.xlu0 %995 }
 0x145   : > { %v10602_v3 = vsel %vm366_vm0, %v1082_v47, %v998_v40  ;;  %v10605_v31 = vsel %vm366_vm0, %v1081_v49, %v996_v2  ;;  %v7331_v49 = vld [vmem:[%s14957_s1 + $0xd0] sm:$0xff]  ;;  %v2753_v40 = vld [vmem:[%s14959_s3 + $0x8] sm:$0xff] }
 0x146   : > { %8084 = vmatprep.mubr.msk.f32.mxu0 %vm1144_vm4, %v10605_v31 }
 0x147   : > { %8085 = vmatmul.mubr.msk.f32.gmra.mrb[22].mxu0 %vm1144_vm4, %v10602_v3 }
 0x148   : > { %v803_v33 = vpop.permute.xlu1 %802  ;;  %v801_v44 = vpop.permute.xlu0 %800 }
 0x149   : > { %v1084_v5 = vsel %vm487_vm1, %v10307_v24, %v803_v33  ;;  %v1083_v7 = vsel %vm487_vm1, %v10309_v26, %v801_v44  ;;  %v2754_v33 = vld [vmem:[%s14959_s3 + $0x10] sm:$0xff]  ;;  %v2755_v44 = vld [vmem:[%s14959_s3 + $0x18] sm:$0xff] }
 0x14c   : > { %v1002_v46 = vpop.permute.xlu1 %1001  ;;  %v1000_v51 = vpop.permute.xlu0 %999 }
 0x14d   : > { %v10616_v53 = vsel %vm366_vm0, %v1084_v5, %v1002_v46  ;;  %v10619_v50 = vsel %vm366_vm0, %v1083_v7, %v1000_v51  ;;  %v7333_v7 = vld [vmem:[%s14957_s1 + $0xe0] sm:$0xff]  ;;  %v7334_v46 = vld [vmem:[%s14957_s1 + $0xe8] sm:$0xff]  ;;  %v8559_v51 = vpack.c.bf16 %v2755_v44, %v2754_v33 }
 0x14e   : > { %8087 = vmatprep.mubr.msk.f32.mxu0 %vm1144_vm4, %v10619_v50 }
 0x14f   : > { %8088 = vmatmul.mubr.msk.f32.gmra.mrb[24].mxu0 %vm1144_vm4, %v10616_v53 }
 0x150   : > { %v807_v55 = vpop.permute.xlu1 %806  ;;  %v805_v59 = vpop.permute.xlu0 %804 }
 0x151   : > { %v1086_v24 = vsel %vm487_vm1, %v10323_v43, %v807_v55  ;;  %v1085_v26 = vsel %vm487_vm1, %v10325_v45, %v805_v59  ;;  %v10772_v55 = vld [vmem:[#allocation2 + $0x8] sm:$0xff]  ;;  %v2756_v59 = vld [vmem:[%s14959_s3 + $0x20] sm:$0xff] }
 0x154   : > { %v1006_v15 = vpop.permute.xlu1 %1005  ;;  %v1004_v10 = vpop.permute.xlu0 %1003 }
 0x155   : > { %v10630_v11 = vsel %vm366_vm0, %v1086_v24, %v1006_v15  ;;  %v10633_v16 = vsel %vm366_vm0, %v1085_v26, %v1004_v10  ;;  %v2757_v24 = vld [vmem:[%s14959_s3 + $0x28] sm:$0xff]  ;;  %v8539_v26 = vpack.c.bf16 %v7334_v46, %v7333_v7  ;;  %v7336_v15 = vld [vmem:[%s14957_s1 + $0xf8] sm:$0xff]  ;;  %v2390_v10 = vrot.slane %v10772_v55, 1  ;;  %v2774_v46 = vld [vmem:[%s14959_s3 + $0xb0] sm:$0xff] }
 0x156   : > { %8090 = vmatprep.mubr.msk.f32.mxu0 %vm1144_vm4, %v10633_v16 }
 0x157   : > { %8091 = vmatmul.mubr.msk.f32.gmra.mrb[26].mxu0 %vm1144_vm4, %v10630_v11 }
 0x158   : > { %v811_v19 = vpop.permute.xlu1 %810  ;;  %v809_v13 = vpop.permute.xlu0 %808 }
 0x159   : > { %v1088_v43 = vsel %vm487_vm1, %v10339_v1, %v811_v19  ;;  %v1087_v45 = vsel %vm487_vm1, %v10341_v6, %v809_v13  ;;  %v8562_v19 = vpack.c.bf16 %v2757_v24, %v2756_v59 }
 0x15c   : > { %v1010_v20 = vpop.permute.xlu1 %1009  ;;  %v1008_v30 = vpop.permute.xlu0 %1007 }
 0x15d   : > { %v10644_v22 = vsel %vm366_vm0, %v1088_v43, %v1010_v20  ;;  %v10647_v34 = vsel %vm366_vm0, %v1087_v45, %v1008_v30  ;;  %v10799_v43 = vld [vmem:[#allocation2 + $0x10] sm:$0x3]  ;;  %v7337_v30 = vld [vmem:[%s14957_s1 + $0x100] sm:$0xff] }
 0x15e   : > { %8093 = vmatprep.mubr.msk.f32.mxu0 %vm1144_vm4, %v10647_v34  ;;  %v2392_v20 = vrot.slane %v10799_v43, 1 }
 0x15f   : > { %8094 = vmatmul.mubr.msk.f32.gmra.mrb[28].mxu0 %vm1144_vm4, %v10644_v22 }
 0x160   : > { %v815_v36 = vpop.permute.xlu1 %814  ;;  %v813_v27 = vpop.permute.xlu0 %812 }
 0x161   : > { %v1090_v1 = vsel %vm487_vm1, %v10355_v25, %v815_v36  ;;  %v1089_v6 = vsel %vm487_vm1, %v10357_v29, %v813_v27  ;;  %v7332_v25 = vld [vmem:[%s14957_s1 + $0xd8] sm:$0xff]  ;;  %v2752_v29 = vld [vmem:[%s14959_s3] sm:$0xff]  ;;  %v7338_v36 = vld [vmem:[%s14957_s1 + $0x108] sm:$0xff] }
 0x162   : > { %v8556_v2 = vpack.c.bf16 %v2753_v40, %v2752_v29  ;;  %v8535_v5 = vpack.c.bf16 %v7332_v25, %v7331_v49 }
 0x164   : > { %v1014_v37 = vpop.permute.xlu1 %1013  ;;  %v1012_v0 = vpop.permute.xlu0 %1011 }
 0x165   : > { %v10658_v39 = vsel %vm366_vm0, %v1090_v1, %v1014_v37  ;;  %v10661_v47 = vsel %vm366_vm0, %v1089_v6, %v1012_v0  ;;  %v2393_v1 = vsel %vm661_vm3, %v2390_v10, %v2392_v20  ;;  %v8547_v6 = vpack.c.bf16 %v7338_v36, %v7337_v30  ;;  %v7339_v37 = vld [vmem:[%s14957_s1 + $0x110] sm:$0xff]  ;;  %v7340_v0 = vld [vmem:[%s14957_s1 + $0x118] sm:$0xff]  ;;  %v7438_v30 = vld [vmem:[%s14959_s3 + $0xc0] sm:$0xff] }
 0x166   : > { %8096 = vmatprep.mubr.msk.f32.mxu0 %vm1144_vm4, %v10661_v47  ;;  %2481 = vrot.lane.b32.xlu1 %v2393_v1, %s9791_s15  ;;  %v8551_v49 = vpack.c.bf16 %v7340_v0, %v7339_v37 }
 0x167   : > { %8097 = vmatmul.mubr.msk.f32.gmra.mrb[30].mxu0 %vm1144_vm4, %v10658_v39 }
 0x168   : > { %8123 = vmatprep.mubr.msk.f32.mxu0 %vm1144_vm4, %v10423_v56  ;;  %v14974_v56 = vmov 0.0|0.0   ;;  %v817_v25 = vpop.permute.xlu0 %816 }
 0x169   : > { %8555 = vmatprep.subr.bf16.mxu1 %v14974_v56  ;;  %v819_v29 = vpop.permute.xlu1 %818  ;;  %v1091_v40 = vsel %vm487_vm1, %v10381_v61, %v817_v25 }
 0x16a   : > { %8557 = vmatpush1.bf16.msra.mxu1 %v8556_v2  ;;  %v1092_v44 = vsel %vm487_vm1, %v10383_v63, %v819_v29 }
 0x16b   : > { %8124 = vmatmul.mubr.msk.f32.vlgmr.msra.gmra.mrb[0].mxu0 %vm1144_vm4, %v10420_v54  ;;  %8558 = vmatprep.subr.bf16.mxu1 %v14974_v56  ;;  %v7335_v54 = vld [vmem:[%s14957_s1 + $0xf0] sm:$0xff] }
 0x16c   : > { %8534 = vmatpush3.bf16.msra.mxu0 %v10480_v52  ;;  %8126 = vmatprep.mubr.msk.f32.mxu0 %vm1144_vm4, %v10464_v41  ;;  %v10793_v52 = vld [vmem:[#allocation2] sm:$0xff]  ;;  %v8543_v45 = vpack.c.bf16 %v7336_v15, %v7335_v54  ;;  %v1016_v2 = vpop.permute.xlu0 %1015 }
 0x16d   : > { %8536 = vmatprep.subr.bf16.mxu0 %v8535_v5  ;;  %v2389_v13 = vrot.slane %v10793_v52, 1  ;;  %v1127_v33 = vsel %vm366_vm0, %v1091_v40, %v1016_v2  ;;  %v2587_v24 = vrot.slane %v10793_v52, 2 }
 0x16e   : > { %8560 = vmatpush1.bf16.msra.mxu1 %v8559_v51  ;;  %v2775_v51 = vld [vmem:[%s14959_s3 + $0xb8] sm:$0xff] }
 0x16f   : > { %8127 = vmatmul.mubr.msk.f32.gmra.mrb[2].mxu0 %vm1144_vm4, %v10461_v9  ;;  %8561 = vmatprep.subr.bf16.mxu1 %v14974_v56  ;;  %v2391_v27 = vsel %vm661_vm3, %v2389_v13, %v2390_v10  ;;  %v8589_v59 = vpack.c.bf16 %v2775_v51, %v2774_v46 }
 0x170   : > { %8129 = vmatprep.mubr.msk.f32.mxu0 %vm1144_vm4, %v10492_v4  ;;  %8538 = vmatpush3.bf16.msra.mxu0 %v8535_v5  ;;  %v1018_v5 = vpop.permute.xlu1 %1017  ;;  %v821_v63 = vpop.permute.xlu0 %820 }
 0x171   : > { %8540 = vmatprep.subr.bf16.mxu0 %v8539_v26  ;;  %2479 = vrot.lane.b32.xlu0 %v2391_v27, %s9791_s15  ;;  %v1128_v61 = vsel %vm366_vm0, %v1092_v44, %v1018_v5 }
 0x172   : > { %8563 = vmatpush1.bf16.msra.mxu1 %v8562_v19  ;;  %v2590_v19 = vrot.slane %v10799_v43, 2  ;;  %v11028_v43 = vld [vmem:[%s14958_s2] ss:$0 sm:$0xff] }
 0x173   : > { %8130 = vmatmul.mubr.msk.f32.gmra.mrb[4].mxu0 %vm1144_vm4, %v10489_v60  ;;  %8564 = vmatprep.subr.bf16.mxu1 %v14974_v56 }
 0x174   : > { %8132 = vmatprep.mubr.msk.f32.mxu0 %vm1144_vm4, %v10507_v18  ;;  %8542 = vmatpush3.bf16.msra.mxu0 %v8539_v26  ;;  %v2588_v26 = vrot.slane %v10772_v55, 2 }
 0x175   : > { %8544 = vmatprep.subr.bf16.mxu0 %v8543_v45 }
 0x176   : > { %v2589_v15 = vsel %vm860_vm2, %v2587_v24, %v2588_v26 }
 0x177   : > { %8133 = vmatmul.mubr.msk.f32.gmra.mrb[6].mxu0 %vm1144_vm4, %v10504_v14  ;;  %7406 = vmatprep.mubr.msk.f32.mxu1 %vm366_vm0, %v2589_v15 }
 0x178   : > { %8135 = vmatprep.mubr.msk.f32.mxu0 %vm1144_vm4, %v10521_v35  ;;  %8546 = vmatpush3.bf16.msra.mxu0 %v8543_v45  ;;  %v2591_v45 = vsel %vm860_vm2, %v2588_v26, %v2590_v19 }
 0x179   : > { %8548 = vmatprep.subr.bf16.mxu0 %v8547_v6 }
 0x17b   : > { %8136 = vmatmul.mubr.msk.f32.gmra.mrb[8].mxu0 %vm1144_vm4, %v10518_v32 }
 0x17c   : > { %8138 = vmatprep.mubr.msk.f32.mxu0 %vm1144_vm4, %v10535_v62  ;;  %8550 = vmatpush3.bf16.msra.mxu0 %v8547_v6 }
 0x17d   : > { %8552 = vmatprep.subr.bf16.mxu0 %v8551_v49 }
 0x17f   : > { %8139 = vmatmul.mubr.msk.f32.gmra.mrb[10].mxu0 %vm1144_vm4, %v10532_v42 }
 0x180   : > { %8141 = vmatprep.mubr.msk.f32.mxu0 %vm1144_vm4, %v10549_v58  ;;  %8554 = vmatpush3.bf16.msra.mxu0 %v8551_v49 }
 0x181   : > { %8663 = vmatprep.subr.bf16.mxu0 %v14974_v56 }
 0x183   : > { %8142 = vmatmul.mubr.msk.f32.gmra.mrb[12].mxu0 %vm1144_vm4, %v10546_v48 }
 0x184   : > { %8144 = vmatprep.mubr.msk.f32.mxu0 %vm1144_vm4, %v10563_v17 }
 0x187   : > { %8145 = vmatmul.mubr.msk.f32.gmra.mrb[14].mxu0 %vm1144_vm4, %v10560_v8 }
 0x188   : > { %8147 = vmatprep.mubr.msk.f32.mxu0 %vm1144_vm4, %v10577_v28 }
 0x18b   : > { %8148 = vmatmul.mubr.msk.f32.gmra.mrb[16].mxu0 %vm1144_vm4, %v10574_v21 }
 0x18c   : > { %8150 = vmatprep.mubr.msk.f32.mxu0 %vm1144_vm4, %v10591_v57 }
 0x18f   : > { %8151 = vmatmul.mubr.msk.f32.gmra.mrb[18].mxu0 %vm1144_vm4, %v10588_v38 }
 0x190   : > { %8153 = vmatprep.mubr.msk.f32.mxu0 %vm1144_vm4, %v10605_v31 }
 0x193   : > { %8154 = vmatmul.mubr.msk.f32.gmra.mrb[20].mxu0 %vm1144_vm4, %v10602_v3 }
 0x194   : > { %8156 = vmatprep.mubr.msk.f32.mxu0 %vm1144_vm4, %v10619_v50 }
 0x197   : > { %8157 = vmatmul.mubr.msk.f32.gmra.mrb[22].mxu0 %vm1144_vm4, %v10616_v53 }
 0x198   : > { %8159 = vmatprep.mubr.msk.f32.mxu0 %vm1144_vm4, %v10633_v16 }
 0x19b   : > { %8160 = vmatmul.mubr.msk.f32.gmra.mrb[24].mxu0 %vm1144_vm4, %v10630_v11 }
 0x19c   : > { %8162 = vmatprep.mubr.msk.f32.mxu0 %vm1144_vm4, %v10647_v34 }
 0x19f   : > { %8163 = vmatmul.mubr.msk.f32.gmra.mrb[26].mxu0 %vm1144_vm4, %v10644_v22 }
 0x1a0   : > { %8165 = vmatprep.mubr.msk.f32.mxu0 %vm1144_vm4, %v10661_v47 }
 0x1a3   : > { %8166 = vmatmul.mubr.msk.f32.gmra.mrb[28].mxu0 %vm1144_vm4, %v10658_v39 }
 0x1a4   : > { %8168 = vmatprep.mubr.msk.f32.mxu0 %vm1144_vm4, %v1127_v33 }
 0x1a7   : > { %8169 = vmatmul.mubr.msk.f32.gmra.mrb[30].mxu0 %vm1144_vm4, %v1128_v61 }
 0x1a8   : > { %8195 = vmatprep.mubr.msk.f32.mxu0 %vm1144_vm4, %v10464_v41  ;;  %v1093_v41 = vsel %vm487_vm1, %v10417_v12, %v821_v63  ;;  %v2758_v12 = vld [vmem:[%s14959_s3 + $0x30] sm:$0xff] }
 0x1ab   : > { %8196 = vmatmul.mubr.msk.f32.vlgmr.msra.gmra.mrb[0].mxu0 %vm1144_vm4, %v10461_v9  ;;  %v823_v9 = vpop.permute.xlu1 %822 }
 0x1ac   : > { %8198 = vmatprep.mubr.msk.f32.mxu0 %vm1144_vm4, %v10492_v4  ;;  %v1094_v4 = vsel %vm487_vm1, %v10451_v23, %v823_v9 }
 0x1af   : > { %8199 = vmatmul.mubr.msk.f32.gmra.mrb[2].mxu0 %vm1144_vm4, %v10489_v60  ;;  %v1020_v60 = vpop.permute.xlu0 %1019 }
 0x1b0   : > { %8201 = vmatprep.mubr.msk.f32.mxu0 %vm1144_vm4, %v10507_v18  ;;  %v1022_v18 = vpop.permute.xlu1 %1021 }
 0x1b3   : > { %8202 = vmatmul.mubr.msk.f32.gmra.mrb[4].mxu0 %vm1144_vm4, %v10504_v14  ;;  %v1129_v14 = vsel %vm366_vm0, %v1093_v41, %v1020_v60 }
 0x1b4   : > { %8204 = vmatprep.mubr.msk.f32.mxu0 %vm1144_vm4, %v10521_v35  ;;  %v2759_v35 = vld [vmem:[%s14959_s3 + $0x38] sm:$0xff] }
 0x1b5   : > { %v8565_v23 = vpack.c.bf16 %v2759_v35, %v2758_v12 }
 0x1b7   : > { %8205 = vmatmul.mubr.msk.f32.gmra.mrb[6].mxu0 %vm1144_vm4, %v10518_v32  ;;  %v1130_v32 = vsel %vm366_vm0, %v1094_v4, %v1022_v18  ;;  %8566 = vmatpush1.bf16.msra.mxu1 %v8565_v23 }
 0x1b8   : > { %8207 = vmatprep.mubr.msk.f32.mxu0 %vm1144_vm4, %v10535_v62  ;;  %8567 = vmatprep.subr.bf16.mxu1 %v14974_v56  ;;  %v2761_v62 = vld [vmem:[%s14959_s3 + $0x48] sm:$0xff] }
 0x1bb   : > { %8208 = vmatmul.mubr.msk.f32.gmra.mrb[8].mxu0 %vm1144_vm4, %v10532_v42  ;;  %v2760_v42 = vld [vmem:[%s14959_s3 + $0x40] sm:$0xff] }
 0x1bc   : > { %8210 = vmatprep.mubr.msk.f32.mxu0 %vm1144_vm4, %v10549_v58  ;;  %v2762_v58 = vld [vmem:[%s14959_s3 + $0x50] sm:$0xff] }
 0x1bf   : > { %8211 = vmatmul.mubr.msk.f32.gmra.mrb[10].mxu0 %vm1144_vm4, %v10546_v48  ;;  %v8568_v48 = vpack.c.bf16 %v2761_v62, %v2760_v42 }
 0x1c0   : > { %8213 = vmatprep.mubr.msk.f32.mxu0 %vm1144_vm4, %v10563_v17 }
 0x1c1   : > { %8569 = vmatpush1.bf16.msra.mxu1 %v8568_v48 }
 0x1c2   : > { %8570 = vmatprep.subr.bf16.mxu1 %v14974_v56 }
 0x1c3   : > { %8214 = vmatmul.mubr.msk.f32.gmra.mrb[12].mxu0 %vm1144_vm4, %v10560_v8  ;;  %v2763_v8 = vld [vmem:[%s14959_s3 + $0x58] sm:$0xff] }
 0x1c4   : > { %8216 = vmatprep.mubr.msk.f32.mxu0 %vm1144_vm4, %v10577_v28  ;;  %v8571_v17 = vpack.c.bf16 %v2763_v8, %v2762_v58  ;;  %v2765_v28 = vld [vmem:[%s14959_s3 + $0x68] sm:$0xff] }
 0x1c6   : > { %8572 = vmatpush1.bf16.msra.mxu1 %v8571_v17 }
 0x1c7   : > { %8217 = vmatmul.mubr.msk.f32.gmra.mrb[14].mxu0 %vm1144_vm4, %v10574_v21  ;;  %8573 = vmatprep.subr.bf16.mxu1 %v14974_v56  ;;  %v2764_v21 = vld [vmem:[%s14959_s3 + $0x60] sm:$0xff] }
 0x1c8   : > { %8219 = vmatprep.mubr.msk.f32.mxu0 %vm1144_vm4, %v10591_v57  ;;  %v2766_v57 = vld [vmem:[%s14959_s3 + $0x70] sm:$0xff] }
 0x1cb   : > { %8220 = vmatmul.mubr.msk.f32.gmra.mrb[16].mxu0 %vm1144_vm4, %v10588_v38  ;;  %v8574_v38 = vpack.c.bf16 %v2765_v28, %v2764_v21 }
 0x1cc   : > { %8222 = vmatprep.mubr.msk.f32.mxu0 %vm1144_vm4, %v10605_v31 }
 0x1cd   : > { %8575 = vmatpush1.bf16.msra.mxu1 %v8574_v38 }
 0x1ce   : > { %8576 = vmatprep.subr.bf16.mxu1 %v14974_v56 }
 0x1cf   : > { %8223 = vmatmul.mubr.msk.f32.gmra.mrb[18].mxu0 %vm1144_vm4, %v10602_v3  ;;  %v2767_v3 = vld [vmem:[%s14959_s3 + $0x78] sm:$0xff] }
 0x1d0   : > { %8225 = vmatprep.mubr.msk.f32.mxu0 %vm1144_vm4, %v10619_v50  ;;  %v8577_v31 = vpack.c.bf16 %v2767_v3, %v2766_v57  ;;  %v2769_v50 = vld [vmem:[%s14959_s3 + $0x88] sm:$0xff] }
 0x1d2   : > { %8578 = vmatpush1.bf16.msra.mxu1 %v8577_v31 }
 0x1d3   : > { %8226 = vmatmul.mubr.msk.f32.gmra.mrb[20].mxu0 %vm1144_vm4, %v10616_v53  ;;  %8579 = vmatprep.subr.bf16.mxu1 %v14974_v56  ;;  %v2768_v53 = vld [vmem:[%s14959_s3 + $0x80] sm:$0xff] }
 0x1d4   : > { %8228 = vmatprep.mubr.msk.f32.mxu0 %vm1144_vm4, %v10633_v16  ;;  %v2770_v16 = vld [vmem:[%s14959_s3 + $0x90] sm:$0xff] }
 0x1d7   : > { %8229 = vmatmul.mubr.msk.f32.gmra.mrb[22].mxu0 %vm1144_vm4, %v10630_v11  ;;  %v8580_v11 = vpack.c.bf16 %v2769_v50, %v2768_v53 }
 0x1d8   : > { %8231 = vmatprep.mubr.msk.f32.mxu0 %vm1144_vm4, %v10647_v34  ;;  %v2482_v13 = vpop.permute.xlu1 %2481 }
 0x1d9   : > { %8581 = vmatpush1.bf16.msra.mxu1 %v8580_v11  ;;  %v2678_v20 = vsel %vm366_vm0, %v10772_v55, %v2482_v13 }
 0x1da   : > { %8582 = vmatprep.subr.bf16.mxu1 %v14974_v56 }
 0x1db   : > { %8232 = vmatmul.mubr.msk.f32.gmra.mrb[24].mxu0 %vm1144_vm4, %v10644_v22  ;;  %v2771_v22 = vld [vmem:[%s14959_s3 + $0x98] sm:$0xff] }
 0x1dc   : > { %8234 = vmatprep.mubr.msk.f32.mxu0 %vm1144_vm4, %v10661_v47  ;;  %v8583_v34 = vpack.c.bf16 %v2771_v22, %v2770_v16  ;;  %v2773_v47 = vld [vmem:[%s14959_s3 + $0xa8] sm:$0xff] }
 0x1de   : > { %8584 = vmatpush1.bf16.msra.mxu1 %v8583_v34 }
 0x1df   : > { %8235 = vmatmul.mubr.msk.f32.gmra.mrb[26].mxu0 %vm1144_vm4, %v10658_v39  ;;  %8585 = vmatprep.subr.bf16.mxu1 %v14974_v56  ;;  %v2772_v39 = vld [vmem:[%s14959_s3 + $0xa0] sm:$0xff] }
 0x1e0   : > { %8237 = vmatprep.mubr.msk.f32.mxu0 %vm1144_vm4, %v1127_v33  ;;  %v8586_v7 = vpack.c.bf16 %v2773_v47, %v2772_v39 }
 0x1e2   : > { %8587 = vmatpush1.bf16.msra.mxu1 %v8586_v7 }
 0x1e3   : > { %8238 = vmatmul.mubr.msk.f32.gmra.mrb[28].mxu0 %vm1144_vm4, %v1128_v61  ;;  %8588 = vmatprep.subr.bf16.mxu1 %v14974_v56  ;;  %v2480_v54 = vpop.permute.xlu0 %2479 }
 0x1e4   : > { %8240 = vmatprep.mubr.msk.f32.mxu0 %vm1144_vm4, %v1129_v14  ;;  %v2677_v10 = vsel %vm366_vm0, %v10793_v52, %v2480_v54  ;;  %v7439_v52 = vld [vmem:[%s14959_s3 + $0xc8] sm:$0xff] }
 0x1e5   : > { %v8592_v36 = vpack.c.bf16 %v7439_v52, %v7438_v30 }
 0x1e6   : > { %8590 = vmatpush1.bf16.msra.mxu1 %v8589_v59 }
 0x1e7   : > { %8241 = vmatmul.mubr.msk.f32.gmra.mrb[30].mxu0 %vm1144_vm4, %v1130_v32  ;;  %8591 = vmatprep.subr.bf16.mxu1 %v14974_v56 }
 0x1e9   : > { %2905 = vmatmul.mubr.f32.vlgmr.msra.gmra.mrb[0].mxu1 %v2677_v10 }
 0x1ea   : > { %7407 = vmatprep.mubr.msk.f32.mxu1 %vm366_vm0, %v2591_v45  ;;  %8593 = vmatpush1.bf16.msra.mxu1 %v8592_v36 }
 0x1eb   : > { %8594 = vmatprep.subr.bf16.mxu1 %v14974_v56 }
 0x1ed   : > { %2910 = vmatmul.mubr.f32.gmra.mrb[2].mxu1 %v2678_v20 }
 0x27e   : > { %v8197_v27 = vpop.f32.mrb[0].mxu0 }
 0x27f   : > { %v11031_v55 = vadd.f32 %v8197_v27, %v11028_v43  ;;  %v1865_v1 = vpop.f32.mrb[1].mxu0 }
 0x280   : > { %v11034_v6 = vadd.f32 %v11028_v43, %v1865_v1 }
 0x281   : > { %15137 = vst [vmem:[#allocation15_spill] sm:$0xff] %v11031_v55  ;;  %v7374_v37 = vmul.f32 -1.442695, %v11031_v55 }
 0x282   : > { %15138 = vst [vmem:[#allocation16_spill] sm:$0xff] %v11034_v6  ;;  %v7373_v0 = vmul.f32 -1.442695, %v11034_v6  ;;  %v8200_v49 = vpop.f32.mrb[2].mxu0 }
 0x283   : > { %9492 = vpow2.f32 %v7374_v37  ;;  %v11039_v25 = vadd.f32 %v8200_v49, %v11028_v43  ;;  %v1875_v29 = vpop.f32.mrb[3].mxu0 }
 0x284   : > { %9494 = vpow2.f32 %v7373_v0  ;;  %v11042_v40 = vadd.f32 %v11028_v43, %v1875_v29 }
 0x285   : > { %15139 = vst [vmem:[#allocation17_spill] sm:$0xff] %v11039_v25  ;;  %v7376_v2 = vmul.f32 -1.442695, %v11039_v25 }
 0x286   : > { %15140 = vst [vmem:[#allocation18_spill] sm:$0xff] %v11042_v40  ;;  %v7375_v33 = vmul.f32 -1.442695, %v11042_v40  ;;  %v8203_v44 = vpop.f32.mrb[4].mxu0 }
 0x287   : > { %9496 = vpow2.f32 %v7376_v2  ;;  %v11047_v5 = vadd.f32 %v8203_v44, %v11028_v43  ;;  %v1885_v61 = vpop.f32.mrb[5].mxu0 }
 0x288   : > { %9498 = vpow2.f32 %v7375_v33  ;;  %v11050_v63 = vadd.f32 %v11028_v43, %v1885_v61 }
 0x289   : > { %15141 = vst [vmem:[#allocation19_spill] sm:$0xff] %v11047_v5  ;;  %v7378_v9 = vmul.f32 -1.442695, %v11047_v5 }
 0x28a   : > { %15142 = vst [vmem:[#allocation20_spill] sm:$0xff] %v11050_v63  ;;  %v7377_v41 = vmul.f32 -1.442695, %v11050_v63  ;;  %v8206_v60 = vpop.f32.mrb[6].mxu0 }
 0x28b   : > { %9500 = vpow2.f32 %v7378_v9  ;;  %v11055_v4 = vadd.f32 %v8206_v60, %v11028_v43  ;;  %v1895_v14 = vpop.f32.mrb[7].mxu0  ;;  %v7441_v60 = vld [vmem:[%s14959_s3 + $0xd8] sm:$0xff] }
 0x28c   : > { %9502 = vpow2.f32 %v7377_v41  ;;  %v11058_v18 = vadd.f32 %v11028_v43, %v1895_v14  ;;  %v7440_v41 = vld [vmem:[%s14959_s3 + $0xd0] sm:$0xff] }
 0x28d   : > { %15143 = vst [vmem:[#allocation21_spill] sm:$0xff] %v11055_v4  ;;  %v9493_v32 = vpop.eup %9492  ;;  %v7380_v12 = vmul.f32 -1.442695, %v11055_v4 }
 0x28e   : > { %15144 = vst [vmem:[#allocation22_spill] sm:$0xff] %v11058_v18  ;;  %v9495_v35 = vpop.eup %9494  ;;  %v2153_v23 = vadd.f32 1.0, %v9493_v32  ;;  %v7379_v42 = vmul.f32 -1.442695, %v11058_v18  ;;  %v8209_v62 = vpop.f32.mrb[8].mxu0 }
 0x28f   : > { %v2152_v48 = vadd.f32 1.0, %v9495_v35  ;;  %9504 = vpow2.f32 %v7380_v12  ;;  %v11063_v58 = vadd.f32 %v8209_v62, %v11028_v43  ;;  %v1905_v8 = vpop.f32.mrb[9].mxu0  ;;  %v8595_v12 = vpack.c.bf16 %v7441_v60, %v7440_v41 }
 0x290   : > { %9506 = vrcp.f32 %v2153_v23  ;;  %v11066_v17 = vadd.f32 %v11028_v43, %v1905_v8 }
 0x291   : > { %15145 = vst [vmem:[#allocation23_spill] sm:$0xff] %v11063_v58  ;;  %v9497_v21 = vpop.eup %9496  ;;  %9508 = vrcp.f32 %v2152_v48  ;;  %v7382_v28 = vmul.f32 -1.442695, %v11063_v58  ;;  %8596 = vmatpush1.bf16.msra.mxu1 %v8595_v12 }
 0x292   : > { %15146 = vst [vmem:[#allocation24_spill] sm:$0xff] %v11066_v17  ;;  %v9499_v38 = vpop.eup %9498  ;;  %v2155_v57 = vadd.f32 1.0, %v9497_v21  ;;  %9510 = vpow2.f32 %v7379_v42  ;;  %v7381_v3 = vmul.f32 -1.442695, %v11066_v17  ;;  %v8212_v31 = vpop.f32.mrb[10].mxu0  ;;  %8597 = vmatprep.subr.bf16.mxu1 %v14974_v56 }
 0x293   : > { %v2154_v53 = vadd.f32 1.0, %v9499_v38  ;;  %9512 = vpow2.f32 %v7382_v28  ;;  %v11071_v50 = vadd.f32 %v8212_v31, %v11028_v43  ;;  %v1915_v11 = vpop.f32.mrb[11].mxu0 }
 0x294   : > { %9514 = vrcp.f32 %v2155_v57  ;;  %v11074_v16 = vadd.f32 %v11028_v43, %v1915_v11 }
 0x295   : > { %15147 = vst [vmem:[#allocation25_spill] sm:$0xff] %v11071_v50  ;;  %v9501_v22 = vpop.eup %9500  ;;  %9516 = vrcp.f32 %v2154_v53  ;;  %v7384_v34 = vmul.f32 -1.442695, %v11071_v50 }
 0x296   : > { %15148 = vst [vmem:[#allocation26_spill] sm:$0xff] %v11074_v16  ;;  %v9503_v39 = vpop.eup %9502  ;;  %v2157_v47 = vadd.f32 1.0, %v9501_v22  ;;  %9518 = vpow2.f32 %v7381_v3  ;;  %v7383_v7 = vmul.f32 -1.442695, %v11074_v16  ;;  %v8215_v46 = vpop.f32.mrb[12].mxu0 }
 0x297   : > { %v2156_v51 = vadd.f32 1.0, %v9503_v39  ;;  %9520 = vpow2.f32 %v7384_v34  ;;  %v11079_v59 = vadd.f32 %v8215_v46, %v11028_v43  ;;  %v1925_v24 = vpop.f32.mrb[13].mxu0 }
 0x298   : > { %9522 = vrcp.f32 %v2157_v47  ;;  %v11082_v26 = vadd.f32 %v11028_v43, %v1925_v24 }
 0x299   : > { %15149 = vst [vmem:[#allocation27_spill] sm:$0xff] %v11079_v59  ;;  %v9505_v54 = vpop.eup %9504  ;;  %9524 = vrcp.f32 %v2156_v51  ;;  %v7386_v15 = vmul.f32 -1.442695, %v11079_v59 }
 0x29a   : > { %15150 = vst [vmem:[#allocation28_spill] sm:$0xff] %v11082_v26  ;;  %v9507_v10 = vpop.eup %9506  ;;  %v2159_v19 = vadd.f32 1.0, %v9505_v54  ;;  %9526 = vpow2.f32 %v7383_v7  ;;  %v7385_v13 = vmul.f32 -1.442695, %v11082_v26  ;;  %v8218_v45 = vpop.f32.mrb[14].mxu0 }
 0x29b   : > { %v9509_v20 = vpop.eup %9508  ;;  %2250 = vst.msk [vmem:[#allocation2 + $0x21] sm:$0xff] %vm366_vm0, %v9507_v10  ;;  %9528 = vpow2.f32 %v7386_v15  ;;  %v11088_v30 = vadd.f32 %v8218_v45, %v11028_v43  ;;  %v1935_v52 = vpop.f32.mrb[15].mxu0 }
 0x29c   : > { %v9511_v36 = vpop.eup %9510  ;;  %2249 = vst.msk [vmem:[#allocation2 + $0x19] sm:$0xff] %vm366_vm0, %v9509_v20  ;;  %9530 = vrcp.f32 %v2159_v19  ;;  %v11092_v27 = vadd.f32 %v11028_v43, %v1935_v52 }
 0x29d   : > { %15151 = vst [vmem:[#allocation29_spill] sm:$0xff] %v11088_v30  ;;  %v9513_v1 = vpop.eup %9512  ;;  %v2158_v37 = vadd.f32 1.0, %v9511_v36  ;;  %9532 = vpow2.f32 %v7385_v13  ;;  %v7388_v0 = vmul.f32 -1.442695, %v11088_v30 }
 0x29e   : > { %15152 = vst [vmem:[#allocation30_spill] sm:$0xff] %v11092_v27  ;;  %v9515_v49 = vpop.eup %9514  ;;  %v2161_v29 = vadd.f32 1.0, %v9513_v1  ;;  %v7387_v2 = vmul.f32 -1.442695, %v11092_v27  ;;  %v8221_v33 = vpop.f32.mrb[16].mxu0 }
 0x29f   : > { %v9517_v44 = vpop.eup %9516  ;;  %2252 = vst.msk [vmem:[#allocation2 + $0x39] sm:$0xff] %vm366_vm0, %v9515_v49  ;;  %9534 = vrcp.f32 %v2158_v37  ;;  %v11098_v61 = vadd.f32 %v8221_v33, %v11028_v43  ;;  %v1945_v9 = vpop.f32.mrb[17].mxu0 }
 0x2a0   : > { %v9519_v14 = vpop.eup %9518  ;;  %2251 = vst.msk [vmem:[#allocation2 + $0x31] sm:$0xff] %vm366_vm0, %v9517_v44  ;;  %9536 = vrcp.f32 %v2161_v29  ;;  %v11108_v32 = vadd.f32 %v11028_v43, %v1945_v9 }
 0x2a1   : > { %15153 = vst [vmem:[#allocation31_spill] sm:$0xff] %v11098_v61  ;;  %v9521_v35 = vpop.eup %9520  ;;  %v2160_v23 = vadd.f32 1.0, %v9519_v14  ;;  %9538 = vpow2.f32 %v7388_v0  ;;  %v7390_v42 = vmul.f32 -1.442695, %v11098_v61  ;;  %v7449_v61 = vld [vmem:[%s14959_s3 + $0x118] sm:$0xff] }
 0x2a2   : > { %15154 = vst [vmem:[#allocation32_spill] sm:$0xff] %v11108_v32  ;;  %v9523_v62 = vpop.eup %9522  ;;  %v2163_v48 = vadd.f32 1.0, %v9521_v35  ;;  %9540 = vpow2.f32 %v7387_v2  ;;  %v7389_v8 = vmul.f32 -1.442695, %v11108_v32  ;;  %v8224_v21 = vpop.f32.mrb[18].mxu0 }
 0x2a3   : > { %v11112_v28 = vld [vmem:[#allocation2 + $0x28] sm:$0x3]  ;;  %v9525_v38 = vpop.eup %9524  ;;  %2254 = vst.msk [vmem:[#allocation2 + $0x51] sm:$0xff] %vm366_vm0, %v9523_v62  ;;  %9542 = vrcp.f32 %v2160_v23  ;;  %v11116_v57 = vadd.f32 %v8224_v21, %v11028_v43  ;;  %v1955_v3 = vpop.f32.mrb[19].mxu0  ;;  %v11118_v31 = vld [vmem:[#allocation2 + $0x20] sm:$0xff]  ;;  %v11121_v11 = vld [vmem:[#allocation2 + $0x18] sm:$0xff] }
 0x2a4   : > { %v2397_v53 = vrot.slane %v11112_v28, 1  ;;  %v9527_v22 = vpop.eup %9526  ;;  %2253 = vst.msk [vmem:[#allocation2 + $0x49] sm:$0xff] %vm366_vm0, %v9525_v38  ;;  %9544 = vrcp.f32 %v2163_v48  ;;  %v11126_v34 = vadd.f32 %v11028_v43, %v1955_v3  ;;  %v2395_v39 = vrot.slane %v11118_v31, 1 }
 0x2a5   : > { %15155 = vst [vmem:[#allocation33_spill] sm:$0xff] %v11116_v57  ;;  %v2394_v47 = vrot.slane %v11121_v11, 1  ;;  %v9529_v7 = vpop.eup %9528  ;;  %v2162_v46 = vadd.f32 1.0, %v9527_v22  ;;  %9546 = vpow2.f32 %v7390_v42  ;;  %v7392_v51 = vmul.f32 -1.442695, %v11116_v57  ;;  %v7442_v22 = vld [vmem:[%s14959_s3 + $0xe0] sm:$0xff] }
 0x2a6   : > { %15156 = vst [vmem:[#allocation34_spill] sm:$0xff] %v11126_v34  ;;  %v2592_v24 = vrot.slane %v11121_v11, 2  ;;  %v9531_v54 = vpop.eup %9530  ;;  %v2165_v15 = vadd.f32 1.0, %v9529_v7  ;;  %9548 = vpow2.f32 %v7389_v8  ;;  %v7391_v10 = vmul.f32 -1.442695, %v11126_v34  ;;  %v8227_v19 = vpop.f32.mrb[20].mxu0 }
 0x2a7   : > { %v2398_v13 = vsel %vm661_vm3, %v2395_v39, %v2397_v53  ;;  %v11134_v45 = vld [vmem:[#allocation2 + $0x40] sm:$0x3]  ;;  %v9533_v20 = vpop.eup %9532  ;;  %2256 = vst.msk [vmem:[#allocation2 + $0x69] sm:$0xff] %vm366_vm0, %v9531_v54  ;;  %9550 = vrcp.f32 %v2162_v46  ;;  %v11138_v52 = vadd.f32 %v8227_v19, %v11028_v43  ;;  %v1965_v36 = vpop.f32.mrb[21].mxu0  ;;  %v2396_v1 = vsel %vm661_vm3, %v2394_v47, %v2395_v39  ;;  %v11143_v0 = vld [vmem:[#allocation2 + $0x38] sm:$0xff]  ;;  %v11145_v49 = vld [vmem:[#allocation2 + $0x30] sm:$0xff] }
 0x2a8   : > { %2485 = vrot.lane.b32.xlu1 %v2398_v13, %s9791_s15  ;;  %v14973_v37 = vrot.slane %v11118_v31, 2  ;;  %9552 = vrcp.f32 %v2165_v15  ;;  %v2164_v29 = vadd.f32 1.0, %v9533_v20  ;;  %v11148_v2 = vadd.f32 %v11028_v43, %v1965_v36  ;;  %2483 = vrot.lane.b32.xlu0 %v2396_v1, %s9791_s15 }
 0x2a9   : > { %15157 = vst [vmem:[#allocation35_spill] sm:$0xff] %v11138_v52  ;;  %v2400_v33 = vrot.slane %v11143_v0, 1  ;;  %v9535_v44 = vpop.eup %9534  ;;  %9554 = vpow2.f32 %v7392_v51  ;;  %v7394_v9 = vmul.f32 -1.442695, %v11138_v52  ;;  %v2402_v60 = vrot.slane %v11134_v45, 1  ;;  %v7443_v51 = vld [vmem:[%s14959_s3 + $0xe8] sm:$0xff] }
 0x2aa   : > { %15158 = vst [vmem:[#allocation36_spill] sm:$0xff] %v11148_v2  ;;  %v11156_v41 = vsel %vm860_vm2, %v2592_v24, %v14973_v37  ;;  %v9537_v14 = vpop.eup %9536  ;;  %2255 = vst.msk [vmem:[#allocation2 + $0x61] sm:$0xff] %vm366_vm0, %v9535_v44  ;;  %9556 = vrcp.f32 %v2164_v29  ;;  %v7393_v12 = vmul.f32 -1.442695, %v11148_v2  ;;  %v8230_v35 = vpop.f32.mrb[22].mxu0  ;;  %v2399_v23 = vrot.slane %v11145_v49, 1 }
 0x2ab   : > { %7408 = vmatprep.mubr.msk.f32.mxu1 %vm366_vm0, %v11156_v41  ;;  %v11164_v42 = vld [vmem:[#allocation2 + $0x58] sm:$0x3]  ;;  %v9539_v62 = vpop.eup %9538  ;;  %2258 = vst.msk [vmem:[#allocation2 + $0x81] sm:$0xff] %vm366_vm0, %v9537_v14  ;;  %9558 = vpow2.f32 %v7391_v10  ;;  %v11168_v48 = vadd.f32 %v8230_v35, %v11028_v43  ;;  %v1975_v8 = vpop.f32.mrb[23].mxu0  ;;  %v2403_v21 = vsel %vm661_vm3, %v2400_v33, %v2402_v60  ;;  %v11171_v38 = vld [vmem:[#allocation2 + $0x50] sm:$0xff]  ;;  %v11174_v53 = vld [vmem:[#allocation2 + $0x48] sm:$0xff]  ;;  %v8598_v29 = vpack.c.bf16 %v7443_v51, %v7442_v22 }
 0x2ac   : > { %v2407_v3 = vrot.slane %v11164_v42, 1  ;;  %v9541_v39 = vpop.eup %9540  ;;  %v2167_v47 = vadd.f32 1.0, %v9539_v62  ;;  %9560 = vpow2.f32 %v7394_v9  ;;  %v11180_v7 = vadd.f32 %v11028_v43, %v1975_v8  ;;  %2489 = vrot.lane.b32.xlu1 %v2403_v21, %s9791_s15 }
 0x2ad   : > { %15159 = vst [vmem:[#allocation37_spill] sm:$0xff] %v11168_v48  ;;  %v2401_v46 = vsel %vm661_vm3, %v2399_v23, %v2400_v33  ;;  %v9543_v24 = vpop.eup %9542  ;;  %v2166_v54 = vadd.f32 1.0, %v9541_v39  ;;  %9562 = vpow2.f32 %v7393_v12  ;;  %v7396_v15 = vmul.f32 -1.442695, %v11168_v48  ;;  %8599 = vmatpush1.bf16.msra.mxu1 %v8598_v29 }
 0x2ae   : > { %15160 = vst [vmem:[#allocation38_spill] sm:$0xff] %v11180_v7  ;;  %2487 = vrot.lane.b32.xlu0 %v2401_v46, %s9791_s15  ;;  %v2405_v10 = vrot.slane %v11171_v38, 1  ;;  %v9545_v19 = vpop.eup %9544  ;;  %2257 = vst.msk [vmem:[#allocation2 + $0x79] sm:$0xff] %vm366_vm0, %v9543_v24  ;;  %9564 = vrcp.f32 %v2167_v47  ;;  %v7395_v13 = vmul.f32 -1.442695, %v11180_v7  ;;  %v8233_v20 = vpop.f32.mrb[24].mxu0  ;;  %8600 = vmatprep.subr.bf16.mxu1 %v14974_v56 }
 0x2af   : > { %v2404_v36 = vrot.slane %v11174_v53, 1  ;;  %v11193_v1 = vld [vmem:[#allocation2 + $0x70] sm:$0x3]  ;;  %v9547_v33 = vpop.eup %9546  ;;  %2260 = vst.msk [vmem:[#allocation2 + $0x99] sm:$0xff] %vm366_vm0, %v9545_v19  ;;  %9566 = vrcp.f32 %v2166_v54  ;;  %v11197_v44 = vadd.f32 %v8233_v20, %v11028_v43  ;;  %v1985_v9 = vpop.f32.mrb[25].mxu0 }
 0x2b0   : > { %v2408_v60 = vsel %vm661_vm3, %v2405_v10, %v2407_v3  ;;  %v2412_v14 = vrot.slane %v11193_v1, 1  ;;  %v9549_v12 = vpop.eup %9548  ;;  %v2169_v35 = vadd.f32 1.0, %v9547_v33  ;;  %9568 = vpow2.f32 %v7396_v15 }
 0x2b1   : > { %15161 = vst [vmem:[#allocation39_spill] sm:$0xff] %v11197_v44  ;;  %v11202_v23 = vadd.f32 %v11028_v43, %v1985_v9  ;;  %2493 = vrot.lane.b32.xlu1 %v2408_v60, %s9791_s15  ;;  %v2406_v62 = vsel %vm661_vm3, %v2404_v36, %v2405_v10  ;;  %v9551_v8 = vpop.eup %9550  ;;  %v2168_v21 = vadd.f32 1.0, %v9549_v12  ;;  %9570 = vpow2.f32 %v7395_v13  ;;  %v11208_v3 = vld [vmem:[#allocation2 + $0x68] sm:$0xff]  ;;  %v11210_v39 = vld [vmem:[#allocation2 + $0x60] sm:$0xff] }
 0x2b2   : > { %v7398_v22 = vmul.f32 -1.442695, %v11197_v44  ;;  %2491 = vrot.lane.b32.xlu0 %v2406_v62, %s9791_s15  ;;  %v9553_v47 = vpop.eup %9552  ;;  %2259 = vst.msk [vmem:[#allocation2 + $0x91] sm:$0xff] %vm366_vm0, %v9551_v8  ;;  %9572 = vrcp.f32 %v2169_v35  ;;  %v8236_v51 = vpop.f32.mrb[26].mxu0  ;;  %v2410_v24 = vrot.slane %v11208_v3, 1  ;;  %v2409_v54 = vrot.slane %v11210_v39, 1 }
 0x2b3   : > { %15162 = vst [vmem:[#allocation40_spill] sm:$0xff] %v11202_v23  ;;  %v7397_v46 = vmul.f32 -1.442695, %v11202_v23  ;;  %v9555_v15 = vpop.eup %9554  ;;  %2262 = vst.msk [vmem:[#allocation2 + $0xb1] sm:$0xff] %vm366_vm0, %v9553_v47  ;;  %9574 = vrcp.f32 %v2168_v21  ;;  %v11219_v10 = vadd.f32 %v8236_v51, %v11028_v43  ;;  %v1995_v19 = vpop.f32.mrb[27].mxu0 }
 0x2b4   : > { %v11221_v13 = vld [vmem:[#allocation2 + $0x88] sm:$0x3]  ;;  %v9557_v20 = vpop.eup %9556  ;;  %v2171_v36 = vadd.f32 1.0, %v9555_v15  ;;  %9576 = vpow2.f32 %v7398_v22  ;;  %v11224_v29 = vadd.f32 %v11028_v43, %v1995_v19  ;;  %v2413_v33 = vsel %vm661_vm3, %v2410_v24, %v2412_v14 }
 0x2b5   : > { %15163 = vst [vmem:[#allocation41_spill] sm:$0xff] %v11219_v10  ;;  %v9559_v9 = vpop.eup %9558  ;;  %2261 = vst.msk [vmem:[#allocation2 + $0xa9] sm:$0xff] %vm366_vm0, %v9557_v20  ;;  %9578 = vpow2.f32 %v7397_v46  ;;  %v7400_v60 = vmul.f32 -1.442695, %v11219_v10  ;;  %2497 = vrot.lane.b32.xlu1 %v2413_v33, %s9791_s15  ;;  %v2411_v12 = vsel %vm661_vm3, %v2409_v54, %v2410_v24  ;;  %v11231_v35 = vld [vmem:[#allocation2 + $0x80] sm:$0xff]  ;;  %v2417_v62 = vrot.slane %v11221_v13, 1 }
 0x2b6   : > { %15164 = vst [vmem:[#allocation42_spill] sm:$0xff] %v11224_v29  ;;  %v11234_v8 = vld [vmem:[#allocation2 + $0x78] sm:$0xff]  ;;  %v9561_v21 = vpop.eup %9560  ;;  %9580 = vrcp.f32 %v2171_v36  ;;  %v2170_v22 = vadd.f32 1.0, %v9559_v9  ;;  %v7399_v14 = vmul.f32 -1.442695, %v11224_v29  ;;  %2495 = vrot.lane.b32.xlu0 %v2411_v12, %s9791_s15  ;;  %v8239_v47 = vpop.f32.mrb[28].mxu0 }
 0x2b7   : > { %v2415_v46 = vrot.slane %v11231_v35, 1  ;;  %v9563_v51 = vpop.eup %9562  ;;  %v2173_v15 = vadd.f32 1.0, %v9561_v21  ;;  %9582 = vpow2.f32 %v7400_v60  ;;  %v11240_v24 = vadd.f32 %v8239_v47, %v11028_v43  ;;  %v2005_v54 = vpop.f32.mrb[29].mxu0  ;;  %v11243_v20 = vld [vmem:[#allocation2 + $0xa0] sm:$0x3] }
 0x2b8   : > { %v2414_v19 = vrot.slane %v11234_v8, 1  ;;  %v9565_v36 = vpop.eup %9564  ;;  %9584 = vrcp.f32 %v2170_v22  ;;  %v2172_v33 = vadd.f32 1.0, %v9563_v51  ;;  %v11246_v9 = vadd.f32 %v11028_v43, %v2005_v54 }
 0x2b9   : > { %15165 = vst [vmem:[#allocation43_spill] sm:$0xff] %v11240_v24  ;;  %v2418_v12 = vsel %vm661_vm3, %v2415_v46, %v2417_v62  ;;  %v9567_v37 = vpop.eup %9566  ;;  %2264 = vst.msk [vmem:[#allocation2 + $0xc9] sm:$0xff] %vm366_vm0, %v9565_v36  ;;  %9586 = vrcp.f32 %v2173_v15  ;;  %v7402_v60 = vmul.f32 -1.442695, %v11240_v24  ;;  %v11253_v47 = vld [vmem:[#allocation2 + $0x98] sm:$0xff]  ;;  %v2422_v22 = vrot.slane %v11243_v20, 1 }
 0x2ba   : > { %15166 = vst [vmem:[#allocation44_spill] sm:$0xff] %v11246_v9  ;;  %2501 = vrot.lane.b32.xlu1 %v2418_v12, %s9791_s15  ;;  %v2416_v21 = vsel %vm661_vm3, %v2414_v19, %v2415_v46  ;;  %v11256_v51 = vld [vmem:[#allocation2 + $0x90] sm:$0xff]  ;;  %v9569_v54 = vpop.eup %9568  ;;  %2263 = vst.msk [vmem:[#allocation2 + $0xc1] sm:$0xff] %vm366_vm0, %v9567_v37  ;;  %9588 = vrcp.f32 %v2172_v33  ;;  %v8242_v62 = vpop.f32.mrb[30].mxu0  ;;  %v2420_v15 = vrot.slane %v11253_v47, 1 }
 0x2bb   : > { %2499 = vrot.lane.b32.xlu0 %v2416_v21, %s9791_s15  ;;  %v2419_v36 = vrot.slane %v11256_v51, 1  ;;  %v9571_v12 = vpop.eup %9570  ;;  %v2175_v56 = vadd.f32 1.0, %v9569_v54  ;;  %9590 = vpow2.f32 %v7399_v14  ;;  %v7401_v46 = vmul.f32 -1.442695, %v11246_v9  ;;  %v2015_v24 = vpop.f32.mrb[31].mxu0 }
 0x2bc   : > { %v11264_v19 = vadd.f32 %v8242_v62, %v11028_v43  ;;  %v11266_v10 = vld [vmem:[#allocation2 + $0xb8] sm:$0x3]  ;;  %v9573_v37 = vpop.eup %9572  ;;  %v2174_v33 = vadd.f32 1.0, %v9571_v12  ;;  %9592 = vpow2.f32 %v7402_v60  ;;  %v11269_v21 = vadd.f32 %v11028_v43, %v2015_v24  ;;  %v11272_v44 = vld [vmem:[#allocation2 + $0xb0] sm:$0xff]  ;;  %v11274_v54 = vld [vmem:[#allocation2 + $0xa8] sm:$0xff] }
 0x2bd   : > { %v2423_v29 = vsel %vm661_vm3, %v2420_v15, %v2422_v22  ;;  %v9575_v14 = vpop.eup %9574  ;;  %2266 = vst.msk [vmem:[#allocation2 + $0xe1] sm:$0xff] %vm366_vm0, %v9573_v37  ;;  %9594 = vrcp.f32 %v2175_v56  ;;  %v2421_v12 = vsel %vm661_vm3, %v2419_v36, %v2420_v15  ;;  %v2425_v60 = vrot.slane %v11272_v44, 1 }
 0x2be   : > { %15167 = vst [vmem:[#allocation45_spill] sm:$0xff] %v11264_v19  ;;  %15168 = vst [vmem:[#allocation46_spill] sm:$0xff] %v11269_v21  ;;  %v7404_v62 = vmul.f32 -1.442695, %v11264_v19  ;;  %2505 = vrot.lane.b32.xlu1 %v2423_v29, %s9791_s15  ;;  %v9577_v43 = vpop.eup %9576  ;;  %9596 = vrcp.f32 %v2174_v33  ;;  %v2427_v24 = vrot.slane %v11266_v10, 1  ;;  %v2424_v22 = vrot.slane %v11274_v54, 1 }
 0x2bf   : > { %2265 = vst.msk [vmem:[#allocation2 + $0xd9] sm:$0xff] %vm366_vm0, %v9575_v14  ;;  %2503 = vrot.lane.b32.xlu0 %v2421_v12, %s9791_s15  ;;  %v9579_v37 = vpop.eup %9578  ;;  %v2177_v56 = vadd.f32 1.0, %v9577_v43  ;;  %9598 = vpow2.f32 %v7401_v46  ;;  %v7403_v19 = vmul.f32 -1.442695, %v11269_v21  ;;  %v7446_v21 = vld [vmem:[%s14959_s3 + $0x100] sm:$0xff] }
 0x2c0   : > { %v9581_v29 = vpop.eup %9580  ;;  %v2176_v9 = vadd.f32 1.0, %v9579_v37  ;;  %9600 = vpow2.f32 %v7404_v62  ;;  %v2428_v15 = vsel %vm661_vm3, %v2425_v60, %v2427_v24  ;;  %v2426_v36 = vsel %vm661_vm3, %v2424_v22, %v2425_v60  ;;  %v11288_v14 = vld [vmem:[#allocation2 + $0xd0] sm:$0x3] }
 0x2c1   : > { %v9583_v33 = vpop.eup %9582  ;;  %2268 = vst.msk [vmem:[#allocation2 + $0xf9] sm:$0xff] %vm366_vm0, %v9581_v29  ;;  %9602 = vrcp.f32 %v2177_v56  ;;  %v11292_v12 = vld [vmem:[#allocation2 + $0xc8] sm:$0xff]  ;;  %v2432_v46 = vrot.slane %v11288_v14, 1  ;;  %v11295_v43 = vld [vmem:[#allocation2 + $0xc0] sm:$0xff]  ;;  %v7444_v22 = vld [vmem:[%s14959_s3 + $0xf0] sm:$0xff] }
 0x2c2   : > { %2509 = vrot.lane.b32.xlu1 %v2428_v15, %s9791_s15  ;;  %v9585_v37 = vpop.eup %9584  ;;  %9604 = vrcp.f32 %v2176_v9  ;;  %v2179_v62 = vadd.f32 1.0, %v9583_v33  ;;  %v2430_v60 = vrot.slane %v11292_v12, 1  ;;  %v2429_v24 = vrot.slane %v11295_v43, 1  ;;  %v7445_v56 = vld [vmem:[%s14959_s3 + $0xf8] sm:$0xff] }
 0x2c3   : > { %2507 = vrot.lane.b32.xlu0 %v2426_v36, %s9791_s15  ;;  %v9587_v29 = vpop.eup %9586  ;;  %2267 = vst.msk [vmem:[#allocation2 + $0xf1] sm:$0xff] %vm366_vm0, %v9585_v37  ;;  %9606 = vpow2.f32 %v7403_v19 }
 0x2c4   : > { %v9589_v9 = vpop.eup %9588  ;;  %2270 = vst.msk [vmem:[#allocation2 + $0x111] sm:$0xff] %vm366_vm0, %v9587_v29  ;;  %9608 = vrcp.f32 %v2179_v62  ;;  %v2433_v15 = vsel %vm661_vm3, %v2430_v60, %v2432_v46  ;;  %v2431_v36 = vsel %vm661_vm3, %v2429_v24, %v2430_v60  ;;  %v11310_v33 = vld [vmem:[#allocation2 + $0xe8] sm:$0x3]  ;;  %v8601_v46 = vpack.c.bf16 %v7445_v56, %v7444_v22 }
 0x2c5   : > { %v9591_v23 = vpop.eup %9590  ;;  %2269 = vst.msk [vmem:[#allocation2 + $0x109] sm:$0xff] %vm366_vm0, %v9589_v9  ;;  %v2437_v37 = vrot.slane %v11310_v33, 1  ;;  %v7447_v60 = vld [vmem:[%s14959_s3 + $0x108] sm:$0xff] }
 0x2c6   : > { %2513 = vrot.lane.b32.xlu1 %v2433_v15, %s9791_s15  ;;  %v11317_v19 = vld [vmem:[#allocation2 + $0xe0] sm:$0xff]  ;;  %v11320_v62 = vld [vmem:[#allocation2 + $0xd8] sm:$0xff]  ;;  %v9593_v24 = vpop.eup %9592  ;;  %v2178_v29 = vadd.f32 1.0, %v9591_v23  ;;  %8602 = vmatpush1.bf16.msra.mxu1 %v8601_v46  ;;  %v15169_v23 = vmov 0.0|0.0  }
 0x2c7   : > { %2511 = vrot.lane.b32.xlu0 %v2431_v36, %s9791_s15  ;;  %v2435_v48 = vrot.slane %v11317_v19, 1  ;;  %v2434_v9 = vrot.slane %v11320_v62, 1  ;;  %v9595_v15 = vpop.eup %9594  ;;  %v2181_v7 = vadd.f32 1.0, %v9593_v24  ;;  %8603 = vmatprep.subr.bf16.mxu1 %v15169_v23  ;;  %v8604_v36 = vpack.c.bf16 %v7447_v60, %v7446_v21 }
 0x2c8   : > { %v9597_v52 = vpop.eup %9596  ;;  %2272 = vst.msk [vmem:[#allocation2 + $0x129] sm:$0xff] %vm366_vm0, %v9595_v15  ;;  %9610 = vrcp.f32 %v2178_v29  ;;  %v11331_v2 = vld [vmem:[#allocation2 + $0x100] sm:$0x3] }
 0x2c9   : > { %v2438_v22 = vsel %vm661_vm3, %v2435_v48, %v2437_v37  ;;  %v2436_v56 = vsel %vm661_vm3, %v2434_v9, %v2435_v48  ;;  %v9599_v57 = vpop.eup %9598  ;;  %2271 = vst.msk [vmem:[#allocation2 + $0x121] sm:$0xff] %vm366_vm0, %v9597_v52  ;;  %9612 = vrcp.f32 %v2181_v7  ;;  %v2442_v46 = vrot.slane %v11331_v2, 1 }
 0x2ca   : > { %2517 = vrot.lane.b32.xlu1 %v2438_v22, %s9791_s15  ;;  %v9601_v24 = vpop.eup %9600  ;;  %v2180_v15 = vadd.f32 1.0, %v9599_v57  ;;  %v11338_v37 = vld [vmem:[#allocation2 + $0xf8] sm:$0xff]  ;;  %v11340_v48 = vld [vmem:[#allocation2 + $0xf0] sm:$0xff]  ;;  %8605 = vmatpush1.bf16.msra.mxu1 %v8604_v36 }
 0x2cb   : > { %2515 = vrot.lane.b32.xlu0 %v2436_v56, %s9791_s15  ;;  %v9603_v29 = vpop.eup %9602  ;;  %v2183_v9 = vadd.f32 1.0, %v9601_v24  ;;  %v2440_v21 = vrot.slane %v11338_v37, 1  ;;  %v2439_v60 = vrot.slane %v11340_v48, 1  ;;  %v11344_v52 = vld [vmem:[#allocation2 + $0x118] sm:$0x3]  ;;  %8606 = vmatprep.subr.bf16.mxu1 %v15169_v23  ;;  %v7448_v24 = vld [vmem:[%s14959_s3 + $0x110] sm:$0xff] }
 0x2cc   : > { %v9605_v7 = vpop.eup %9604  ;;  %2274 = vst.msk [vmem:[#allocation2 + $0x141] sm:$0xff] %vm366_vm0, %v9603_v29  ;;  %9614 = vrcp.f32 %v2180_v15  ;;  %v11347_v57 = vld [vmem:[#allocation2 + $0x110] sm:$0xff]  ;;  %v2447_v22 = vrot.slane %v11344_v52, 1  ;;  %v11350_v56 = vld [vmem:[#allocation2 + $0x108] sm:$0xff] }
 0x2cd   : > { %v9607_v34 = vpop.eup %9606  ;;  %2273 = vst.msk [vmem:[#allocation2 + $0x139] sm:$0xff] %vm366_vm0, %v9605_v7  ;;  %9616 = vrcp.f32 %v2183_v9  ;;  %v2443_v36 = vsel %vm661_vm3, %v2440_v21, %v2442_v46  ;;  %v2441_v15 = vsel %vm661_vm3, %v2439_v60, %v2440_v21  ;;  %v2445_v29 = vrot.slane %v11347_v57, 1 }
 0x2ce   : > { %v9609_v32 = vpop.eup %9608  ;;  %v2182_v30 = vadd.f32 1.0, %v9607_v34  ;;  %2521 = vrot.lane.b32.xlu1 %v2443_v36, %s9791_s15  ;;  %v2444_v27 = vrot.slane %v11350_v56, 1  ;;  %v8607_v7 = vpack.c.bf16 %v7449_v61, %v7448_v24 }
 0x2cf   : > { %2519 = vrot.lane.b32.xlu0 %v2441_v15, %s9791_s15  ;;  %2276 = vst.msk [vmem:[#allocation2 + $0x159] sm:$0xff] %vm366_vm0, %v9609_v32  ;;  %v2448_v46 = vsel %vm661_vm3, %v2445_v29, %v2447_v22  ;;  %v11368_v9 = vld [vmem:[#allocation2 + $0x130] sm:$0x3] }
 0x2d0   : > { %9618 = vrcp.f32 %v2182_v30  ;;  %v2446_v21 = vsel %vm661_vm3, %v2444_v27, %v2445_v29  ;;  %v11371_v60 = vld [vmem:[#allocation2 + $0x128] sm:$0xff]  ;;  %v2452_v34 = vrot.slane %v11368_v9, 1  ;;  %v11374_v59 = vld [vmem:[#allocation2 + $0x120] sm:$0xff]  ;;  %8608 = vmatpush1.bf16.msra.mxu1 %v8607_v7 }
 0x2d1   : > { %v2450_v36 = vrot.slane %v11371_v60, 1  ;;  %v2449_v61 = vrot.slane %v11374_v59, 1  ;;  %8609 = vmatprep.subr.bf16.mxu1 %v15169_v23 }
 0x2d2   : > { %v9611_v32 = vpop.eup %9610  ;;  %2525 = vrot.lane.b32.xlu1 %v2448_v46, %s9791_s15  ;;  %v7450_v46 = vld [vmem:[%s14959_s3 + $0x120] sm:$0xff] }
 0x2d3   : > { %2523 = vrot.lane.b32.xlu0 %v2446_v21, %s9791_s15  ;;  %v9613_v30 = vpop.eup %9612  ;;  %2275 = vst.msk [vmem:[#allocation2 + $0x151] sm:$0xff] %vm366_vm0, %v9611_v32  ;;  %v2453_v27 = vsel %vm661_vm3, %v2450_v36, %v2452_v34  ;;  %v2451_v22 = vsel %vm661_vm3, %v2449_v61, %v2450_v36  ;;  %v11384_v24 = vld [vmem:[#allocation2 + $0x148] sm:$0x3] }
 0x2d4   : > { %2278 = vst.msk [vmem:[#allocation2 + $0x171] sm:$0xff] %vm366_vm0, %v9613_v30  ;;  %v11387_v15 = vld [vmem:[#allocation2 + $0x140] sm:$0xff]  ;;  %v2457_v29 = vrot.slane %v11384_v24, 1  ;;  %v11390_v7 = vld [vmem:[#allocation2 + $0x138] sm:$0xff]  ;;  %v7451_v36 = vld [vmem:[%s14959_s3 + $0x128] sm:$0xff] }
 0x2d5   : > { %v2455_v21 = vrot.slane %v11387_v15, 1  ;;  %v2454_v34 = vrot.slane %v11390_v7, 1  ;;  %v8610_v30 = vpack.c.bf16 %v7451_v36, %v7450_v46 }
 0x2d6   : > { %v9615_v61 = vpop.eup %9614  ;;  %2529 = vrot.lane.b32.xlu1 %v2453_v27, %s9791_s15  ;;  %v11402_v32 = vld [vmem:[#allocation2 + $0x160] sm:$0x3] }
 0x2d7   : > { %2527 = vrot.lane.b32.xlu0 %v2451_v22, %s9791_s15  ;;  %v9617_v26 = vpop.eup %9616  ;;  %2277 = vst.msk [vmem:[#allocation2 + $0x169] sm:$0xff] %vm366_vm0, %v9615_v61  ;;  %v2458_v50 = vsel %vm661_vm3, %v2455_v21, %v2457_v29  ;;  %v2456_v16 = vsel %vm661_vm3, %v2454_v34, %v2455_v21  ;;  %8611 = vmatpush1.bf16.msra.mxu1 %v8610_v30  ;;  %v2462_v58 = vrot.slane %v11402_v32, 1  ;;  %v7453_v61 = vld [vmem:[%s14959_s3 + $0x138] sm:$0xff] }
 0x2d8   : > { %2280 = vst.msk [vmem:[#allocation2 + $0x189] sm:$0xff] %vm366_vm0, %v9617_v26  ;;  %8612 = vmatprep.subr.bf16.mxu1 %v15169_v23 }
 0x2da   : > { %v9619_v27 = vpop.eup %9618  ;;  %2533 = vrot.lane.b32.xlu1 %v2458_v50, %s9791_s15  ;;  %v11412_v22 = vld [vmem:[#allocation2 + $0x158] sm:$0xff]  ;;  %v11414_v46 = vld [vmem:[#allocation2 + $0x150] sm:$0xff] }
 0x2db   : > { %2531 = vrot.lane.b32.xlu0 %v2456_v16, %s9791_s15  ;;  %2279 = vst.msk [vmem:[#allocation2 + $0x181] sm:$0xff] %vm366_vm0, %v9619_v27  ;;  %v2460_v29 = vrot.slane %v11412_v22, 1  ;;  %v2459_v26 = vrot.slane %v11414_v46, 1  ;;  %v11419_v21 = vld [vmem:[#allocation2 + $0x178] sm:$0x3]  ;;  %v7452_v16 = vld [vmem:[%s14959_s3 + $0x130] sm:$0xff] }
 0x2dc   : > { %v2467_v50 = vrot.slane %v11419_v21, 1 }
 0x2dd   : > { %v2463_v34 = vsel %vm661_vm3, %v2460_v29, %v2462_v58  ;;  %v2461_v36 = vsel %vm661_vm3, %v2459_v26, %v2460_v29  ;;  %v8613_v58 = vpack.c.bf16 %v7453_v61, %v7452_v16 }
 0x2de   : > { %2537 = vrot.lane.b32.xlu1 %v2463_v34, %s9791_s15  ;;  %v11432_v30 = vld [vmem:[#allocation2 + $0x170] sm:$0xff]  ;;  %v11434_v27 = vld [vmem:[#allocation2 + $0x168] sm:$0xff] }
 0x2df   : > { %2535 = vrot.lane.b32.xlu0 %v2461_v36, %s9791_s15  ;;  %v2465_v29 = vrot.slane %v11432_v30, 1  ;;  %v2464_v26 = vrot.slane %v11434_v27, 1  ;;  %v11438_v17 = vld [vmem:[#allocation2 + $0x190] sm:$0x3]  ;;  %8614 = vmatpush1.bf16.msra.mxu1 %v8613_v58 }
 0x2e0   : > { %15170 = vst [vmem:[#allocation47_spill] sm:$0xff] %v11438_v17  ;;  %v2472_v34 = vrot.slane %v11438_v17, 1  ;;  %8615 = vmatprep.subr.bf16.mxu1 %v15169_v23 }
 0x2e1   : > { %v2468_v4 = vsel %vm661_vm3, %v2465_v29, %v2467_v50  ;;  %v2466_v18 = vsel %vm661_vm3, %v2464_v26, %v2465_v29 }
 0x2e2   : > { %2541 = vrot.lane.b32.xlu1 %v2468_v4, %s9791_s15  ;;  %v11446_v36 = vld [vmem:[#allocation2 + $0x188] sm:$0xff]  ;;  %v11448_v16 = vld [vmem:[#allocation2 + $0x180] sm:$0xff] }
 0x2e3   : > { %2539 = vrot.lane.b32.xlu0 %v2466_v18, %s9791_s15  ;;  %15171 = vst [vmem:[#allocation48_spill] sm:$0xff] %v11446_v36  ;;  %15172 = vst [vmem:[#allocation49_spill] sm:$0xff] %v11448_v16  ;;  %v2470_v61 = vrot.slane %v11446_v36, 1  ;;  %v2469_v58 = vrot.slane %v11448_v16, 1  ;;  %v7454_v4 = vld [vmem:[%s14959_s3 + $0x140] sm:$0xff]  ;;  %v7455_v18 = vld [vmem:[%s14959_s3 + $0x148] sm:$0xff] }
 0x2e4   : > { %v8616_v26 = vpack.c.bf16 %v7455_v18, %v7454_v4  ;;  %v7460_v18 = vld [vmem:[%s14959_s3 + $0x170] sm:$0xff] }
 0x2e5   : > { %v2473_v50 = vsel %vm661_vm3, %v2470_v61, %v2472_v34  ;;  %v2471_v29 = vsel %vm661_vm3, %v2469_v58, %v2470_v61  ;;  %v7456_v34 = vld [vmem:[%s14959_s3 + $0x150] sm:$0xff]  ;;  %v7457_v61 = vld [vmem:[%s14959_s3 + $0x158] sm:$0xff] }
 0x2e6   : > { %2545 = vrot.lane.b32.xlu1 %v2473_v50, %s9791_s15  ;;  %8617 = vmatpush1.bf16.msra.mxu1 %v8616_v26  ;;  %v8619_v58 = vpack.c.bf16 %v7457_v61, %v7456_v34  ;;  %v7458_v50 = vld [vmem:[%s14959_s3 + $0x160] sm:$0xff]  ;;  %v7461_v26 = vld [vmem:[%s14959_s3 + $0x178] sm:$0xff]  ;;  %v2595_v61 = vrot.slane %v11112_v28, 2 }
 0x2e7   : > { %2543 = vrot.lane.b32.xlu0 %v2471_v29, %s9791_s15  ;;  %8618 = vmatprep.subr.bf16.mxu1 %v15169_v23  ;;  %v7459_v29 = vld [vmem:[%s14959_s3 + $0x168] sm:$0xff]  ;;  %v8625_v34 = vpack.c.bf16 %v7461_v26, %v7460_v18  ;;  %v2597_v18 = vrot.slane %v11145_v49, 2  ;;  %v2598_v26 = vrot.slane %v11143_v0, 2 }
 0x2e8   : > { %v8622_v4 = vpack.c.bf16 %v7459_v29, %v7458_v50 }
 0x2ea   : > { %8620 = vmatpush1.bf16.msra.mxu1 %v8619_v58 }
 0x2eb   : > { %8621 = vmatprep.subr.bf16.mxu1 %v15169_v23 }
 0x2ee   : > { %8623 = vmatpush1.bf16.msra.mxu1 %v8622_v4  ;;  %v15173_v4 = vrot.slane %v11118_v31, 2 }
 0x2ef   : > { %8624 = vmatprep.subr.bf16.mxu1 %v15169_v23 }
 0x2f0   : > { %v11493_v5 = vsel %vm860_vm2, %v15173_v4, %v2595_v61  ;;  %v2600_v61 = vrot.slane %v11134_v45, 2 }
 0x2f2   : > { %8626 = vmatpush1.bf16.msra.mxu1 %v8625_v34  ;;  %v11505_v34 = vsel %vm860_vm2, %v2597_v18, %v2598_v26  ;;  %v2603_v18 = vrot.slane %v11171_v38, 2 }
 0x2f3   : > { %8627 = vmatprep.subr.bf16.mxu1 %v15169_v23 }
 0x31a   : > { %v2484_v58 = vpop.permute.xlu0 %2483  ;;  %v2486_v29 = vpop.permute.xlu1 %2485 }
 0x31b   : > { %v11487_v50 = vsel %vm366_vm0, %v11121_v11, %v2484_v58  ;;  %v11501_v28 = vsel %vm366_vm0, %v11118_v31, %v2486_v29  ;;  %v11516_v31 = vsel %vm860_vm2, %v2598_v26, %v2600_v61  ;;  %v2602_v29 = vrot.slane %v11174_v53, 2 }
 0x31c   : > { %2915 = vmatmul.mubr.f32.gmra.mrb[4].mxu1 %v11487_v50  ;;  %v2605_v26 = vrot.slane %v11164_v42, 2 }
 0x31d   : > { %7409 = vmatprep.mubr.msk.f32.mxu1 %vm366_vm0, %v11493_v5 }
 0x31e   : > { %v2490_v4 = vpop.permute.xlu1 %2489 }
 0x31f   : > { %v11524_v45 = vsel %vm366_vm0, %v11143_v0, %v2490_v4  ;;  %v11539_v0 = vsel %vm860_vm2, %v2603_v18, %v2605_v26  ;;  %v2607_v4 = vrot.slane %v11210_v39, 2 }
 0x320   : > { %v2488_v11 = vpop.permute.xlu0 %2487  ;;  %2920 = vmatmul.mubr.f32.gmra.mrb[6].mxu1 %v11501_v28 }
 0x321   : > { %7410 = vmatprep.mubr.msk.f32.mxu1 %vm366_vm0, %v11505_v34  ;;  %v11512_v58 = vsel %vm366_vm0, %v11145_v49, %v2488_v11  ;;  %v11528_v49 = vsel %vm860_vm2, %v2602_v29, %v2603_v18  ;;  %v2608_v29 = vrot.slane %v11208_v3, 2 }
 0x323   : > { %v2494_v61 = vpop.permute.xlu1 %2493 }
 0x324   : > { %2925 = vmatmul.mubr.f32.gmra.mrb[8].mxu1 %v11512_v58  ;;  %v2492_v63 = vpop.permute.xlu0 %2491  ;;  %v11547_v42 = vsel %vm366_vm0, %v11171_v38, %v2494_v61  ;;  %v2612_v61 = vrot.slane %v11234_v8, 2 }
 0x325   : > { %7411 = vmatprep.mubr.msk.f32.mxu1 %vm366_vm0, %v11516_v31  ;;  %v11535_v11 = vsel %vm366_vm0, %v11174_v53, %v2492_v63  ;;  %v11551_v63 = vsel %vm860_vm2, %v2607_v4, %v2608_v29  ;;  %v2610_v53 = vrot.slane %v11193_v1, 2  ;;  %v2613_v4 = vrot.slane %v11231_v35, 2 }
 0x327   : > { %v2498_v26 = vpop.permute.xlu1 %2497  ;;  %v11562_v38 = vsel %vm860_vm2, %v2608_v29, %v2610_v53 }
 0x328   : > { %2930 = vmatmul.mubr.f32.gmra.mrb[10].mxu1 %v11524_v45  ;;  %v2496_v25 = vpop.permute.xlu0 %2495  ;;  %v11570_v1 = vsel %vm366_vm0, %v11208_v3, %v2498_v26  ;;  %v2617_v26 = vrot.slane %v11256_v51, 2 }
 0x329   : > { %7412 = vmatprep.mubr.msk.f32.mxu1 %vm366_vm0, %v11528_v49  ;;  %v11558_v18 = vsel %vm366_vm0, %v11210_v39, %v2496_v25  ;;  %v11574_v25 = vsel %vm860_vm2, %v2612_v61, %v2613_v4  ;;  %v2615_v39 = vrot.slane %v11221_v13, 2  ;;  %v2618_v61 = vrot.slane %v11253_v47, 2 }
 0x32b   : > { %v11585_v3 = vsel %vm860_vm2, %v2613_v4, %v2615_v39 }
 0x32c   : > { %2935 = vmatmul.mubr.f32.gmra.mrb[12].mxu1 %v11535_v11  ;;  %v2502_v53 = vpop.permute.xlu1 %2501 }
 0x32d   : > { %7413 = vmatprep.mubr.msk.f32.mxu1 %vm366_vm0, %v11539_v0  ;;  %v2500_v40 = vpop.permute.xlu0 %2499  ;;  %v11593_v13 = vsel %vm366_vm0, %v11231_v35, %v2502_v53  ;;  %v2622_v53 = vrot.slane %v11274_v54, 2 }
 0x32e   : > { %v11581_v29 = vsel %vm366_vm0, %v11234_v8, %v2500_v40  ;;  %v11597_v40 = vsel %vm860_vm2, %v2617_v26, %v2618_v61  ;;  %v2620_v8 = vrot.slane %v11243_v20, 2  ;;  %v2623_v26 = vrot.slane %v11272_v44, 2 }
 0x330   : > { %2940 = vmatmul.mubr.f32.gmra.mrb[14].mxu1 %v11547_v42  ;;  %v2506_v39 = vpop.permute.xlu1 %2505  ;;  %v11608_v35 = vsel %vm860_vm2, %v2618_v61, %v2620_v8 }
 0x331   : > { %7414 = vmatprep.mubr.msk.f32.mxu1 %vm366_vm0, %v11551_v63  ;;  %v2504_v55 = vpop.permute.xlu0 %2503  ;;  %v11616_v20 = vsel %vm366_vm0, %v11253_v47, %v2506_v39  ;;  %v2627_v39 = vrot.slane %v11295_v43, 2 }
 0x332   : > { %v11604_v4 = vsel %vm366_vm0, %v11256_v51, %v2504_v55  ;;  %v11620_v55 = vsel %vm860_vm2, %v2622_v53, %v2623_v26  ;;  %v2625_v51 = vrot.slane %v11266_v10, 2  ;;  %v2628_v53 = vrot.slane %v11292_v12, 2 }
 0x334   : > { %2945 = vmatmul.mubr.f32.gmra.mrb[16].mxu1 %v11558_v18  ;;  %v2510_v8 = vpop.permute.xlu1 %2509  ;;  %v11631_v47 = vsel %vm860_vm2, %v2623_v26, %v2625_v51 }
 0x335   : > { %7415 = vmatprep.mubr.msk.f32.mxu1 %vm366_vm0, %v11562_v38  ;;  %v2508_v6 = vpop.permute.xlu0 %2507  ;;  %v11639_v10 = vsel %vm366_vm0, %v11272_v44, %v2510_v8  ;;  %v2632_v8 = vrot.slane %v11320_v62, 2 }
 0x336   : > { %v11627_v61 = vsel %vm366_vm0, %v11274_v54, %v2508_v6  ;;  %v11643_v6 = vsel %vm860_vm2, %v2627_v39, %v2628_v53  ;;  %v2630_v54 = vrot.slane %v11288_v14, 2  ;;  %v2633_v39 = vrot.slane %v11317_v19, 2 }
 0x338   : > { %2950 = vmatmul.mubr.f32.gmra.mrb[18].mxu1 %v11570_v1  ;;  %v2514_v51 = vpop.permute.xlu1 %2513  ;;  %v11654_v44 = vsel %vm860_vm2, %v2628_v53, %v2630_v54 }
 0x339   : > { %7416 = vmatprep.mubr.msk.f32.mxu1 %vm366_vm0, %v11574_v25  ;;  %v2512_v17 = vpop.permute.xlu0 %2511  ;;  %v11662_v14 = vsel %vm366_vm0, %v11292_v12, %v2514_v51  ;;  %v2637_v51 = vrot.slane %v11340_v48, 2 }
 0x33a   : > { %v11650_v26 = vsel %vm366_vm0, %v11295_v43, %v2512_v17  ;;  %v11666_v17 = vsel %vm860_vm2, %v2632_v8, %v2633_v39  ;;  %v2635_v43 = vrot.slane %v11310_v33, 2  ;;  %v2638_v8 = vrot.slane %v11338_v37, 2 }
 0x33c   : > { %2955 = vmatmul.mubr.f32.gmra.mrb[20].mxu1 %v11581_v29  ;;  %v2518_v54 = vpop.permute.xlu1 %2517  ;;  %v11677_v12 = vsel %vm860_vm2, %v2633_v39, %v2635_v43 }
 0x33d   : > { %7417 = vmatprep.mubr.msk.f32.mxu1 %vm366_vm0, %v11585_v3  ;;  %v2516_v36 = vpop.permute.xlu0 %2515  ;;  %v11685_v33 = vsel %vm366_vm0, %v11317_v19, %v2518_v54  ;;  %v2642_v54 = vrot.slane %v11350_v56, 2 }
 0x33e   : > { %v11673_v53 = vsel %vm366_vm0, %v11320_v62, %v2516_v36  ;;  %v11689_v62 = vsel %vm860_vm2, %v2637_v51, %v2638_v8  ;;  %v2640_v36 = vrot.slane %v11331_v2, 2  ;;  %v2643_v51 = vrot.slane %v11347_v57, 2 }
 0x33f   : > { %15174 = vst [vmem:[#allocation50_spill] sm:$0xff] %v11689_v62 }
 0x340   : > { %2960 = vmatmul.mubr.f32.gmra.mrb[22].mxu1 %v11593_v13  ;;  %v2522_v43 = vpop.permute.xlu1 %2521  ;;  %v11700_v19 = vsel %vm860_vm2, %v2638_v8, %v2640_v36 }
 0x341   : > { %7418 = vmatprep.mubr.msk.f32.mxu1 %vm366_vm0, %v11597_v40  ;;  %v2520_v16 = vpop.permute.xlu0 %2519  ;;  %v11708_v2 = vsel %vm366_vm0, %v11338_v37, %v2522_v43  ;;  %v2647_v43 = vrot.slane %v11374_v59, 2 }
 0x342   : > { %v11696_v39 = vsel %vm366_vm0, %v11340_v48, %v2520_v16  ;;  %v11712_v48 = vsel %vm860_vm2, %v2642_v54, %v2643_v51  ;;  %v2645_v16 = vrot.slane %v11344_v52, 2  ;;  %v2648_v54 = vrot.slane %v11371_v60, 2 }
 0x343   : > { %15175 = vst [vmem:[#allocation51_spill] sm:$0xff] %v11712_v48 }
 0x344   : > { %2965 = vmatmul.mubr.f32.gmra.mrb[24].mxu1 %v11604_v4  ;;  %v2526_v36 = vpop.permute.xlu1 %2525  ;;  %v11723_v37 = vsel %vm860_vm2, %v2643_v51, %v2645_v16 }
 0x345   : > { %7419 = vmatprep.mubr.msk.f32.mxu1 %vm366_vm0, %v11608_v35  ;;  %v11731_v52 = vsel %vm366_vm0, %v11347_v57, %v2526_v36  ;;  %v2652_v36 = vrot.slane %v11390_v7, 2 }
 0x348   : > { %2970 = vmatmul.mubr.f32.gmra.mrb[26].mxu1 %v11616_v20  ;;  %v2530_v16 = vpop.permute.xlu1 %2529 }
 0x349   : > { %7420 = vmatprep.mubr.msk.f32.mxu1 %vm366_vm0, %v11620_v55 }
 0x34c   : > { %2975 = vmatmul.mubr.f32.gmra.mrb[28].mxu1 %v11627_v61 }
 0x34d   : > { %7421 = vmatprep.mubr.msk.f32.mxu1 %vm366_vm0, %v11631_v47 }
 0x350   : > { %2980 = vmatmul.mubr.f32.gmra.mrb[30].mxu1 %v11639_v10 }
 0x351   : > { %7422 = vmatprep.mubr.msk.f32.mxu1 %vm366_vm0, %v11643_v6 }
 0x354   : > { %2985 = vmatmul.mubr.f32.gmra.mrb[32].mxu1 %v11650_v26 }
 0x355   : > { %7423 = vmatprep.mubr.msk.f32.mxu1 %vm366_vm0, %v11654_v44 }
 0x358   : > { %2990 = vmatmul.mubr.f32.gmra.mrb[34].mxu1 %v11662_v14 }
 0x359   : > { %7424 = vmatprep.mubr.msk.f32.mxu1 %vm366_vm0, %v11666_v17 }
 0x35c   : > { %2995 = vmatmul.mubr.f32.gmra.mrb[36].mxu1 %v11673_v53 }
 0x35d   : > { %7425 = vmatprep.mubr.msk.f32.mxu1 %vm366_vm0, %v11677_v12 }
 0x360   : > { %3000 = vmatmul.mubr.f32.gmra.mrb[38].mxu1 %v11685_v33 }
 0x361   : > { %7426 = vmatprep.mubr.msk.f32.mxu1 %vm366_vm0, %v11689_v62  ;;  %v2524_v62 = vpop.permute.xlu0 %2523 }
 0x362   : > { %v11719_v8 = vsel %vm366_vm0, %v11350_v56, %v2524_v62  ;;  %v11735_v56 = vsel %vm860_vm2, %v2647_v43, %v2648_v54  ;;  %v2650_v62 = vrot.slane %v11368_v9, 2  ;;  %v2653_v43 = vrot.slane %v11387_v15, 2 }
 0x363   : > { %15176 = vst [vmem:[#allocation52_spill] sm:$0xff] %v11735_v56  ;;  %v11754_v9 = vsel %vm366_vm0, %v11371_v60, %v2530_v16  ;;  %v2657_v16 = vrot.slane %v11414_v46, 2 }
 0x364   : > { %3005 = vmatmul.mubr.f32.gmra.mrb[40].mxu1 %v11696_v39  ;;  %v11746_v57 = vsel %vm860_vm2, %v2648_v54, %v2650_v62  ;;  %v2534_v62 = vpop.permute.xlu1 %2533 }
 0x365   : > { %7427 = vmatprep.mubr.msk.f32.mxu1 %vm366_vm0, %v11700_v19 }
 0x368   : > { %3010 = vmatmul.mubr.f32.gmra.mrb[42].mxu1 %v11708_v2 }
 0x369   : > { %7428 = vmatprep.mubr.msk.f32.mxu1 %vm366_vm0, %v11712_v48  ;;  %v2528_v48 = vpop.permute.xlu0 %2527 }
 0x36a   : > { %v11742_v51 = vsel %vm366_vm0, %v11374_v59, %v2528_v48  ;;  %v11758_v59 = vsel %vm860_vm2, %v2652_v36, %v2653_v43  ;;  %v2655_v48 = vrot.slane %v11384_v24, 2  ;;  %v2658_v36 = vrot.slane %v11412_v22, 2 }
 0x36b   : > { %15177 = vst [vmem:[#allocation53_spill] sm:$0xff] %v11758_v59  ;;  %v11777_v24 = vsel %vm366_vm0, %v11387_v15, %v2534_v62  ;;  %v2662_v62 = vrot.slane %v11434_v27, 2 }
 0x36c   : > { %3015 = vmatmul.mubr.f32.gmra.mrb[44].mxu1 %v11719_v8  ;;  %v11769_v60 = vsel %vm860_vm2, %v2653_v43, %v2655_v48  ;;  %v2538_v48 = vpop.permute.xlu1 %2537 }
 0x36d   : > { %7429 = vmatprep.mubr.msk.f32.mxu1 %vm366_vm0, %v11723_v37 }
 0x370   : > { %3020 = vmatmul.mubr.f32.gmra.mrb[46].mxu1 %v11731_v52 }
 0x371   : > { %7430 = vmatprep.mubr.msk.f32.mxu1 %vm366_vm0, %v11735_v56  ;;  %v2532_v56 = vpop.permute.xlu0 %2531 }
 0x372   : > { %v11765_v54 = vsel %vm366_vm0, %v11390_v7, %v2532_v56  ;;  %v11781_v7 = vsel %vm860_vm2, %v2657_v16, %v2658_v36  ;;  %v2660_v56 = vrot.slane %v11402_v32, 2  ;;  %v2663_v16 = vrot.slane %v11432_v30, 2 }
 0x373   : > { %15178 = vst [vmem:[#allocation54_spill] sm:$0xff] %v11781_v7  ;;  %v11800_v32 = vsel %vm366_vm0, %v11412_v22, %v2538_v48  ;;  %v7495_v48 = vld [vmem:[%s14959_s3 + $0x188] sm:$0xff] }
 0x374   : > { %3025 = vmatmul.mubr.f32.gmra.mrb[48].mxu1 %v11742_v51  ;;  %v11792_v15 = vsel %vm860_vm2, %v2658_v36, %v2660_v56  ;;  %v2542_v56 = vpop.permute.xlu1 %2541 }
 0x375   : > { %7431 = vmatprep.mubr.msk.f32.mxu1 %vm366_vm0, %v11746_v57  ;;  %15180 = vst [vmem:[#allocation56_spill] sm:$0xff] %v11792_v15 }
 0x378   : > { %3030 = vmatmul.mubr.f32.gmra.mrb[50].mxu1 %v11754_v9 }
 0x379   : > { %7432 = vmatprep.mubr.msk.f32.mxu1 %vm366_vm0, %v11758_v59  ;;  %v2536_v59 = vpop.permute.xlu0 %2535 }
 0x37a   : > { %v11788_v43 = vsel %vm366_vm0, %v11414_v46, %v2536_v59  ;;  %v11804_v46 = vsel %vm860_vm2, %v2662_v62, %v2663_v16  ;;  %v2665_v59 = vrot.slane %v11419_v21, 2  ;;  %v7494_v21 = vld [vmem:[%s14959_s3 + $0x180] sm:$0xff]  ;;  %v7496_v62 = vld [vmem:[%s14959_s3 + $0x190] sm:$0xff] }
 0x37b   : > { %15179 = vst [vmem:[#allocation55_spill] sm:$0xff] %v11788_v43  ;;  %15181 = vst [vmem:[#allocation57_spill] sm:$0xff] %v11804_v46 }
 0x37c   : > { %3035 = vmatmul.mubr.f32.gmra.mrb[52].mxu1 %v11765_v54  ;;  %v11815_v22 = vsel %vm860_vm2, %v2663_v16, %v2665_v59  ;;  %v7497_v16 = vld [vmem:[%s14959_s3 + $0x198] sm:$0xff] }
 0x37d   : > { %7433 = vmatprep.mubr.msk.f32.mxu1 %vm366_vm0, %v11769_v60  ;;  %v11841_v59 = vld [vmem:[#allocation2 + $0x198] sm:$0xff] }
 0x37e   : > { %15183 = vst [vmem:[#allocation59_spill] sm:$0xff] %v11841_v59 }
 0x380   : > { %3040 = vmatmul.mubr.f32.gmra.mrb[54].mxu1 %v11777_v24 }
 0x381   : > { %7434 = vmatprep.mubr.msk.f32.mxu1 %vm366_vm0, %v11781_v7  ;;  %v2540_v7 = vpop.permute.xlu0 %2539 }
 0x382   : > { %v11811_v36 = vsel %vm366_vm0, %v11434_v27, %v2540_v7  ;;  %v11827_v27 = vsel %vm366_vm0, %v11432_v30, %v2542_v56  ;;  %v8628_v7 = vpack.c.bf16 %v7495_v48, %v7494_v21  ;;  %v8631_v30 = vpack.c.bf16 %v7497_v16, %v7496_v62  ;;  %v11843_v56 = vld [vmem:[#allocation2 + $0x1a0] sm:$0xff]  ;;  %v7499_v21 = vld [vmem:[%s14959_s3 + $0x1a8] sm:$0xff]  ;;  %v7500_v16 = vld [vmem:[%s14959_s3 + $0x1b0] sm:$0xff] }
 0x383   : > { %15182 = vst [vmem:[#allocation58_spill] sm:$0xff] %v11811_v36  ;;  %15184 = vst [vmem:[#allocation60_spill] sm:$0xff] %v11843_v56  ;;  %v2475_v48 = vrot.slane %v11843_v56, 1  ;;  %v11858_v62 = vld [vmem:[#allocation2 + $0x1a8] sm:$0x3]  ;;  %v7501_v56 = vld [vmem:[%s14959_s3 + $0x1b8] sm:$0xff] }
 0x384   : > { %3045 = vmatmul.mubr.f32.gmra.mrb[56].mxu1 %v11788_v43  ;;  %15185 = vst [vmem:[#allocation61_spill] sm:$0xff] %v11858_v62 }
 0x385   : > { %7435 = vmatprep.mubr.msk.f32.mxu1 %vm366_vm0, %v11792_v15 }
 0x388   : > { %3050 = vmatmul.mubr.f32.gmra.mrb[58].mxu1 %v11800_v32 }
 0x389   : > { %7436 = vmatprep.mubr.msk.f32.mxu1 %vm366_vm0, %v11804_v46 }
 0x38c   : > { %3055 = vmatmul.mubr.f32.gmra.mrb[60].mxu1 %v11811_v36 }
 0x38d   : > { %7437 = vmatprep.mubr.msk.f32.mxu1 %vm366_vm0, %v11815_v22 }
 0x390   : > { %3060 = vmatmul.mubr.f32.gmra.mrb[62].mxu1 %v11827_v27 }
 0x391   : > { %7462 = vmatprep.mubr.msk.f32.mxu1 %vm366_vm0, %v11156_v41  ;;  %v7498_v41 = vld [vmem:[%s14959_s3 + $0x1a0] sm:$0xff] }
 0x394   : > { %3191 = vmatmul.mubr.f32.vlgmr.msra.gmra.mrb[0].mxu1 %v11487_v50  ;;  %v2474_v50 = vrot.slane %v11841_v59, 1 }
 0x395   : > { %8629 = vmatpush1.bf16.msra.mxu1 %v8628_v7  ;;  %7463 = vmatprep.mubr.msk.f32.mxu1 %vm366_vm0, %v11493_v5  ;;  %v8634_v7 = vpack.c.bf16 %v7499_v21, %v7498_v41  ;;  %v8637_v41 = vpack.c.bf16 %v7501_v56, %v7500_v16  ;;  %v7502_v21 = vld [vmem:[%s14959_s3 + $0x1c0] sm:$0xff]  ;;  %v7504_v56 = vld [vmem:[%s14959_s3 + $0x1d0] sm:$0xff] }
 0x396   : > { %8630 = vmatprep.subr.bf16.mxu1 %v15169_v23  ;;  %v2476_v5 = vsel %vm661_vm3, %v2474_v50, %v2475_v48  ;;  %v7503_v50 = vld [vmem:[%s14959_s3 + $0x1c8] sm:$0xff]  ;;  %v7506_v16 = vld [vmem:[%s14959_s3 + $0x1e0] sm:$0xff] }
 0x397   : > { %2547 = vrot.lane.b32.xlu0 %v2476_v5, %s9791_s15  ;;  %v7505_v5 = vld [vmem:[%s14959_s3 + $0x1d8] sm:$0xff] }
 0x398   : > { %3196 = vmatmul.mubr.f32.gmra.mrb[2].mxu1 %v11501_v28  ;;  %v2477_v28 = vrot.slane %v11858_v62, 1  ;;  %v12015_v62 = vld [vmem:[#allocation2 + $0x10] sm:$0x3] }
 0x399   : > { %7464 = vmatprep.mubr.msk.f32.mxu1 %vm366_vm0, %v11505_v34  ;;  %8632 = vmatpush1.bf16.msra.mxu1 %v8631_v30  ;;  %v3812_v59 = vrot.slane %v12015_v62, 1 }
 0x39a   : > { %8633 = vmatprep.subr.bf16.mxu1 %v15169_v23  ;;  %v2478_v30 = vsel %vm661_vm3, %v2475_v48, %v2477_v28  ;;  %v8640_v48 = vpack.c.bf16 %v7503_v50, %v7502_v21  ;;  %v7507_v28 = vld [vmem:[%s14959_s3 + $0x1e8] sm:$0xff]  ;;  %v7509_v21 = vld [vmem:[%s14959_s3 + $0x1f8] sm:$0xff] }
 0x39b   : > { %2549 = vrot.lane.b32.xlu1 %v2478_v30, %s9791_s15  ;;  %v8646_v30 = vpack.c.bf16 %v7507_v28, %v7506_v16  ;;  %v7513_v16 = vld [vmem:[%s14959_s3 + $0x218] sm:$0xff] }
 0x39c   : > { %3201 = vmatmul.mubr.f32.gmra.mrb[4].mxu1 %v11512_v58 }
 0x39d   : > { %7465 = vmatprep.mubr.msk.f32.mxu1 %vm366_vm0, %v11516_v31  ;;  %8635 = vmatpush1.bf16.msra.mxu1 %v8634_v7  ;;  %v8643_v7 = vpack.c.bf16 %v7505_v5, %v7504_v56  ;;  %v7511_v56 = vld [vmem:[%s14959_s3 + $0x208] sm:$0xff] }
 0x39e   : > { %8636 = vmatprep.subr.bf16.mxu1 %v15169_v23 }
 0x3a0   : > { %3206 = vmatmul.mubr.f32.gmra.mrb[6].mxu1 %v11524_v45 }
 0x3a1   : > { %7466 = vmatprep.mubr.msk.f32.mxu1 %vm366_vm0, %v11528_v49  ;;  %8638 = vmatpush1.bf16.msra.mxu1 %v8637_v41  ;;  %v7508_v41 = vld [vmem:[%s14959_s3 + $0x1f0] sm:$0xff] }
 0x3a2   : > { %8639 = vmatprep.subr.bf16.mxu1 %v15169_v23  ;;  %v8649_v50 = vpack.c.bf16 %v7509_v21, %v7508_v41  ;;  %v7515_v41 = vld [vmem:[%s14959_s3 + $0x228] sm:$0xff] }
 0x3a4   : > { %3211 = vmatmul.mubr.f32.gmra.mrb[8].mxu1 %v11535_v11 }
 0x3a5   : > { %7467 = vmatprep.mubr.msk.f32.mxu1 %vm366_vm0, %v11539_v0  ;;  %8641 = vmatpush1.bf16.msra.mxu1 %v8640_v48  ;;  %v7510_v48 = vld [vmem:[%s14959_s3 + $0x200] sm:$0xff] }
 0x3a6   : > { %8642 = vmatprep.subr.bf16.mxu1 %v15169_v23  ;;  %v8652_v5 = vpack.c.bf16 %v7511_v56, %v7510_v48  ;;  %v7517_v48 = vld [vmem:[%s14959_s3 + $0x238] sm:$0xff] }
 0x3a8   : > { %3216 = vmatmul.mubr.f32.gmra.mrb[10].mxu1 %v11547_v42 }
 0x3a9   : > { %7468 = vmatprep.mubr.msk.f32.mxu1 %vm366_vm0, %v11551_v63  ;;  %8644 = vmatpush1.bf16.msra.mxu1 %v8643_v7  ;;  %v7512_v7 = vld [vmem:[%s14959_s3 + $0x210] sm:$0xff] }
 0x3aa   : > { %8645 = vmatprep.subr.bf16.mxu1 %v15169_v23  ;;  %v8655_v28 = vpack.c.bf16 %v7513_v16, %v7512_v7  ;;  %v15187_v7 = vld [vmem:[#allocation51_spill] sm:$0xff]  ;;  %v15188_v16 = vld [vmem:[#allocation52_spill] sm:$0xff] }
 0x3ab   : > { %15193 = vst [vmem:[#allocation52_spill] sm:$0xff] %v12015_v62  ;;  %v15197_v62 = vld [vmem:[#allocation47_spill] sm:$0xff] }
 0x3ac   : > { %3221 = vmatmul.mubr.f32.gmra.mrb[12].mxu1 %v11558_v18 }
 0x3ad   : > { %7469 = vmatprep.mubr.msk.f32.mxu1 %vm366_vm0, %v11562_v38  ;;  %8647 = vmatpush1.bf16.msra.mxu1 %v8646_v30  ;;  %v7514_v30 = vld [vmem:[%s14959_s3 + $0x220] sm:$0xff] }
 0x3ae   : > { %8648 = vmatprep.subr.bf16.mxu1 %v15169_v23  ;;  %v8658_v21 = vpack.c.bf16 %v7515_v41, %v7514_v30  ;;  %v15190_v30 = vld [vmem:[#allocation54_spill] sm:$0xff]  ;;  %v12004_v41 = vld [vmem:[#allocation2] sm:$0xff] }
 0x3b0   : > { %3226 = vmatmul.mubr.f32.gmra.mrb[14].mxu1 %v11570_v1 }
 0x3b1   : > { %7470 = vmatprep.mubr.msk.f32.mxu1 %vm366_vm0, %v11574_v25  ;;  %8650 = vmatpush1.bf16.msra.mxu1 %v8649_v50  ;;  %v7516_v50 = vld [vmem:[%s14959_s3 + $0x230] sm:$0xff] }
 0x3b2   : > { %8651 = vmatprep.subr.bf16.mxu1 %v15169_v23  ;;  %v8661_v56 = vpack.c.bf16 %v7517_v48, %v7516_v50  ;;  %v3809_v50 = vrot.slane %v12004_v41, 1 }
 0x3b4   : > { %3231 = vmatmul.mubr.f32.gmra.mrb[16].mxu1 %v11581_v29 }
 0x3b5   : > { %7471 = vmatprep.mubr.msk.f32.mxu1 %vm366_vm0, %v11585_v3  ;;  %8653 = vmatpush1.bf16.msra.mxu1 %v8652_v5  ;;  %v15186_v5 = vld [vmem:[#allocation50_spill] sm:$0xff] }
 0x3b6   : > { %8654 = vmatprep.subr.bf16.mxu1 %v15169_v23  ;;  %15191 = vst [vmem:[#allocation50_spill] sm:$0xff] %v12004_v41  ;;  %v15195_v41 = vld [vmem:[#allocation48_spill] sm:$0xff] }
 0x3b8   : > { %3236 = vmatmul.mubr.f32.gmra.mrb[18].mxu1 %v11593_v13 }
 0x3b9   : > { %7472 = vmatprep.mubr.msk.f32.mxu1 %vm366_vm0, %v11597_v40  ;;  %8656 = vmatpush1.bf16.msra.mxu1 %v8655_v28  ;;  %v15189_v28 = vld [vmem:[#allocation53_spill] sm:$0xff] }
 0x3ba   : > { %8657 = vmatprep.subr.bf16.mxu1 %v15169_v23 }
 0x3bc   : > { %3241 = vmatmul.mubr.f32.gmra.mrb[20].mxu1 %v11604_v4 }
 0x3bd   : > { %7473 = vmatprep.mubr.msk.f32.mxu1 %vm366_vm0, %v11608_v35  ;;  %8659 = vmatpush1.bf16.msra.mxu1 %v8658_v21  ;;  %v12006_v21 = vld [vmem:[#allocation2 + $0x8] sm:$0xff] }
 0x3be   : > { %8660 = vmatprep.subr.bf16.mxu1 %v15169_v23  ;;  %15192 = vst [vmem:[#allocation51_spill] sm:$0xff] %v12006_v21  ;;  %v3810_v48 = vrot.slane %v12006_v21, 1 }
 0x3c0   : > { %3246 = vmatmul.mubr.f32.gmra.mrb[22].mxu1 %v11616_v20  ;;  %v3813_v21 = vsel %vm661_vm3, %v3810_v48, %v3812_v59  ;;  %v2546_v59 = vpop.permute.xlu1 %2545 }
 0x3c1   : > { %7474 = vmatprep.mubr.msk.f32.mxu1 %vm366_vm0, %v11620_v55  ;;  %8662 = vmatpush1.bf16.msra.mxu1 %v8661_v56  ;;  %v3811_v56 = vsel %vm661_vm3, %v3809_v50, %v3810_v48  ;;  %v2544_v50 = vpop.permute.xlu0 %2543  ;;  %v4135_v48 = vld [vmem:[#allocation7 + $0x8] sm:$0xff] }
 0x3c2   : > { %8771 = vmatprep.subr.bf16.mxu1 %v15169_v23  ;;  %3899 = vrot.lane.b32.xlu0 %v3811_v56, %s9791_s15 }
 0x3c3   : > { %3901 = vrot.lane.b32.xlu1 %v3813_v21, %s9791_s15 }
 0x3c4   : > { %3251 = vmatmul.mubr.f32.gmra.mrb[24].mxu1 %v11627_v61 }
 0x3c5   : > { %7475 = vmatprep.mubr.msk.f32.mxu1 %vm366_vm0, %v11631_v47 }
 0x3c8   : > { %3256 = vmatmul.mubr.f32.gmra.mrb[26].mxu1 %v11639_v10 }
 0x3c9   : > { %7476 = vmatprep.mubr.msk.f32.mxu1 %vm366_vm0, %v11643_v6 }
 0x3cc   : > { %3261 = vmatmul.mubr.f32.gmra.mrb[28].mxu1 %v11650_v26 }
 0x3cd   : > { %7477 = vmatprep.mubr.msk.f32.mxu1 %vm366_vm0, %v11654_v44 }
 0x3d0   : > { %3266 = vmatmul.mubr.f32.gmra.mrb[30].mxu1 %v11662_v14 }
 0x3d1   : > { %7478 = vmatprep.mubr.msk.f32.mxu1 %vm366_vm0, %v11666_v17 }
 0x3d4   : > { %3271 = vmatmul.mubr.f32.gmra.mrb[32].mxu1 %v11673_v53 }
 0x3d5   : > { %7479 = vmatprep.mubr.msk.f32.mxu1 %vm366_vm0, %v11677_v12 }
 0x3d8   : > { %3276 = vmatmul.mubr.f32.gmra.mrb[34].mxu1 %v11685_v33 }
 0x3d9   : > { %7480 = vmatprep.mubr.msk.f32.mxu1 %vm366_vm0, %v15186_v5 }
 0x3dc   : > { %3281 = vmatmul.mubr.f32.gmra.mrb[36].mxu1 %v11696_v39 }
 0x3dd   : > { %7481 = vmatprep.mubr.msk.f32.mxu1 %vm366_vm0, %v11700_v19 }
 0x3e0   : > { %3286 = vmatmul.mubr.f32.gmra.mrb[38].mxu1 %v11708_v2 }
 0x3e1   : > { %7482 = vmatprep.mubr.msk.f32.mxu1 %vm366_vm0, %v15187_v7 }
 0x3e4   : > { %3291 = vmatmul.mubr.f32.gmra.mrb[40].mxu1 %v11719_v8 }
 0x3e5   : > { %7483 = vmatprep.mubr.msk.f32.mxu1 %vm366_vm0, %v11723_v37 }
 0x3e8   : > { %3296 = vmatmul.mubr.f32.gmra.mrb[42].mxu1 %v11731_v52 }
 0x3e9   : > { %7484 = vmatprep.mubr.msk.f32.mxu1 %vm366_vm0, %v15188_v16 }
 0x3ec   : > { %3301 = vmatmul.mubr.f32.gmra.mrb[44].mxu1 %v11742_v51 }
 0x3ed   : > { %7485 = vmatprep.mubr.msk.f32.mxu1 %vm366_vm0, %v11746_v57 }
 0x3f0   : > { %3306 = vmatmul.mubr.f32.gmra.mrb[46].mxu1 %v11754_v9 }
 0x3f1   : > { %7486 = vmatprep.mubr.msk.f32.mxu1 %vm366_vm0, %v15189_v28 }
 0x3f4   : > { %3311 = vmatmul.mubr.f32.gmra.mrb[48].mxu1 %v11765_v54 }
 0x3f5   : > { %7487 = vmatprep.mubr.msk.f32.mxu1 %vm366_vm0, %v11769_v60 }
 0x3f8   : > { %3316 = vmatmul.mubr.f32.gmra.mrb[50].mxu1 %v11777_v24 }
 0x3f9   : > { %7488 = vmatprep.mubr.msk.f32.mxu1 %vm366_vm0, %v15190_v30  ;;  %v2668_v30 = vrot.slane %v15195_v41, 2 }
 0x3fc   : > { %3321 = vmatmul.mubr.f32.gmra.mrb[52].mxu1 %v11788_v43 }
 0x3fd   : > { %7489 = vmatprep.mubr.msk.f32.mxu1 %vm366_vm0, %v11792_v15  ;;  %v15194_v15 = vld [vmem:[#allocation49_spill] sm:$0xff] }
 0x3fe   : > { %v2667_v43 = vrot.slane %v15194_v15, 2 }
 0x400   : > { %3326 = vmatmul.mubr.f32.gmra.mrb[54].mxu1 %v11800_v32  ;;  %v12027_v56 = vsel %vm860_vm2, %v2667_v43, %v2668_v30  ;;  %v12044_v43 = vsel %vm366_vm0, %v15195_v41, %v2546_v59  ;;  %v4141_v59 = vld [vmem:[#allocation7 + $0x38] sm:$0xff] }
 0x401   : > { %7490 = vmatprep.mubr.msk.f32.mxu1 %vm366_vm0, %v11804_v46  ;;  %15196 = vst [vmem:[#allocation53_spill] sm:$0xff] %v12027_v56  ;;  %v2670_v46 = vrot.slane %v15197_v62, 2  ;;  %v4134_v62 = vld [vmem:[#allocation7] sm:$0xff] }
 0x403   : > { %v12038_v21 = vsel %vm860_vm2, %v2668_v30, %v2670_v46  ;;  %v4138_v30 = vld [vmem:[#allocation7 + $0x20] sm:$0xff] }
 0x404   : > { %3331 = vmatmul.mubr.f32.gmra.mrb[56].mxu1 %v11811_v36  ;;  %v12034_v36 = vsel %vm366_vm0, %v15194_v15, %v2544_v50  ;;  %15198 = vst [vmem:[#allocation49_spill] sm:$0xff] %v12038_v21  ;;  %v8664_v15 = vpack.c.bf16 %v4135_v48, %v4134_v62  ;;  %v4137_v50 = vld [vmem:[#allocation7 + $0x18] sm:$0xff]  ;;  %v4143_v62 = vld [vmem:[#allocation7 + $0x48] sm:$0xff] }
 0x405   : > { %7491 = vmatprep.mubr.msk.f32.mxu1 %vm366_vm0, %v11815_v22  ;;  %v4147_v48 = vld [vmem:[#allocation7 + $0x68] sm:$0xff] }
 0x406   : > { %8665 = vmatpush1.bf16.msra.mxu0 %v8664_v15  ;;  %v4149_v15 = vld [vmem:[#allocation7 + $0x78] sm:$0xff] }
 0x407   : > { %8666 = vmatprep.subr.bf16.mxu0 %v15169_v23 }
 0x408   : > { %3336 = vmatmul.mubr.f32.gmra.mrb[58].mxu1 %v11827_v27 }
 0x409   : > { %7492 = vmatprep.mubr.msk.f32.mxu1 %vm366_vm0, %v12027_v56  ;;  %v4136_v56 = vld [vmem:[#allocation7 + $0x10] sm:$0xff] }
 0x40a   : > { %v8667_v46 = vpack.c.bf16 %v4137_v50, %v4136_v56  ;;  %v4142_v56 = vld [vmem:[#allocation7 + $0x40] sm:$0xff]  ;;  %v4151_v50 = vld [vmem:[#allocation7 + $0x88] sm:$0xff] }
 0x40c   : > { %3341 = vmatmul.mubr.f32.gmra.mrb[60].mxu1 %v12034_v36  ;;  %8668 = vmatpush1.bf16.msra.mxu0 %v8667_v46 }
 0x40d   : > { %7493 = vmatprep.mubr.msk.f32.mxu1 %vm366_vm0, %v12038_v21  ;;  %v4139_v21 = vld [vmem:[#allocation7 + $0x28] sm:$0xff]  ;;  %8669 = vmatprep.subr.bf16.mxu0 %v15169_v23 }
 0x40e   : > { %v8670_v41 = vpack.c.bf16 %v4139_v21, %v4138_v30  ;;  %v4145_v21 = vld [vmem:[#allocation7 + $0x58] sm:$0xff]  ;;  %v4486_v30 = vld [vmem:[#allocation7 + $0xc0] sm:$0xff] }
 0x410   : > { %3346 = vmatmul.mubr.f32.gmra.mrb[62].mxu1 %v12044_v43  ;;  %8671 = vmatpush1.bf16.msra.mxu0 %v8670_v41  ;;  %v4487_v41 = vld [vmem:[#allocation7 + $0xc8] sm:$0xff] }
 0x411   : > { %7518 = vmatprep.mubr.msk.f32.mxu1 %vm366_vm0, %v11505_v34  ;;  %v4140_v34 = vld [vmem:[#allocation7 + $0x30] sm:$0xff]  ;;  %8672 = vmatprep.subr.bf16.mxu0 %v15169_v23 }
 0x414   : > { %3477 = vmatmul.mubr.f32.vlgmr.msra.gmra.mrb[0].mxu1 %v11512_v58  ;;  %v8673_v58 = vpack.c.bf16 %v4141_v59, %v4140_v34  ;;  %v8700_v59 = vpack.c.bf16 %v4487_v41, %v4486_v30  ;;  %v15219_v41 = vld [vmem:[#allocation21_spill] sm:$0xff] }
 0x415   : > { %7519 = vmatprep.mubr.msk.f32.mxu1 %vm366_vm0, %v11516_v31  ;;  %v8676_v31 = vpack.c.bf16 %v4143_v62, %v4142_v56  ;;  %v15213_v62 = vld [vmem:[#allocation15_spill] sm:$0xff] }
 0x416   : > { %8674 = vmatpush1.bf16.msra.mxu0 %v8673_v58 }
 0x417   : > { %8675 = vmatprep.subr.bf16.mxu0 %v15169_v23 }
 0x418   : > { %3482 = vmatmul.mubr.f32.gmra.mrb[2].mxu1 %v11524_v45  ;;  %v4144_v45 = vld [vmem:[#allocation7 + $0x50] sm:$0xff] }
 0x419   : > { %7520 = vmatprep.mubr.msk.f32.mxu1 %vm366_vm0, %v11528_v49  ;;  %v8679_v49 = vpack.c.bf16 %v4145_v21, %v4144_v45 }
 0x41a   : > { %8677 = vmatpush1.bf16.msra.mxu0 %v8676_v31 }
 0x41b   : > { %8678 = vmatprep.subr.bf16.mxu0 %v15169_v23 }
 0x41c   : > { %3487 = vmatmul.mubr.f32.gmra.mrb[4].mxu1 %v11535_v11  ;;  %v4146_v11 = vld [vmem:[#allocation7 + $0x60] sm:$0xff] }
 0x41d   : > { %7521 = vmatprep.mubr.msk.f32.mxu1 %vm366_vm0, %v11539_v0  ;;  %v8682_v0 = vpack.c.bf16 %v4147_v48, %v4146_v11  ;;  %v15214_v11 = vld [vmem:[#allocation18_spill] sm:$0xff] }
 0x41e   : > { %8680 = vmatpush1.bf16.msra.mxu0 %v8679_v49 }
 0x41f   : > { %8681 = vmatprep.subr.bf16.mxu0 %v15169_v23 }
 0x420   : > { %3492 = vmatmul.mubr.f32.gmra.mrb[6].mxu1 %v11547_v42  ;;  %v4148_v42 = vld [vmem:[#allocation7 + $0x70] sm:$0xff] }
 0x421   : > { %7522 = vmatprep.mubr.msk.f32.mxu1 %vm366_vm0, %v11551_v63  ;;  %v8685_v63 = vpack.c.bf16 %v4149_v15, %v4148_v42  ;;  %v4489_v42 = vld [vmem:[#allocation7 + $0xd8] sm:$0xff] }
 0x422   : > { %8683 = vmatpush1.bf16.msra.mxu0 %v8682_v0  ;;  %v4488_v0 = vld [vmem:[#allocation7 + $0xd0] sm:$0xff] }
 0x423   : > { %8684 = vmatprep.subr.bf16.mxu0 %v15169_v23 }
 0x424   : > { %3497 = vmatmul.mubr.f32.gmra.mrb[8].mxu1 %v11558_v18  ;;  %v4150_v18 = vld [vmem:[#allocation7 + $0x80] sm:$0xff] }
 0x425   : > { %7523 = vmatprep.mubr.msk.f32.mxu1 %vm366_vm0, %v11562_v38  ;;  %v8688_v38 = vpack.c.bf16 %v4151_v50, %v4150_v18 }
 0x426   : > { %8686 = vmatpush1.bf16.msra.mxu0 %v8685_v63  ;;  %v8703_v63 = vpack.c.bf16 %v4489_v42, %v4488_v0  ;;  %v4492_v42 = vld [vmem:[#allocation7 + $0xf0] sm:$0xff] }
 0x427   : > { %8687 = vmatprep.subr.bf16.mxu0 %v15169_v23 }
 0x428   : > { %3502 = vmatmul.mubr.f32.gmra.mrb[10].mxu1 %v11570_v1  ;;  %v4152_v1 = vld [vmem:[#allocation7 + $0x90] sm:$0xff] }
 0x429   : > { %7524 = vmatprep.mubr.msk.f32.mxu1 %vm366_vm0, %v11574_v25  ;;  %v4153_v25 = vld [vmem:[#allocation7 + $0x98] sm:$0xff] }
 0x42a   : > { %8689 = vmatpush1.bf16.msra.mxu0 %v8688_v38  ;;  %v15215_v38 = vld [vmem:[#allocation17_spill] sm:$0xff] }
 0x42b   : > { %8690 = vmatprep.subr.bf16.mxu0 %v15169_v23 }
 0x42c   : > { %3507 = vmatmul.mubr.f32.gmra.mrb[12].mxu1 %v11581_v29  ;;  %v8691_v29 = vpack.c.bf16 %v4153_v25, %v4152_v1 }
 0x42d   : > { %7525 = vmatprep.mubr.msk.f32.mxu1 %vm366_vm0, %v11585_v3  ;;  %v4154_v3 = vld [vmem:[#allocation7 + $0xa0] sm:$0xff] }
 0x42e   : > { %8692 = vmatpush1.bf16.msra.mxu0 %v8691_v29 }
 0x42f   : > { %8693 = vmatprep.subr.bf16.mxu0 %v15169_v23 }
 0x430   : > { %3512 = vmatmul.mubr.f32.gmra.mrb[14].mxu1 %v11593_v13  ;;  %v4155_v13 = vld [vmem:[#allocation7 + $0xa8] sm:$0xff] }
 0x431   : > { %7526 = vmatprep.mubr.msk.f32.mxu1 %vm366_vm0, %v11597_v40  ;;  %v8694_v40 = vpack.c.bf16 %v4155_v13, %v4154_v3 }
 0x433   : > { %8695 = vmatpush1.bf16.msra.mxu0 %v8694_v40  ;;  %v15216_v40 = vld [vmem:[#allocation20_spill] sm:$0xff] }
 0x434   : > { %3517 = vmatmul.mubr.f32.gmra.mrb[16].mxu1 %v11604_v4  ;;  %v2548_v4 = vpop.permute.xlu0 %2547  ;;  %8696 = vmatprep.subr.bf16.mxu0 %v15169_v23 }
 0x435   : > { %7527 = vmatprep.mubr.msk.f32.mxu1 %vm366_vm0, %v11608_v35  ;;  %v15199_v35 = vld [vmem:[#allocation54_spill] sm:$0xff] }
 0x438   : > { %3522 = vmatmul.mubr.f32.gmra.mrb[18].mxu1 %v11616_v20  ;;  %v4156_v20 = vld [vmem:[#allocation7 + $0xb0] sm:$0xff] }
 0x439   : > { %7528 = vmatprep.mubr.msk.f32.mxu1 %vm366_vm0, %v11620_v55  ;;  %v4157_v55 = vld [vmem:[#allocation7 + $0xb8] sm:$0xff] }
 0x43c   : > { %3527 = vmatmul.mubr.f32.gmra.mrb[20].mxu1 %v11627_v61  ;;  %v8697_v61 = vpack.c.bf16 %v4157_v55, %v4156_v20 }
 0x43d   : > { %7529 = vmatprep.mubr.msk.f32.mxu1 %vm366_vm0, %v11631_v47  ;;  %v15200_v47 = vld [vmem:[#allocation55_spill] sm:$0xff] }
 0x43e   : > { %8698 = vmatpush1.bf16.msra.mxu0 %v8697_v61 }
 0x43f   : > { %8699 = vmatprep.subr.bf16.mxu0 %v15169_v23 }
 0x440   : > { %3532 = vmatmul.mubr.f32.gmra.mrb[22].mxu1 %v11639_v10  ;;  %v2550_v10 = vpop.permute.xlu1 %2549 }
 0x441   : > { %7530 = vmatprep.mubr.msk.f32.mxu1 %vm366_vm0, %v11643_v6  ;;  %v3900_v6 = vpop.permute.xlu0 %3899 }
 0x444   : > { %3537 = vmatmul.mubr.f32.gmra.mrb[24].mxu1 %v11650_v26  ;;  %v15201_v26 = vld [vmem:[#allocation56_spill] sm:$0xff] }
 0x445   : > { %7531 = vmatprep.mubr.msk.f32.mxu1 %vm366_vm0, %v11654_v44  ;;  %v15202_v44 = vld [vmem:[#allocation50_spill] sm:$0xff] }
 0x448   : > { %3542 = vmatmul.mubr.f32.gmra.mrb[26].mxu1 %v11662_v14  ;;  %v4007_v14 = vrot.slane %v15202_v44, 2 }
 0x449   : > { %7532 = vmatprep.mubr.msk.f32.mxu1 %vm366_vm0, %v11666_v17  ;;  %v15203_v17 = vld [vmem:[#allocation51_spill] sm:$0xff] }
 0x44c   : > { %3547 = vmatmul.mubr.f32.gmra.mrb[28].mxu1 %v11673_v53  ;;  %v4008_v53 = vrot.slane %v15203_v17, 2 }
 0x44d   : > { %7533 = vmatprep.mubr.msk.f32.mxu1 %vm366_vm0, %v11677_v12  ;;  %v4097_v12 = vsel %vm366_vm0, %v15202_v44, %v3900_v6 }
 0x450   : > { %3552 = vmatmul.mubr.f32.gmra.mrb[30].mxu1 %v11685_v33  ;;  %v4009_v33 = vsel %vm860_vm2, %v4007_v14, %v4008_v53 }
 0x451   : > { %7534 = vmatprep.mubr.msk.f32.mxu1 %vm366_vm0, %v15186_v5  ;;  %7550 = vmatprep.mubr.msk.f32.mxu0 %vm366_vm0, %v4009_v33 }
 0x452   : > { %4287 = vmatmul.mubr.f32.vlgmr.msra.gmra.mrb[32].mxu0 %v4097_v12 }
 0x453   : > { %8701 = vmatpush1.bf16.msra.mxu0 %v8700_v59 }
 0x454   : > { %3557 = vmatmul.mubr.f32.gmra.mrb[32].mxu1 %v11696_v39  ;;  %v3902_v39 = vpop.permute.xlu1 %3901  ;;  %8702 = vmatprep.subr.bf16.mxu0 %v15169_v23 }
 0x455   : > { %7535 = vmatprep.mubr.msk.f32.mxu1 %vm366_vm0, %v11700_v19  ;;  %v15204_v19 = vld [vmem:[#allocation57_spill] sm:$0xff] }
 0x457   : > { %8704 = vmatpush1.bf16.msra.mxu0 %v8703_v63 }
 0x458   : > { %3562 = vmatmul.mubr.f32.gmra.mrb[34].mxu1 %v11708_v2  ;;  %v15205_v2 = vld [vmem:[#allocation52_spill] sm:$0xff]  ;;  %8705 = vmatprep.subr.bf16.mxu0 %v15169_v23 }
 0x459   : > { %7536 = vmatprep.mubr.msk.f32.mxu1 %vm366_vm0, %v15187_v7 }
 0x45c   : > { %3567 = vmatmul.mubr.f32.gmra.mrb[36].mxu1 %v11719_v8  ;;  %v4010_v8 = vrot.slane %v15205_v2, 2 }
 0x45d   : > { %7537 = vmatprep.mubr.msk.f32.mxu1 %vm366_vm0, %v11723_v37  ;;  %v4098_v37 = vsel %vm366_vm0, %v15203_v17, %v3902_v39 }
 0x460   : > { %3572 = vmatmul.mubr.f32.gmra.mrb[38].mxu1 %v11731_v52  ;;  %v15206_v52 = vld [vmem:[#allocation58_spill] sm:$0xff] }
 0x461   : > { %7538 = vmatprep.mubr.msk.f32.mxu1 %vm366_vm0, %v15188_v16 }
 0x464   : > { %3577 = vmatmul.mubr.f32.gmra.mrb[40].mxu1 %v11742_v51  ;;  %v4011_v51 = vsel %vm860_vm2, %v4008_v53, %v4010_v8 }
 0x465   : > { %7539 = vmatprep.mubr.msk.f32.mxu1 %vm366_vm0, %v11746_v57  ;;  %7551 = vmatprep.mubr.msk.f32.mxu0 %vm366_vm0, %v4011_v51  ;;  %v15207_v57 = vld [vmem:[#allocation53_spill] sm:$0xff]  ;;  %v4491_v51 = vld [vmem:[#allocation7 + $0xe8] sm:$0xff] }
 0x466   : > { %4292 = vmatmul.mubr.f32.gmra.mrb[34].mxu0 %v4098_v37 }
 0x468   : > { %3582 = vmatmul.mubr.f32.gmra.mrb[42].mxu1 %v11754_v9  ;;  %v15208_v9 = vld [vmem:[#allocation59_spill] sm:$0xff] }
 0x469   : > { %7540 = vmatprep.mubr.msk.f32.mxu1 %vm366_vm0, %v15189_v28  ;;  %v12174_v28 = vld [vmem:[%s14960_s4] ss:$0 sm:$0xff] }
 0x46a   : > { %v2721_v31 = vadd.f32 %v15213_v62, %v12174_v28  ;;  %v2722_v48 = vadd.f32 %v15214_v11, %v12174_v28  ;;  %v2723_v1 = vadd.f32 %v15215_v38, %v12174_v28 }
 0x46c   : > { %3587 = vmatmul.mubr.f32.gmra.mrb[44].mxu1 %v11765_v54  ;;  %v2672_v54 = vrot.slane %v15208_v9, 2 }
 0x46d   : > { %7541 = vmatprep.mubr.msk.f32.mxu1 %vm366_vm0, %v11769_v60  ;;  %v15209_v60 = vld [vmem:[#allocation60_spill] sm:$0xff] }
 0x470   : > { %3592 = vmatmul.mubr.f32.gmra.mrb[46].mxu1 %v11777_v24  ;;  %v2673_v24 = vrot.slane %v15209_v60, 2 }
 0x471   : > { %7542 = vmatprep.mubr.msk.f32.mxu1 %vm366_vm0, %v15199_v35 }
 0x472   : > { %v2674_v5 = vsel %vm860_vm2, %v2672_v54, %v2673_v24 }
 0x474   : > { %3597 = vmatmul.mubr.f32.gmra.mrb[48].mxu1 %v15200_v47 }
 0x475   : > { %7543 = vmatprep.mubr.msk.f32.mxu1 %vm366_vm0, %v15201_v26 }
 0x478   : > { %3602 = vmatmul.mubr.f32.gmra.mrb[50].mxu1 %v11800_v32  ;;  %v15210_v32 = vld [vmem:[#allocation49_spill] sm:$0xff] }
 0x479   : > { %7544 = vmatprep.mubr.msk.f32.mxu1 %vm366_vm0, %v15204_v19  ;;  %v15217_v19 = vld [vmem:[#allocation19_spill] sm:$0xff] }
 0x47a   : > { %v2725_v2 = vadd.f32 %v15217_v19, %v12174_v28 }
 0x47c   : > { %3607 = vmatmul.mubr.f32.gmra.mrb[52].mxu1 %v15206_v52  ;;  %v4490_v52 = vld [vmem:[#allocation7 + $0xe0] sm:$0xff] }
 0x47d   : > { %7545 = vmatprep.mubr.msk.f32.mxu1 %vm366_vm0, %v11815_v22  ;;  %v15211_v22 = vld [vmem:[#allocation61_spill] sm:$0xff]  ;;  %v8706_v54 = vpack.c.bf16 %v4491_v51, %v4490_v52 }
 0x47e   : > { %v2675_v7 = vrot.slane %v15211_v22, 2 }
 0x47f   : > { %8707 = vmatpush1.bf16.msra.mxu0 %v8706_v54 }
 0x480   : > { %3612 = vmatmul.mubr.f32.gmra.mrb[54].mxu1 %v11827_v27  ;;  %v2711_v27 = vsel %vm366_vm0, %v15208_v9, %v2548_v4  ;;  %v2676_v16 = vsel %vm860_vm2, %v2673_v24, %v2675_v7  ;;  %v2724_v4 = vadd.f32 %v15216_v40, %v12174_v28  ;;  %8708 = vmatprep.subr.bf16.mxu0 %v15169_v23 }
 0x481   : > { %7546 = vmatprep.mubr.msk.f32.mxu1 %vm366_vm0, %v15207_v57 }
 0x484   : > { %3617 = vmatmul.mubr.f32.gmra.mrb[56].mxu1 %v12034_v36  ;;  %v2712_v36 = vsel %vm366_vm0, %v15209_v60, %v2550_v10 }
 0x485   : > { %7547 = vmatprep.mubr.msk.f32.mxu1 %vm366_vm0, %v15210_v32  ;;  %v15218_v32 = vld [vmem:[#allocation22_spill] sm:$0xff] }
 0x488   : > { %3622 = vmatmul.mubr.f32.gmra.mrb[58].mxu1 %v12044_v43  ;;  %v15212_v43 = vld [vmem:[#allocation16_spill] sm:$0xff] }
 0x489   : > { %7548 = vmatprep.mubr.msk.f32.mxu1 %vm366_vm0, %v2674_v5  ;;  %v2720_v46 = vadd.f32 %v15212_v43, %v12174_v28  ;;  %v2726_v5 = vadd.f32 %v15218_v32, %v12174_v28 }
 0x48c   : > { %3627 = vmatmul.mubr.f32.gmra.mrb[60].mxu1 %v2711_v27 }
 0x48d   : > { %7549 = vmatprep.mubr.msk.f32.mxu1 %vm366_vm0, %v2676_v16 }
 0x490   : > { %3632 = vmatmul.mubr.f32.gmra.mrb[62].mxu1 %v2712_v36 }
 0x4e7   : > { %v3478_v34 = vpop.f32.mrb[0].mxu1 }
 0x4e8   : > { %v9043_v58 = vadd.f32 %v3478_v34, %v2720_v46  ;;  %v3480_v56 = vpop.f32.mrb[1].mxu1  ;;  %v2727_v34 = vadd.f32 %v15219_v41, %v12174_v28 }
 0x4ea   : > { %3669 = vst.msk [vmem:[#allocation2 + $0x19] sm:$0xff] %vm366_vm0, %v9043_v58 }
 0x4eb   : > { %v3483_v45 = vpop.f32.mrb[2].mxu1 }
 0x4ec   : > { %v9044_v21 = vadd.f32 %v3483_v45, %v2721_v31  ;;  %v3485_v49 = vpop.f32.mrb[3].mxu1 }
 0x4ee   : > { %3670 = vst.msk [vmem:[#allocation2 + $0x21] sm:$0xff] %vm366_vm0, %v9044_v21  ;;  %v15220_v21 = vld [vmem:[#allocation24_spill] sm:$0xff] }
 0x4ef   : > { %v3488_v15 = vpop.f32.mrb[4].mxu1  ;;  %v2728_v49 = vadd.f32 %v15220_v21, %v12174_v28  ;;  %v15225_v21 = vld [vmem:[#allocation27_spill] sm:$0xff] }
 0x4f0   : > { %v9045_v18 = vadd.f32 %v3488_v15, %v2722_v48  ;;  %v3490_v50 = vpop.f32.mrb[5].mxu1  ;;  %v4493_v15 = vld [vmem:[#allocation7 + $0xf8] sm:$0xff] }
 0x4f1   : > { %v12188_v25 = vld [vmem:[#allocation2 + $0x18] sm:$0xff] }
 0x4f2   : > { %3671 = vst.msk [vmem:[#allocation2 + $0x31] sm:$0xff] %vm366_vm0, %v9045_v18  ;;  %v3814_v55 = vrot.slane %v12188_v25, 1  ;;  %v4012_v61 = vrot.slane %v12188_v25, 2  ;;  %v8709_v18 = vpack.c.bf16 %v4493_v15, %v4492_v42  ;;  %v4497_v42 = vld [vmem:[#allocation7 + $0x118] sm:$0xff] }
 0x4f3   : > { %v3493_v29 = vpop.f32.mrb[6].mxu1 }
 0x4f4   : > { %v9046_v3 = vadd.f32 %v3493_v29, %v2723_v1  ;;  %v3495_v13 = vpop.f32.mrb[7].mxu1  ;;  %8710 = vmatpush1.bf16.msra.mxu0 %v8709_v18 }
 0x4f5   : > { %v12193_v35 = vld [vmem:[#allocation2 + $0x20] sm:$0xff]  ;;  %v3706_v20 = vld [vmem:[#allocation2 + $0x28] sm:$0x3]  ;;  %8711 = vmatprep.subr.bf16.mxu0 %v15169_v23 }
 0x4f6   : > { %3672 = vst.msk [vmem:[#allocation2 + $0x39] sm:$0xff] %vm366_vm0, %v9046_v3  ;;  %v3815_v47 = vrot.slane %v12193_v35, 1  ;;  %v3817_v10 = vrot.slane %v3706_v20, 1  ;;  %v4013_v6 = vrot.slane %v12193_v35, 2  ;;  %v4015_v26 = vrot.slane %v3706_v20, 2  ;;  %v15221_v3 = vld [vmem:[#allocation23_spill] sm:$0xff] }
 0x4f7   : > { %v3498_v44 = vpop.f32.mrb[8].mxu1  ;;  %v2729_v13 = vadd.f32 %v15221_v3, %v12174_v28 }
 0x4f8   : > { %v9047_v14 = vadd.f32 %v3498_v44, %v2724_v4  ;;  %v3500_v17 = vpop.f32.mrb[9].mxu1  ;;  %v3818_v53 = vsel %vm661_vm3, %v3815_v47, %v3817_v10  ;;  %v3816_v12 = vsel %vm661_vm3, %v3814_v55, %v3815_v47  ;;  %v12203_v33 = vsel %vm860_vm2, %v4012_v61, %v4013_v6  ;;  %v15222_v10 = vld [vmem:[#allocation26_spill] sm:$0xff] }
 0x4f9   : > { %3905 = vrot.lane.b32.xlu1 %v3818_v53, %s9791_s15  ;;  %3903 = vrot.lane.b32.xlu0 %v3816_v12, %s9791_s15  ;;  %v12208_v39 = vsel %vm860_vm2, %v4013_v6, %v4015_v26  ;;  %v12215_v37 = vld [vmem:[#allocation2 + $0x30] sm:$0xff]  ;;  %v2730_v6 = vadd.f32 %v15222_v10, %v12174_v28  ;;  %v4494_v53 = vld [vmem:[#allocation7 + $0x100] sm:$0xff]  ;;  %v4495_v12 = vld [vmem:[#allocation7 + $0x108] sm:$0xff] }
 0x4fa   : > { %3673 = vst.msk [vmem:[#allocation2 + $0x49] sm:$0xff] %vm366_vm0, %v9047_v14  ;;  %7552 = vmatprep.mubr.msk.f32.mxu0 %vm366_vm0, %v12203_v33  ;;  %v3819_v27 = vrot.slane %v12215_v37, 1  ;;  %v8712_v51 = vpack.c.bf16 %v4495_v12, %v4494_v53 }
 0x4fb   : > { %v3503_v8 = vpop.f32.mrb[10].mxu1 }
 0x4fc   : > { %v9048_v57 = vadd.f32 %v3503_v8, %v2725_v2  ;;  %v3505_v9 = vpop.f32.mrb[11].mxu1  ;;  %8713 = vmatpush1.bf16.msra.mxu0 %v8712_v51 }
 0x4fd   : > { %v12217_v60 = vld [vmem:[#allocation2 + $0x38] sm:$0xff]  ;;  %v12219_v24 = vld [vmem:[#allocation2 + $0x40] sm:$0x3]  ;;  %8714 = vmatprep.subr.bf16.mxu0 %v15169_v23 }
 0x4fe   : > { %3674 = vst.msk [vmem:[#allocation2 + $0x51] sm:$0xff] %vm366_vm0, %v9048_v57  ;;  %v3820_v22 = vrot.slane %v12217_v60, 1  ;;  %v3822_v7 = vrot.slane %v12219_v24, 1  ;;  %v15223_v57 = vld [vmem:[#allocation25_spill] sm:$0xff] }
 0x4ff   : > { %v3508_v16 = vpop.f32.mrb[12].mxu1  ;;  %v2731_v9 = vadd.f32 %v15223_v57, %v12174_v28 }
 0x500   : > { %v9049_v36 = vadd.f32 %v3508_v16, %v2726_v5  ;;  %v3510_v43 = vpop.f32.mrb[13].mxu1  ;;  %v3823_v46 = vsel %vm661_vm3, %v3820_v22, %v3822_v7  ;;  %v3821_v30 = vsel %vm661_vm3, %v3819_v27, %v3820_v22  ;;  %v15224_v16 = vld [vmem:[#allocation28_spill] sm:$0xff] }
 0x501   : > { %3909 = vrot.lane.b32.xlu1 %v3823_v46, %s9791_s15  ;;  %3907 = vrot.lane.b32.xlu0 %v3821_v30, %s9791_s15  ;;  %v12235_v58 = vld [vmem:[#allocation2 + $0x48] sm:$0xff] }
 0x502   : > { %3675 = vst.msk [vmem:[#allocation2 + $0x61] sm:$0xff] %vm366_vm0, %v9049_v36  ;;  %v3824_v0 = vrot.slane %v12235_v58, 1  ;;  %v2732_v36 = vadd.f32 %v15224_v16, %v12174_v28 }
 0x503   : > { %v3513_v59 = vpop.f32.mrb[14].mxu1 }
 0x504   : > { %v9050_v56 = vadd.f32 %v3513_v59, %v2727_v34  ;;  %v3515_v62 = vpop.f32.mrb[15].mxu1 }
 0x505   : > { %v12237_v31 = vld [vmem:[#allocation2 + $0x50] sm:$0xff]  ;;  %v12239_v45 = vld [vmem:[#allocation2 + $0x58] sm:$0x3] }
 0x506   : > { %3676 = vst.msk [vmem:[#allocation2 + $0x69] sm:$0xff] %vm366_vm0, %v9050_v56  ;;  %v3825_v11 = vrot.slane %v12237_v31, 1  ;;  %v3827_v48 = vrot.slane %v12239_v45, 1 }
 0x507   : > { %v3518_v63 = vpop.f32.mrb[16].mxu1 }
 0x508   : > { %v9051_v50 = vadd.f32 %v3518_v63, %v2728_v49  ;;  %v3520_v38 = vpop.f32.mrb[17].mxu1  ;;  %v3828_v1 = vsel %vm661_vm3, %v3825_v11, %v3827_v48  ;;  %v3826_v29 = vsel %vm661_vm3, %v3824_v0, %v3825_v11  ;;  %v2733_v49 = vadd.f32 %v15225_v21, %v12174_v28  ;;  %v4496_v0 = vld [vmem:[#allocation7 + $0x110] sm:$0xff] }
 0x509   : > { %3913 = vrot.lane.b32.xlu1 %v3828_v1, %s9791_s15  ;;  %3911 = vrot.lane.b32.xlu0 %v3826_v29, %s9791_s15  ;;  %v12254_v4 = vld [vmem:[#allocation2 + $0x60] sm:$0xff]  ;;  %v8715_v18 = vpack.c.bf16 %v4497_v42, %v4496_v0  ;;  %v15226_v1 = vld [vmem:[#allocation30_spill] sm:$0xff] }
 0x50a   : > { %3677 = vst.msk [vmem:[#allocation2 + $0x79] sm:$0xff] %vm366_vm0, %v9051_v50  ;;  %v3829_v14 = vrot.slane %v12254_v4, 1  ;;  %v2734_v29 = vadd.f32 %v15226_v1, %v12174_v28  ;;  %v15230_v42 = vld [vmem:[#allocation34_spill] sm:$0xff] }
 0x50b   : > { %v3523_v40 = vpop.f32.mrb[18].mxu1  ;;  %8716 = vmatpush1.bf16.msra.mxu0 %v8715_v18 }
 0x50c   : > { %v9052_v20 = vadd.f32 %v3523_v40, %v2729_v13  ;;  %v3525_v55 = vpop.f32.mrb[19].mxu1  ;;  %8717 = vmatprep.subr.bf16.mxu0 %v15169_v23 }
 0x50d   : > { %v12257_v61 = vld [vmem:[#allocation2 + $0x68] sm:$0xff]  ;;  %v12259_v47 = vld [vmem:[#allocation2 + $0x70] sm:$0x3] }
 0x50e   : > { %3678 = vst.msk [vmem:[#allocation2 + $0x81] sm:$0xff] %vm366_vm0, %v9052_v20  ;;  %v3830_v26 = vrot.slane %v12257_v61, 1  ;;  %v3832_v44 = vrot.slane %v12259_v47, 1 }
 0x50f   : > { %v3528_v17 = vpop.f32.mrb[20].mxu1 }
 0x510   : > { %v9053_v19 = vadd.f32 %v3528_v17, %v2730_v6  ;;  %v3530_v2 = vpop.f32.mrb[21].mxu1  ;;  %v3833_v8 = vsel %vm661_vm3, %v3830_v26, %v3832_v44  ;;  %v3831_v52 = vsel %vm661_vm3, %v3829_v14, %v3830_v26  ;;  %v15227_v44 = vld [vmem:[#allocation29_spill] sm:$0xff] }
 0x511   : > { %3917 = vrot.lane.b32.xlu1 %v3833_v8, %s9791_s15  ;;  %3915 = vrot.lane.b32.xlu0 %v3831_v52, %s9791_s15  ;;  %v12274_v32 = vld [vmem:[#allocation2 + $0x78] sm:$0xff]  ;;  %v2735_v14 = vadd.f32 %v15227_v44, %v12174_v28  ;;  %v15228_v52 = vld [vmem:[#allocation32_spill] sm:$0xff] }
 0x512   : > { %3679 = vst.msk [vmem:[#allocation2 + $0x91] sm:$0xff] %vm366_vm0, %v9053_v19  ;;  %v3834_v30 = vrot.slane %v12274_v32, 1  ;;  %v2736_v51 = vadd.f32 %v15228_v52, %v12174_v28 }
 0x513   : > { %v3533_v54 = vpop.f32.mrb[22].mxu1 }
 0x514   : > { %v9054_v5 = vadd.f32 %v3533_v54, %v2731_v9  ;;  %v3535_v22 = vpop.f32.mrb[23].mxu1 }
 0x515   : > { %v12277_v7 = vld [vmem:[#allocation2 + $0x80] sm:$0xff]  ;;  %v12279_v27 = vld [vmem:[#allocation2 + $0x88] sm:$0x3] }
 0x516   : > { %3680 = vst.msk [vmem:[#allocation2 + $0x99] sm:$0xff] %vm366_vm0, %v9054_v5  ;;  %v3835_v43 = vrot.slane %v12277_v7, 1  ;;  %v3837_v46 = vrot.slane %v12279_v27, 1  ;;  %v4498_v5 = vld [vmem:[#allocation7 + $0x120] sm:$0xff]  ;;  %v4499_v22 = vld [vmem:[#allocation7 + $0x128] sm:$0xff] }
 0x517   : > { %v3538_v41 = vpop.f32.mrb[24].mxu1 }
 0x518   : > { %v9055_v34 = vadd.f32 %v3538_v41, %v2732_v36  ;;  %v3540_v59 = vpop.f32.mrb[25].mxu1  ;;  %v3838_v56 = vsel %vm661_vm3, %v3835_v43, %v3837_v46  ;;  %v3836_v62 = vsel %vm661_vm3, %v3834_v30, %v3835_v43  ;;  %v8718_v36 = vpack.c.bf16 %v4499_v22, %v4498_v5 }
 0x519   : > { %3921 = vrot.lane.b32.xlu1 %v3838_v56, %s9791_s15  ;;  %3919 = vrot.lane.b32.xlu0 %v3836_v62, %s9791_s15  ;;  %v12294_v48 = vld [vmem:[#allocation2 + $0x90] sm:$0xff] }
 0x51a   : > { %3681 = vst.msk [vmem:[#allocation2 + $0xa9] sm:$0xff] %vm366_vm0, %v9055_v34  ;;  %v3839_v40 = vrot.slane %v12294_v48, 1  ;;  %v15229_v34 = vld [vmem:[#allocation31_spill] sm:$0xff]  ;;  %8719 = vmatpush1.bf16.msra.mxu0 %v8718_v36 }
 0x51b   : > { %v3543_v11 = vpop.f32.mrb[26].mxu1  ;;  %v2737_v59 = vadd.f32 %v15229_v34, %v12174_v28  ;;  %8720 = vmatprep.subr.bf16.mxu0 %v15169_v23 }
 0x51c   : > { %v9056_v15 = vadd.f32 %v3543_v11, %v2733_v49  ;;  %v3545_v63 = vpop.f32.mrb[27].mxu1 }
 0x51d   : > { %v12296_v50 = vld [vmem:[#allocation2 + $0x98] sm:$0xff]  ;;  %v12298_v38 = vld [vmem:[#allocation2 + $0xa0] sm:$0x3] }
 0x51e   : > { %3682 = vst.msk [vmem:[#allocation2 + $0xb1] sm:$0xff] %vm366_vm0, %v9056_v15  ;;  %v3840_v3 = vrot.slane %v12296_v50, 1  ;;  %v3842_v13 = vrot.slane %v12298_v38, 1  ;;  %v2738_v15 = vadd.f32 %v15230_v42, %v12174_v28 }
 0x51f   : > { %v3548_v20 = vpop.f32.mrb[28].mxu1 }
 0x520   : > { %v9057_v55 = vadd.f32 %v3548_v20, %v2734_v29  ;;  %v3550_v10 = vpop.f32.mrb[29].mxu1  ;;  %v3843_v6 = vsel %vm661_vm3, %v3840_v3, %v3842_v13  ;;  %v3841_v26 = vsel %vm661_vm3, %v3839_v40, %v3840_v3  ;;  %v4500_v3 = vld [vmem:[#allocation7 + $0x130] sm:$0xff]  ;;  %v4501_v13 = vld [vmem:[#allocation7 + $0x138] sm:$0xff] }
 0x521   : > { %3925 = vrot.lane.b32.xlu1 %v3843_v6, %s9791_s15  ;;  %3923 = vrot.lane.b32.xlu0 %v3841_v26, %s9791_s15  ;;  %v12314_v53 = vld [vmem:[#allocation2 + $0xa8] sm:$0xff]  ;;  %v8721_v6 = vpack.c.bf16 %v4501_v13, %v4500_v3  ;;  %v15231_v26 = vld [vmem:[#allocation33_spill] sm:$0xff] }
 0x522   : > { %3683 = vst.msk [vmem:[#allocation2 + $0xc1] sm:$0xff] %vm366_vm0, %v9057_v55  ;;  %v3844_v54 = vrot.slane %v12314_v53, 1  ;;  %v2739_v44 = vadd.f32 %v15231_v26, %v12174_v28 }
 0x523   : > { %v3553_v17 = vpop.f32.mrb[30].mxu1  ;;  %8722 = vmatpush1.bf16.msra.mxu0 %v8721_v6 }
 0x524   : > { %v9058_v12 = vadd.f32 %v3553_v17, %v2735_v14  ;;  %v3555_v19 = vpop.f32.mrb[31].mxu1  ;;  %8723 = vmatprep.subr.bf16.mxu0 %v15169_v23 }
 0x525   : > { %v12316_v2 = vld [vmem:[#allocation2 + $0xb0] sm:$0xff]  ;;  %v12318_v8 = vld [vmem:[#allocation2 + $0xb8] sm:$0x3] }
 0x526   : > { %3684 = vst.msk [vmem:[#allocation2 + $0xc9] sm:$0xff] %vm366_vm0, %v9058_v12  ;;  %v3845_v57 = vrot.slane %v12316_v2, 1  ;;  %v3847_v9 = vrot.slane %v12318_v8, 1 }
 0x527   : > { %v3558_v16 = vpop.f32.mrb[32].mxu1 }
 0x528   : > { %v9059_v43 = vadd.f32 %v3558_v16, %v2736_v51  ;;  %v3560_v46 = vpop.f32.mrb[33].mxu1  ;;  %v3848_v30 = vsel %vm661_vm3, %v3845_v57, %v3847_v9  ;;  %v3846_v41 = vsel %vm661_vm3, %v3844_v54, %v3845_v57  ;;  %v15232_v57 = vld [vmem:[#allocation36_spill] sm:$0xff] }
 0x529   : > { %3929 = vrot.lane.b32.xlu1 %v3848_v30, %s9791_s15  ;;  %3927 = vrot.lane.b32.xlu0 %v3846_v41, %s9791_s15  ;;  %v12333_v62 = vld [vmem:[#allocation2 + $0xc0] sm:$0xff]  ;;  %v2740_v9 = vadd.f32 %v15232_v57, %v12174_v28 }
 0x52a   : > { %3685 = vst.msk [vmem:[#allocation2 + $0xd9] sm:$0xff] %vm366_vm0, %v9059_v43  ;;  %v3849_v1 = vrot.slane %v12333_v62, 1  ;;  %v15233_v41 = vld [vmem:[#allocation35_spill] sm:$0xff] }
 0x52b   : > { %v3563_v56 = vpop.f32.mrb[34].mxu1  ;;  %v2741_v34 = vadd.f32 %v15233_v41, %v12174_v28  ;;  %v4504_v41 = vld [vmem:[#allocation7 + $0x150] sm:$0xff] }
 0x52c   : > { %v9060_v21 = vadd.f32 %v3563_v56, %v2737_v59  ;;  %v3565_v49 = vpop.f32.mrb[35].mxu1 }
 0x52d   : > { %v12336_v11 = vld [vmem:[#allocation2 + $0xc8] sm:$0xff]  ;;  %v12338_v0 = vld [vmem:[#allocation2 + $0xd0] sm:$0x3] }
 0x52e   : > { %3686 = vst.msk [vmem:[#allocation2 + $0xe1] sm:$0xff] %vm366_vm0, %v9060_v21  ;;  %v3850_v63 = vrot.slane %v12336_v11, 1  ;;  %v3852_v18 = vrot.slane %v12338_v0, 1  ;;  %v4502_v21 = vld [vmem:[#allocation7 + $0x140] sm:$0xff]  ;;  %v4503_v49 = vld [vmem:[#allocation7 + $0x148] sm:$0xff] }
 0x52f   : > { %v3568_v29 = vpop.f32.mrb[36].mxu1 }
 0x530   : > { %v9061_v40 = vadd.f32 %v3568_v29, %v2738_v15  ;;  %v3570_v20 = vpop.f32.mrb[37].mxu1  ;;  %v3853_v55 = vsel %vm661_vm3, %v3850_v63, %v3852_v18  ;;  %v3851_v10 = vsel %vm661_vm3, %v3849_v1, %v3850_v63  ;;  %v8724_v63 = vpack.c.bf16 %v4503_v49, %v4502_v21  ;;  %v15234_v29 = vld [vmem:[#allocation38_spill] sm:$0xff] }
 0x531   : > { %3933 = vrot.lane.b32.xlu1 %v3853_v55, %s9791_s15  ;;  %3931 = vrot.lane.b32.xlu0 %v3851_v10, %s9791_s15  ;;  %v12353_v17 = vld [vmem:[#allocation2 + $0xd8] sm:$0xff]  ;;  %v2742_v3 = vadd.f32 %v15234_v29, %v12174_v28  ;;  %v15237_v29 = vld [vmem:[#allocation39_spill] sm:$0xff] }
 0x532   : > { %3687 = vst.msk [vmem:[#allocation2 + $0xf1] sm:$0xff] %vm366_vm0, %v9061_v40  ;;  %v3854_v22 = vrot.slane %v12353_v17, 1  ;;  %8725 = vmatpush1.bf16.msra.mxu0 %v8724_v63 }
 0x533   : > { %v3573_v14 = vpop.f32.mrb[38].mxu1  ;;  %8726 = vmatprep.subr.bf16.mxu0 %v15169_v23 }
 0x534   : > { %v9062_v12 = vadd.f32 %v3573_v14, %v2739_v44  ;;  %v3575_v19 = vpop.f32.mrb[39].mxu1  ;;  %v15235_v14 = vld [vmem:[#allocation37_spill] sm:$0xff] }
 0x535   : > { %v12356_v52 = vld [vmem:[#allocation2 + $0xe0] sm:$0xff]  ;;  %v12358_v51 = vld [vmem:[#allocation2 + $0xe8] sm:$0x3] }
 0x536   : > { %3688 = vst.msk [vmem:[#allocation2 + $0xf9] sm:$0xff] %vm366_vm0, %v9062_v12  ;;  %v3855_v54 = vrot.slane %v12356_v52, 1  ;;  %v3857_v5 = vrot.slane %v12358_v51, 1  ;;  %v2743_v12 = vadd.f32 %v15235_v14, %v12174_v28 }
 0x537   : > { %v3578_v16 = vpop.f32.mrb[40].mxu1 }
 0x538   : > { %v9063_v36 = vadd.f32 %v3578_v16, %v2740_v9  ;;  %v3580_v43 = vpop.f32.mrb[41].mxu1  ;;  %v3858_v46 = vsel %vm661_vm3, %v3855_v54, %v3857_v5  ;;  %v3856_v30 = vsel %vm661_vm3, %v3854_v22, %v3855_v54  ;;  %v15236_v16 = vld [vmem:[#allocation40_spill] sm:$0xff] }
 0x539   : > { %3937 = vrot.lane.b32.xlu1 %v3858_v46, %s9791_s15  ;;  %3935 = vrot.lane.b32.xlu0 %v3856_v30, %s9791_s15  ;;  %v12373_v56 = vld [vmem:[#allocation2 + $0xf0] sm:$0xff] }
 0x53a   : > { %3689 = vst.msk [vmem:[#allocation2 + $0x109] sm:$0xff] %vm366_vm0, %v9063_v36  ;;  %v3859_v20 = vrot.slane %v12373_v56, 1  ;;  %v2744_v36 = vadd.f32 %v15236_v16, %v12174_v28  ;;  %v4507_v16 = vld [vmem:[#allocation7 + $0x168] sm:$0xff] }
 0x53b   : > { %v3583_v59 = vpop.f32.mrb[42].mxu1 }
 0x53c   : > { %v9064_v42 = vadd.f32 %v3583_v59, %v2741_v34  ;;  %v3585_v15 = vpop.f32.mrb[43].mxu1  ;;  %v4505_v34 = vld [vmem:[#allocation7 + $0x158] sm:$0xff] }
 0x53d   : > { %v12375_v18 = vld [vmem:[#allocation2 + $0xf8] sm:$0xff]  ;;  %v12377_v1 = vld [vmem:[#allocation2 + $0x100] sm:$0x3]  ;;  %v8727_v21 = vpack.c.bf16 %v4505_v34, %v4504_v41  ;;  %v15239_v34 = vld [vmem:[#allocation41_spill] sm:$0xff] }
 0x53e   : > { %3690 = vst.msk [vmem:[#allocation2 + $0x111] sm:$0xff] %vm366_vm0, %v9064_v42  ;;  %v3860_v13 = vrot.slane %v12375_v18, 1  ;;  %v3862_v40 = vrot.slane %v12377_v1, 1 }
 0x53f   : > { %v3588_v55 = vpop.f32.mrb[44].mxu1  ;;  %8728 = vmatpush1.bf16.msra.mxu0 %v8727_v21 }
 0x540   : > { %v9065_v10 = vadd.f32 %v3588_v55, %v2742_v3  ;;  %v3590_v6 = vpop.f32.mrb[45].mxu1  ;;  %v3863_v26 = vsel %vm661_vm3, %v3860_v13, %v3862_v40  ;;  %v3861_v44 = vsel %vm661_vm3, %v3859_v20, %v3860_v13  ;;  %v2745_v3 = vadd.f32 %v15237_v29, %v12174_v28  ;;  %8729 = vmatprep.subr.bf16.mxu0 %v15169_v23 }
 0x541   : > { %3941 = vrot.lane.b32.xlu1 %v3863_v26, %s9791_s15  ;;  %3939 = vrot.lane.b32.xlu0 %v3861_v44, %s9791_s15  ;;  %v12393_v57 = vld [vmem:[#allocation2 + $0x108] sm:$0xff]  ;;  %v15238_v26 = vld [vmem:[#allocation42_spill] sm:$0xff] }
 0x542   : > { %3691 = vst.msk [vmem:[#allocation2 + $0x121] sm:$0xff] %vm366_vm0, %v9065_v10  ;;  %v3864_v30 = vrot.slane %v12393_v57, 1  ;;  %v2746_v44 = vadd.f32 %v15238_v26, %v12174_v28 }
 0x543   : > { %v3593_v19 = vpop.f32.mrb[46].mxu1 }
 0x544   : > { %v9066_v9 = vadd.f32 %v3593_v19, %v2743_v12  ;;  %v3595_v54 = vpop.f32.mrb[47].mxu1 }
 0x545   : > { %v12395_v5 = vld [vmem:[#allocation2 + $0x110] sm:$0xff]  ;;  %v12397_v22 = vld [vmem:[#allocation2 + $0x118] sm:$0x3]  ;;  %v4506_v54 = vld [vmem:[#allocation7 + $0x160] sm:$0xff] }
 0x546   : > { %3692 = vst.msk [vmem:[#allocation2 + $0x129] sm:$0xff] %vm366_vm0, %v9066_v9  ;;  %v3865_v43 = vrot.slane %v12395_v5, 1  ;;  %v3867_v46 = vrot.slane %v12397_v22, 1  ;;  %v8730_v41 = vpack.c.bf16 %v4507_v16, %v4506_v54  ;;  %v15241_v54 = vld [vmem:[#allocation43_spill] sm:$0xff] }
 0x547   : > { %v3598_v59 = vpop.f32.mrb[48].mxu1  ;;  %v2749_v16 = vadd.f32 %v15241_v54, %v12174_v28 }
 0x548   : > { %v9067_v49 = vadd.f32 %v3598_v59, %v2744_v36  ;;  %v3600_v42 = vpop.f32.mrb[49].mxu1  ;;  %v3868_v15 = vsel %vm661_vm3, %v3865_v43, %v3867_v46  ;;  %v3866_v63 = vsel %vm661_vm3, %v3864_v30, %v3865_v43  ;;  %v2747_v59 = vadd.f32 %v15239_v34, %v12174_v28  ;;  %8731 = vmatpush1.bf16.msra.mxu0 %v8730_v41 }
 0x549   : > { %3945 = vrot.lane.b32.xlu1 %v3868_v15, %s9791_s15  ;;  %3943 = vrot.lane.b32.xlu0 %v3866_v63, %s9791_s15  ;;  %v12412_v40 = vld [vmem:[#allocation2 + $0x120] sm:$0xff] }
 0x54a   : > { %3693 = vst.msk [vmem:[#allocation2 + $0x139] sm:$0xff] %vm366_vm0, %v9067_v49  ;;  %v3869_v19 = vrot.slane %v12412_v40, 1  ;;  %8732 = vmatprep.subr.bf16.mxu0 %v15169_v23 }
 0x54b   : > { %v3603_v13 = vpop.f32.mrb[50].mxu1 }
 0x54c   : > { %v9068_v20 = vadd.f32 %v3603_v13, %v2745_v3  ;;  %v3605_v55 = vpop.f32.mrb[51].mxu1  ;;  %v15240_v3 = vld [vmem:[#allocation44_spill] sm:$0xff] }
 0x54d   : > { %v12415_v10 = vld [vmem:[#allocation2 + $0x128] sm:$0xff]  ;;  %v12417_v6 = vld [vmem:[#allocation2 + $0x130] sm:$0x3]  ;;  %v2748_v13 = vadd.f32 %v15240_v3, %v12174_v28 }
 0x54e   : > { %3694 = vst.msk [vmem:[#allocation2 + $0x141] sm:$0xff] %vm366_vm0, %v9068_v20  ;;  %v3870_v14 = vrot.slane %v12415_v10, 1  ;;  %v3872_v12 = vrot.slane %v12417_v6, 1 }
 0x54f   : > { %v3608_v9 = vpop.f32.mrb[52].mxu1 }
 0x550   : > { %v9069_v36 = vadd.f32 %v3608_v9, %v2746_v44  ;;  %v3610_v43 = vpop.f32.mrb[53].mxu1  ;;  %v3873_v46 = vsel %vm661_vm3, %v3870_v14, %v3872_v12  ;;  %v3871_v30 = vsel %vm661_vm3, %v3869_v19, %v3870_v14 }
 0x551   : > { %3949 = vrot.lane.b32.xlu1 %v3873_v46, %s9791_s15  ;;  %3947 = vrot.lane.b32.xlu0 %v3871_v30, %s9791_s15  ;;  %v12432_v49 = vld [vmem:[#allocation2 + $0x138] sm:$0xff]  ;;  %v4508_v46 = vld [vmem:[#allocation7 + $0x170] sm:$0xff] }
 0x552   : > { %3695 = vst.msk [vmem:[#allocation2 + $0x151] sm:$0xff] %vm366_vm0, %v9069_v36  ;;  %v3874_v26 = vrot.slane %v12432_v49, 1  ;;  %v4509_v30 = vld [vmem:[#allocation7 + $0x178] sm:$0xff] }
 0x553   : > { %v3613_v21 = vpop.f32.mrb[54].mxu1 }
 0x554   : > { %v9070_v42 = vadd.f32 %v3613_v21, %v2747_v59  ;;  %v3615_v15 = vpop.f32.mrb[55].mxu1  ;;  %v8733_v59 = vpack.c.bf16 %v4509_v30, %v4508_v46 }
 0x555   : > { %v12435_v63 = vld [vmem:[#allocation2 + $0x140] sm:$0xff]  ;;  %v12437_v29 = vld [vmem:[#allocation2 + $0x148] sm:$0x3]  ;;  %v15242_v15 = vld [vmem:[#allocation46_spill] sm:$0xff] }
 0x556   : > { %3696 = vst.msk [vmem:[#allocation2 + $0x159] sm:$0xff] %vm366_vm0, %v9070_v42  ;;  %v3875_v20 = vrot.slane %v12435_v63, 1  ;;  %v3877_v55 = vrot.slane %v12437_v29, 1  ;;  %v2750_v3 = vadd.f32 %v15242_v15, %v12174_v28  ;;  %8734 = vmatpush1.bf16.msra.mxu0 %v8733_v59 }
 0x557   : > { %v3618_v44 = vpop.f32.mrb[56].mxu1  ;;  %8735 = vmatprep.subr.bf16.mxu0 %v15169_v23 }
 0x558   : > { %v9071_v14 = vadd.f32 %v3618_v44, %v2748_v13  ;;  %v3620_v12 = vpop.f32.mrb[57].mxu1  ;;  %v3878_v19 = vsel %vm661_vm3, %v3875_v20, %v3877_v55  ;;  %v3876_v9 = vsel %vm661_vm3, %v3874_v26, %v3875_v20 }
 0x559   : > { %3953 = vrot.lane.b32.xlu1 %v3878_v19, %s9791_s15  ;;  %3951 = vrot.lane.b32.xlu0 %v3876_v9, %s9791_s15  ;;  %v12452_v43 = vld [vmem:[#allocation2 + $0x150] sm:$0xff] }
 0x55a   : > { %3697 = vst.msk [vmem:[#allocation2 + $0x169] sm:$0xff] %vm366_vm0, %v9071_v14  ;;  %v3879_v55 = vrot.slane %v12452_v43, 1  ;;  %v15243_v9 = vld [vmem:[#allocation45_spill] sm:$0xff] }
 0x55b   : > { %v3623_v36 = vpop.f32.mrb[58].mxu1  ;;  %v2751_v54 = vadd.f32 %v15243_v9, %v12174_v28 }
 0x55c   : > { %v9072_v41 = vadd.f32 %v3623_v36, %v2749_v16  ;;  %v3625_v34 = vpop.f32.mrb[59].mxu1 }
 0x55d   : > { %v12454_v21 = vld [vmem:[#allocation2 + $0x158] sm:$0xff]  ;;  %v12456_v42 = vld [vmem:[#allocation2 + $0x160] sm:$0x3] }
 0x55e   : > { %3698 = vst.msk [vmem:[#allocation2 + $0x171] sm:$0xff] %vm366_vm0, %v9072_v41  ;;  %v3880_v13 = vrot.slane %v12454_v21, 1  ;;  %v3882_v20 = vrot.slane %v12456_v42, 1 }
 0x55f   : > { %v3628_v26 = vpop.f32.mrb[60].mxu1 }
 0x560   : > { %v9073_v44 = vadd.f32 %v3628_v26, %v2750_v3  ;;  %v3630_v14 = vpop.f32.mrb[61].mxu1  ;;  %v3883_v12 = vsel %vm661_vm3, %v3880_v13, %v3882_v20  ;;  %v3881_v19 = vsel %vm661_vm3, %v3879_v55, %v3880_v13 }
 0x561   : > { %3957 = vrot.lane.b32.xlu1 %v3883_v12, %s9791_s15  ;;  %3955 = vrot.lane.b32.xlu0 %v3881_v19, %s9791_s15  ;;  %v12472_v36 = vld [vmem:[#allocation2 + $0x168] sm:$0xff] }
 0x562   : > { %3699 = vst.msk [vmem:[#allocation2 + $0x181] sm:$0xff] %vm366_vm0, %v9073_v44  ;;  %v3884_v3 = vrot.slane %v12472_v36, 1 }
 0x563   : > { %v3633_v16 = vpop.f32.mrb[62].mxu1 }
 0x564   : > { %v9074_v46 = vadd.f32 %v3633_v16, %v2751_v54  ;;  %v3635_v30 = vpop.f32.mrb[63].mxu1  ;;  %v4018_v16 = vrot.slane %v12217_v60, 2 }
 0x565   : > { %v12474_v41 = vld [vmem:[#allocation2 + $0x170] sm:$0xff]  ;;  %v12476_v34 = vld [vmem:[#allocation2 + $0x178] sm:$0x3]  ;;  %v4017_v30 = vrot.slane %v12215_v37, 2 }
 0x566   : > { %3700 = vst.msk [vmem:[#allocation2 + $0x189] sm:$0xff] %vm366_vm0, %v9074_v46  ;;  %v3885_v59 = vrot.slane %v12474_v41, 1  ;;  %v3887_v15 = vrot.slane %v12476_v34, 1 }
 0x568   : > { %v3888_v13 = vsel %vm661_vm3, %v3885_v59, %v3887_v15  ;;  %v3886_v28 = vsel %vm661_vm3, %v3884_v3, %v3885_v59  ;;  %v12514_v15 = vsel %vm860_vm2, %v4017_v30, %v4018_v16  ;;  %v4020_v3 = vrot.slane %v12219_v24, 2 }
 0x569   : > { %3961 = vrot.lane.b32.xlu1 %v3888_v13, %s9791_s15  ;;  %3959 = vrot.lane.b32.xlu0 %v3886_v28, %s9791_s15  ;;  %v12486_v55 = vld [vmem:[#allocation2 + $0x180] sm:$0xff]  ;;  %v4022_v24 = vrot.slane %v12235_v58, 2 }
 0x56a   : > { %15244 = vst [vmem:[#allocation48_spill] sm:$0xff] %v12486_v55  ;;  %v3889_v54 = vrot.slane %v12486_v55, 1 }
 0x56b   : > { %v3904_v20 = vpop.permute.xlu0 %3903  ;;  %v3906_v12 = vpop.permute.xlu1 %3905 }
 0x56c   : > { %v12490_v26 = vsel %vm366_vm0, %v12188_v25, %v3904_v20  ;;  %v12510_v59 = vsel %vm366_vm0, %v12193_v35, %v3906_v12  ;;  %v12525_v35 = vsel %vm860_vm2, %v4018_v16, %v4020_v3  ;;  %v4023_v12 = vrot.slane %v12237_v31, 2 }
 0x56d   : > { %4297 = vmatmul.mubr.f32.gmra.mrb[36].mxu0 %v12490_v26  ;;  %v12493_v44 = vld [vmem:[#allocation2 + $0x188] sm:$0xff]  ;;  %v12495_v14 = vld [vmem:[#allocation2 + $0x190] sm:$0x3]  ;;  %v4030_v3 = vrot.slane %v12259_v47, 2  ;;  %v4032_v47 = vrot.slane %v12274_v32, 2 }
 0x56e   : > { %15245 = vst [vmem:[#allocation47_spill] sm:$0xff] %v12493_v44  ;;  %15246 = vst [vmem:[#allocation54_spill] sm:$0xff] %v12495_v14  ;;  %7553 = vmatprep.mubr.msk.f32.mxu0 %vm366_vm0, %v12208_v39  ;;  %v3890_v19 = vrot.slane %v12493_v44, 1  ;;  %v3892_v9 = vrot.slane %v12495_v14, 1 }
 0x570   : > { %v3893_v25 = vsel %vm661_vm3, %v3890_v19, %v3892_v9  ;;  %v3891_v46 = vsel %vm661_vm3, %v3889_v54, %v3890_v19  ;;  %v4025_v9 = vrot.slane %v12239_v45, 2  ;;  %v4027_v45 = vrot.slane %v12254_v4, 2 }
 0x571   : > { %3965 = vrot.lane.b32.xlu1 %v3893_v25, %s9791_s15  ;;  %3963 = vrot.lane.b32.xlu0 %v3891_v46, %s9791_s15  ;;  %v4028_v46 = vrot.slane %v12257_v61, 2 }
 0x572   : > { %4302 = vmatmul.mubr.f32.gmra.mrb[38].mxu0 %v12510_v59 }
 0x573   : > { %7554 = vmatprep.mubr.msk.f32.mxu0 %vm366_vm0, %v12514_v15  ;;  %v3908_v13 = vpop.permute.xlu0 %3907  ;;  %v3910_v20 = vpop.permute.xlu1 %3909 }
 0x574   : > { %v12521_v28 = vsel %vm366_vm0, %v12215_v37, %v3908_v13  ;;  %v12533_v19 = vsel %vm366_vm0, %v12217_v60, %v3910_v20  ;;  %v12537_v37 = vsel %vm860_vm2, %v4022_v24, %v4023_v12  ;;  %v12548_v60 = vsel %vm860_vm2, %v4023_v12, %v4025_v9 }
 0x575   : > { %v4033_v24 = vrot.slane %v12277_v7, 2 }
 0x576   : > { %4307 = vmatmul.mubr.f32.gmra.mrb[40].mxu0 %v12521_v28 }
 0x577   : > { %7555 = vmatprep.mubr.msk.f32.mxu0 %vm366_vm0, %v12525_v35 }
 0x57a   : > { %4312 = vmatmul.mubr.f32.gmra.mrb[42].mxu0 %v12533_v19 }
 0x57b   : > { %7556 = vmatprep.mubr.msk.f32.mxu0 %vm366_vm0, %v12537_v37  ;;  %v3912_v54 = vpop.permute.xlu0 %3911  ;;  %v3914_v25 = vpop.permute.xlu1 %3913 }
 0x57c   : > { %v12544_v16 = vsel %vm366_vm0, %v12235_v58, %v3912_v54  ;;  %v12556_v30 = vsel %vm366_vm0, %v12237_v31, %v3914_v25  ;;  %v12560_v58 = vsel %vm860_vm2, %v4027_v45, %v4028_v46  ;;  %v12571_v31 = vsel %vm860_vm2, %v4028_v46, %v4030_v3 }
 0x57d   : > { %v4035_v54 = vrot.slane %v12279_v27, 2  ;;  %v4038_v3 = vrot.slane %v12296_v50, 2  ;;  %v4037_v27 = vrot.slane %v12294_v48, 2 }
 0x57e   : > { %4317 = vmatmul.mubr.f32.gmra.mrb[44].mxu0 %v12544_v16 }
 0x57f   : > { %7557 = vmatprep.mubr.msk.f32.mxu0 %vm366_vm0, %v12548_v60 }
 0x582   : > { %4322 = vmatmul.mubr.f32.gmra.mrb[46].mxu0 %v12556_v30 }
 0x583   : > { %7558 = vmatprep.mubr.msk.f32.mxu0 %vm366_vm0, %v12560_v58  ;;  %v3916_v13 = vpop.permute.xlu0 %3915  ;;  %v3918_v12 = vpop.permute.xlu1 %3917 }
 0x584   : > { %v12567_v20 = vsel %vm366_vm0, %v12254_v4, %v3916_v13  ;;  %v12579_v9 = vsel %vm366_vm0, %v12257_v61, %v3918_v12  ;;  %v12583_v4 = vsel %vm860_vm2, %v4032_v47, %v4033_v24  ;;  %v12594_v61 = vsel %vm860_vm2, %v4033_v24, %v4035_v54 }
 0x585   : > { %v4040_v12 = vrot.slane %v12298_v38, 2  ;;  %v4042_v38 = vrot.slane %v12314_v53, 2 }
 0x586   : > { %4327 = vmatmul.mubr.f32.gmra.mrb[48].mxu0 %v12567_v20 }
 0x587   : > { %7559 = vmatprep.mubr.msk.f32.mxu0 %vm366_vm0, %v12571_v31 }
 0x58a   : > { %4332 = vmatmul.mubr.f32.gmra.mrb[50].mxu0 %v12579_v9 }
 0x58b   : > { %7560 = vmatprep.mubr.msk.f32.mxu0 %vm366_vm0, %v12583_v4  ;;  %v3920_v25 = vpop.permute.xlu0 %3919  ;;  %v3922_v45 = vpop.permute.xlu1 %3921 }
 0x58c   : > { %v12590_v46 = vsel %vm366_vm0, %v12274_v32, %v3920_v25  ;;  %v12602_v13 = vsel %vm366_vm0, %v12277_v7, %v3922_v45  ;;  %v12606_v32 = vsel %vm860_vm2, %v4037_v27, %v4038_v3  ;;  %v12617_v7 = vsel %vm860_vm2, %v4038_v3, %v4040_v12 }
 0x58d   : > { %v4043_v25 = vrot.slane %v12316_v2, 2  ;;  %v4045_v27 = vrot.slane %v12318_v8, 2  ;;  %v4047_v8 = vrot.slane %v12333_v62, 2 }
 0x58e   : > { %4337 = vmatmul.mubr.f32.gmra.mrb[52].mxu0 %v12590_v46 }
 0x58f   : > { %7561 = vmatprep.mubr.msk.f32.mxu0 %vm366_vm0, %v12594_v61 }
 0x592   : > { %4342 = vmatmul.mubr.f32.gmra.mrb[54].mxu0 %v12602_v13 }
 0x593   : > { %7562 = vmatprep.mubr.msk.f32.mxu0 %vm366_vm0, %v12606_v32  ;;  %v3924_v24 = vpop.permute.xlu0 %3923  ;;  %v3926_v54 = vpop.permute.xlu1 %3925 }
 0x594   : > { %v12613_v47 = vsel %vm366_vm0, %v12294_v48, %v3924_v24  ;;  %v12625_v45 = vsel %vm366_vm0, %v12296_v50, %v3926_v54  ;;  %v12629_v48 = vsel %vm860_vm2, %v4042_v38, %v4043_v25  ;;  %v12640_v50 = vsel %vm860_vm2, %v4043_v25, %v4045_v27 }
 0x595   : > { %v4048_v54 = vrot.slane %v12336_v11, 2 }
 0x596   : > { %4347 = vmatmul.mubr.f32.gmra.mrb[56].mxu0 %v12613_v47 }
 0x597   : > { %7563 = vmatprep.mubr.msk.f32.mxu0 %vm366_vm0, %v12617_v7 }
 0x59a   : > { %4352 = vmatmul.mubr.f32.gmra.mrb[58].mxu0 %v12625_v45 }
 0x59b   : > { %7564 = vmatprep.mubr.msk.f32.mxu0 %vm366_vm0, %v12629_v48  ;;  %v3928_v3 = vpop.permute.xlu0 %3927  ;;  %v3930_v24 = vpop.permute.xlu1 %3929 }
 0x59c   : > { %v12636_v12 = vsel %vm366_vm0, %v12314_v53, %v3928_v3  ;;  %v12648_v38 = vsel %vm366_vm0, %v12316_v2, %v3930_v24  ;;  %v12652_v53 = vsel %vm860_vm2, %v4047_v8, %v4048_v54  ;;  %v4050_v3 = vrot.slane %v12338_v0, 2 }
 0x59d   : > { %v4053_v24 = vrot.slane %v12356_v52, 2  ;;  %v4052_v0 = vrot.slane %v12353_v17, 2 }
 0x59e   : > { %4357 = vmatmul.mubr.f32.gmra.mrb[60].mxu0 %v12636_v12  ;;  %v12663_v2 = vsel %vm860_vm2, %v4048_v54, %v4050_v3 }
 0x59f   : > { %7565 = vmatprep.mubr.msk.f32.mxu0 %vm366_vm0, %v12640_v50 }
 0x5a2   : > { %4362 = vmatmul.mubr.f32.gmra.mrb[62].mxu0 %v12648_v38 }
 0x5a3   : > { %7566 = vmatprep.mubr.msk.f32.mxu0 %vm366_vm0, %v12652_v53  ;;  %v3932_v25 = vpop.permute.xlu0 %3931  ;;  %v3934_v14 = vpop.permute.xlu1 %3933 }
 0x5a4   : > { %v12659_v27 = vsel %vm366_vm0, %v12333_v62, %v3932_v25  ;;  %v12671_v8 = vsel %vm366_vm0, %v12336_v11, %v3934_v14  ;;  %v12675_v62 = vsel %vm860_vm2, %v4052_v0, %v4053_v24  ;;  %v4055_v25 = vrot.slane %v12358_v51, 2 }
 0x5a5   : > { %v4058_v14 = vrot.slane %v12375_v18, 2  ;;  %v4057_v51 = vrot.slane %v12373_v56, 2 }
 0x5a6   : > { %4367 = vmatmul.mubr.f32.gmra.mrb[64].mxu0 %v12659_v27  ;;  %v12686_v11 = vsel %vm860_vm2, %v4053_v24, %v4055_v25 }
 0x5a7   : > { %7567 = vmatprep.mubr.msk.f32.mxu0 %vm366_vm0, %v12663_v2 }
 0x5aa   : > { %4372 = vmatmul.mubr.f32.gmra.mrb[66].mxu0 %v12671_v8 }
 0x5ab   : > { %7568 = vmatprep.mubr.msk.f32.mxu0 %vm366_vm0, %v12675_v62  ;;  %v3936_v54 = vpop.permute.xlu0 %3935  ;;  %v3938_v55 = vpop.permute.xlu1 %3937 }
 0x5ac   : > { %v12682_v3 = vsel %vm366_vm0, %v12353_v17, %v3936_v54  ;;  %v12694_v0 = vsel %vm366_vm0, %v12356_v52, %v3938_v55  ;;  %v12698_v17 = vsel %vm860_vm2, %v4057_v51, %v4058_v14  ;;  %v4060_v54 = vrot.slane %v12377_v1, 2 }
 0x5ad   : > { %v4063_v55 = vrot.slane %v12395_v5, 2  ;;  %v4062_v1 = vrot.slane %v12393_v57, 2 }
 0x5ae   : > { %4377 = vmatmul.mubr.f32.gmra.mrb[68].mxu0 %v12682_v3  ;;  %v12709_v52 = vsel %vm860_vm2, %v4058_v14, %v4060_v54 }
 0x5af   : > { %7569 = vmatprep.mubr.msk.f32.mxu0 %vm366_vm0, %v12686_v11  ;;  %15247 = vst [vmem:[#allocation55_spill] sm:$0xff] %v12709_v52 }
 0x5b2   : > { %4382 = vmatmul.mubr.f32.gmra.mrb[70].mxu0 %v12694_v0 }
 0x5b3   : > { %7570 = vmatprep.mubr.msk.f32.mxu0 %vm366_vm0, %v12698_v17  ;;  %v3940_v24 = vpop.permute.xlu0 %3939  ;;  %v3942_v44 = vpop.permute.xlu1 %3941 }
 0x5b4   : > { %v12705_v25 = vsel %vm366_vm0, %v12373_v56, %v3940_v24  ;;  %v12717_v51 = vsel %vm366_vm0, %v12375_v18, %v3942_v44  ;;  %v12721_v56 = vsel %vm860_vm2, %v4062_v1, %v4063_v55  ;;  %v4065_v24 = vrot.slane %v12397_v22, 2 }
 0x5b5   : > { %v4068_v44 = vrot.slane %v12415_v10, 2  ;;  %v4067_v22 = vrot.slane %v12412_v40, 2 }
 0x5b6   : > { %4387 = vmatmul.mubr.f32.gmra.mrb[72].mxu0 %v12705_v25  ;;  %v12732_v18 = vsel %vm860_vm2, %v4063_v55, %v4065_v24 }
 0x5b7   : > { %7571 = vmatprep.mubr.msk.f32.mxu0 %vm366_vm0, %v12709_v52  ;;  %15248 = vst [vmem:[#allocation56_spill] sm:$0xff] %v12732_v18 }
 0x5ba   : > { %4392 = vmatmul.mubr.f32.gmra.mrb[74].mxu0 %v12717_v51 }
 0x5bb   : > { %7572 = vmatprep.mubr.msk.f32.mxu0 %vm366_vm0, %v12721_v56  ;;  %v3944_v14 = vpop.permute.xlu0 %3943  ;;  %v3946_v52 = vpop.permute.xlu1 %3945 }
 0x5bc   : > { %v12728_v54 = vsel %vm366_vm0, %v12393_v57, %v3944_v14  ;;  %v12740_v1 = vsel %vm366_vm0, %v12395_v5, %v3946_v52  ;;  %v12744_v57 = vsel %vm860_vm2, %v4067_v22, %v4068_v44  ;;  %v4070_v14 = vrot.slane %v12417_v6, 2 }
 0x5bd   : > { %v4073_v52 = vrot.slane %v12435_v63, 2  ;;  %v4072_v6 = vrot.slane %v12432_v49, 2 }
 0x5be   : > { %4397 = vmatmul.mubr.f32.gmra.mrb[76].mxu0 %v12728_v54  ;;  %v12755_v5 = vsel %vm860_vm2, %v4068_v44, %v4070_v14 }
 0x5bf   : > { %7573 = vmatprep.mubr.msk.f32.mxu0 %vm366_vm0, %v12732_v18  ;;  %15249 = vst [vmem:[#allocation50_spill] sm:$0xff] %v12755_v5 }
 0x5c2   : > { %4402 = vmatmul.mubr.f32.gmra.mrb[78].mxu0 %v12740_v1 }
 0x5c3   : > { %7574 = vmatprep.mubr.msk.f32.mxu0 %vm366_vm0, %v12744_v57  ;;  %v3948_v55 = vpop.permute.xlu0 %3947  ;;  %v3950_v18 = vpop.permute.xlu1 %3949 }
 0x5c4   : > { %v12751_v24 = vsel %vm366_vm0, %v12412_v40, %v3948_v55  ;;  %v12763_v22 = vsel %vm366_vm0, %v12415_v10, %v3950_v18  ;;  %v12767_v40 = vsel %vm860_vm2, %v4072_v6, %v4073_v52  ;;  %v4075_v55 = vrot.slane %v12437_v29, 2 }
 0x5c5   : > { %v4078_v18 = vrot.slane %v12454_v21, 2  ;;  %v4077_v29 = vrot.slane %v12452_v43, 2 }
 0x5c6   : > { %4407 = vmatmul.mubr.f32.gmra.mrb[80].mxu0 %v12751_v24  ;;  %v12778_v10 = vsel %vm860_vm2, %v4073_v52, %v4075_v55 }
 0x5c7   : > { %7575 = vmatprep.mubr.msk.f32.mxu0 %vm366_vm0, %v12755_v5  ;;  %15250 = vst [vmem:[#allocation51_spill] sm:$0xff] %v12778_v10 }
 0x5ca   : > { %4412 = vmatmul.mubr.f32.gmra.mrb[82].mxu0 %v12763_v22 }
 0x5cb   : > { %7576 = vmatprep.mubr.msk.f32.mxu0 %vm366_vm0, %v12767_v40  ;;  %v3952_v44 = vpop.permute.xlu0 %3951  ;;  %v3954_v5 = vpop.permute.xlu1 %3953 }
 0x5cc   : > { %v12774_v14 = vsel %vm366_vm0, %v12432_v49, %v3952_v44  ;;  %v12786_v6 = vsel %vm366_vm0, %v12435_v63, %v3954_v5  ;;  %v12790_v49 = vsel %vm860_vm2, %v4077_v29, %v4078_v18  ;;  %v4080_v44 = vrot.slane %v12456_v42, 2 }
 0x5cd   : > { %v4083_v5 = vrot.slane %v12474_v41, 2  ;;  %v4082_v42 = vrot.slane %v12472_v36, 2 }
 0x5ce   : > { %4417 = vmatmul.mubr.f32.gmra.mrb[84].mxu0 %v12774_v14  ;;  %v12801_v63 = vsel %vm860_vm2, %v4078_v18, %v4080_v44 }
 0x5cf   : > { %7577 = vmatprep.mubr.msk.f32.mxu0 %vm366_vm0, %v12778_v10  ;;  %15251 = vst [vmem:[#allocation57_spill] sm:$0xff] %v12801_v63 }
 0x5d2   : > { %4422 = vmatmul.mubr.f32.gmra.mrb[86].mxu0 %v12786_v6 }
 0x5d3   : > { %7578 = vmatprep.mubr.msk.f32.mxu0 %vm366_vm0, %v12790_v49  ;;  %v3956_v52 = vpop.permute.xlu0 %3955  ;;  %v3958_v10 = vpop.permute.xlu1 %3957 }
 0x5d4   : > { %v12797_v55 = vsel %vm366_vm0, %v12452_v43, %v3956_v52  ;;  %v12809_v29 = vsel %vm366_vm0, %v12454_v21, %v3958_v10  ;;  %v12813_v43 = vsel %vm860_vm2, %v4082_v42, %v4083_v5  ;;  %v4085_v52 = vrot.slane %v12476_v34, 2  ;;  %v4772_v10 = vld [vmem:[#allocation7 + $0x180] sm:$0xff]  ;;  %v4773_v42 = vld [vmem:[#allocation7 + $0x188] sm:$0xff] }
 0x5d5   : > { %15252 = vst [vmem:[#allocation52_spill] sm:$0xff] %v12809_v29  ;;  %15253 = vst [vmem:[#allocation58_spill] sm:$0xff] %v12813_v43 }
 0x5d6   : > { %4427 = vmatmul.mubr.f32.gmra.mrb[88].mxu0 %v12797_v55  ;;  %v12824_v21 = vsel %vm860_vm2, %v4083_v5, %v4085_v52  ;;  %v12838_v52 = vld [vmem:[#allocation2 + $0x198] sm:$0xff] }
 0x5d7   : > { %7579 = vmatprep.mubr.msk.f32.mxu0 %vm366_vm0, %v12801_v63  ;;  %15255 = vst [vmem:[#allocation59_spill] sm:$0xff] %v12824_v21  ;;  %15256 = vst [vmem:[#allocation60_spill] sm:$0xff] %v12838_v52 }
 0x5da   : > { %4432 = vmatmul.mubr.f32.gmra.mrb[90].mxu0 %v12809_v29 }
 0x5db   : > { %7580 = vmatprep.mubr.msk.f32.mxu0 %vm366_vm0, %v12813_v43  ;;  %v3960_v18 = vpop.permute.xlu0 %3959  ;;  %v3962_v63 = vpop.permute.xlu1 %3961 }
 0x5dc   : > { %v12820_v44 = vsel %vm366_vm0, %v12472_v36, %v3960_v18  ;;  %v12830_v34 = vsel %vm366_vm0, %v12474_v41, %v3962_v63  ;;  %v8736_v36 = vpack.c.bf16 %v4773_v42, %v4772_v10  ;;  %v4774_v18 = vld [vmem:[#allocation7 + $0x190] sm:$0xff]  ;;  %v4776_v41 = vld [vmem:[#allocation7 + $0x1a0] sm:$0xff]  ;;  %v4777_v63 = vld [vmem:[#allocation7 + $0x1a8] sm:$0xff] }
 0x5dd   : > { %15254 = vst [vmem:[#allocation53_spill] sm:$0xff] %v12820_v44  ;;  %v4778_v42 = vld [vmem:[#allocation7 + $0x1b0] sm:$0xff] }
 0x5de   : > { %4437 = vmatmul.mubr.f32.gmra.mrb[92].mxu0 %v12820_v44  ;;  %v4775_v44 = vld [vmem:[#allocation7 + $0x198] sm:$0xff] }
 0x5df   : > { %7581 = vmatprep.mubr.msk.f32.mxu0 %vm366_vm0, %v12824_v21  ;;  %v8739_v5 = vpack.c.bf16 %v4775_v44, %v4774_v18  ;;  %v12840_v21 = vld [vmem:[#allocation2 + $0x1a0] sm:$0xff]  ;;  %v12849_v44 = vld [vmem:[#allocation2 + $0x1a8] sm:$0x3] }
 0x5e0   : > { %15257 = vst [vmem:[#allocation49_spill] sm:$0xff] %v12840_v21  ;;  %v3895_v10 = vrot.slane %v12840_v21, 1  ;;  %15258 = vst [vmem:[#allocation61_spill] sm:$0xff] %v12849_v44  ;;  %v3897_v18 = vrot.slane %v12849_v44, 1  ;;  %v5524_v44 = vld [vmem:[%s14963_s7 + $0x20] sm:$0xff]  ;;  %v15267_v21 = vld [vmem:[#allocation48_spill] sm:$0xff] }
 0x5e2   : > { %4442 = vmatmul.mubr.f32.gmra.mrb[94].mxu0 %v12830_v34 }
 0x5e3   : > { %7583 = vmatprep.mubr.msk.f32.mxu0 %vm366_vm0, %v12203_v33  ;;  %v3894_v33 = vrot.slane %v12838_v52, 1  ;;  %v4087_v52 = vrot.slane %v15267_v21, 2 }
 0x5e6   : > { %4579 = vmatmul.mubr.f32.vlgmr.msra.gmra.mrb[32].mxu0 %v12490_v26  ;;  %v3896_v26 = vsel %vm661_vm3, %v3894_v33, %v3895_v10 }
 0x5e7   : > { %8737 = vmatpush1.bf16.msra.mxu0 %v8736_v36  ;;  %7584 = vmatprep.mubr.msk.f32.mxu0 %vm366_vm0, %v12208_v39  ;;  %v8742_v39 = vpack.c.bf16 %v4777_v63, %v4776_v41  ;;  %v4779_v36 = vld [vmem:[#allocation7 + $0x1b8] sm:$0xff]  ;;  %v4780_v41 = vld [vmem:[#allocation7 + $0x1c0] sm:$0xff]  ;;  %v4781_v63 = vld [vmem:[#allocation7 + $0x1c8] sm:$0xff] }
 0x5e8   : > { %8738 = vmatprep.subr.bf16.mxu0 %v15169_v23  ;;  %3967 = vrot.lane.b32.xlu0 %v3896_v26, %s9791_s15  ;;  %v8748_v33 = vpack.c.bf16 %v4781_v63, %v4780_v41  ;;  %v4783_v26 = vld [vmem:[#allocation7 + $0x1d8] sm:$0xff]  ;;  %v4788_v63 = vld [vmem:[#allocation7 + $0x200] sm:$0xff] }
 0x5ea   : > { %4584 = vmatmul.mubr.f32.gmra.mrb[34].mxu0 %v12510_v59  ;;  %v3898_v59 = vsel %vm661_vm3, %v3895_v10, %v3897_v18  ;;  %v4782_v10 = vld [vmem:[#allocation7 + $0x1d0] sm:$0xff] }
 0x5eb   : > { %7585 = vmatprep.mubr.msk.f32.mxu0 %vm366_vm0, %v12514_v15  ;;  %8740 = vmatpush1.bf16.msra.mxu0 %v8739_v5  ;;  %v8745_v5 = vpack.c.bf16 %v4779_v36, %v4778_v42  ;;  %v4784_v42 = vld [vmem:[#allocation7 + $0x1e0] sm:$0xff]  ;;  %v4785_v36 = vld [vmem:[#allocation7 + $0x1e8] sm:$0xff] }
 0x5ec   : > { %8741 = vmatprep.subr.bf16.mxu0 %v15169_v23  ;;  %3969 = vrot.lane.b32.xlu1 %v3898_v59, %s9791_s15  ;;  %v8754_v18 = vpack.c.bf16 %v4785_v36, %v4784_v42  ;;  %v4786_v59 = vld [vmem:[#allocation7 + $0x1f0] sm:$0xff]  ;;  %v4792_v36 = vld [vmem:[#allocation7 + $0x220] sm:$0xff]  ;;  %s9720_s15 = scalar_lea.vmem %s9719_s21, 8192 }
 0x5ed   : > { %p9722_p13 = scmp.lt.s32.totalorder %s9720_s15, %s9714_s17 }
 0x5ee   : > { %4589 = vmatmul.mubr.f32.gmra.mrb[36].mxu0 %v12521_v28 }
 0x5ef   : > { %7586 = vmatprep.mubr.msk.f32.mxu0 %vm366_vm0, %v12525_v35  ;;  %8743 = vmatpush1.bf16.msra.mxu0 %v8742_v39  ;;  %v8751_v39 = vpack.c.bf16 %v4783_v26, %v4782_v10  ;;  %v4790_v26 = vld [vmem:[#allocation7 + $0x210] sm:$0xff]  ;;  %p9723_p3 = por %p9722_p13, %p9721_p10 }
 0x5f0   : > { %8744 = vmatprep.subr.bf16.mxu0 %v15169_v23 }
 0x5f1   : > { %p9724_p7 = pnand %p9723_p3, %p9717_p8 }
 0x5f2   : > { %4594 = vmatmul.mubr.f32.gmra.mrb[38].mxu0 %v12533_v19 }
 0x5f3   : > { %7587 = vmatprep.mubr.msk.f32.mxu0 %vm366_vm0, %v12537_v37  ;;  %8746 = vmatpush1.bf16.msra.mxu0 %v8745_v5  ;;  %v4787_v5 = vld [vmem:[#allocation7 + $0x1f8] sm:$0xff] }
 0x5f4   : > { %8747 = vmatprep.subr.bf16.mxu0 %v15169_v23  ;;  %v8757_v41 = vpack.c.bf16 %v4787_v5, %v4786_v59  ;;  %v4794_v5 = vld [vmem:[#allocation7 + $0x230] sm:$0xff] }
 0x5f6   : > { %4599 = vmatmul.mubr.f32.gmra.mrb[40].mxu0 %v12544_v16 }
 0x5f7   : > { %7588 = vmatprep.mubr.msk.f32.mxu0 %vm366_vm0, %v12548_v60  ;;  %8749 = vmatpush1.bf16.msra.mxu0 %v8748_v33  ;;  %v4789_v33 = vld [vmem:[#allocation7 + $0x208] sm:$0xff] }
 0x5f8   : > { %8750 = vmatprep.subr.bf16.mxu0 %v15169_v23  ;;  %v8760_v10 = vpack.c.bf16 %v4789_v33, %v4788_v63  ;;  %v15259_v33 = vld [vmem:[#allocation55_spill] sm:$0xff] }
 0x5fa   : > { %4604 = vmatmul.mubr.f32.gmra.mrb[42].mxu0 %v12556_v30 }
 0x5fb   : > { %7589 = vmatprep.mubr.msk.f32.mxu0 %vm366_vm0, %v12560_v58  ;;  %8752 = vmatpush1.bf16.msra.mxu0 %v8751_v39  ;;  %v4791_v39 = vld [vmem:[#allocation7 + $0x218] sm:$0xff] }
 0x5fc   : > { %8753 = vmatprep.subr.bf16.mxu0 %v15169_v23  ;;  %v8763_v42 = vpack.c.bf16 %v4791_v39, %v4790_v26  ;;  %v15261_v26 = vld [vmem:[#allocation50_spill] sm:$0xff]  ;;  %v5520_v39 = vld [vmem:[%s14963_s7] sm:$0xff] }
 0x5fe   : > { %4609 = vmatmul.mubr.f32.gmra.mrb[44].mxu0 %v12567_v20 }
 0x5ff   : > { %7590 = vmatprep.mubr.msk.f32.mxu0 %vm366_vm0, %v12571_v31  ;;  %8755 = vmatpush1.bf16.msra.mxu0 %v8754_v18  ;;  %v4793_v18 = vld [vmem:[#allocation7 + $0x228] sm:$0xff] }
 0x600   : > { %8756 = vmatprep.subr.bf16.mxu0 %v15169_v23  ;;  %v8766_v59 = vpack.c.bf16 %v4793_v18, %v4792_v36  ;;  %v15262_v36 = vld [vmem:[#allocation51_spill] sm:$0xff] }
 0x602   : > { %4614 = vmatmul.mubr.f32.gmra.mrb[46].mxu0 %v12579_v9 }
 0x603   : > { %7591 = vmatprep.mubr.msk.f32.mxu0 %vm366_vm0, %v12583_v4  ;;  %8758 = vmatpush1.bf16.msra.mxu0 %v8757_v41  ;;  %v4795_v41 = vld [vmem:[#allocation7 + $0x238] sm:$0xff] }
 0x604   : > { %8759 = vmatprep.subr.bf16.mxu0 %v15169_v23  ;;  %v8769_v63 = vpack.c.bf16 %v4795_v41, %v4794_v5  ;;  %v5523_v5 = vld [vmem:[%s14963_s7 + $0x18] sm:$0xff]  ;;  %v15263_v41 = vld [vmem:[#allocation57_spill] sm:$0xff] }
 0x606   : > { %4619 = vmatmul.mubr.f32.gmra.mrb[48].mxu0 %v12590_v46 }
 0x607   : > { %7592 = vmatprep.mubr.msk.f32.mxu0 %vm366_vm0, %v12594_v61  ;;  %8761 = vmatpush1.bf16.msra.mxu0 %v8760_v10  ;;  %v15260_v10 = vld [vmem:[#allocation56_spill] sm:$0xff] }
 0x608   : > { %8762 = vmatprep.subr.bf16.mxu0 %v15169_v23 }
 0x60a   : > { %4624 = vmatmul.mubr.f32.gmra.mrb[50].mxu0 %v12602_v13 }
 0x60b   : > { %7593 = vmatprep.mubr.msk.f32.mxu0 %vm366_vm0, %v12606_v32  ;;  %8764 = vmatpush1.bf16.msra.mxu0 %v8763_v42  ;;  %v5521_v42 = vld [vmem:[%s14963_s7 + $0x8] sm:$0xff] }
 0x60c   : > { %8765 = vmatprep.subr.bf16.mxu0 %v15169_v23  ;;  %v8772_v18 = vpack.c.bf16 %v5521_v42, %v5520_v39  ;;  %v15264_v39 = vld [vmem:[#allocation53_spill] sm:$0xff]  ;;  %v15265_v42 = vld [vmem:[#allocation47_spill] sm:$0xff] }
 0x60e   : > { %4629 = vmatmul.mubr.f32.gmra.mrb[52].mxu0 %v12613_v47  ;;  %8773 = vmatpush1.bf16.msra.mxu1 %v8772_v18  ;;  %v4088_v18 = vrot.slane %v15265_v42, 2 }
 0x60f   : > { %7594 = vmatprep.mubr.msk.f32.mxu0 %vm366_vm0, %v12617_v7  ;;  %8767 = vmatpush1.bf16.msra.mxu0 %v8766_v59  ;;  %v5522_v59 = vld [vmem:[%s14963_s7 + $0x10] sm:$0xff] }
 0x610   : > { %8768 = vmatprep.subr.bf16.mxu0 %v15169_v23  ;;  %8774 = vmatprep.subr.bf16.mxu1 %v15169_v23 }
 0x612   : > { %4634 = vmatmul.mubr.f32.gmra.mrb[54].mxu0 %v12625_v45 }
 0x613   : > { %7595 = vmatprep.mubr.msk.f32.mxu0 %vm366_vm0, %v12629_v48  ;;  %8770 = vmatpush1.bf16.msra.mxu0 %v8769_v63  ;;  %v8775_v63 = vpack.c.bf16 %v5523_v5, %v5522_v59  ;;  %v5525_v59 = vld [vmem:[%s14963_s7 + $0x28] sm:$0xff]  ;;  %v15266_v5 = vld [vmem:[#allocation59_spill] sm:$0xff] }
 0x614   : > { %8851 = vmatprep.subr.bf16.mxu0 %v15169_v23 }
 0x615   : > { %8776 = vmatpush1.bf16.msra.mxu1 %v8775_v63  ;;  %v8778_v63 = vpack.c.bf16 %v5525_v59, %v5524_v44  ;;  %v3966_v44 = vpop.permute.xlu1 %3965 }
 0x616   : > { %4639 = vmatmul.mubr.f32.gmra.mrb[56].mxu0 %v12636_v12  ;;  %8777 = vmatprep.subr.bf16.mxu1 %v15169_v23 }
 0x617   : > { %7596 = vmatprep.mubr.msk.f32.mxu0 %vm366_vm0, %v12640_v50 }
 0x619   : > { %8779 = vmatpush1.bf16.msra.mxu1 %v8778_v63 }
 0x61a   : > { %4644 = vmatmul.mubr.f32.gmra.mrb[58].mxu0 %v12648_v38  ;;  %8780 = vmatprep.subr.bf16.mxu1 %v15169_v23 }
 0x61b   : > { %7597 = vmatprep.mubr.msk.f32.mxu0 %vm366_vm0, %v12652_v53 }
 0x61e   : > { %4649 = vmatmul.mubr.f32.gmra.mrb[60].mxu0 %v12659_v27 }
 0x61f   : > { %7598 = vmatprep.mubr.msk.f32.mxu0 %vm366_vm0, %v12663_v2 }
 0x622   : > { %4654 = vmatmul.mubr.f32.gmra.mrb[62].mxu0 %v12671_v8 }
 0x623   : > { %7599 = vmatprep.mubr.msk.f32.mxu0 %vm366_vm0, %v12675_v62 }
 0x626   : > { %4659 = vmatmul.mubr.f32.gmra.mrb[64].mxu0 %v12682_v3 }
 0x627   : > { %7600 = vmatprep.mubr.msk.f32.mxu0 %vm366_vm0, %v12686_v11 }
 0x62a   : > { %4664 = vmatmul.mubr.f32.gmra.mrb[66].mxu0 %v12694_v0 }
 0x62b   : > { %7601 = vmatprep.mubr.msk.f32.mxu0 %vm366_vm0, %v12698_v17 }
 0x62e   : > { %4669 = vmatmul.mubr.f32.gmra.mrb[68].mxu0 %v12705_v25 }
 0x62f   : > { %7602 = vmatprep.mubr.msk.f32.mxu0 %vm366_vm0, %v15259_v33 }
 0x632   : > { %4674 = vmatmul.mubr.f32.gmra.mrb[70].mxu0 %v12717_v51 }
 0x633   : > { %7603 = vmatprep.mubr.msk.f32.mxu0 %vm366_vm0, %v12721_v56 }
 0x636   : > { %4679 = vmatmul.mubr.f32.gmra.mrb[72].mxu0 %v12728_v54 }
 0x637   : > { %7604 = vmatprep.mubr.msk.f32.mxu0 %vm366_vm0, %v15260_v10 }
 0x63a   : > { %4684 = vmatmul.mubr.f32.gmra.mrb[74].mxu0 %v12740_v1 }
 0x63b   : > { %7605 = vmatprep.mubr.msk.f32.mxu0 %vm366_vm0, %v12744_v57 }
 0x63e   : > { %4689 = vmatmul.mubr.f32.gmra.mrb[76].mxu0 %v12751_v24 }
 0x63f   : > { %7606 = vmatprep.mubr.msk.f32.mxu0 %vm366_vm0, %v15261_v26 }
 0x642   : > { %4694 = vmatmul.mubr.f32.gmra.mrb[78].mxu0 %v12763_v22 }
 0x643   : > { %7607 = vmatprep.mubr.msk.f32.mxu0 %vm366_vm0, %v12767_v40 }
 0x646   : > { %4699 = vmatmul.mubr.f32.gmra.mrb[80].mxu0 %v12774_v14 }
 0x647   : > { %7608 = vmatprep.mubr.msk.f32.mxu0 %vm366_vm0, %v15262_v36 }
 0x64a   : > { %4704 = vmatmul.mubr.f32.gmra.mrb[82].mxu0 %v12786_v6 }
 0x64b   : > { %7609 = vmatprep.mubr.msk.f32.mxu0 %vm366_vm0, %v12790_v49 }
 0x64e   : > { %4709 = vmatmul.mubr.f32.gmra.mrb[84].mxu0 %v12797_v55 }
 0x64f   : > { %7610 = vmatprep.mubr.msk.f32.mxu0 %vm366_vm0, %v15263_v41 }
 0x652   : > { %4714 = vmatmul.mubr.f32.gmra.mrb[86].mxu0 %v12809_v29  ;;  %v15268_v29 = vld [vmem:[#allocation54_spill] sm:$0xff] }
 0x653   : > { %7611 = vmatprep.mubr.msk.f32.mxu0 %vm366_vm0, %v12813_v43  ;;  %v3964_v43 = vpop.permute.xlu0 %3963  ;;  %v4090_v41 = vrot.slane %v15268_v29, 2  ;;  %v5527_v29 = vld [vmem:[%s14963_s7 + $0x38] sm:$0xff] }
 0x655   : > { %v12983_v59 = vsel %vm860_vm2, %v4088_v18, %v4090_v41  ;;  %v5529_v41 = vld [vmem:[%s14963_s7 + $0x48] sm:$0xff] }
 0x656   : > { %4719 = vmatmul.mubr.f32.gmra.mrb[88].mxu0 %v15264_v39  ;;  %v12971_v39 = vsel %vm860_vm2, %v4087_v52, %v4088_v18  ;;  %v5526_v52 = vld [vmem:[%s14963_s7 + $0x30] sm:$0xff] }
 0x657   : > { %7612 = vmatprep.mubr.msk.f32.mxu0 %vm366_vm0, %v15266_v5  ;;  %v12979_v5 = vsel %vm366_vm0, %v15267_v21, %v3964_v43  ;;  %v8781_v63 = vpack.c.bf16 %v5527_v29, %v5526_v52  ;;  %v12995_v43 = vsel %vm366_vm0, %v15265_v42, %v3966_v44  ;;  %v5528_v21 = vld [vmem:[%s14963_s7 + $0x40] sm:$0xff]  ;;  %v5530_v18 = vld [vmem:[%s14963_s7 + $0x50] sm:$0xff]  ;;  %v5531_v44 = vld [vmem:[%s14963_s7 + $0x58] sm:$0xff] }
 0x658   : > { %15269 = vst [vmem:[#allocation16_spill] sm:$0xff] %v12995_v43  ;;  %v8784_v42 = vpack.c.bf16 %v5529_v41, %v5528_v21  ;;  %v8787_v52 = vpack.c.bf16 %v5531_v44, %v5530_v18  ;;  %v5532_v29 = vld [vmem:[%s14963_s7 + $0x60] sm:$0xff]  ;;  %v7649_v21 = vld [vmem:[%s14963_s7 + $0x188] sm:$0xff]  ;;  %v7650_v41 = vld [vmem:[%s14963_s7 + $0x190] sm:$0xff] }
 0x659   : > { %8782 = vmatpush1.bf16.msra.mxu1 %v8781_v63  ;;  %v5533_v63 = vld [vmem:[%s14963_s7 + $0x68] sm:$0xff]  ;;  %v5534_v44 = vld [vmem:[%s14963_s7 + $0x70] sm:$0xff] }
 0x65a   : > { %4724 = vmatmul.mubr.f32.gmra.mrb[90].mxu0 %v12830_v34  ;;  %8783 = vmatprep.subr.bf16.mxu1 %v15169_v23 }
 0x65b   : > { %7613 = vmatprep.mubr.msk.f32.mxu0 %vm366_vm0, %v12971_v39 }
 0x65d   : > { %8785 = vmatpush1.bf16.msra.mxu1 %v8784_v42  ;;  %v8790_v42 = vpack.c.bf16 %v5533_v63, %v5532_v29  ;;  %v5536_v29 = vld [vmem:[%s14963_s7 + $0x80] sm:$0xff] }
 0x65e   : > { %4729 = vmatmul.mubr.f32.gmra.mrb[92].mxu0 %v12979_v5  ;;  %8786 = vmatprep.subr.bf16.mxu1 %v15169_v23 }
 0x65f   : > { %7614 = vmatprep.mubr.msk.f32.mxu0 %vm366_vm0, %v12983_v59 }
 0x661   : > { %8788 = vmatpush1.bf16.msra.mxu1 %v8787_v52  ;;  %v7653_v52 = vld [vmem:[%s14963_s7 + $0x1a8] sm:$0xff] }
 0x662   : > { %4734 = vmatmul.mubr.f32.gmra.mrb[94].mxu0 %v12995_v43  ;;  %8789 = vmatprep.subr.bf16.mxu1 %v15169_v23 }
 0x663   : > { %7615 = vmatprep.mubr.msk.f32.mxu0 %vm366_vm0, %v12514_v15  ;;  %v7648_v15 = vld [vmem:[%s14963_s7 + $0x180] sm:$0xff] }
 0x664   : > { %v8852_v18 = vpack.c.bf16 %v7649_v21, %v7648_v15  ;;  %v7652_v15 = vld [vmem:[%s14963_s7 + $0x1a0] sm:$0xff]  ;;  %v5537_v21 = vld [vmem:[%s14963_s7 + $0x88] sm:$0xff] }
 0x665   : > { %8791 = vmatpush1.bf16.msra.mxu1 %v8790_v42  ;;  %v8858_v63 = vpack.c.bf16 %v7653_v52, %v7652_v15  ;;  %v7657_v42 = vld [vmem:[%s14963_s7 + $0x1c8] sm:$0xff]  ;;  %v7659_v52 = vld [vmem:[%s14963_s7 + $0x1d8] sm:$0xff] }
 0x666   : > { %4865 = vmatmul.mubr.f32.vlgmr.msra.gmra.mrb[32].mxu0 %v12521_v28  ;;  %v7651_v28 = vld [vmem:[%s14963_s7 + $0x198] sm:$0xff]  ;;  %8792 = vmatprep.subr.bf16.mxu1 %v15169_v23  ;;  %v5541_v15 = vld [vmem:[%s14963_s7 + $0xa8] sm:$0xff] }
 0x667   : > { %7616 = vmatprep.mubr.msk.f32.mxu0 %vm366_vm0, %v12525_v35  ;;  %8853 = vmatpush1.bf16.msra.mxu0 %v8852_v18  ;;  %v8855_v43 = vpack.c.bf16 %v7651_v28, %v7650_v41  ;;  %v5535_v35 = vld [vmem:[%s14963_s7 + $0x78] sm:$0xff] }
 0x668   : > { %8854 = vmatprep.subr.bf16.mxu0 %v15169_v23  ;;  %v7655_v41 = vld [vmem:[%s14963_s7 + $0x1b8] sm:$0xff] }
 0x669   : > { %v5539_v28 = vld [vmem:[%s14963_s7 + $0x98] sm:$0xff] }
 0x66a   : > { %4870 = vmatmul.mubr.f32.gmra.mrb[34].mxu0 %v12533_v19  ;;  %v8793_v19 = vpack.c.bf16 %v5535_v35, %v5534_v44  ;;  %v5540_v44 = vld [vmem:[%s14963_s7 + $0xa0] sm:$0xff] }
 0x66b   : > { %7617 = vmatprep.mubr.msk.f32.mxu0 %vm366_vm0, %v12537_v37  ;;  %8856 = vmatpush1.bf16.msra.mxu0 %v8855_v43  ;;  %v7654_v37 = vld [vmem:[%s14963_s7 + $0x1b0] sm:$0xff] }
 0x66c   : > { %8857 = vmatprep.subr.bf16.mxu0 %v15169_v23  ;;  %8794 = vmatpush1.bf16.msra.mxu1 %v8793_v19  ;;  %v5538_v43 = vld [vmem:[%s14963_s7 + $0x90] sm:$0xff]  ;;  %v8861_v18 = vpack.c.bf16 %v7655_v41, %v7654_v37  ;;  %v5544_v37 = vld [vmem:[%s14963_s7 + $0xc0] sm:$0xff] }
 0x66d   : > { %8795 = vmatprep.subr.bf16.mxu1 %v15169_v23  ;;  %v5542_v19 = vld [vmem:[%s14963_s7 + $0xb0] sm:$0xff] }
 0x66e   : > { %4875 = vmatmul.mubr.f32.gmra.mrb[36].mxu0 %v12544_v16  ;;  %v8796_v16 = vpack.c.bf16 %v5537_v21, %v5536_v29  ;;  %v7661_v21 = vld [vmem:[%s14963_s7 + $0x1e8] sm:$0xff] }
 0x66f   : > { %7618 = vmatprep.mubr.msk.f32.mxu0 %vm366_vm0, %v12548_v60  ;;  %8859 = vmatpush1.bf16.msra.mxu0 %v8858_v63  ;;  %v7656_v60 = vld [vmem:[%s14963_s7 + $0x1c0] sm:$0xff]  ;;  %v5543_v63 = vld [vmem:[%s14963_s7 + $0xb8] sm:$0xff] }
 0x670   : > { %8860 = vmatprep.subr.bf16.mxu0 %v15169_v23  ;;  %8797 = vmatpush1.bf16.msra.mxu1 %v8796_v16  ;;  %v8864_v35 = vpack.c.bf16 %v7657_v42, %v7656_v60  ;;  %v5545_v16 = vld [vmem:[%s14963_s7 + $0xc8] sm:$0xff]  ;;  %v5547_v60 = vld [vmem:[%s14963_s7 + $0xd8] sm:$0xff] }
 0x671   : > { %8798 = vmatprep.subr.bf16.mxu1 %v15169_v23  ;;  %v7665_v42 = vld [vmem:[%s14963_s7 + $0x208] sm:$0xff] }
 0x672   : > { %4880 = vmatmul.mubr.f32.gmra.mrb[38].mxu0 %v12556_v30  ;;  %v8799_v30 = vpack.c.bf16 %v5539_v28, %v5538_v43  ;;  %v7663_v43 = vld [vmem:[%s14963_s7 + $0x1f8] sm:$0xff]  ;;  %v5546_v28 = vld [vmem:[%s14963_s7 + $0xd0] sm:$0xff] }
 0x673   : > { %7619 = vmatprep.mubr.msk.f32.mxu0 %vm366_vm0, %v12560_v58  ;;  %8862 = vmatpush1.bf16.msra.mxu0 %v8861_v18  ;;  %v7658_v58 = vld [vmem:[%s14963_s7 + $0x1d0] sm:$0xff] }
 0x674   : > { %8863 = vmatprep.subr.bf16.mxu0 %v15169_v23  ;;  %8800 = vmatpush1.bf16.msra.mxu1 %v8799_v30  ;;  %v8867_v29 = vpack.c.bf16 %v7659_v52, %v7658_v58  ;;  %v7668_v52 = vld [vmem:[%s14963_s7 + $0x220] sm:$0xff] }
 0x675   : > { %8801 = vmatprep.subr.bf16.mxu1 %v15169_v23 }
 0x676   : > { %4885 = vmatmul.mubr.f32.gmra.mrb[40].mxu0 %v12567_v20  ;;  %v8802_v20 = vpack.c.bf16 %v5541_v15, %v5540_v44  ;;  %v7666_v44 = vld [vmem:[%s14963_s7 + $0x210] sm:$0xff]  ;;  %v5549_v15 = vld [vmem:[%s14963_s7 + $0xe8] sm:$0xff] }
 0x677   : > { %7620 = vmatprep.mubr.msk.f32.mxu0 %vm366_vm0, %v12571_v31  ;;  %8865 = vmatpush1.bf16.msra.mxu0 %v8864_v35  ;;  %v7660_v31 = vld [vmem:[%s14963_s7 + $0x1e0] sm:$0xff]  ;;  %v7667_v35 = vld [vmem:[%s14963_s7 + $0x218] sm:$0xff] }
 0x678   : > { %8866 = vmatprep.subr.bf16.mxu0 %v15169_v23  ;;  %8803 = vmatpush1.bf16.msra.mxu1 %v8802_v20  ;;  %v8870_v41 = vpack.c.bf16 %v7661_v21, %v7660_v31  ;;  %v7669_v20 = vld [vmem:[%s14963_s7 + $0x228] sm:$0xff] }
 0x679   : > { %8804 = vmatprep.subr.bf16.mxu1 %v15169_v23  ;;  %v15275_v31 = vld [vmem:[#allocation60_spill] sm:$0xff] }
 0x67a   : > { %4890 = vmatmul.mubr.f32.gmra.mrb[42].mxu0 %v12579_v9  ;;  %v8805_v9 = vpack.c.bf16 %v5543_v63, %v5542_v19  ;;  %v7679_v19 = vld [vmem:[%s14963_s7 + $0x278] sm:$0xff]  ;;  %v4092_v21 = vrot.slane %v15275_v31, 2 }
 0x67b   : > { %7621 = vmatprep.mubr.msk.f32.mxu0 %vm366_vm0, %v12583_v4  ;;  %8868 = vmatpush1.bf16.msra.mxu0 %v8867_v29  ;;  %v7662_v4 = vld [vmem:[%s14963_s7 + $0x1f0] sm:$0xff]  ;;  %v15274_v29 = vld [vmem:[#allocation59_spill] sm:$0xff] }
 0x67c   : > { %8869 = vmatprep.subr.bf16.mxu0 %v15169_v23  ;;  %8806 = vmatpush1.bf16.msra.mxu1 %v8805_v9  ;;  %v8873_v18 = vpack.c.bf16 %v7663_v43, %v7662_v4  ;;  %v15276_v9 = vld [vmem:[#allocation49_spill] sm:$0xff] }
 0x67d   : > { %8807 = vmatprep.subr.bf16.mxu1 %v15169_v23  ;;  %v15277_v4 = vld [vmem:[#allocation61_spill] sm:$0xff] }
 0x67e   : > { %4895 = vmatmul.mubr.f32.gmra.mrb[44].mxu0 %v12590_v46  ;;  %v8808_v46 = vpack.c.bf16 %v5545_v16, %v5544_v37  ;;  %v4093_v37 = vrot.slane %v15276_v9, 2  ;;  %v4095_v43 = vrot.slane %v15277_v4, 2 }
 0x67f   : > { %7622 = vmatprep.mubr.msk.f32.mxu0 %vm366_vm0, %v12594_v61  ;;  %8871 = vmatpush1.bf16.msra.mxu0 %v8870_v41  ;;  %v7664_v61 = vld [vmem:[%s14963_s7 + $0x200] sm:$0xff]  ;;  %v3968_v41 = vpop.permute.xlu0 %3967 }
 0x680   : > { %8872 = vmatprep.subr.bf16.mxu0 %v15169_v23  ;;  %8809 = vmatpush1.bf16.msra.mxu1 %v8808_v46  ;;  %v8876_v30 = vpack.c.bf16 %v7665_v42, %v7664_v61  ;;  %v4094_v16 = vsel %vm860_vm2, %v4092_v21, %v4093_v37  ;;  %v15278_v46 = vld [vmem:[#allocation16_spill] sm:$0xff]  ;;  %v5556_v61 = vld [vmem:[%s14963_s7 + $0x120] sm:$0xff] }
 0x681   : > { %8810 = vmatprep.subr.bf16.mxu1 %v15169_v23  ;;  %v5557_v42 = vld [vmem:[%s14963_s7 + $0x128] sm:$0xff] }
 0x682   : > { %4900 = vmatmul.mubr.f32.gmra.mrb[46].mxu0 %v12602_v13  ;;  %v8811_v13 = vpack.c.bf16 %v5547_v60, %v5546_v28  ;;  %v4096_v28 = vsel %vm860_vm2, %v4093_v37, %v4095_v43  ;;  %v7730_v37 = vld [vmem:[%s14963_s7 + $0x410] sm:$0xff] }
 0x683   : > { %7623 = vmatprep.mubr.msk.f32.mxu0 %vm366_vm0, %v12606_v32  ;;  %8874 = vmatpush1.bf16.msra.mxu0 %v8873_v18  ;;  %v5548_v32 = vld [vmem:[%s14963_s7 + $0xe0] sm:$0xff]  ;;  %v3970_v18 = vpop.permute.xlu1 %3969 }
 0x684   : > { %8875 = vmatprep.subr.bf16.mxu0 %v15169_v23  ;;  %8812 = vmatpush1.bf16.msra.mxu1 %v8811_v13  ;;  %v8814_v58 = vpack.c.bf16 %v5549_v15, %v5548_v32  ;;  %v4132_v60 = vsel %vm366_vm0, %v15276_v9, %v3970_v18  ;;  %v8827_v13 = vpack.c.bf16 %v5557_v42, %v5556_v61  ;;  %v5560_v32 = vld [vmem:[%s14963_s7 + $0x140] sm:$0xff]  ;;  %v5561_v15 = vld [vmem:[%s14963_s7 + $0x148] sm:$0xff] }
 0x685   : > { %8813 = vmatprep.subr.bf16.mxu1 %v15169_v23 }
 0x686   : > { %4905 = vmatmul.mubr.f32.gmra.mrb[48].mxu0 %v12613_v47  ;;  %v8879_v47 = vpack.c.bf16 %v7667_v35, %v7666_v44  ;;  %v5559_v44 = vld [vmem:[%s14963_s7 + $0x138] sm:$0xff] }
 0x687   : > { %7624 = vmatprep.mubr.msk.f32.mxu0 %vm366_vm0, %v12617_v7  ;;  %8877 = vmatpush1.bf16.msra.mxu0 %v8876_v30  ;;  %v8882_v7 = vpack.c.bf16 %v7669_v20, %v7668_v52  ;;  %v5558_v30 = vld [vmem:[%s14963_s7 + $0x130] sm:$0xff]  ;;  %v5563_v52 = vld [vmem:[%s14963_s7 + $0x158] sm:$0xff] }
 0x688   : > { %8878 = vmatprep.subr.bf16.mxu0 %v15169_v23  ;;  %8815 = vmatpush1.bf16.msra.mxu1 %v8814_v58  ;;  %v8831_v35 = vpack.c.bf16 %v5559_v44, %v5558_v30  ;;  %v5562_v58 = vld [vmem:[%s14963_s7 + $0x150] sm:$0xff]  ;;  %v7732_v30 = vld [vmem:[%s14963_s7 + $0x420] sm:$0xff] }
 0x689   : > { %8816 = vmatprep.subr.bf16.mxu1 %v15169_v23  ;;  %v8839_v20 = vpack.c.bf16 %v5563_v52, %v5562_v58 }
 0x68a   : > { %4910 = vmatmul.mubr.f32.gmra.mrb[50].mxu0 %v12625_v45  ;;  %v7670_v45 = vld [vmem:[%s14963_s7 + $0x230] sm:$0xff] }
 0x68b   : > { %7625 = vmatprep.mubr.msk.f32.mxu0 %vm366_vm0, %v12629_v48  ;;  %8880 = vmatpush1.bf16.msra.mxu0 %v8879_v47  ;;  %v7671_v48 = vld [vmem:[%s14963_s7 + $0x238] sm:$0xff]  ;;  %v8835_v47 = vpack.c.bf16 %v5561_v15, %v5560_v32  ;;  %v7733_v15 = vld [vmem:[%s14963_s7 + $0x428] sm:$0xff] }
 0x68c   : > { %8881 = vmatprep.subr.bf16.mxu0 %v15169_v23 }
 0x68e   : > { %4915 = vmatmul.mubr.f32.gmra.mrb[52].mxu0 %v12636_v12  ;;  %v8885_v12 = vpack.c.bf16 %v7671_v48, %v7670_v45  ;;  %v5565_v45 = vld [vmem:[%s14963_s7 + $0x168] sm:$0xff] }
 0x68f   : > { %7626 = vmatprep.mubr.msk.f32.mxu0 %vm366_vm0, %v12640_v50  ;;  %8883 = vmatpush1.bf16.msra.mxu0 %v8882_v7  ;;  %v5550_v50 = vld [vmem:[%s14963_s7 + $0xf0] sm:$0xff]  ;;  %v5564_v7 = vld [vmem:[%s14963_s7 + $0x160] sm:$0xff] }
 0x690   : > { %8884 = vmatprep.subr.bf16.mxu0 %v15169_v23  ;;  %v8843_v48 = vpack.c.bf16 %v5565_v45, %v5564_v7 }
 0x692   : > { %4920 = vmatmul.mubr.f32.gmra.mrb[54].mxu0 %v12648_v38  ;;  %v5551_v38 = vld [vmem:[%s14963_s7 + $0xf8] sm:$0xff] }
 0x693   : > { %7627 = vmatprep.mubr.msk.f32.mxu0 %vm366_vm0, %v12652_v53  ;;  %8886 = vmatpush1.bf16.msra.mxu0 %v8885_v12  ;;  %v7672_v53 = vld [vmem:[%s14963_s7 + $0x240] sm:$0xff] }
 0x694   : > { %8887 = vmatprep.subr.bf16.mxu0 %v15169_v23  ;;  %v7728_v12 = vld [vmem:[%s14963_s7 + $0x400] sm:$0xff] }
 0x696   : > { %4925 = vmatmul.mubr.f32.gmra.mrb[56].mxu0 %v12659_v27  ;;  %v8817_v27 = vpack.c.bf16 %v5551_v38, %v5550_v50  ;;  %v7729_v50 = vld [vmem:[%s14963_s7 + $0x408] sm:$0xff] }
 0x697   : > { %7628 = vmatprep.mubr.msk.f32.mxu0 %vm366_vm0, %v12663_v2  ;;  %v7673_v2 = vld [vmem:[%s14963_s7 + $0x248] sm:$0xff]  ;;  %v13344_v38 = vpack.c.bf16 %v7729_v50, %v7728_v12  ;;  %v8987_v12 = vpack.c.bf16 %v7733_v15, %v7732_v30  ;;  %v7734_v50 = vld [vmem:[%s14963_s7 + $0x430] sm:$0xff]  ;;  %v7740_v15 = vld [vmem:[%s14963_s7 + $0x460] sm:$0xff] }
 0x698   : > { %8818 = vmatpush1.bf16.msra.mxu1 %v8817_v27 }
 0x69a   : > { %4930 = vmatmul.mubr.f32.gmra.mrb[58].mxu0 %v12671_v8  ;;  %v8888_v8 = vpack.c.bf16 %v7673_v2, %v7672_v53  ;;  %v13350_v53 = vld [vmem:[%s14962_s6] ss:$0 sm:$0xff] }
 0x69b   : > { %7629 = vmatprep.mubr.msk.f32.mxu0 %vm366_vm0, %v12675_v62  ;;  %v7674_v62 = vld [vmem:[%s14963_s7 + $0x250] sm:$0xff] }
 0x69c   : > { %8889 = vmatpush1.bf16.msra.mxu0 %v8888_v8 }
 0x69d   : > { %8890 = vmatprep.subr.bf16.mxu0 %v15169_v23 }
 0x69e   : > { %4935 = vmatmul.mubr.f32.gmra.mrb[60].mxu0 %v12682_v3  ;;  %v7675_v3 = vld [vmem:[%s14963_s7 + $0x258] sm:$0xff] }
 0x69f   : > { %7630 = vmatprep.mubr.msk.f32.mxu0 %vm366_vm0, %v12686_v11  ;;  %v5121_v11 = vld [vmem:[#allocation3] sm:$0xff] }
 0x6a2   : > { %4940 = vmatmul.mubr.f32.gmra.mrb[62].mxu0 %v12694_v0  ;;  %v9621_v0 = vld [vmem:[#allocation3 + $0x8] sm:$0xff] }
 0x6a3   : > { %7631 = vmatprep.mubr.msk.f32.mxu0 %vm366_vm0, %v12698_v17  ;;  %v5230_v17 = vrot.slane %v9621_v0, 1 }
 0x6a6   : > { %4945 = vmatmul.mubr.f32.gmra.mrb[64].mxu0 %v12705_v25  ;;  %v15270_v25 = vld [vmem:[#allocation57_spill] sm:$0xff] }
 0x6a7   : > { %7632 = vmatprep.mubr.msk.f32.mxu0 %vm366_vm0, %v15259_v33 }
 0x6aa   : > { %4950 = vmatmul.mubr.f32.gmra.mrb[66].mxu0 %v12717_v51  ;;  %v8891_v51 = vpack.c.bf16 %v7675_v3, %v7674_v62  ;;  %v5566_v62 = vld [vmem:[%s14963_s7 + $0x170] sm:$0xff]  ;;  %v5567_v3 = vld [vmem:[%s14963_s7 + $0x178] sm:$0xff] }
 0x6ab   : > { %7633 = vmatprep.mubr.msk.f32.mxu0 %vm366_vm0, %v12721_v56  ;;  %v5229_v56 = vrot.slane %v5121_v11, 1 }
 0x6ac   : > { %8892 = vmatpush1.bf16.msra.mxu0 %v8891_v51 }
 0x6ad   : > { %8893 = vmatprep.subr.bf16.mxu0 %v15169_v23 }
 0x6ae   : > { %4955 = vmatmul.mubr.f32.gmra.mrb[68].mxu0 %v12728_v54  ;;  %v5231_v54 = vsel %vm661_vm3, %v5229_v56, %v5230_v17 }
 0x6af   : > { %7634 = vmatprep.mubr.msk.f32.mxu0 %vm366_vm0, %v15260_v10  ;;  %5632 = vmatprep.mubr.f32.mxu1 %v5231_v54  ;;  %v15273_v10 = vld [vmem:[#allocation53_spill] sm:$0xff] }
 0x6b0   : > { %5633 = vmatmul.mubr.f32.vlgmr.msra.gmra.mrb[64].mxu1 %v5121_v11  ;;  %v8847_v11 = vpack.c.bf16 %v5567_v3, %v5566_v62 }
 0x6b2   : > { %4960 = vmatmul.mubr.f32.gmra.mrb[70].mxu0 %v12740_v1  ;;  %v15271_v1 = vld [vmem:[#allocation52_spill] sm:$0xff] }
 0x6b3   : > { %7635 = vmatprep.mubr.msk.f32.mxu0 %vm366_vm0, %v12744_v57  ;;  %v5552_v57 = vld [vmem:[%s14963_s7 + $0x100] sm:$0xff] }
 0x6b6   : > { %4965 = vmatmul.mubr.f32.gmra.mrb[72].mxu0 %v12751_v24  ;;  %v5553_v24 = vld [vmem:[%s14963_s7 + $0x108] sm:$0xff] }
 0x6b7   : > { %7636 = vmatprep.mubr.msk.f32.mxu0 %vm366_vm0, %v15261_v26 }
 0x6ba   : > { %4970 = vmatmul.mubr.f32.gmra.mrb[74].mxu0 %v12763_v22  ;;  %v7676_v22 = vld [vmem:[%s14963_s7 + $0x260] sm:$0xff] }
 0x6bb   : > { %7637 = vmatprep.mubr.msk.f32.mxu0 %vm366_vm0, %v12767_v40  ;;  %v15272_v40 = vld [vmem:[#allocation58_spill] sm:$0xff] }
 0x6be   : > { %4975 = vmatmul.mubr.f32.gmra.mrb[76].mxu0 %v12774_v14  ;;  %v8819_v14 = vpack.c.bf16 %v5553_v24, %v5552_v57 }
 0x6bf   : > { %7638 = vmatprep.mubr.msk.f32.mxu0 %vm366_vm0, %v15262_v36  ;;  %v7678_v36 = vld [vmem:[%s14963_s7 + $0x270] sm:$0xff] }
 0x6c0   : > { %8820 = vmatprep.subr.bf16.mxu1 %v8819_v14  ;;  %v8897_v63 = vpack.c.bf16 %v7679_v19, %v7678_v36 }
 0x6c1   : > { %8822 = vmatpush3.bf16.msra.mxu1 %v8819_v14  ;;  %v7681_v14 = vld [vmem:[%s14963_s7 + $0x288] sm:$0xff] }
 0x6c2   : > { %4980 = vmatmul.mubr.f32.gmra.mrb[78].mxu0 %v12786_v6  ;;  %v7677_v6 = vld [vmem:[%s14963_s7 + $0x268] sm:$0xff] }
 0x6c3   : > { %7639 = vmatprep.mubr.msk.f32.mxu0 %vm366_vm0, %v12790_v49  ;;  %v5123_v49 = vld [vmem:[#allocation3 + $0x10] sm:$0x3] }
 0x6c4   : > { %v5232_v33 = vrot.slane %v5123_v49, 1 }
 0x6c6   : > { %4985 = vmatmul.mubr.f32.gmra.mrb[80].mxu0 %v12797_v55  ;;  %v8894_v55 = vpack.c.bf16 %v7677_v6, %v7676_v22  ;;  %v5233_v26 = vsel %vm661_vm3, %v5230_v17, %v5232_v33 }
 0x6c7   : > { %7640 = vmatprep.mubr.msk.f32.mxu0 %vm366_vm0, %v15270_v25  ;;  %5637 = vmatprep.mubr.f32.mxu1 %v5233_v26 }
 0x6c8   : > { %8895 = vmatpush1.bf16.msra.mxu0 %v8894_v55  ;;  %5638 = vmatmul.mubr.f32.gmra.mrb[66].mxu1 %v9621_v0 }
 0x6c9   : > { %8896 = vmatprep.subr.bf16.mxu0 %v15169_v23 }
 0x6ca   : > { %4990 = vmatmul.mubr.f32.gmra.mrb[82].mxu0 %v15271_v1 }
 0x6cb   : > { %7641 = vmatprep.mubr.msk.f32.mxu0 %vm366_vm0, %v15272_v40  ;;  %v7680_v40 = vld [vmem:[%s14963_s7 + $0x280] sm:$0xff] }
 0x6cc   : > { %8898 = vmatpush1.bf16.msra.mxu0 %v8897_v63  ;;  %v13379_v33 = vpack.c.bf16 %v7681_v14, %v7680_v40 }
 0x6cd   : > { %8980 = vmatprep.subr.bf16.mxu0 %v13344_v38 }
 0x6ce   : > { %4995 = vmatmul.mubr.f32.gmra.mrb[84].mxu0 %v15273_v10 }
 0x6cf   : > { %7642 = vmatprep.mubr.msk.f32.mxu0 %vm366_vm0, %v15274_v29 }
 0x6d2   : > { %5000 = vmatmul.mubr.f32.gmra.mrb[86].mxu0 %v12830_v34  ;;  %v5554_v34 = vld [vmem:[%s14963_s7 + $0x110] sm:$0xff] }
 0x6d3   : > { %7643 = vmatprep.mubr.msk.f32.mxu0 %vm366_vm0, %v12971_v39  ;;  %v5555_v39 = vld [vmem:[%s14963_s7 + $0x118] sm:$0xff] }
 0x6d6   : > { %5005 = vmatmul.mubr.f32.gmra.mrb[88].mxu0 %v12979_v5  ;;  %v4131_v5 = vsel %vm366_vm0, %v15275_v31, %v3968_v41  ;;  %v7731_v41 = vld [vmem:[%s14963_s7 + $0x418] sm:$0xff] }
 0x6d7   : > { %7644 = vmatprep.mubr.msk.f32.mxu0 %vm366_vm0, %v12983_v59  ;;  %v8823_v59 = vpack.c.bf16 %v5555_v39, %v5554_v34 }
 0x6d9   : > { %8824 = vmatprep.subr.bf16.mxu1 %v8823_v59 }
 0x6da   : > { %5010 = vmatmul.mubr.f32.gmra.mrb[90].mxu0 %v15278_v46  ;;  %8826 = vmatpush3.bf16.msra.mxu1 %v8823_v59 }
 0x6db   : > { %7645 = vmatprep.mubr.msk.f32.mxu0 %vm366_vm0, %v4094_v16  ;;  %8828 = vmatprep.subr.bf16.mxu1 %v8827_v13 }
 0x6de   : > { %5015 = vmatmul.mubr.f32.gmra.mrb[92].mxu0 %v4131_v5  ;;  %8830 = vmatpush3.bf16.msra.mxu1 %v8827_v13  ;;  %v8983_v5 = vpack.c.bf16 %v7731_v41, %v7730_v37  ;;  %v7738_v41 = vld [vmem:[%s14963_s7 + $0x450] sm:$0xff] }
 0x6df   : > { %7646 = vmatprep.mubr.msk.f32.mxu0 %vm366_vm0, %v4096_v28  ;;  %8832 = vmatprep.subr.bf16.mxu1 %v8831_v35 }
 0x6e2   : > { %5020 = vmatmul.mubr.f32.gmra.mrb[94].mxu0 %v4132_v60  ;;  %8834 = vmatpush3.bf16.msra.mxu1 %v8831_v35 }
 0x6e3   : > { %8836 = vmatprep.subr.bf16.mxu1 %v8835_v47 }
 0x6e6   : > { %8838 = vmatpush3.bf16.msra.mxu1 %v8835_v47 }
 0x6e7   : > { %8840 = vmatprep.subr.bf16.mxu1 %v8839_v20 }
 0x6ea   : > { %8842 = vmatpush3.bf16.msra.mxu1 %v8839_v20 }
 0x6eb   : > { %8844 = vmatprep.subr.bf16.mxu1 %v8843_v48 }
 0x6ee   : > { %8846 = vmatpush3.bf16.msra.mxu1 %v8843_v48 }
 0x6ef   : > { %8848 = vmatprep.subr.bf16.mxu1 %v8847_v11 }
 0x6f2   : > { %8850 = vmatpush3.bf16.msra.mxu1 %v8847_v11 }
 0x6f3   : > { %8900 = vmatprep.subr.bf16.mxu1 %v13379_v33 }
 0x739   : > { %v4866_v27 = vpop.f32.mrb[32].mxu0 }
 0x73a   : > { %v13353_v2 = vadd.f32 %v13350_v53, %v4866_v27  ;;  %v4868_v8 = vpop.f32.mrb[33].mxu0 }
 0x73c   : > { %15279 = vst [vmem:[#allocation15_spill] sm:$0xff] %v13353_v2  ;;  %v5057_v0 = vmax.f32 %v13353_v2, 0.0 }
 0x73d   : > { %v4871_v17 = vpop.f32.mrb[34].mxu0 }
 0x73e   : > { %5089 = vst [vmem:[#allocation3 + $0x19] sm:$0xff] %v5057_v0  ;;  %v13363_v25 = vadd.f32 %v13350_v53, %v4871_v17  ;;  %v4873_v51 = vpop.f32.mrb[35].mxu0 }
 0x740   : > { %15280 = vst [vmem:[#allocation18_spill] sm:$0xff] %v13363_v25  ;;  %v5058_v56 = vmax.f32 %v13363_v25, 0.0 }
 0x741   : > { %v4876_v54 = vpop.f32.mrb[36].mxu0 }
 0x742   : > { %5090 = vst [vmem:[#allocation3 + $0x21] sm:$0xff] %v5058_v56  ;;  %v13367_v1 = vadd.f32 %v13350_v53, %v4876_v54  ;;  %v4878_v57 = vpop.f32.mrb[37].mxu0 }
 0x744   : > { %15281 = vst [vmem:[#allocation17_spill] sm:$0xff] %v13367_v1  ;;  %v5059_v24 = vmax.f32 %v13367_v1, 0.0 }
 0x745   : > { %v4881_v22 = vpop.f32.mrb[38].mxu0  ;;  %v5124_v55 = vld [vmem:[#allocation3 + $0x18] sm:$0xff] }
 0x746   : > { %5091 = vst [vmem:[#allocation3 + $0x31] sm:$0xff] %v5059_v24  ;;  %v13377_v6 = vadd.f32 %v13350_v53, %v4881_v22  ;;  %v4883_v49 = vpop.f32.mrb[39].mxu0  ;;  %v5234_v19 = vrot.slane %v5124_v55, 1  ;;  %v5360_v4 = vrot.slane %v5124_v55, 2 }
 0x747   : > { %v7736_v49 = vld [vmem:[%s14963_s7 + $0x440] sm:$0xff] }
 0x748   : > { %15282 = vst [vmem:[#allocation20_spill] sm:$0xff] %v13377_v6  ;;  %v5060_v10 = vmax.f32 %v13377_v6, 0.0 }
 0x749   : > { %v4886_v26 = vpop.f32.mrb[40].mxu0  ;;  %v5125_v36 = vld [vmem:[#allocation3 + $0x20] sm:$0xff]  ;;  %v5126_v29 = vld [vmem:[#allocation3 + $0x28] sm:$0x3] }
 0x74a   : > { %5092 = vst [vmem:[#allocation3 + $0x39] sm:$0xff] %v5060_v10  ;;  %v13384_v63 = vadd.f32 %v13350_v53, %v4886_v26  ;;  %v4888_v31 = vpop.f32.mrb[41].mxu0  ;;  %v5235_v21 = vrot.slane %v5125_v36, 1  ;;  %v5237_v9 = vrot.slane %v5126_v29, 1  ;;  %v5361_v16 = vrot.slane %v5125_v36, 2 }
 0x74b   : > { %v5363_v43 = vrot.slane %v5126_v29, 2 }
 0x74c   : > { %15283 = vst [vmem:[#allocation19_spill] sm:$0xff] %v13384_v63  ;;  %v5061_v46 = vmax.f32 %v13384_v63, 0.0  ;;  %v5236_v34 = vsel %vm661_vm3, %v5234_v19, %v5235_v21  ;;  %v13395_v59 = vsel %vm860_vm2, %v5360_v4, %v5361_v16  ;;  %v5238_v61 = vsel %vm661_vm3, %v5235_v21, %v5237_v9 }
 0x74d   : > { %v4891_v39 = vpop.f32.mrb[42].mxu0  ;;  %5642 = vmatprep.mubr.f32.mxu1 %v5236_v34  ;;  %6163 = vmatprep.mubr.f32.mxu0 %v5236_v34  ;;  %v13398_v18 = vsel %vm860_vm2, %v5361_v16, %v5363_v43  ;;  %v13404_v42 = vld [vmem:[#allocation3 + $0x30] sm:$0xff] }
 0x74e   : > { %5093 = vst [vmem:[#allocation3 + $0x49] sm:$0xff] %v5061_v46  ;;  %v13401_v28 = vadd.f32 %v13350_v53, %v4891_v39  ;;  %v4893_v60 = vpop.f32.mrb[43].mxu0  ;;  %5643 = vmatmul.mubr.f32.gmra.mrb[68].mxu1 %v5124_v55  ;;  %6164 = vmatmul.mubr.f32.vlgmr.msra.gmra.mrb[96].mxu0 %v5124_v55  ;;  %v5239_v52 = vrot.slane %v13404_v42, 1  ;;  %v7737_v55 = vld [vmem:[%s14963_s7 + $0x448] sm:$0xff]  ;;  %v7739_v46 = vld [vmem:[%s14963_s7 + $0x458] sm:$0xff] }
 0x74f   : > { %5647 = vmatprep.mubr.f32.mxu1 %v5238_v61  ;;  %6168 = vmatprep.mubr.f32.mxu0 %v5238_v61  ;;  %v8995_v19 = vpack.c.bf16 %v7737_v55, %v7736_v49  ;;  %v7743_v49 = vld [vmem:[%s14963_s7 + $0x478] sm:$0xff] }
 0x750   : > { %15284 = vst [vmem:[#allocation22_spill] sm:$0xff] %v13401_v28  ;;  %v5062_v13 = vmax.f32 %v13401_v28, 0.0  ;;  %8982 = vmatpush3.bf16.msra.mxu0 %v13344_v38  ;;  %v7735_v38 = vld [vmem:[%s14963_s7 + $0x438] sm:$0xff] }
 0x751   : > { %v4896_v44 = vpop.f32.mrb[44].mxu0  ;;  %v13411_v35 = vld [vmem:[#allocation3 + $0x38] sm:$0xff]  ;;  %v13413_v32 = vld [vmem:[#allocation3 + $0x40] sm:$0x3]  ;;  %8984 = vmatprep.subr.bf16.mxu0 %v8983_v5  ;;  %v8991_v0 = vpack.c.bf16 %v7735_v38, %v7734_v50 }
 0x752   : > { %5094 = vst [vmem:[#allocation3 + $0x51] sm:$0xff] %v5062_v13  ;;  %v13419_v47 = vadd.f32 %v13350_v53, %v4896_v44  ;;  %v4898_v58 = vpop.f32.mrb[45].mxu0  ;;  %5648 = vmatmul.mubr.f32.gmra.mrb[70].mxu1 %v5125_v36  ;;  %6169 = vmatmul.mubr.f32.gmra.mrb[98].mxu0 %v5125_v36  ;;  %v5240_v20 = vrot.slane %v13411_v35, 1  ;;  %v5242_v7 = vrot.slane %v13413_v32, 1  ;;  %v8999_v44 = vpack.c.bf16 %v7739_v46, %v7738_v41 }
 0x753   : > { %v7741_v58 = vld [vmem:[%s14963_s7 + $0x468] sm:$0xff] }
 0x754   : > { %15285 = vst [vmem:[#allocation21_spill] sm:$0xff] %v13419_v47  ;;  %v5063_v45 = vmax.f32 %v13419_v47, 0.0  ;;  %v13426_v48 = vsel %vm661_vm3, %v5239_v52, %v5240_v20  ;;  %8986 = vmatpush3.bf16.msra.mxu0 %v8983_v5  ;;  %v13442_v3 = vsel %vm661_vm3, %v5240_v20, %v5242_v7  ;;  %v9003_v50 = vpack.c.bf16 %v7741_v58, %v7740_v15 }
 0x755   : > { %v4901_v27 = vpop.f32.mrb[46].mxu0  ;;  %5652 = vmatprep.mubr.f32.mxu1 %v13426_v48  ;;  %6173 = vmatprep.mubr.f32.mxu0 %v13426_v48  ;;  %v13446_v11 = vld [vmem:[#allocation3 + $0x48] sm:$0xff] }
 0x756   : > { %5095 = vst [vmem:[#allocation3 + $0x61] sm:$0xff] %v5063_v45  ;;  %v13437_v8 = vadd.f32 %v13350_v53, %v4901_v27  ;;  %v4903_v62 = vpop.f32.mrb[47].mxu0  ;;  %5653 = vmatmul.mubr.f32.gmra.mrb[72].mxu1 %v13404_v42  ;;  %6174 = vmatmul.mubr.f32.gmra.mrb[100].mxu0 %v13404_v42  ;;  %v5244_v22 = vrot.slane %v13446_v11, 1 }
 0x757   : > { %5657 = vmatprep.mubr.f32.mxu1 %v13442_v3  ;;  %6178 = vmatprep.mubr.f32.mxu0 %v13442_v3 }
 0x758   : > { %15286 = vst [vmem:[#allocation24_spill] sm:$0xff] %v13437_v8  ;;  %v5064_v17 = vmax.f32 %v13437_v8, 0.0  ;;  %8988 = vmatprep.subr.bf16.mxu0 %v8987_v12 }
 0x759   : > { %v4906_v51 = vpop.f32.mrb[48].mxu0  ;;  %v13449_v56 = vld [vmem:[#allocation3 + $0x50] sm:$0xff]  ;;  %v13451_v54 = vld [vmem:[#allocation3 + $0x58] sm:$0x3]  ;;  %8990 = vmatpush3.bf16.msra.mxu0 %v8987_v12 }
 0x75a   : > { %5096 = vst [vmem:[#allocation3 + $0x69] sm:$0xff] %v5064_v17  ;;  %v13454_v57 = vadd.f32 %v13350_v53, %v4906_v51  ;;  %v4908_v24 = vpop.f32.mrb[49].mxu0  ;;  %5658 = vmatmul.mubr.f32.gmra.mrb[74].mxu1 %v13411_v35  ;;  %6179 = vmatmul.mubr.f32.gmra.mrb[102].mxu0 %v13411_v35  ;;  %v5245_v40 = vrot.slane %v13449_v56, 1  ;;  %v5247_v14 = vrot.slane %v13451_v54, 1 }
 0x75b   : > { %8992 = vmatprep.subr.bf16.mxu0 %v8991_v0 }
 0x75c   : > { %15287 = vst [vmem:[#allocation23_spill] sm:$0xff] %v13454_v57  ;;  %v5065_v10 = vmax.f32 %v13454_v57, 0.0  ;;  %v13469_v26 = vsel %vm661_vm3, %v5244_v22, %v5245_v40  ;;  %v13479_v21 = vsel %vm661_vm3, %v5245_v40, %v5247_v14  ;;  %v7742_v14 = vld [vmem:[%s14963_s7 + $0x470] sm:$0xff] }
 0x75d   : > { %v4911_v36 = vpop.f32.mrb[50].mxu0  ;;  %5662 = vmatprep.mubr.f32.mxu1 %v13469_v26  ;;  %6183 = vmatprep.mubr.f32.mxu0 %v13469_v26  ;;  %15289 = vst [vmem:[#allocation25_spill] sm:$0xff] %v13479_v21  ;;  %v13483_v9 = vld [vmem:[#allocation3 + $0x60] sm:$0xff] }
 0x75e   : > { %5097 = vst [vmem:[#allocation3 + $0x79] sm:$0xff] %v5065_v10  ;;  %v13474_v29 = vadd.f32 %v13350_v53, %v4911_v36  ;;  %v4913_v31 = vpop.f32.mrb[51].mxu0  ;;  %5663 = vmatmul.mubr.f32.gmra.mrb[76].mxu1 %v13446_v11  ;;  %6184 = vmatmul.mubr.f32.gmra.mrb[104].mxu0 %v13446_v11  ;;  %v5249_v5 = vrot.slane %v13483_v9, 1 }
 0x75f   : > { %5667 = vmatprep.mubr.f32.mxu1 %v13479_v21  ;;  %6188 = vmatprep.mubr.f32.mxu0 %v13479_v21  ;;  %v5366_v21 = vrot.slane %v13411_v35, 2  ;;  %v5368_v35 = vrot.slane %v13413_v32, 2  ;;  %v5370_v32 = vrot.slane %v13446_v11, 2  ;;  %v7688_v11 = vld [vmem:[%s14963_s7 + $0x2c0] sm:$0xff] }
 0x760   : > { %15288 = vst [vmem:[#allocation26_spill] sm:$0xff] %v13474_v29  ;;  %v5066_v37 = vmax.f32 %v13474_v29, 0.0  ;;  %8994 = vmatpush3.bf16.msra.mxu0 %v8991_v0 }
 0x761   : > { %v4916_v16 = vpop.f32.mrb[52].mxu0  ;;  %v13489_v4 = vld [vmem:[#allocation3 + $0x68] sm:$0xff]  ;;  %v13491_v43 = vld [vmem:[#allocation3 + $0x70] sm:$0x3]  ;;  %8996 = vmatprep.subr.bf16.mxu0 %v8995_v19 }
 0x762   : > { %5098 = vst [vmem:[#allocation3 + $0x81] sm:$0xff] %v5066_v37  ;;  %v13497_v34 = vadd.f32 %v13350_v53, %v4916_v16  ;;  %v4918_v39 = vpop.f32.mrb[53].mxu0  ;;  %5668 = vmatmul.mubr.f32.gmra.mrb[78].mxu1 %v13449_v56  ;;  %6189 = vmatmul.mubr.f32.gmra.mrb[106].mxu0 %v13449_v56  ;;  %v5250_v60 = vrot.slane %v13489_v4, 1  ;;  %v5252_v61 = vrot.slane %v13491_v43, 1 }
 0x764   : > { %15290 = vst [vmem:[#allocation28_spill] sm:$0xff] %v13497_v34  ;;  %v5067_v13 = vmax.f32 %v13497_v34, 0.0  ;;  %v13506_v30 = vsel %vm661_vm3, %v5249_v5, %v5250_v60  ;;  %8998 = vmatpush3.bf16.msra.mxu0 %v8995_v19  ;;  %v13522_v45 = vsel %vm661_vm3, %v5250_v60, %v5252_v61  ;;  %v9007_v19 = vpack.c.bf16 %v7743_v49, %v7742_v14 }
 0x765   : > { %15291 = vst [vmem:[#allocation27_spill] sm:$0xff] %v13506_v30  ;;  %v4921_v52 = vpop.f32.mrb[54].mxu0  ;;  %5672 = vmatprep.mubr.f32.mxu1 %v13506_v30  ;;  %6193 = vmatprep.mubr.f32.mxu0 %v13506_v30  ;;  %15293 = vst [vmem:[#allocation29_spill] sm:$0xff] %v13522_v45  ;;  %v13526_v12 = vld [vmem:[#allocation3 + $0x78] sm:$0xff] }
 0x766   : > { %5099 = vst [vmem:[#allocation3 + $0x91] sm:$0xff] %v5067_v13  ;;  %v13517_v20 = vadd.f32 %v13350_v53, %v4921_v52  ;;  %v4923_v7 = vpop.f32.mrb[55].mxu0  ;;  %5673 = vmatmul.mubr.f32.gmra.mrb[80].mxu1 %v13483_v9  ;;  %6194 = vmatmul.mubr.f32.gmra.mrb[108].mxu0 %v13483_v9  ;;  %v5254_v24 = vrot.slane %v13526_v12, 1 }
 0x767   : > { %5677 = vmatprep.mubr.f32.mxu1 %v13522_v45  ;;  %6198 = vmatprep.mubr.f32.mxu0 %v13522_v45 }
 0x768   : > { %15292 = vst [vmem:[#allocation30_spill] sm:$0xff] %v13517_v20  ;;  %v5068_v38 = vmax.f32 %v13517_v20, 0.0  ;;  %9000 = vmatprep.subr.bf16.mxu0 %v8999_v44 }
 0x769   : > { %v4926_v27 = vpop.f32.mrb[56].mxu0  ;;  %v13529_v62 = vld [vmem:[#allocation3 + $0x80] sm:$0xff]  ;;  %v13531_v0 = vld [vmem:[#allocation3 + $0x88] sm:$0x3]  ;;  %9002 = vmatpush3.bf16.msra.mxu0 %v8999_v44 }
 0x76a   : > { %5100 = vst [vmem:[#allocation3 + $0x99] sm:$0xff] %v5068_v38  ;;  %v13534_v17 = vadd.f32 %v13350_v53, %v4926_v27  ;;  %v4928_v51 = vpop.f32.mrb[57].mxu0  ;;  %5678 = vmatmul.mubr.f32.gmra.mrb[82].mxu1 %v13489_v4  ;;  %6199 = vmatmul.mubr.f32.gmra.mrb[110].mxu0 %v13489_v4  ;;  %v5255_v22 = vrot.slane %v13529_v62, 1  ;;  %v5257_v40 = vrot.slane %v13531_v0, 1 }
 0x76b   : > { %9004 = vmatprep.subr.bf16.mxu0 %v9003_v50 }
 0x76c   : > { %15294 = vst [vmem:[#allocation32_spill] sm:$0xff] %v13534_v17  ;;  %v5069_v55 = vmax.f32 %v13534_v17, 0.0  ;;  %v13549_v10 = vsel %vm661_vm3, %v5254_v24, %v5255_v22  ;;  %v13559_v41 = vsel %vm661_vm3, %v5255_v22, %v5257_v40 }
 0x76d   : > { %15295 = vst [vmem:[#allocation31_spill] sm:$0xff] %v13549_v10  ;;  %v4931_v36 = vpop.f32.mrb[58].mxu0  ;;  %5682 = vmatprep.mubr.f32.mxu1 %v13549_v10  ;;  %6203 = vmatprep.mubr.f32.mxu0 %v13549_v10  ;;  %15297 = vst [vmem:[#allocation33_spill] sm:$0xff] %v13559_v41  ;;  %v13563_v16 = vld [vmem:[#allocation3 + $0x90] sm:$0xff] }
 0x76e   : > { %5101 = vst [vmem:[#allocation3 + $0xa9] sm:$0xff] %v5069_v55  ;;  %v13554_v31 = vadd.f32 %v13350_v53, %v4931_v36  ;;  %v4933_v37 = vpop.f32.mrb[59].mxu0  ;;  %5683 = vmatmul.mubr.f32.gmra.mrb[84].mxu1 %v13526_v12  ;;  %6204 = vmatmul.mubr.f32.gmra.mrb[112].mxu0 %v13526_v12  ;;  %v5259_v44 = vrot.slane %v13563_v16, 1 }
 0x76f   : > { %5687 = vmatprep.mubr.f32.mxu1 %v13559_v41  ;;  %6208 = vmatprep.mubr.f32.mxu0 %v13559_v41 }
 0x770   : > { %15296 = vst [vmem:[#allocation34_spill] sm:$0xff] %v13554_v31  ;;  %v5070_v46 = vmax.f32 %v13554_v31, 0.0  ;;  %9006 = vmatpush3.bf16.msra.mxu0 %v9003_v50 }
 0x771   : > { %v4936_v39 = vpop.f32.mrb[60].mxu0  ;;  %v13566_v5 = vld [vmem:[#allocation3 + $0x98] sm:$0xff]  ;;  %v13568_v60 = vld [vmem:[#allocation3 + $0xa0] sm:$0x3]  ;;  %9008 = vmatprep.subr.bf16.mxu0 %v9007_v19 }
 0x772   : > { %5102 = vst [vmem:[#allocation3 + $0xb1] sm:$0xff] %v5070_v46  ;;  %v13571_v61 = vadd.f32 %v13350_v53, %v4936_v39  ;;  %v4938_v13 = vpop.f32.mrb[61].mxu0  ;;  %5688 = vmatmul.mubr.f32.gmra.mrb[86].mxu1 %v13529_v62  ;;  %6209 = vmatmul.mubr.f32.gmra.mrb[114].mxu0 %v13529_v62  ;;  %v5260_v15 = vrot.slane %v13566_v5, 1  ;;  %v5262_v58 = vrot.slane %v13568_v60, 1 }
 0x774   : > { %15298 = vst [vmem:[#allocation36_spill] sm:$0xff] %v13571_v61  ;;  %v5071_v52 = vmax.f32 %v13571_v61, 0.0  ;;  %v13580_v7 = vsel %vm661_vm3, %v5259_v44, %v5260_v15  ;;  %9010 = vmatpush3.bf16.msra.mxu0 %v9007_v19  ;;  %v13590_v51 = vsel %vm661_vm3, %v5260_v15, %v5262_v58 }
 0x775   : > { %15299 = vst [vmem:[#allocation35_spill] sm:$0xff] %v13580_v7  ;;  %v4941_v50 = vpop.f32.mrb[62].mxu0  ;;  %5692 = vmatprep.mubr.f32.mxu1 %v13580_v7  ;;  %6213 = vmatprep.mubr.f32.mxu0 %v13580_v7  ;;  %15301 = vst [vmem:[#allocation37_spill] sm:$0xff] %v13590_v51  ;;  %v13594_v24 = vld [vmem:[#allocation3 + $0xa8] sm:$0xff]  ;;  %v9624_v7 = vld [vmem:[#allocation3 + $0x10] sm:$0x3] }
 0x776   : > { %5103 = vst [vmem:[#allocation3 + $0xc1] sm:$0xff] %v5071_v52  ;;  %v13585_v38 = vadd.f32 %v13350_v53, %v4941_v50  ;;  %v4943_v27 = vpop.f32.mrb[63].mxu0  ;;  %5693 = vmatmul.mubr.f32.gmra.mrb[88].mxu1 %v13563_v16  ;;  %6214 = vmatmul.mubr.f32.gmra.mrb[116].mxu0 %v13563_v16  ;;  %v5264_v19 = vrot.slane %v13594_v24, 1  ;;  %v5358_v41 = vrot.slane %v9624_v7, 2  ;;  %v7683_v7 = vld [vmem:[%s14963_s7 + $0x298] sm:$0xff] }
 0x777   : > { %5697 = vmatprep.mubr.f32.mxu1 %v13590_v51  ;;  %6218 = vmatprep.mubr.f32.mxu0 %v13590_v51 }
 0x778   : > { %15300 = vst [vmem:[#allocation38_spill] sm:$0xff] %v13585_v38  ;;  %v5072_v22 = vmax.f32 %v13585_v38, 0.0 }
 0x779   : > { %v4946_v40 = vpop.f32.mrb[64].mxu0  ;;  %v13597_v14 = vld [vmem:[#allocation3 + $0xb0] sm:$0xff]  ;;  %v13599_v49 = vld [vmem:[#allocation3 + $0xb8] sm:$0x3] }
 0x77a   : > { %5104 = vst [vmem:[#allocation3 + $0xc9] sm:$0xff] %v5072_v22  ;;  %v13602_v55 = vadd.f32 %v13350_v53, %v4946_v40  ;;  %v4948_v36 = vpop.f32.mrb[65].mxu0  ;;  %5698 = vmatmul.mubr.f32.gmra.mrb[90].mxu1 %v13566_v5  ;;  %6219 = vmatmul.mubr.f32.gmra.mrb[118].mxu0 %v13566_v5  ;;  %v5265_v37 = vrot.slane %v13597_v14, 1  ;;  %v5267_v46 = vrot.slane %v13599_v49, 1 }
 0x77c   : > { %15302 = vst [vmem:[#allocation40_spill] sm:$0xff] %v13602_v55  ;;  %v5073_v39 = vmax.f32 %v13602_v55, 0.0  ;;  %v13611_v13 = vsel %vm661_vm3, %v5264_v19, %v5265_v37  ;;  %v13621_v52 = vsel %vm661_vm3, %v5265_v37, %v5267_v46 }
 0x77d   : > { %15303 = vst [vmem:[#allocation39_spill] sm:$0xff] %v13611_v13  ;;  %v4951_v44 = vpop.f32.mrb[66].mxu0  ;;  %5702 = vmatprep.mubr.f32.mxu1 %v13611_v13  ;;  %6223 = vmatprep.mubr.f32.mxu0 %v13611_v13  ;;  %15305 = vst [vmem:[#allocation41_spill] sm:$0xff] %v13621_v52  ;;  %v13625_v50 = vld [vmem:[#allocation3 + $0xc0] sm:$0xff] }
 0x77e   : > { %5105 = vst [vmem:[#allocation3 + $0xd9] sm:$0xff] %v5073_v39  ;;  %v13616_v15 = vadd.f32 %v13350_v53, %v4951_v44  ;;  %v4953_v58 = vpop.f32.mrb[67].mxu0  ;;  %5703 = vmatmul.mubr.f32.gmra.mrb[92].mxu1 %v13594_v24  ;;  %6224 = vmatmul.mubr.f32.gmra.mrb[120].mxu0 %v13594_v24  ;;  %v5269_v37 = vrot.slane %v13625_v50, 1 }
 0x77f   : > { %5707 = vmatprep.mubr.f32.mxu1 %v13621_v52  ;;  %6228 = vmatprep.mubr.f32.mxu0 %v13621_v52 }
 0x780   : > { %15304 = vst [vmem:[#allocation42_spill] sm:$0xff] %v13616_v15  ;;  %v5074_v27 = vmax.f32 %v13616_v15, 0.0 }
 0x781   : > { %v4956_v22 = vpop.f32.mrb[68].mxu0  ;;  %v13628_v40 = vld [vmem:[#allocation3 + $0xc8] sm:$0xff]  ;;  %v13630_v36 = vld [vmem:[#allocation3 + $0xd0] sm:$0x3] }
 0x782   : > { %5106 = vst [vmem:[#allocation3 + $0xe1] sm:$0xff] %v5074_v27  ;;  %v13633_v19 = vadd.f32 %v13350_v53, %v4956_v22  ;;  %v4958_v39 = vpop.f32.mrb[69].mxu0  ;;  %5708 = vmatmul.mubr.f32.gmra.mrb[94].mxu1 %v13597_v14  ;;  %6229 = vmatmul.mubr.f32.gmra.mrb[122].mxu0 %v13597_v14  ;;  %v5270_v46 = vrot.slane %v13628_v40, 1  ;;  %v5272_v44 = vrot.slane %v13630_v36, 1 }
 0x784   : > { %15306 = vst [vmem:[#allocation44_spill] sm:$0xff] %v13633_v19  ;;  %v5075_v58 = vmax.f32 %v13633_v19, 0.0  ;;  %v13642_v55 = vsel %vm661_vm3, %v5269_v37, %v5270_v46  ;;  %v13652_v15 = vsel %vm661_vm3, %v5270_v46, %v5272_v44 }
 0x785   : > { %15307 = vst [vmem:[#allocation43_spill] sm:$0xff] %v13642_v55  ;;  %v4961_v27 = vpop.f32.mrb[70].mxu0  ;;  %5712 = vmatprep.mubr.f32.mxu1 %v13642_v55  ;;  %6233 = vmatprep.mubr.f32.mxu0 %v13642_v55  ;;  %15309 = vst [vmem:[#allocation45_spill] sm:$0xff] %v13652_v15  ;;  %v13656_v37 = vld [vmem:[#allocation3 + $0xd8] sm:$0xff] }
 0x786   : > { %5107 = vst [vmem:[#allocation3 + $0xf1] sm:$0xff] %v5075_v58  ;;  %v13647_v22 = vadd.f32 %v13350_v53, %v4961_v27  ;;  %v4963_v39 = vpop.f32.mrb[71].mxu0  ;;  %5713 = vmatmul.mubr.f32.gmra.mrb[96].mxu1 %v13625_v50  ;;  %6234 = vmatmul.mubr.f32.gmra.mrb[124].mxu0 %v13625_v50  ;;  %v5274_v46 = vrot.slane %v13656_v37, 1 }
 0x787   : > { %5717 = vmatprep.mubr.f32.mxu1 %v13652_v15  ;;  %6238 = vmatprep.mubr.f32.mxu0 %v13652_v15 }
 0x788   : > { %15308 = vst [vmem:[#allocation46_spill] sm:$0xff] %v13647_v22  ;;  %v5076_v19 = vmax.f32 %v13647_v22, 0.0 }
 0x789   : > { %v4966_v58 = vpop.f32.mrb[72].mxu0  ;;  %v13659_v61 = vld [vmem:[#allocation3 + $0xe0] sm:$0xff]  ;;  %v13661_v27 = vld [vmem:[#allocation3 + $0xe8] sm:$0x3] }
 0x78a   : > { %5108 = vst [vmem:[#allocation3 + $0xf9] sm:$0xff] %v5076_v19  ;;  %v13664_v39 = vadd.f32 %v13350_v53, %v4966_v58  ;;  %v4968_v38 = vpop.f32.mrb[73].mxu0  ;;  %5718 = vmatmul.mubr.f32.gmra.mrb[98].mxu1 %v13628_v40  ;;  %6239 = vmatmul.mubr.f32.gmra.mrb[126].mxu0 %v13628_v40  ;;  %v5275_v44 = vrot.slane %v13659_v61, 1  ;;  %v5277_v22 = vrot.slane %v13661_v27, 1 }
 0x78c   : > { %15310 = vst [vmem:[#allocation55_spill] sm:$0xff] %v13664_v39  ;;  %v5077_v17 = vmax.f32 %v13664_v39, 0.0  ;;  %v13673_v31 = vsel %vm661_vm3, %v5274_v46, %v5275_v44  ;;  %v13683_v34 = vsel %vm661_vm3, %v5275_v44, %v5277_v22 }
 0x78d   : > { %15311 = vst [vmem:[#allocation56_spill] sm:$0xff] %v13673_v31  ;;  %v4971_v19 = vpop.f32.mrb[74].mxu0  ;;  %5722 = vmatprep.mubr.f32.mxu1 %v13673_v31  ;;  %6243 = vmatprep.mubr.f32.mxu0 %v13673_v31  ;;  %15313 = vst [vmem:[#allocation51_spill] sm:$0xff] %v13683_v34  ;;  %v13687_v46 = vld [vmem:[#allocation3 + $0xf0] sm:$0xff] }
 0x78e   : > { %5109 = vst [vmem:[#allocation3 + $0x109] sm:$0xff] %v5077_v17  ;;  %v13678_v38 = vadd.f32 %v13350_v53, %v4971_v19  ;;  %v4973_v58 = vpop.f32.mrb[75].mxu0  ;;  %5723 = vmatmul.mubr.f32.gmra.mrb[100].mxu1 %v13656_v37  ;;  %6244 = vmatmul.mubr.f32.gmra.mrb[128].mxu0 %v13656_v37  ;;  %v5279_v22 = vrot.slane %v13687_v46, 1 }
 0x78f   : > { %5727 = vmatprep.mubr.f32.mxu1 %v13683_v34  ;;  %6248 = vmatprep.mubr.f32.mxu0 %v13683_v34 }
 0x790   : > { %15312 = vst [vmem:[#allocation50_spill] sm:$0xff] %v13678_v38  ;;  %v5078_v39 = vmax.f32 %v13678_v38, 0.0 }
 0x791   : > { %v4976_v17 = vpop.f32.mrb[76].mxu0  ;;  %v13690_v20 = vld [vmem:[#allocation3 + $0xf8] sm:$0xff]  ;;  %v13692_v19 = vld [vmem:[#allocation3 + $0x100] sm:$0x3] }
 0x792   : > { %5110 = vst [vmem:[#allocation3 + $0x111] sm:$0xff] %v5078_v39  ;;  %v13695_v58 = vadd.f32 %v13350_v53, %v4976_v17  ;;  %v4978_v57 = vpop.f32.mrb[77].mxu0  ;;  %5728 = vmatmul.mubr.f32.gmra.mrb[102].mxu1 %v13659_v61  ;;  %6249 = vmatmul.mubr.f32.gmra.mrb[130].mxu0 %v13659_v61  ;;  %v5280_v44 = vrot.slane %v13690_v20, 1  ;;  %v5282_v38 = vrot.slane %v13692_v19, 1 }
 0x794   : > { %15314 = vst [vmem:[#allocation47_spill] sm:$0xff] %v13695_v58  ;;  %v5079_v29 = vmax.f32 %v13695_v58, 0.0  ;;  %v13704_v47 = vsel %vm661_vm3, %v5279_v22, %v5280_v44  ;;  %v13714_v8 = vsel %vm661_vm3, %v5280_v44, %v5282_v38 }
 0x795   : > { %15315 = vst [vmem:[#allocation48_spill] sm:$0xff] %v13704_v47  ;;  %v4981_v39 = vpop.f32.mrb[78].mxu0  ;;  %5732 = vmatprep.mubr.f32.mxu1 %v13704_v47  ;;  %6253 = vmatprep.mubr.f32.mxu0 %v13704_v47  ;;  %15317 = vst [vmem:[#allocation57_spill] sm:$0xff] %v13714_v8  ;;  %v13718_v22 = vld [vmem:[#allocation3 + $0x108] sm:$0xff] }
 0x796   : > { %5111 = vst [vmem:[#allocation3 + $0x121] sm:$0xff] %v5079_v29  ;;  %v13709_v57 = vadd.f32 %v13350_v53, %v4981_v39  ;;  %v4983_v17 = vpop.f32.mrb[79].mxu0  ;;  %5733 = vmatmul.mubr.f32.gmra.mrb[104].mxu1 %v13687_v46  ;;  %6254 = vmatmul.mubr.f32.gmra.mrb[132].mxu0 %v13687_v46  ;;  %v5284_v38 = vrot.slane %v13718_v22, 1 }
 0x797   : > { %5737 = vmatprep.mubr.f32.mxu1 %v13714_v8  ;;  %6258 = vmatprep.mubr.f32.mxu0 %v13714_v8 }
 0x798   : > { %15316 = vst [vmem:[#allocation54_spill] sm:$0xff] %v13709_v57  ;;  %v5080_v58 = vmax.f32 %v13709_v57, 0.0 }
 0x799   : > { %v4986_v29 = vpop.f32.mrb[80].mxu0  ;;  %v13721_v63 = vld [vmem:[#allocation3 + $0x110] sm:$0xff]  ;;  %v13723_v39 = vld [vmem:[#allocation3 + $0x118] sm:$0x3] }
 0x79a   : > { %5112 = vst [vmem:[#allocation3 + $0x129] sm:$0xff] %v5080_v58  ;;  %v13726_v17 = vadd.f32 %v13350_v53, %v4986_v29  ;;  %v4988_v28 = vpop.f32.mrb[81].mxu0  ;;  %5738 = vmatmul.mubr.f32.gmra.mrb[106].mxu1 %v13690_v20  ;;  %6259 = vmatmul.mubr.f32.gmra.mrb[134].mxu0 %v13690_v20  ;;  %v5285_v44 = vrot.slane %v13721_v63, 1  ;;  %v5287_v57 = vrot.slane %v13723_v39, 1 }
 0x79c   : > { %15318 = vst [vmem:[#allocation52_spill] sm:$0xff] %v13726_v17  ;;  %v5081_v1 = vmax.f32 %v13726_v17, 0.0  ;;  %v13735_v6 = vsel %vm661_vm3, %v5284_v38, %v5285_v44  ;;  %v13745_v2 = vsel %vm661_vm3, %v5285_v44, %v5287_v57  ;;  %v13751_v17 = vpop.f32.mrb[64].mxu1 }
 0x79d   : > { %15319 = vst [vmem:[#allocation58_spill] sm:$0xff] %v13735_v6  ;;  %v4991_v58 = vpop.f32.mrb[82].mxu0  ;;  %5742 = vmatprep.mubr.f32.mxu1 %v13735_v6  ;;  %6263 = vmatprep.mubr.f32.mxu0 %v13735_v6  ;;  %15321 = vst [vmem:[#allocation59_spill] sm:$0xff] %v13745_v2  ;;  %v13749_v38 = vld [vmem:[#allocation3 + $0x120] sm:$0xff] }
 0x79e   : > { %5113 = vst [vmem:[#allocation3 + $0x139] sm:$0xff] %v5081_v1  ;;  %v13740_v28 = vadd.f32 %v13350_v53, %v4991_v58  ;;  %v4993_v29 = vpop.f32.mrb[83].mxu0  ;;  %5743 = vmatmul.mubr.f32.gmra.mrb[108].mxu1 %v13718_v22  ;;  %6264 = vmatmul.mubr.f32.gmra.mrb[136].mxu0 %v13718_v22  ;;  %15322 = vst [vmem:[#allocation60_spill] sm:$0xff] %v13751_v17  ;;  %v5636_v58 = vpop.f32.mrb[65].mxu1 }
 0x79f   : > { %5747 = vmatprep.mubr.f32.mxu1 %v13745_v2  ;;  %6268 = vmatprep.mubr.f32.mxu0 %v13745_v2  ;;  %v5289_v2 = vrot.slane %v13749_v38, 1 }
 0x7a0   : > { %15320 = vst [vmem:[#allocation53_spill] sm:$0xff] %v13740_v28  ;;  %v5082_v1 = vmax.f32 %v13740_v28, 0.0 }
 0x7a1   : > { %v4996_v25 = vpop.f32.mrb[84].mxu0  ;;  %v13754_v29 = vld [vmem:[#allocation3 + $0x128] sm:$0xff]  ;;  %v13756_v6 = vld [vmem:[#allocation3 + $0x130] sm:$0x3] }
 0x7a2   : > { %5114 = vst [vmem:[#allocation3 + $0x141] sm:$0xff] %v5082_v1  ;;  %v13759_v57 = vadd.f32 %v13350_v53, %v4996_v25  ;;  %v4998_v44 = vpop.f32.mrb[85].mxu0  ;;  %5748 = vmatmul.mubr.f32.gmra.mrb[110].mxu1 %v13721_v63  ;;  %6269 = vmatmul.mubr.f32.gmra.mrb[138].mxu0 %v13721_v63  ;;  %v5290_v17 = vrot.slane %v13754_v29, 1  ;;  %v5292_v58 = vrot.slane %v13756_v6, 1  ;;  %v13770_v1 = vpop.f32.mrb[66].mxu1 }
 0x7a3   : > { %15325 = vst [vmem:[#allocation16_spill] sm:$0xff] %v13770_v1  ;;  %v5641_v44 = vpop.f32.mrb[67].mxu1 }
 0x7a4   : > { %15323 = vst [vmem:[#allocation49_spill] sm:$0xff] %v13759_v57  ;;  %v5083_v28 = vmax.f32 %v13759_v57, 0.0  ;;  %v13768_v8 = vsel %vm661_vm3, %v5289_v2, %v5290_v17  ;;  %v13780_v2 = vsel %vm661_vm3, %v5290_v17, %v5292_v58 }
 0x7a5   : > { %15324 = vst [vmem:[#allocation61_spill] sm:$0xff] %v13768_v8  ;;  %v5001_v25 = vpop.f32.mrb[86].mxu0  ;;  %5752 = vmatprep.mubr.f32.mxu1 %v13768_v8  ;;  %6273 = vmatprep.mubr.f32.mxu0 %v13768_v8  ;;  %15327 = vst [vmem:[#allocation63_spill] sm:$0xff] %v13780_v2  ;;  %v13784_v57 = vld [vmem:[#allocation3 + $0x138] sm:$0xff] }
 0x7a6   : > { %5115 = vst [vmem:[#allocation3 + $0x151] sm:$0xff] %v5083_v28  ;;  %v13775_v47 = vadd.f32 %v13350_v53, %v5001_v25  ;;  %v5003_v34 = vpop.f32.mrb[87].mxu0  ;;  %5753 = vmatmul.mubr.f32.gmra.mrb[112].mxu1 %v13749_v38  ;;  %6274 = vmatmul.mubr.f32.gmra.mrb[140].mxu0 %v13749_v38  ;;  %v5294_v17 = vrot.slane %v13784_v57, 1 }
 0x7a7   : > { %5757 = vmatprep.mubr.f32.mxu1 %v13780_v2  ;;  %6278 = vmatprep.mubr.f32.mxu0 %v13780_v2 }
 0x7a8   : > { %15326 = vst [vmem:[#allocation62_spill] sm:$0xff] %v13775_v47  ;;  %v5084_v44 = vmax.f32 %v13775_v47, 0.0 }
 0x7a9   : > { %v5006_v28 = vpop.f32.mrb[88].mxu0  ;;  %v13787_v1 = vld [vmem:[#allocation3 + $0x140] sm:$0xff]  ;;  %v13789_v25 = vld [vmem:[#allocation3 + $0x148] sm:$0x3] }
 0x7aa   : > { %5116 = vst [vmem:[#allocation3 + $0x159] sm:$0xff] %v5084_v44  ;;  %v13792_v34 = vadd.f32 %v13350_v53, %v5006_v28  ;;  %v5008_v8 = vpop.f32.mrb[89].mxu0  ;;  %5758 = vmatmul.mubr.f32.gmra.mrb[114].mxu1 %v13754_v29  ;;  %6279 = vmatmul.mubr.f32.gmra.mrb[142].mxu0 %v13754_v29  ;;  %v5295_v58 = vrot.slane %v13787_v1, 1  ;;  %v5297_v47 = vrot.slane %v13789_v25, 1 }
 0x7ac   : > { %15328 = vst [vmem:[#allocation64_spill] sm:$0xff] %v13792_v34  ;;  %v5085_v2 = vmax.f32 %v13792_v34, 0.0  ;;  %v13801_v31 = vsel %vm661_vm3, %v5294_v17, %v5295_v58  ;;  %v13811_v15 = vsel %vm661_vm3, %v5295_v58, %v5297_v47 }
 0x7ad   : > { %15329 = vst [vmem:[#allocation65_spill] sm:$0xff] %v13801_v31  ;;  %v5011_v44 = vpop.f32.mrb[90].mxu0  ;;  %5762 = vmatprep.mubr.f32.mxu1 %v13801_v31  ;;  %6283 = vmatprep.mubr.f32.mxu0 %v13801_v31  ;;  %15331 = vst [vmem:[#allocation67_spill] sm:$0xff] %v13811_v15  ;;  %v13815_v17 = vld [vmem:[#allocation3 + $0x150] sm:$0xff] }
 0x7ae   : > { %5117 = vst [vmem:[#allocation3 + $0x169] sm:$0xff] %v5085_v2  ;;  %v13806_v8 = vadd.f32 %v13350_v53, %v5011_v44  ;;  %v5013_v28 = vpop.f32.mrb[91].mxu0  ;;  %5763 = vmatmul.mubr.f32.gmra.mrb[116].mxu1 %v13784_v57  ;;  %6284 = vmatmul.mubr.f32.gmra.mrb[144].mxu0 %v13784_v57  ;;  %v5299_v47 = vrot.slane %v13815_v17, 1 }
 0x7af   : > { %5767 = vmatprep.mubr.f32.mxu1 %v13811_v15  ;;  %6288 = vmatprep.mubr.f32.mxu0 %v13811_v15 }
 0x7b0   : > { %15330 = vst [vmem:[#allocation66_spill] sm:$0xff] %v13806_v8  ;;  %v5086_v34 = vmax.f32 %v13806_v8, 0.0 }
 0x7b1   : > { %v5016_v2 = vpop.f32.mrb[92].mxu0  ;;  %v13818_v31 = vld [vmem:[#allocation3 + $0x158] sm:$0xff]  ;;  %v13820_v44 = vld [vmem:[#allocation3 + $0x160] sm:$0x3] }
 0x7b2   : > { %5118 = vst [vmem:[#allocation3 + $0x171] sm:$0xff] %v5086_v34  ;;  %v13823_v28 = vadd.f32 %v13350_v53, %v5016_v2  ;;  %v5018_v55 = vpop.f32.mrb[93].mxu0  ;;  %5768 = vmatmul.mubr.f32.gmra.mrb[118].mxu1 %v13787_v1  ;;  %6289 = vmatmul.mubr.f32.gmra.mrb[146].mxu0 %v13787_v1  ;;  %v5300_v58 = vrot.slane %v13818_v31, 1  ;;  %v5302_v8 = vrot.slane %v13820_v44, 1 }
 0x7b4   : > { %15332 = vst [vmem:[#allocation68_spill] sm:$0xff] %v13823_v28  ;;  %v5087_v15 = vmax.f32 %v13823_v28, 0.0  ;;  %v13832_v52 = vsel %vm661_vm3, %v5299_v47, %v5300_v58  ;;  %v13842_v13 = vsel %vm661_vm3, %v5300_v58, %v5302_v8 }
 0x7b5   : > { %15333 = vst [vmem:[#allocation69_spill] sm:$0xff] %v13832_v52  ;;  %v5021_v34 = vpop.f32.mrb[94].mxu0  ;;  %5772 = vmatprep.mubr.f32.mxu1 %v13832_v52  ;;  %6293 = vmatprep.mubr.f32.mxu0 %v13832_v52  ;;  %15335 = vst [vmem:[#allocation71_spill] sm:$0xff] %v13842_v13  ;;  %v13846_v47 = vld [vmem:[#allocation3 + $0x168] sm:$0xff] }
 0x7b6   : > { %5119 = vst [vmem:[#allocation3 + $0x181] sm:$0xff] %v5087_v15  ;;  %v13837_v55 = vadd.f32 %v13350_v53, %v5021_v34  ;;  %v5023_v2 = vpop.f32.mrb[95].mxu0  ;;  %5773 = vmatmul.mubr.f32.gmra.mrb[120].mxu1 %v13815_v17  ;;  %6294 = vmatmul.mubr.f32.gmra.mrb[148].mxu0 %v13815_v17  ;;  %v5304_v8 = vrot.slane %v13846_v47, 1  ;;  %v9623_v52 = vld [vmem:[#allocation3 + $0x8] sm:$0xff] }
 0x7b7   : > { %5777 = vmatprep.mubr.f32.mxu1 %v13842_v13  ;;  %6298 = vmatprep.mubr.f32.mxu0 %v13842_v13  ;;  %v9622_v13 = vld [vmem:[#allocation3] sm:$0xff]  ;;  %v13861_v51 = vrot.slane %v9623_v52, 2 }
 0x7b8   : > { %15334 = vst [vmem:[#allocation70_spill] sm:$0xff] %v13837_v55  ;;  %v5088_v28 = vmax.f32 %v13837_v55, 0.0  ;;  %v5355_v55 = vrot.slane %v9622_v13, 2 }
 0x7b9   : > { %v13849_v15 = vld [vmem:[#allocation3 + $0x170] sm:$0xff]  ;;  %v13851_v53 = vld [vmem:[#allocation3 + $0x178] sm:$0x3] }
 0x7ba   : > { %5120 = vst [vmem:[#allocation3 + $0x189] sm:$0xff] %v5088_v28  ;;  %5778 = vmatmul.mubr.f32.gmra.mrb[122].mxu1 %v13818_v31  ;;  %6299 = vmatmul.mubr.f32.gmra.mrb[150].mxu0 %v13818_v31  ;;  %v5305_v58 = vrot.slane %v13849_v15, 1  ;;  %v5307_v34 = vrot.slane %v13851_v53, 1  ;;  %v5357_v52 = vsel %vm860_vm2, %v5355_v55, %v13861_v51 }
 0x7bc   : > { %v13859_v2 = vsel %vm661_vm3, %v5304_v8, %v5305_v58  ;;  %v13868_v28 = vsel %vm661_vm3, %v5305_v58, %v5307_v34  ;;  %v7682_v8 = vld [vmem:[%s14963_s7 + $0x290] sm:$0xff]  ;;  %v5359_v34 = vsel %vm860_vm2, %v13861_v51, %v5358_v41  ;;  %v7685_v41 = vld [vmem:[%s14963_s7 + $0x2a8] sm:$0xff] }
 0x7bd   : > { %15336 = vst [vmem:[#allocation72_spill] sm:$0xff] %v13859_v2  ;;  %5782 = vmatprep.mubr.f32.mxu1 %v13859_v2  ;;  %6303 = vmatprep.mubr.f32.mxu0 %v13859_v2  ;;  %15337 = vst [vmem:[#allocation73_spill] sm:$0xff] %v13868_v28  ;;  %v13872_v13 = vld [vmem:[#allocation3 + $0x180] sm:$0xff]  ;;  %v8903_v30 = vpack.c.bf16 %v7683_v7, %v7682_v8  ;;  %v5365_v7 = vrot.slane %v13404_v42, 2  ;;  %v7687_v42 = vld [vmem:[%s14963_s7 + $0x2b8] sm:$0xff] }
 0x7be   : > { %5783 = vmatmul.mubr.f32.gmra.mrb[124].mxu1 %v13846_v47  ;;  %6304 = vmatmul.mubr.f32.gmra.mrb[152].mxu0 %v13846_v47  ;;  %v5309_v58 = vrot.slane %v13872_v13, 1 }
 0x7bf   : > { %5787 = vmatprep.mubr.f32.mxu1 %v13868_v28  ;;  %6308 = vmatprep.mubr.f32.mxu0 %v13868_v28 }
 0x7c1   : > { %v13879_v2 = vld [vmem:[#allocation3 + $0x188] sm:$0xff]  ;;  %v13881_v10 = vld [vmem:[#allocation3 + $0x190] sm:$0x3] }
 0x7c2   : > { %5788 = vmatmul.mubr.f32.gmra.mrb[126].mxu1 %v13849_v15  ;;  %6309 = vmatmul.mubr.f32.gmra.mrb[154].mxu0 %v13849_v15  ;;  %v5310_v55 = vrot.slane %v13879_v2, 1  ;;  %v5312_v28 = vrot.slane %v13881_v10, 1 }
 0x7c3   : > { %8275 = vmatprep.mubr.f32.mxu1 %v5357_v52  ;;  %v7684_v52 = vld [vmem:[%s14963_s7 + $0x2a0] sm:$0xff] }
 0x7c4   : > { %v13894_v45 = vsel %vm661_vm3, %v5309_v58, %v5310_v55  ;;  %v13908_v8 = vsel %vm661_vm3, %v5310_v55, %v5312_v28  ;;  %v8907_v58 = vpack.c.bf16 %v7685_v41, %v7684_v52  ;;  %v7686_v28 = vld [vmem:[%s14963_s7 + $0x2b0] sm:$0xff]  ;;  %v13929_v55 = vsel %vm860_vm2, %v5366_v21, %v5368_v35 }
 0x7c5   : > { %6313 = vmatprep.mubr.f32.mxu0 %v13894_v45  ;;  %v8911_v52 = vpack.c.bf16 %v7687_v42, %v7686_v28  ;;  %v5381_v42 = vrot.slane %v13529_v62, 2  ;;  %v5383_v62 = vrot.slane %v13531_v0, 2  ;;  %v5385_v0 = vrot.slane %v13563_v16, 2  ;;  %v7694_v16 = vld [vmem:[%s14963_s7 + $0x2f0] sm:$0xff] }
 0x7c6   : > { %8276 = vmatmul.mubr.f32.vlgmr.msra.gmra.mrb[128].mxu1 %v5359_v34  ;;  %6314 = vmatmul.mubr.f32.gmra.mrb[156].mxu0 %v13872_v13  ;;  %v13916_v34 = vsel %vm860_vm2, %v5365_v7, %v5366_v21  ;;  %v5376_v7 = vrot.slane %v13489_v4, 2  ;;  %v7689_v21 = vld [vmem:[%s14963_s7 + $0x2c8] sm:$0xff]  ;;  %v5378_v4 = vrot.slane %v13491_v43, 2  ;;  %v5380_v43 = vrot.slane %v13526_v12, 2  ;;  %v7692_v12 = vld [vmem:[%s14963_s7 + $0x2e0] sm:$0xff] }
 0x7c7   : > { %8902 = vmatpush3.bf16.msra.mxu1 %v13379_v33  ;;  %8278 = vmatprep.mubr.f32.mxu1 %v13395_v59  ;;  %v5371_v33 = vrot.slane %v13449_v56, 2  ;;  %v5373_v56 = vrot.slane %v13451_v54, 2  ;;  %v5375_v54 = vrot.slane %v13483_v9, 2  ;;  %v8915_v35 = vpack.c.bf16 %v7689_v21, %v7688_v11  ;;  %v7690_v9 = vld [vmem:[%s14963_s7 + $0x2d0] sm:$0xff] }
 0x7c8   : > { %6318 = vmatprep.mubr.f32.mxu0 %v13908_v8  ;;  %8904 = vmatprep.subr.bf16.mxu1 %v8903_v30  ;;  %v5386_v11 = vrot.slane %v13566_v5, 2  ;;  %v5388_v5 = vrot.slane %v13568_v60, 2  ;;  %v5390_v60 = vrot.slane %v13594_v24, 2  ;;  %v5395_v24 = vrot.slane %v13625_v50, 2 }
 0x7c9   : > { %v13935_v41 = vsel %vm860_vm2, %v5370_v32, %v5371_v33  ;;  %v13954_v28 = vsel %vm860_vm2, %v5375_v54, %v5376_v7  ;;  %v5400_v50 = vrot.slane %v13656_v37, 2  ;;  %v5405_v37 = vrot.slane %v13687_v46, 2 }
 0x7ca   : > { %8279 = vmatmul.mubr.f32.gmra.mrb[130].mxu1 %v13398_v18  ;;  %6319 = vmatmul.mubr.f32.gmra.mrb[158].mxu0 %v13879_v2  ;;  %v13992_v54 = vsel %vm860_vm2, %v5385_v0, %v5386_v11  ;;  %v5410_v46 = vrot.slane %v13718_v22, 2  ;;  %v5415_v22 = vrot.slane %v13749_v38, 2  ;;  %v5420_v38 = vrot.slane %v13784_v57, 2 }
 0x7cb   : > { %8281 = vmatprep.mubr.f32.mxu1 %v13916_v34  ;;  %8435 = vmatprep.mubr.f32.mxu0 %v13916_v34  ;;  %v5425_v57 = vrot.slane %v13815_v17, 2  ;;  %v5430_v17 = vrot.slane %v13846_v47, 2  ;;  %v5435_v47 = vrot.slane %v13872_v13, 2 }
 0x7cc   : > { %8906 = vmatpush3.bf16.msra.mxu1 %v8903_v30  ;;  %v13948_v30 = vsel %vm860_vm2, %v5371_v33, %v5373_v56  ;;  %v13967_v33 = vsel %vm860_vm2, %v5376_v7, %v5378_v4  ;;  %v13973_v56 = vsel %vm860_vm2, %v5380_v43, %v5381_v42  ;;  %v13986_v7 = vsel %vm860_vm2, %v5381_v42, %v5383_v62 }
 0x7cd   : > { %8908 = vmatprep.subr.bf16.mxu1 %v8907_v58  ;;  %v5391_v4 = vrot.slane %v13597_v14, 2  ;;  %v14005_v42 = vsel %vm860_vm2, %v5386_v11, %v5388_v5  ;;  %v5393_v14 = vrot.slane %v13599_v49, 2  ;;  %v5396_v43 = vrot.slane %v13628_v40, 2 }
 0x7ce   : > { %8282 = vmatmul.mubr.f32.gmra.mrb[132].mxu1 %v13929_v55  ;;  %8436 = vmatmul.mubr.f32.vlgmr.msra.gmra.mrb[160].mxu0 %v13929_v55  ;;  %v5398_v62 = vrot.slane %v13630_v36, 2  ;;  %v5401_v40 = vrot.slane %v13659_v61, 2  ;;  %v5403_v36 = vrot.slane %v13661_v27, 2  ;;  %v5408_v27 = vrot.slane %v13692_v19, 2 }
 0x7cf   : > { %8284 = vmatprep.mubr.f32.mxu1 %v13935_v41  ;;  %8438 = vmatprep.mubr.f32.mxu0 %v13935_v41  ;;  %v14018_v49 = vsel %vm860_vm2, %v5391_v4, %v5393_v14  ;;  %v5413_v19 = vrot.slane %v13723_v39, 2  ;;  %v5418_v39 = vrot.slane %v13756_v6, 2  ;;  %v5423_v6 = vrot.slane %v13789_v25, 2 }
 0x7d0   : > { %8910 = vmatpush3.bf16.msra.mxu1 %v8907_v58  ;;  %v7691_v58 = vld [vmem:[%s14963_s7 + $0x2d8] sm:$0xff]  ;;  %v14031_v11 = vsel %vm860_vm2, %v5396_v43, %v5398_v62  ;;  %v14038_v61 = vsel %vm860_vm2, %v5400_v50, %v5401_v40  ;;  %v5428_v25 = vrot.slane %v13820_v44, 2  ;;  %v5433_v44 = vrot.slane %v13851_v53, 2  ;;  %v7696_v62 = vld [vmem:[%s14963_s7 + $0x300] sm:$0xff]  ;;  %v7697_v53 = vld [vmem:[%s14963_s7 + $0x308] sm:$0xff] }
 0x7d1   : > { %8912 = vmatprep.subr.bf16.mxu1 %v8911_v52  ;;  %v8919_v32 = vpack.c.bf16 %v7691_v58, %v7690_v9  ;;  %v14011_v58 = vsel %vm860_vm2, %v5390_v60, %v5391_v4  ;;  %v5438_v50 = vrot.slane %v13881_v10, 2  ;;  %v8932_v13 = vpack.c.bf16 %v7697_v53, %v7696_v62  ;;  %v7699_v10 = vld [vmem:[%s14963_s7 + $0x318] sm:$0xff] }
 0x7d2   : > { %8285 = vmatmul.mubr.f32.gmra.mrb[134].mxu1 %v13948_v30  ;;  %8439 = vmatmul.mubr.f32.gmra.mrb[162].mxu0 %v13948_v30 }
 0x7d3   : > { %8287 = vmatprep.mubr.f32.mxu1 %v13954_v28  ;;  %8441 = vmatprep.mubr.f32.mxu0 %v13954_v28 }
 0x7d4   : > { %8914 = vmatpush3.bf16.msra.mxu1 %v8911_v52  ;;  %v7693_v52 = vld [vmem:[%s14963_s7 + $0x2e8] sm:$0xff] }
 0x7d5   : > { %8916 = vmatprep.subr.bf16.mxu1 %v8915_v35  ;;  %v8923_v21 = vpack.c.bf16 %v7693_v52, %v7692_v12  ;;  %v5406_v12 = vrot.slane %v13690_v20, 2  ;;  %v14045_v52 = vsel %vm860_vm2, %v5401_v40, %v5403_v36  ;;  %v5411_v20 = vrot.slane %v13721_v63, 2  ;;  %v7698_v36 = vld [vmem:[%s14963_s7 + $0x310] sm:$0xff] }
 0x7d6   : > { %8288 = vmatmul.mubr.f32.gmra.mrb[136].mxu1 %v13967_v33  ;;  %8442 = vmatmul.mubr.f32.gmra.mrb[164].mxu0 %v13967_v33  ;;  %v5416_v63 = vrot.slane %v13754_v29, 2  ;;  %v5421_v29 = vrot.slane %v13787_v1, 2  ;;  %v5426_v1 = vrot.slane %v13818_v31, 2  ;;  %v5431_v31 = vrot.slane %v13849_v15, 2 }
 0x7d7   : > { %8290 = vmatprep.mubr.f32.mxu1 %v13973_v56  ;;  %8444 = vmatprep.mubr.f32.mxu0 %v13973_v56  ;;  %v14051_v0 = vsel %vm860_vm2, %v5405_v37, %v5406_v12  ;;  %v14058_v5 = vsel %vm860_vm2, %v5406_v12, %v5408_v27  ;;  %v14071_v4 = vsel %vm860_vm2, %v5411_v20, %v5413_v19  ;;  %v5436_v15 = vrot.slane %v13879_v2, 2  ;;  %v7700_v37 = vld [vmem:[%s14963_s7 + $0x320] sm:$0xff]  ;;  %v7701_v27 = vld [vmem:[%s14963_s7 + $0x328] sm:$0xff]  ;;  %v7707_v19 = vld [vmem:[%s14963_s7 + $0x358] sm:$0xff] }
 0x7d8   : > { %8918 = vmatpush3.bf16.msra.mxu1 %v8915_v35  ;;  %v7695_v35 = vld [vmem:[%s14963_s7 + $0x2f8] sm:$0xff]  ;;  %v14090_v60 = vsel %vm860_vm2, %v5420_v38, %v5421_v29  ;;  %v14097_v14 = vsel %vm860_vm2, %v5421_v29, %v5423_v6  ;;  %v14129_v40 = vsel %vm860_vm2, %v5431_v31, %v5433_v44  ;;  %v7716_v44 = vld [vmem:[%s14963_s7 + $0x3a0] sm:$0xff] }
 0x7d9   : > { %8920 = vmatprep.subr.bf16.mxu1 %v8919_v32  ;;  %v8927_v9 = vpack.c.bf16 %v7695_v35, %v7694_v16  ;;  %v14077_v16 = vsel %vm860_vm2, %v5415_v22, %v5416_v63  ;;  %v14084_v35 = vsel %vm860_vm2, %v5416_v63, %v5418_v39  ;;  %v14135_v2 = vsel %vm860_vm2, %v5435_v47, %v5436_v15  ;;  %v7709_v63 = vld [vmem:[%s14963_s7 + $0x368] sm:$0xff]  ;;  %v7711_v22 = vld [vmem:[%s14963_s7 + $0x378] sm:$0xff] }
 0x7da   : > { %8291 = vmatmul.mubr.f32.gmra.mrb[138].mxu1 %v13986_v7  ;;  %8445 = vmatmul.mubr.f32.gmra.mrb[166].mxu0 %v13986_v7  ;;  %v14146_v12 = vsel %vm860_vm2, %v5436_v15, %v5438_v50  ;;  %v7713_v39 = vld [vmem:[%s14963_s7 + $0x388] sm:$0xff]  ;;  %v7718_v50 = vld [vmem:[%s14963_s7 + $0x3b0] sm:$0xff] }
 0x7db   : > { %8293 = vmatprep.mubr.f32.mxu1 %v13992_v54  ;;  %8447 = vmatprep.mubr.f32.mxu0 %v13992_v54  ;;  %v7717_v15 = vld [vmem:[%s14963_s7 + $0x3a8] sm:$0xff] }
 0x7dc   : > { %8922 = vmatpush3.bf16.msra.mxu1 %v8919_v32  ;;  %v14024_v32 = vsel %vm860_vm2, %v5395_v24, %v5396_v43  ;;  %v14110_v43 = vsel %vm860_vm2, %v5426_v1, %v5428_v25  ;;  %v14116_v24 = vsel %vm860_vm2, %v5430_v17, %v5431_v31 }
 0x7dd   : > { %8924 = vmatprep.subr.bf16.mxu1 %v8923_v21 }
 0x7de   : > { %8294 = vmatmul.mubr.f32.gmra.mrb[140].mxu1 %v14005_v42  ;;  %8448 = vmatmul.mubr.f32.gmra.mrb[168].mxu0 %v14005_v42 }
 0x7df   : > { %8296 = vmatprep.mubr.f32.mxu1 %v14011_v58  ;;  %8450 = vmatprep.mubr.f32.mxu0 %v14011_v58 }
 0x7e0   : > { %8926 = vmatpush3.bf16.msra.mxu1 %v8923_v21  ;;  %v14064_v21 = vsel %vm860_vm2, %v5410_v46, %v5411_v20  ;;  %v7703_v20 = vld [vmem:[%s14963_s7 + $0x338] sm:$0xff]  ;;  %v7705_v46 = vld [vmem:[%s14963_s7 + $0x348] sm:$0xff] }
 0x7e1   : > { %8928 = vmatprep.subr.bf16.mxu1 %v8927_v9 }
 0x7e2   : > { %8297 = vmatmul.mubr.f32.gmra.mrb[142].mxu1 %v14018_v49  ;;  %8451 = vmatmul.mubr.f32.gmra.mrb[170].mxu0 %v14018_v49 }
 0x7e3   : > { %8299 = vmatprep.mubr.f32.mxu1 %v14024_v32  ;;  %8453 = vmatprep.mubr.f32.mxu0 %v14024_v32 }
 0x7e4   : > { %8930 = vmatpush3.bf16.msra.mxu1 %v8927_v9  ;;  %v14103_v9 = vsel %vm860_vm2, %v5425_v57, %v5426_v1  ;;  %v7714_v1 = vld [vmem:[%s14963_s7 + $0x390] sm:$0xff]  ;;  %v7715_v57 = vld [vmem:[%s14963_s7 + $0x398] sm:$0xff] }
 0x7e5   : > { %8931 = vmatprep.subr.bf16.mxu1 %v15169_v23 }
 0x7e6   : > { %8300 = vmatmul.mubr.f32.gmra.mrb[144].mxu1 %v14031_v11  ;;  %8454 = vmatmul.mubr.f32.gmra.mrb[172].mxu0 %v14031_v11 }
 0x7e7   : > { %8302 = vmatprep.mubr.f32.mxu1 %v14038_v61  ;;  %8456 = vmatprep.mubr.f32.mxu0 %v14038_v61 }
 0x7ea   : > { %8303 = vmatmul.mubr.f32.gmra.mrb[146].mxu1 %v14045_v52  ;;  %8457 = vmatmul.mubr.f32.gmra.mrb[174].mxu0 %v14045_v52 }
 0x7eb   : > { %8305 = vmatprep.mubr.f32.mxu1 %v14051_v0  ;;  %8459 = vmatprep.mubr.f32.mxu0 %v14051_v0 }
 0x7ee   : > { %8306 = vmatmul.mubr.f32.gmra.mrb[148].mxu1 %v14058_v5  ;;  %8460 = vmatmul.mubr.f32.gmra.mrb[176].mxu0 %v14058_v5 }
 0x7ef   : > { %8308 = vmatprep.mubr.f32.mxu1 %v14064_v21  ;;  %8462 = vmatprep.mubr.f32.mxu0 %v14064_v21 }
 0x7f2   : > { %8309 = vmatmul.mubr.f32.gmra.mrb[150].mxu1 %v14071_v4  ;;  %8463 = vmatmul.mubr.f32.gmra.mrb[178].mxu0 %v14071_v4 }
 0x7f3   : > { %8311 = vmatprep.mubr.f32.mxu1 %v14077_v16  ;;  %8465 = vmatprep.mubr.f32.mxu0 %v14077_v16 }
 0x7f6   : > { %8312 = vmatmul.mubr.f32.gmra.mrb[152].mxu1 %v14084_v35  ;;  %8466 = vmatmul.mubr.f32.gmra.mrb[180].mxu0 %v14084_v35 }
 0x7f7   : > { %8314 = vmatprep.mubr.f32.mxu1 %v14090_v60  ;;  %8468 = vmatprep.mubr.f32.mxu0 %v14090_v60 }
 0x7fa   : > { %8315 = vmatmul.mubr.f32.gmra.mrb[154].mxu1 %v14097_v14  ;;  %8469 = vmatmul.mubr.f32.gmra.mrb[182].mxu0 %v14097_v14 }
 0x7fb   : > { %8317 = vmatprep.mubr.f32.mxu1 %v14103_v9  ;;  %8471 = vmatprep.mubr.f32.mxu0 %v14103_v9 }
 0x7fe   : > { %8318 = vmatmul.mubr.f32.gmra.mrb[156].mxu1 %v14110_v43  ;;  %8472 = vmatmul.mubr.f32.gmra.mrb[184].mxu0 %v14110_v43 }
 0x7ff   : > { %8320 = vmatprep.mubr.f32.mxu1 %v14116_v24  ;;  %8474 = vmatprep.mubr.f32.mxu0 %v14116_v24 }
 0x802   : > { %8321 = vmatmul.mubr.f32.gmra.mrb[158].mxu1 %v14129_v40  ;;  %8475 = vmatmul.mubr.f32.gmra.mrb[186].mxu0 %v14129_v40 }
 0x803   : > { %8355 = vmatprep.mubr.f32.mxu1 %v13395_v59  ;;  %8477 = vmatprep.mubr.f32.mxu0 %v14135_v2  ;;  %v8935_v59 = vpack.c.bf16 %v7699_v10, %v7698_v36 }
 0x806   : > { %8356 = vmatmul.mubr.f32.vlgmr.msra.gmra.mrb[160].mxu1 %v13398_v18  ;;  %8478 = vmatmul.mubr.f32.gmra.mrb[188].mxu0 %v14146_v12  ;;  %v8938_v18 = vpack.c.bf16 %v7701_v27, %v7700_v37  ;;  %v7720_v37 = vld [vmem:[%s14963_s7 + $0x3c0] sm:$0xff]  ;;  %v7721_v27 = vld [vmem:[%s14963_s7 + $0x3c8] sm:$0xff] }
 0x807   : > { %8933 = vmatpush1.bf16.msra.mxu1 %v8932_v13  ;;  %8358 = vmatprep.mubr.f32.mxu1 %v13916_v34  ;;  %v7702_v34 = vld [vmem:[%s14963_s7 + $0x330] sm:$0xff]  ;;  %v7719_v13 = vld [vmem:[%s14963_s7 + $0x3b8] sm:$0xff] }
 0x808   : > { %8934 = vmatprep.subr.bf16.mxu1 %v15169_v23 }
 0x80a   : > { %8359 = vmatmul.mubr.f32.gmra.mrb[162].mxu1 %v13929_v55  ;;  %v8941_v55 = vpack.c.bf16 %v7703_v20, %v7702_v34 }
 0x80b   : > { %8936 = vmatpush1.bf16.msra.mxu1 %v8935_v59  ;;  %8361 = vmatprep.mubr.f32.mxu1 %v13935_v41  ;;  %v7704_v41 = vld [vmem:[%s14963_s7 + $0x340] sm:$0xff] }
 0x80c   : > { %8937 = vmatprep.subr.bf16.mxu1 %v15169_v23 }
 0x80e   : > { %8362 = vmatmul.mubr.f32.gmra.mrb[164].mxu1 %v13948_v30  ;;  %v8944_v30 = vpack.c.bf16 %v7705_v46, %v7704_v41  ;;  %v7723_v41 = vld [vmem:[%s14963_s7 + $0x3d8] sm:$0xff] }
 0x80f   : > { %8939 = vmatpush1.bf16.msra.mxu1 %v8938_v18  ;;  %8364 = vmatprep.mubr.f32.mxu1 %v13954_v28  ;;  %v7706_v28 = vld [vmem:[%s14963_s7 + $0x350] sm:$0xff] }
 0x810   : > { %8940 = vmatprep.subr.bf16.mxu1 %v15169_v23 }
 0x812   : > { %8365 = vmatmul.mubr.f32.gmra.mrb[166].mxu1 %v13967_v33  ;;  %v8947_v33 = vpack.c.bf16 %v7707_v19, %v7706_v28  ;;  %v7724_v19 = vld [vmem:[%s14963_s7 + $0x3e0] sm:$0xff] }
 0x813   : > { %8942 = vmatpush1.bf16.msra.mxu1 %v8941_v55  ;;  %8367 = vmatprep.mubr.f32.mxu1 %v13973_v56  ;;  %v7708_v56 = vld [vmem:[%s14963_s7 + $0x360] sm:$0xff]  ;;  %v7722_v55 = vld [vmem:[%s14963_s7 + $0x3d0] sm:$0xff] }
 0x814   : > { %8943 = vmatprep.subr.bf16.mxu1 %v15169_v23 }
 0x816   : > { %8368 = vmatmul.mubr.f32.gmra.mrb[168].mxu1 %v13986_v7  ;;  %v8950_v7 = vpack.c.bf16 %v7709_v63, %v7708_v56 }
 0x817   : > { %8945 = vmatpush1.bf16.msra.mxu1 %v8944_v30  ;;  %8370 = vmatprep.mubr.f32.mxu1 %v13992_v54  ;;  %v7710_v54 = vld [vmem:[%s14963_s7 + $0x370] sm:$0xff] }
 0x818   : > { %8946 = vmatprep.subr.bf16.mxu1 %v15169_v23 }
 0x81a   : > { %8371 = vmatmul.mubr.f32.gmra.mrb[170].mxu1 %v14005_v42  ;;  %v8953_v42 = vpack.c.bf16 %v7711_v22, %v7710_v54  ;;  %v7726_v54 = vld [vmem:[%s14963_s7 + $0x3f0] sm:$0xff]  ;;  %v7727_v22 = vld [vmem:[%s14963_s7 + $0x3f8] sm:$0xff] }
 0x81b   : > { %8948 = vmatpush1.bf16.msra.mxu1 %v8947_v33  ;;  %8373 = vmatprep.mubr.f32.mxu1 %v14011_v58  ;;  %v7712_v58 = vld [vmem:[%s14963_s7 + $0x380] sm:$0xff]  ;;  %v7725_v33 = vld [vmem:[%s14963_s7 + $0x3e8] sm:$0xff] }
 0x81c   : > { %8949 = vmatprep.subr.bf16.mxu1 %v15169_v23 }
 0x81e   : > { %8374 = vmatmul.mubr.f32.gmra.mrb[172].mxu1 %v14018_v49 }
 0x81f   : > { %8951 = vmatpush1.bf16.msra.mxu1 %v8950_v7  ;;  %8376 = vmatprep.mubr.f32.mxu1 %v14024_v32  ;;  %v8956_v32 = vpack.c.bf16 %v7713_v39, %v7712_v58  ;;  %v14307_v39 = vld [vmem:[#allocation3 + $0x198] sm:$0xff] }
 0x820   : > { %8952 = vmatprep.subr.bf16.mxu1 %v15169_v23 }
 0x821   : > { %v14212_v29 = vpop.f32.mrb[68].mxu1  ;;  %v14214_v38 = vpop.f32.mrb[96].mxu0 }
 0x822   : > { %v5646_v6 = vpop.f32.mrb[69].mxu1  ;;  %v6167_v49 = vpop.f32.mrb[97].mxu0  ;;  %8377 = vmatmul.mubr.f32.gmra.mrb[174].mxu1 %v14031_v11 }
 0x823   : > { %8954 = vmatpush1.bf16.msra.mxu1 %v8953_v42  ;;  %8379 = vmatprep.mubr.f32.mxu1 %v14038_v61  ;;  %v8959_v61 = vpack.c.bf16 %v7715_v57, %v7714_v1  ;;  %v8977_v49 = vpack.c.bf16 %v7727_v22, %v7726_v54  ;;  %v14315_v1 = vld [vmem:[#allocation3 + $0x1a8] sm:$0x3] }
 0x824   : > { %8955 = vmatprep.subr.bf16.mxu1 %v15169_v23  ;;  %v9630_v22 = vld [vmem:[#allocation3 + $0x68] sm:$0xff] }
 0x825   : > { %v14225_v25 = vpop.f32.mrb[70].mxu1  ;;  %v14227_v31 = vpop.f32.mrb[98].mxu0 }
 0x826   : > { %v5651_v17 = vpop.f32.mrb[71].mxu1  ;;  %v6172_v11 = vpop.f32.mrb[99].mxu0  ;;  %8380 = vmatmul.mubr.f32.gmra.mrb[176].mxu1 %v14045_v52 }
 0x827   : > { %8957 = vmatpush1.bf16.msra.mxu1 %v8956_v32  ;;  %8382 = vmatprep.mubr.f32.mxu1 %v14051_v0  ;;  %v8962_v0 = vpack.c.bf16 %v7717_v15, %v7716_v44 }
 0x828   : > { %8958 = vmatprep.subr.bf16.mxu1 %v15169_v23 }
 0x829   : > { %v14238_v47 = vpop.f32.mrb[72].mxu1  ;;  %v14240_v62 = vpop.f32.mrb[100].mxu0 }
 0x82a   : > { %v5656_v53 = vpop.f32.mrb[73].mxu1  ;;  %v6177_v52 = vpop.f32.mrb[101].mxu0  ;;  %8383 = vmatmul.mubr.f32.gmra.mrb[178].mxu1 %v14058_v5 }
 0x82b   : > { %8960 = vmatpush1.bf16.msra.mxu1 %v8959_v61  ;;  %8385 = vmatprep.mubr.f32.mxu1 %v14064_v21  ;;  %v8965_v21 = vpack.c.bf16 %v7719_v13, %v7718_v50  ;;  %v9625_v52 = vld [vmem:[#allocation3 + $0x30] sm:$0xff]  ;;  %v9626_v13 = vld [vmem:[#allocation3 + $0x38] sm:$0xff] }
 0x82c   : > { %8961 = vmatprep.subr.bf16.mxu1 %v15169_v23 }
 0x82d   : > { %v14251_v36 = vpop.f32.mrb[74].mxu1  ;;  %v14253_v10 = vpop.f32.mrb[102].mxu0 }
 0x82e   : > { %v5661_v59 = vpop.f32.mrb[75].mxu1  ;;  %v6182_v5 = vpop.f32.mrb[103].mxu0  ;;  %8386 = vmatmul.mubr.f32.gmra.mrb[180].mxu1 %v14071_v4 }
 0x82f   : > { %8963 = vmatpush1.bf16.msra.mxu1 %v8962_v0  ;;  %8388 = vmatprep.mubr.f32.mxu1 %v14077_v16  ;;  %v8968_v16 = vpack.c.bf16 %v7721_v27, %v7720_v37  ;;  %v9627_v37 = vld [vmem:[#allocation3 + $0x48] sm:$0xff]  ;;  %v15339_v27 = vld [vmem:[#allocation25_spill] sm:$0xff] }
 0x830   : > { %8964 = vmatprep.subr.bf16.mxu1 %v15169_v23 }
 0x831   : > { %v14264_v18 = vpop.f32.mrb[76].mxu1  ;;  %v14266_v34 = vpop.f32.mrb[104].mxu0 }
 0x832   : > { %v5666_v20 = vpop.f32.mrb[77].mxu1  ;;  %v6187_v4 = vpop.f32.mrb[105].mxu0  ;;  %8389 = vmatmul.mubr.f32.gmra.mrb[182].mxu1 %v14084_v35 }
 0x833   : > { %8966 = vmatpush1.bf16.msra.mxu1 %v8965_v21  ;;  %8391 = vmatprep.mubr.f32.mxu1 %v14090_v60  ;;  %v8971_v60 = vpack.c.bf16 %v7723_v41, %v7722_v55  ;;  %v9628_v55 = vld [vmem:[#allocation3 + $0x50] sm:$0xff] }
 0x834   : > { %8967 = vmatprep.subr.bf16.mxu1 %v15169_v23  ;;  %v15341_v41 = vld [vmem:[#allocation27_spill] sm:$0xff] }
 0x835   : > { %v14277_v46 = vpop.f32.mrb[78].mxu1  ;;  %v14279_v30 = vpop.f32.mrb[106].mxu0 }
 0x836   : > { %v5671_v28 = vpop.f32.mrb[79].mxu1  ;;  %v6192_v35 = vpop.f32.mrb[107].mxu0  ;;  %8392 = vmatmul.mubr.f32.gmra.mrb[184].mxu1 %v14097_v14 }
 0x837   : > { %8969 = vmatpush1.bf16.msra.mxu1 %v8968_v16  ;;  %8394 = vmatprep.mubr.f32.mxu1 %v14103_v9  ;;  %v8974_v9 = vpack.c.bf16 %v7725_v33, %v7724_v19  ;;  %v9629_v19 = vld [vmem:[#allocation3 + $0x60] sm:$0xff] }
 0x838   : > { %8970 = vmatprep.subr.bf16.mxu1 %v15169_v23  ;;  %v15343_v33 = vld [vmem:[#allocation29_spill] sm:$0xff] }
 0x839   : > { %v14290_v56 = vpop.f32.mrb[80].mxu1  ;;  %v14292_v63 = vpop.f32.mrb[108].mxu0 }
 0x83a   : > { %v5676_v7 = vpop.f32.mrb[81].mxu1  ;;  %v6197_v14 = vpop.f32.mrb[109].mxu0  ;;  %8395 = vmatmul.mubr.f32.gmra.mrb[186].mxu1 %v14110_v43 }
 0x83b   : > { %8972 = vmatpush1.bf16.msra.mxu1 %v8971_v60  ;;  %8397 = vmatprep.mubr.f32.mxu1 %v14116_v24  ;;  %v5440_v24 = vrot.slane %v14307_v39, 2 }
 0x83c   : > { %8973 = vmatprep.subr.bf16.mxu1 %v15169_v23 }
 0x83d   : > { %v14303_v42 = vpop.f32.mrb[82].mxu1  ;;  %v14305_v58 = vpop.f32.mrb[110].mxu0  ;;  %v5442_v32 = vsel %vm860_vm2, %v5440_v24, %v13861_v51 }
 0x83e   : > { %v5681_v43 = vpop.f32.mrb[83].mxu1  ;;  %v6202_v6 = vpop.f32.mrb[111].mxu0  ;;  %8398 = vmatmul.mubr.f32.gmra.mrb[188].mxu1 %v14129_v40  ;;  %8480 = vmatprep.mubr.f32.mxu0 %v5442_v32  ;;  %v5443_v40 = vrot.slane %v14315_v1, 2 }
 0x83f   : > { %8975 = vmatpush1.bf16.msra.mxu1 %v8974_v9  ;;  %8400 = vmatprep.mubr.f32.mxu1 %v14135_v2  ;;  %v15345_v43 = vld [vmem:[#allocation31_spill] sm:$0xff] }
 0x840   : > { %8976 = vmatprep.subr.bf16.mxu1 %v15169_v23  ;;  %v5444_v23 = vsel %vm860_vm2, %v13861_v51, %v5443_v40  ;;  %v9631_v40 = vld [vmem:[#allocation3 + $0x78] sm:$0xff] }
 0x841   : > { %v14317_v57 = vpop.f32.mrb[84].mxu1  ;;  %v14319_v17 = vpop.f32.mrb[112].mxu0  ;;  %8481 = vmatmul.mubr.f32.gmra.mrb[190].mxu0 %v5444_v23 }
 0x842   : > { %v5686_v11 = vpop.f32.mrb[85].mxu1  ;;  %v6207_v61 = vpop.f32.mrb[113].mxu0  ;;  %8401 = vmatmul.mubr.f32.gmra.mrb[190].mxu1 %v14146_v12 }
 0x843   : > { %8978 = vmatpush1.bf16.msra.mxu1 %v8977_v49  ;;  %6694 = vmatprep.mubr.f32.mxu1 %v13426_v48  ;;  %v15347_v11 = vld [vmem:[#allocation33_spill] sm:$0xff] }
 0x845   : > { %v14326_v2 = vpop.f32.mrb[86].mxu1  ;;  %v14328_v44 = vpop.f32.mrb[114].mxu0 }
 0x846   : > { %v5691_v15 = vpop.f32.mrb[87].mxu1  ;;  %v6212_v53 = vpop.f32.mrb[115].mxu0  ;;  %6695 = vmatmul.mubr.f32.vlgmr.msra.gmra.mrb[192].mxu1 %v9625_v52  ;;  %v9632_v52 = vld [vmem:[#allocation3 + $0x80] sm:$0xff] }
 0x847   : > { %6699 = vmatprep.mubr.f32.mxu1 %v13442_v3 }
 0x849   : > { %v14331_v0 = vpop.f32.mrb[88].mxu1  ;;  %v14333_v12 = vpop.f32.mrb[116].mxu0 }
 0x84a   : > { %15338 = vst [vmem:[#allocation74_spill] sm:$0xff] %v14333_v12  ;;  %v5696_v50 = vpop.f32.mrb[89].mxu1  ;;  %v6217_v48 = vpop.f32.mrb[117].mxu0  ;;  %6700 = vmatmul.mubr.f32.gmra.mrb[194].mxu1 %v9626_v13  ;;  %v9647_v12 = vld [vmem:[#allocation3 + $0x138] sm:$0xff] }
 0x84b   : > { %6704 = vmatprep.mubr.f32.mxu1 %v13469_v26  ;;  %v15349_v50 = vld [vmem:[#allocation35_spill] sm:$0xff] }
 0x84d   : > { %v14336_v51 = vpop.f32.mrb[90].mxu1  ;;  %v14338_v59 = vpop.f32.mrb[118].mxu0 }
 0x84e   : > { %v5701_v5 = vpop.f32.mrb[91].mxu1  ;;  %v6222_v21 = vpop.f32.mrb[119].mxu0  ;;  %6705 = vmatmul.mubr.f32.gmra.mrb[196].mxu1 %v9627_v37  ;;  %v9633_v37 = vld [vmem:[#allocation3 + $0x90] sm:$0xff] }
 0x84f   : > { %6709 = vmatprep.mubr.f32.mxu1 %v15339_v27  ;;  %v15351_v27 = vld [vmem:[#allocation37_spill] sm:$0xff] }
 0x851   : > { %v14341_v3 = vpop.f32.mrb[92].mxu1  ;;  %v14343_v20 = vpop.f32.mrb[120].mxu0 }
 0x852   : > { %15340 = vst [vmem:[#allocation25_spill] sm:$0xff] %v14343_v20  ;;  %v5706_v4 = vpop.f32.mrb[93].mxu1  ;;  %v6227_v16 = vpop.f32.mrb[121].mxu0  ;;  %6710 = vmatmul.mubr.f32.gmra.mrb[198].mxu1 %v9628_v55 }
 0x853   : > { %6714 = vmatprep.mubr.f32.mxu1 %v15341_v41 }
 0x855   : > { %v14346_v26 = vpop.f32.mrb[94].mxu1  ;;  %v14348_v28 = vpop.f32.mrb[122].mxu0 }
 0x856   : > { %15342 = vst [vmem:[#allocation27_spill] sm:$0xff] %v14348_v28  ;;  %v5711_v35 = vpop.f32.mrb[95].mxu1  ;;  %v6232_v60 = vpop.f32.mrb[123].mxu0  ;;  %6715 = vmatmul.mubr.f32.gmra.mrb[200].mxu1 %v9629_v19 }
 0x857   : > { %6719 = vmatprep.mubr.f32.mxu1 %v15343_v33  ;;  %v9634_v35 = vld [vmem:[#allocation3 + $0x98] sm:$0xff]  ;;  %v15353_v60 = vld [vmem:[#allocation39_spill] sm:$0xff] }
 0x859   : > { %v14351_v7 = vpop.f32.mrb[96].mxu1  ;;  %v14353_v14 = vpop.f32.mrb[124].mxu0 }
 0x85a   : > { %15344 = vst [vmem:[#allocation29_spill] sm:$0xff] %v14353_v14  ;;  %v5716_v9 = vpop.f32.mrb[97].mxu1  ;;  %v6237_v54 = vpop.f32.mrb[125].mxu0  ;;  %6720 = vmatmul.mubr.f32.gmra.mrb[202].mxu1 %v9630_v22  ;;  %v9635_v22 = vld [vmem:[#allocation3 + $0xa8] sm:$0xff]  ;;  %v15381_v14 = vld [vmem:[#allocation65_spill] sm:$0xff] }
 0x85b   : > { %6724 = vmatprep.mubr.f32.mxu1 %v15345_v43  ;;  %v15355_v43 = vld [vmem:[#allocation41_spill] sm:$0xff] }
 0x85d   : > { %v14356_v6 = vpop.f32.mrb[98].mxu1  ;;  %v14358_v24 = vpop.f32.mrb[126].mxu0 }
 0x85e   : > { %15346 = vst [vmem:[#allocation31_spill] sm:$0xff] %v14358_v24  ;;  %v5721_v49 = vpop.f32.mrb[99].mxu1  ;;  %v6242_v32 = vpop.f32.mrb[127].mxu0  ;;  %6725 = vmatmul.mubr.f32.gmra.mrb[204].mxu1 %v9631_v40 }
 0x85f   : > { %6729 = vmatprep.mubr.f32.mxu1 %v15347_v11 }
 0x861   : > { %v14361_v61 = vpop.f32.mrb[100].mxu1  ;;  %v14363_v23 = vpop.f32.mrb[128].mxu0 }
 0x862   : > { %15348 = vst [vmem:[#allocation33_spill] sm:$0xff] %v14363_v23  ;;  %v5726_v15 = vpop.f32.mrb[101].mxu1  ;;  %v6247_v53 = vpop.f32.mrb[129].mxu0  ;;  %6730 = vmatmul.mubr.f32.gmra.mrb[206].mxu1 %v9632_v52  ;;  %v15380_v23 = vld [vmem:[#allocation60_spill] sm:$0xff] }
 0x863   : > { %6734 = vmatprep.mubr.f32.mxu1 %v15349_v50  ;;  %v9636_v15 = vld [vmem:[#allocation3 + $0xb0] sm:$0xff] }
 0x864   : > { %v15357_v53 = vld [vmem:[#allocation43_spill] sm:$0xff] }
 0x865   : > { %v14366_v48 = vpop.f32.mrb[102].mxu1  ;;  %v14368_v13 = vpop.f32.mrb[130].mxu0 }
 0x866   : > { %15350 = vst [vmem:[#allocation35_spill] sm:$0xff] %v14368_v13  ;;  %v5731_v5 = vpop.f32.mrb[103].mxu1  ;;  %v6252_v21 = vpop.f32.mrb[131].mxu0  ;;  %6735 = vmatmul.mubr.f32.gmra.mrb[208].mxu1 %v9633_v37  ;;  %v9637_v37 = vld [vmem:[#allocation3 + $0xc0] sm:$0xff] }
 0x867   : > { %6739 = vmatprep.mubr.f32.mxu1 %v15351_v27  ;;  %v15359_v27 = vld [vmem:[#allocation45_spill] sm:$0xff] }
 0x869   : > { %v14371_v4 = vpop.f32.mrb[104].mxu1  ;;  %v14373_v16 = vpop.f32.mrb[132].mxu0 }
 0x86a   : > { %15352 = vst [vmem:[#allocation37_spill] sm:$0xff] %v14373_v16  ;;  %v5736_v55 = vpop.f32.mrb[105].mxu1  ;;  %v6257_v41 = vpop.f32.mrb[133].mxu0  ;;  %6740 = vmatmul.mubr.f32.gmra.mrb[210].mxu1 %v9634_v35 }
 0x86b   : > { %6744 = vmatprep.mubr.f32.mxu1 %v15353_v60 }
 0x86d   : > { %v14376_v19 = vpop.f32.mrb[106].mxu1  ;;  %v14378_v33 = vpop.f32.mrb[134].mxu0 }
 0x86e   : > { %15354 = vst [vmem:[#allocation39_spill] sm:$0xff] %v14378_v33  ;;  %v5741_v9 = vpop.f32.mrb[107].mxu1  ;;  %v6262_v54 = vpop.f32.mrb[135].mxu0  ;;  %6745 = vmatmul.mubr.f32.gmra.mrb[212].mxu1 %v9635_v22 }
 0x86f   : > { %6749 = vmatprep.mubr.f32.mxu1 %v15355_v43  ;;  %v9638_v9 = vld [vmem:[#allocation3 + $0xc8] sm:$0xff]  ;;  %v15361_v54 = vld [vmem:[#allocation56_spill] sm:$0xff] }
 0x871   : > { %v14381_v49 = vpop.f32.mrb[108].mxu1  ;;  %v14383_v32 = vpop.f32.mrb[136].mxu0 }
 0x872   : > { %15356 = vst [vmem:[#allocation41_spill] sm:$0xff] %v14383_v32  ;;  %v5746_v40 = vpop.f32.mrb[109].mxu1  ;;  %v6267_v11 = vpop.f32.mrb[137].mxu0  ;;  %6750 = vmatmul.mubr.f32.gmra.mrb[214].mxu1 %v9636_v15  ;;  %v9639_v15 = vld [vmem:[#allocation3 + $0xd8] sm:$0xff] }
 0x873   : > { %6754 = vmatprep.mubr.f32.mxu1 %v15357_v53  ;;  %v15363_v53 = vld [vmem:[#allocation51_spill] sm:$0xff] }
 0x875   : > { %v14386_v52 = vpop.f32.mrb[110].mxu1  ;;  %v14388_v50 = vpop.f32.mrb[138].mxu0 }
 0x876   : > { %15358 = vst [vmem:[#allocation43_spill] sm:$0xff] %v14388_v50  ;;  %v5751_v5 = vpop.f32.mrb[111].mxu1  ;;  %v6272_v21 = vpop.f32.mrb[139].mxu0  ;;  %6755 = vmatmul.mubr.f32.gmra.mrb[216].mxu1 %v9637_v37 }
 0x877   : > { %6759 = vmatprep.mubr.f32.mxu1 %v15359_v27 }
 0x879   : > { %v14391_v55 = vpop.f32.mrb[112].mxu1  ;;  %v14393_v41 = vpop.f32.mrb[140].mxu0 }
 0x87a   : > { %15360 = vst [vmem:[#allocation45_spill] sm:$0xff] %v14393_v41  ;;  %v5756_v35 = vpop.f32.mrb[113].mxu1  ;;  %v6277_v60 = vpop.f32.mrb[141].mxu0  ;;  %6760 = vmatmul.mubr.f32.gmra.mrb[218].mxu1 %v9638_v9  ;;  %v9641_v41 = vld [vmem:[#allocation3 + $0xf0] sm:$0xff] }
 0x87b   : > { %6764 = vmatprep.mubr.f32.mxu1 %v15361_v54  ;;  %v9640_v35 = vld [vmem:[#allocation3 + $0xe0] sm:$0xff]  ;;  %v15365_v60 = vld [vmem:[#allocation48_spill] sm:$0xff] }
 0x87d   : > { %v14396_v22 = vpop.f32.mrb[114].mxu1  ;;  %v14398_v43 = vpop.f32.mrb[142].mxu0 }
 0x87e   : > { %15362 = vst [vmem:[#allocation56_spill] sm:$0xff] %v14398_v43  ;;  %v5761_v40 = vpop.f32.mrb[115].mxu1  ;;  %v6282_v11 = vpop.f32.mrb[143].mxu0  ;;  %6765 = vmatmul.mubr.f32.gmra.mrb[220].mxu1 %v9639_v15  ;;  %v15367_v15 = vld [vmem:[#allocation57_spill] sm:$0xff] }
 0x87f   : > { %6769 = vmatprep.mubr.f32.mxu1 %v15363_v53 }
 0x881   : > { %v14401_v5 = vpop.f32.mrb[116].mxu1  ;;  %v14403_v21 = vpop.f32.mrb[144].mxu0 }
 0x882   : > { %15364 = vst [vmem:[#allocation51_spill] sm:$0xff] %v14403_v21  ;;  %v5766_v37 = vpop.f32.mrb[117].mxu1  ;;  %v6287_v27 = vpop.f32.mrb[145].mxu0  ;;  %6770 = vmatmul.mubr.f32.gmra.mrb[222].mxu1 %v9640_v35  ;;  %v9642_v21 = vld [vmem:[#allocation3 + $0xf8] sm:$0xff]  ;;  %v15369_v35 = vld [vmem:[#allocation58_spill] sm:$0xff] }
 0x883   : > { %6774 = vmatprep.mubr.f32.mxu1 %v15365_v60 }
 0x885   : > { %v14406_v9 = vpop.f32.mrb[118].mxu1  ;;  %v14408_v54 = vpop.f32.mrb[146].mxu0 }
 0x886   : > { %15366 = vst [vmem:[#allocation48_spill] sm:$0xff] %v14408_v54  ;;  %v5771_v40 = vpop.f32.mrb[119].mxu1  ;;  %v6292_v11 = vpop.f32.mrb[147].mxu0  ;;  %6775 = vmatmul.mubr.f32.gmra.mrb[224].mxu1 %v9641_v41  ;;  %v9643_v54 = vld [vmem:[#allocation3 + $0x108] sm:$0xff]  ;;  %v15371_v41 = vld [vmem:[#allocation59_spill] sm:$0xff] }
 0x887   : > { %6779 = vmatprep.mubr.f32.mxu1 %v15367_v15 }
 0x889   : > { %v14411_v53 = vpop.f32.mrb[120].mxu1  ;;  %v14413_v43 = vpop.f32.mrb[148].mxu0 }
 0x88a   : > { %15368 = vst [vmem:[#allocation57_spill] sm:$0xff] %v14413_v43  ;;  %v5776_v37 = vpop.f32.mrb[121].mxu1  ;;  %v6297_v27 = vpop.f32.mrb[149].mxu0  ;;  %6780 = vmatmul.mubr.f32.gmra.mrb[226].mxu1 %v9642_v21  ;;  %v9644_v43 = vld [vmem:[#allocation3 + $0x110] sm:$0xff]  ;;  %v15373_v21 = vld [vmem:[#allocation61_spill] sm:$0xff] }
 0x88b   : > { %6784 = vmatprep.mubr.f32.mxu1 %v15369_v35 }
 0x88d   : > { %v14416_v60 = vpop.f32.mrb[122].mxu1  ;;  %v14418_v32 = vpop.f32.mrb[150].mxu0 }
 0x88e   : > { %15370 = vst [vmem:[#allocation58_spill] sm:$0xff] %v14418_v32  ;;  %v5781_v40 = vpop.f32.mrb[123].mxu1  ;;  %v6302_v11 = vpop.f32.mrb[151].mxu0  ;;  %6785 = vmatmul.mubr.f32.gmra.mrb[228].mxu1 %v9643_v54  ;;  %v9645_v32 = vld [vmem:[#allocation3 + $0x120] sm:$0xff]  ;;  %v15375_v54 = vld [vmem:[#allocation63_spill] sm:$0xff] }
 0x88f   : > { %6789 = vmatprep.mubr.f32.mxu1 %v15371_v41  ;;  %v14434_v41 = vld [vmem:[%s14964_s8] ss:$0 sm:$0xff] }
 0x891   : > { %v14421_v15 = vpop.f32.mrb[124].mxu1  ;;  %v14423_v50 = vpop.f32.mrb[152].mxu0 }
 0x892   : > { %15372 = vst [vmem:[#allocation59_spill] sm:$0xff] %v14423_v50  ;;  %v5786_v37 = vpop.f32.mrb[125].mxu1  ;;  %v6307_v27 = vpop.f32.mrb[153].mxu0  ;;  %6790 = vmatmul.mubr.f32.gmra.mrb[230].mxu1 %v9644_v43  ;;  %v15377_v43 = vld [vmem:[#allocation18_spill] sm:$0xff]  ;;  %v15378_v50 = vld [vmem:[#allocation16_spill] sm:$0xff] }
 0x893   : > { %6794 = vmatprep.mubr.f32.mxu1 %v15373_v21  ;;  %v5489_v21 = vadd.f32 %v15377_v43, %v14434_v41 }
 0x895   : > { %v14426_v35 = vpop.f32.mrb[126].mxu1  ;;  %v14428_v16 = vpop.f32.mrb[154].mxu0 }
 0x896   : > { %15374 = vst [vmem:[#allocation61_spill] sm:$0xff] %v14428_v16  ;;  %v5791_v40 = vpop.f32.mrb[127].mxu1  ;;  %v6312_v11 = vpop.f32.mrb[155].mxu0  ;;  %6795 = vmatmul.mubr.f32.gmra.mrb[232].mxu1 %v9645_v32  ;;  %v15379_v32 = vld [vmem:[#allocation15_spill] sm:$0xff] }
 0x897   : > { %6799 = vmatprep.mubr.f32.mxu1 %v15375_v54  ;;  %v9646_v11 = vld [vmem:[#allocation3 + $0x128] sm:$0xff]  ;;  %v5488_v54 = vadd.f32 %v15379_v32, %v14434_v41 }
 0x899   : > { %v8277_v37 = vpop.f32.mrb[128].mxu1  ;;  %v14436_v27 = vpop.f32.mrb[156].mxu0 }
 0x89a   : > { %15376 = vst [vmem:[#allocation63_spill] sm:$0xff] %v14436_v27  ;;  %v5865_v33 = vadd.f32 %v8277_v37, %v15378_v50  ;;  %v5859_v16 = vpop.f32.mrb[129].mxu1  ;;  %v6317_v40 = vpop.f32.mrb[157].mxu0  ;;  %6800 = vmatmul.mubr.f32.gmra.mrb[234].mxu1 %v9646_v11  ;;  %v15383_v50 = vld [vmem:[#allocation20_spill] sm:$0xff] }
 0x89b   : > { %v5860_v13 = vadd.f32 %v5859_v16, %v15380_v23  ;;  %6804 = vmatprep.mubr.f32.mxu1 %v15381_v14  ;;  %v5491_v37 = vadd.f32 %v15383_v50, %v14434_v41  ;;  %v15384_v23 = vld [vmem:[#allocation17_spill] sm:$0xff] }
 0x89c   : > { %v14445_v24 = vadd.f32 %v5865_v33, %v5489_v21  ;;  %v5490_v16 = vadd.f32 %v15384_v23, %v14434_v41  ;;  %v15385_v33 = vld [vmem:[#allocation67_spill] sm:$0xff] }
 0x89d   : > { %v14447_v20 = vadd.f32 %v5860_v13, %v5488_v54  ;;  %v8280_v27 = vpop.f32.mrb[130].mxu1  ;;  %v14449_v28 = vpop.f32.mrb[158].mxu0 }
 0x89e   : > { %15382 = vst [vmem:[#allocation18_spill] sm:$0xff] %v14449_v28  ;;  %v5875_v43 = vadd.f32 %v8280_v27, %v14225_v25  ;;  %v5869_v40 = vpop.f32.mrb[131].mxu1  ;;  %v6322_v11 = vpop.f32.mrb[159].mxu0  ;;  %6805 = vmatmul.mubr.f32.gmra.mrb[236].mxu1 %v9647_v12  ;;  %v15387_v25 = vld [vmem:[#allocation22_spill] sm:$0xff] }
 0x89f   : > { %v5870_v14 = vadd.f32 %v5869_v40, %v14212_v29  ;;  %6809 = vmatprep.mubr.f32.mxu1 %v15385_v33  ;;  %v5493_v27 = vadd.f32 %v15387_v25, %v14434_v41  ;;  %v9648_v11 = vld [vmem:[#allocation3 + $0x140] sm:$0xff]  ;;  %v15389_v29 = vld [vmem:[#allocation19_spill] sm:$0xff] }
 0x8a0   : > { %v14458_v13 = vadd.f32 %v5875_v43, %v5491_v37  ;;  %v5492_v40 = vadd.f32 %v15389_v29, %v14434_v41  ;;  %v15390_v43 = vld [vmem:[#allocation69_spill] sm:$0xff] }
 0x8a1   : > { %v14460_v21 = vadd.f32 %v5870_v14, %v5490_v16  ;;  %v8283_v32 = vpop.f32.mrb[132].mxu1  ;;  %v14462_v54 = vpop.f32.mrb[160].mxu0 }
 0x8a2   : > { %15386 = vst [vmem:[#allocation16_spill] sm:$0xff] %v14462_v54  ;;  %v5885_v50 = vadd.f32 %v8283_v32, %v14251_v36  ;;  %v5879_v12 = vpop.f32.mrb[133].mxu1  ;;  %6810 = vmatmul.mubr.f32.gmra.mrb[238].mxu1 %v9648_v11  ;;  %v14467_v23 = vpop.f32.mrb[161].mxu0  ;;  %v15392_v36 = vld [vmem:[#allocation24_spill] sm:$0xff] }
 0x8a3   : > { %15388 = vst [vmem:[#allocation15_spill] sm:$0xff] %v14467_v23  ;;  %v5880_v37 = vadd.f32 %v5879_v12, %v14238_v47  ;;  %6814 = vmatprep.mubr.f32.mxu1 %v15390_v43  ;;  %v5495_v32 = vadd.f32 %v15392_v36, %v14434_v41  ;;  %v9649_v23 = vld [vmem:[#allocation3 + $0x150] sm:$0xff]  ;;  %v15394_v47 = vld [vmem:[#allocation21_spill] sm:$0xff] }
 0x8a4   : > { %v14473_v16 = vadd.f32 %v5885_v50, %v5493_v27  ;;  %v5494_v12 = vadd.f32 %v15394_v47, %v14434_v41  ;;  %v15395_v50 = vld [vmem:[#allocation71_spill] sm:$0xff] }
 0x8a5   : > { %v14475_v14 = vadd.f32 %v5880_v37, %v5492_v40  ;;  %v8286_v33 = vpop.f32.mrb[134].mxu1  ;;  %v14477_v25 = vpop.f32.mrb[162].mxu0 }
 0x8a6   : > { %15391 = vst [vmem:[#allocation60_spill] sm:$0xff] %v14477_v25  ;;  %v5895_v11 = vadd.f32 %v8286_v33, %v14277_v46  ;;  %v5889_v54 = vpop.f32.mrb[135].mxu1  ;;  %6815 = vmatmul.mubr.f32.gmra.mrb[240].mxu1 %v9649_v23  ;;  %v14482_v29 = vpop.f32.mrb[163].mxu0  ;;  %v15397_v46 = vld [vmem:[#allocation26_spill] sm:$0xff] }
 0x8a7   : > { %15393 = vst [vmem:[#allocation65_spill] sm:$0xff] %v14482_v29  ;;  %v5890_v27 = vadd.f32 %v5889_v54, %v14264_v18  ;;  %6819 = vmatprep.mubr.f32.mxu1 %v15395_v50  ;;  %v5497_v33 = vadd.f32 %v15397_v46, %v14434_v41  ;;  %v9650_v29 = vld [vmem:[#allocation3 + $0x158] sm:$0xff]  ;;  %v15399_v18 = vld [vmem:[#allocation23_spill] sm:$0xff] }
 0x8a8   : > { %v14488_v40 = vadd.f32 %v5895_v11, %v5495_v32  ;;  %v5496_v54 = vadd.f32 %v15399_v18, %v14434_v41  ;;  %v15400_v11 = vld [vmem:[#allocation72_spill] sm:$0xff] }
 0x8a9   : > { %v14490_v37 = vadd.f32 %v5890_v27, %v5494_v12  ;;  %v8289_v43 = vpop.f32.mrb[136].mxu1  ;;  %v14492_v36 = vpop.f32.mrb[164].mxu0 }
 0x8aa   : > { %15396 = vst [vmem:[#allocation20_spill] sm:$0xff] %v14492_v36  ;;  %v5905_v23 = vadd.f32 %v8289_v43, %v14303_v42  ;;  %v5899_v25 = vpop.f32.mrb[137].mxu1  ;;  %6820 = vmatmul.mubr.f32.gmra.mrb[242].mxu1 %v9650_v29  ;;  %v14497_v47 = vpop.f32.mrb[165].mxu0  ;;  %v15402_v42 = vld [vmem:[#allocation30_spill] sm:$0xff] }
 0x8ab   : > { %15398 = vst [vmem:[#allocation17_spill] sm:$0xff] %v14497_v47  ;;  %v5900_v32 = vadd.f32 %v5899_v25, %v14290_v56  ;;  %6824 = vmatprep.mubr.f32.mxu1 %v15400_v11  ;;  %v5499_v43 = vadd.f32 %v15402_v42, %v14434_v41  ;;  %v9651_v47 = vld [vmem:[#allocation3 + $0x168] sm:$0xff]  ;;  %v15404_v56 = vld [vmem:[#allocation28_spill] sm:$0xff] }
 0x8ac   : > { %v14503_v12 = vadd.f32 %v5905_v23, %v5497_v33  ;;  %v5498_v25 = vadd.f32 %v15404_v56, %v14434_v41  ;;  %v15405_v23 = vld [vmem:[#allocation73_spill] sm:$0xff] }
 0x8ad   : > { %v14505_v27 = vadd.f32 %v5900_v32, %v5496_v54  ;;  %v8292_v50 = vpop.f32.mrb[138].mxu1  ;;  %v14507_v46 = vpop.f32.mrb[166].mxu0 }
 0x8ae   : > { %15401 = vst [vmem:[#allocation67_spill] sm:$0xff] %v14507_v46  ;;  %v5915_v29 = vadd.f32 %v8292_v50, %v14326_v2  ;;  %v5909_v36 = vpop.f32.mrb[139].mxu1  ;;  %6825 = vmatmul.mubr.f32.gmra.mrb[244].mxu1 %v9651_v47  ;;  %v14512_v18 = vpop.f32.mrb[167].mxu0  ;;  %v15407_v2 = vld [vmem:[#allocation34_spill] sm:$0xff] }
 0x8af   : > { %15403 = vst [vmem:[#allocation22_spill] sm:$0xff] %v14512_v18  ;;  %v5910_v33 = vadd.f32 %v5909_v36, %v14317_v57  ;;  %6829 = vmatprep.mubr.f32.mxu1 %v15405_v23  ;;  %v5501_v50 = vadd.f32 %v15407_v2, %v14434_v41  ;;  %v9652_v18 = vld [vmem:[#allocation3 + $0x170] sm:$0xff]  ;;  %v15409_v57 = vld [vmem:[#allocation32_spill] sm:$0xff] }
 0x8b0   : > { %v14518_v54 = vadd.f32 %v5915_v29, %v5499_v43  ;;  %v5500_v36 = vadd.f32 %v15409_v57, %v14434_v41 }
 0x8b1   : > { %v14520_v32 = vadd.f32 %v5910_v33, %v5498_v25  ;;  %v8295_v11 = vpop.f32.mrb[140].mxu1  ;;  %v14522_v42 = vpop.f32.mrb[168].mxu0  ;;  %v5314_v25 = vrot.slane %v14307_v39, 1  ;;  %v9653_v33 = vld [vmem:[#allocation3 + $0x8] sm:$0xff] }
 0x8b2   : > { %15406 = vst [vmem:[#allocation19_spill] sm:$0xff] %v14522_v42  ;;  %v5925_v47 = vadd.f32 %v8295_v11, %v14336_v51  ;;  %v5919_v46 = vpop.f32.mrb[141].mxu1  ;;  %6830 = vmatmul.mubr.f32.gmra.mrb[246].mxu1 %v9652_v18  ;;  %v14527_v56 = vpop.f32.mrb[169].mxu0  ;;  %v5315_v23 = vrot.slane %v9653_v33, 1  ;;  %v15411_v18 = vld [vmem:[#allocation38_spill] sm:$0xff] }
 0x8b3   : > { %15408 = vst [vmem:[#allocation69_spill] sm:$0xff] %v14527_v56  ;;  %v5920_v43 = vadd.f32 %v5919_v46, %v14331_v0  ;;  %6834 = vmatprep.mubr.f32.mxu1 %v13894_v45  ;;  %v5503_v42 = vadd.f32 %v15411_v18, %v14434_v41  ;;  %v9654_v0 = vld [vmem:[#allocation3 + $0x180] sm:$0xff]  ;;  %v15413_v46 = vld [vmem:[#allocation36_spill] sm:$0xff]  ;;  %v5317_v18 = vrot.slane %v14315_v1, 1 }
 0x8b4   : > { %v14533_v29 = vadd.f32 %v5925_v47, %v5501_v50  ;;  %v5502_v50 = vadd.f32 %v15413_v46, %v14434_v41 }
 0x8b5   : > { %v14536_v2 = vadd.f32 %v5920_v43, %v5500_v36  ;;  %v8298_v51 = vpop.f32.mrb[142].mxu1  ;;  %v14538_v11 = vpop.f32.mrb[170].mxu0  ;;  %v5316_v43 = vsel %vm661_vm3, %v5314_v25, %v5315_v23 }
 0x8b6   : > { %15410 = vst [vmem:[#allocation24_spill] sm:$0xff] %v14538_v11  ;;  %v5935_v57 = vadd.f32 %v8298_v51, %v14346_v26  ;;  %v5929_v56 = vpop.f32.mrb[143].mxu1  ;;  %6835 = vmatmul.mubr.f32.gmra.mrb[248].mxu1 %v9654_v0  ;;  %v14543_v45 = vpop.f32.mrb[171].mxu0  ;;  %v15415_v0 = vld [vmem:[#allocation42_spill] sm:$0xff] }
 0x8b7   : > { %15412 = vst [vmem:[#allocation21_spill] sm:$0xff] %v14543_v45  ;;  %v5930_v47 = vadd.f32 %v5929_v56, %v14341_v3  ;;  %6839 = vmatprep.mubr.f32.mxu1 %v13908_v8  ;;  %v5505_v45 = vadd.f32 %v15415_v0, %v14434_v41  ;;  %v9655_v3 = vld [vmem:[#allocation3 + $0x188] sm:$0xff] }
 0x8b8   : > { %v14549_v36 = vadd.f32 %v5935_v57, %v5503_v42  ;;  %v15416_v42 = vld [vmem:[#allocation40_spill] sm:$0xff]  ;;  %v5318_v57 = vsel %vm661_vm3, %v5315_v23, %v5317_v18 }
 0x8b9   : > { %v14553_v11 = vadd.f32 %v5930_v47, %v5502_v50  ;;  %v8301_v26 = vpop.f32.mrb[144].mxu1  ;;  %v14555_v51 = vpop.f32.mrb[172].mxu0  ;;  %v5504_v56 = vadd.f32 %v15416_v42, %v14434_v41 }
 0x8ba   : > { %15414 = vst [vmem:[#allocation71_spill] sm:$0xff] %v14555_v51  ;;  %v5945_v46 = vadd.f32 %v8301_v26, %v14356_v6  ;;  %v5939_v28 = vpop.f32.mrb[145].mxu1  ;;  %6840 = vmatmul.mubr.f32.gmra.mrb[250].mxu1 %v9655_v3  ;;  %v14560_v8 = vpop.f32.mrb[173].mxu0  ;;  %v15417_v6 = vld [vmem:[#allocation46_spill] sm:$0xff] }
 0x8bb   : > { %v5940_v1 = vadd.f32 %v5939_v28, %v14351_v7  ;;  %6844 = vmatprep.mubr.f32.mxu1 %v5316_v43  ;;  %v5507_v26 = vadd.f32 %v15417_v6, %v14434_v41  ;;  %v15418_v28 = vld [vmem:[#allocation44_spill] sm:$0xff]  ;;  %v15420_v6 = vld [vmem:[#allocation55_spill] sm:$0xff] }
 0x8bc   : > { %v14565_v25 = vadd.f32 %v5945_v46, %v5505_v45  ;;  %v5506_v7 = vadd.f32 %v15418_v28, %v14434_v41 }
 0x8bd   : > { %v14568_v50 = vadd.f32 %v5940_v1, %v5504_v56  ;;  %v8304_v47 = vpop.f32.mrb[146].mxu1  ;;  %v14570_v0 = vpop.f32.mrb[174].mxu0 }
 0x8be   : > { %v5955_v3 = vadd.f32 %v8304_v47, %v14366_v48  ;;  %v5949_v51 = vpop.f32.mrb[147].mxu1  ;;  %6845 = vmatmul.mubr.f32.gmra.mrb[252].mxu1 %v14307_v39  ;;  %v14576_v42 = vpop.f32.mrb[175].mxu0  ;;  %v15419_v48 = vld [vmem:[#allocation50_spill] sm:$0xff] }
 0x8bf   : > { %v5950_v23 = vadd.f32 %v5949_v51, %v14361_v61  ;;  %6849 = vmatprep.mubr.f32.mxu1 %v5318_v57  ;;  %v5509_v56 = vadd.f32 %v15419_v48, %v14434_v41  ;;  %v5508_v61 = vadd.f32 %v15420_v6, %v14434_v41  ;;  %v15424_v48 = vld [vmem:[#allocation47_spill] sm:$0xff] }
 0x8c0   : > { %v14581_v45 = vadd.f32 %v5955_v3, %v5507_v26  ;;  %v5510_v6 = vadd.f32 %v15424_v48, %v14434_v41 }
 0x8c1   : > { %v14583_v43 = vadd.f32 %v5950_v23, %v5506_v7  ;;  %v8307_v18 = vpop.f32.mrb[148].mxu1  ;;  %v14585_v46 = vpop.f32.mrb[176].mxu0  ;;  %v15422_v7 = vld [vmem:[#allocation54_spill] sm:$0xff] }
 0x8c2   : > { %v5965_v39 = vadd.f32 %v8307_v18, %v14376_v19  ;;  %v5959_v1 = vpop.f32.mrb[149].mxu1  ;;  %6850 = vmatmul.mubr.f32.gmra.mrb[254].mxu1 %v9653_v33  ;;  %v14590_v47 = vpop.f32.mrb[177].mxu0  ;;  %v5511_v23 = vadd.f32 %v15422_v7, %v14434_v41 }
 0x8c3   : > { %v5960_v51 = vadd.f32 %v5959_v1, %v14371_v4 }
 0x8c4   : > { %v14595_v57 = vadd.f32 %v5965_v39, %v5509_v56 }
 0x8c5   : > { %v14597_v26 = vadd.f32 %v5960_v51, %v5508_v61  ;;  %v8310_v3 = vpop.f32.mrb[150].mxu1  ;;  %v14599_v28 = vpop.f32.mrb[178].mxu0  ;;  %v15426_v51 = vld [vmem:[#allocation53_spill] sm:$0xff] }
 0x8c6   : > { %15421 = vst [vmem:[#allocation26_spill] sm:$0xff] %v14599_v28  ;;  %v5975_v19 = vadd.f32 %v8310_v3, %v14386_v52  ;;  %v5969_v33 = vpop.f32.mrb[151].mxu1  ;;  %v14604_v18 = vpop.f32.mrb[179].mxu0  ;;  %v5513_v7 = vadd.f32 %v15426_v51, %v14434_v41 }
 0x8c7   : > { %15423 = vst [vmem:[#allocation23_spill] sm:$0xff] %v14604_v18  ;;  %v5970_v4 = vadd.f32 %v5969_v33, %v14381_v49  ;;  %v15428_v18 = vld [vmem:[#allocation52_spill] sm:$0xff] }
 0x8c8   : > { %v14609_v56 = vadd.f32 %v5975_v19, %v5511_v23  ;;  %v5512_v48 = vadd.f32 %v15428_v18, %v14434_v41 }
 0x8c9   : > { %v14611_v39 = vadd.f32 %v5970_v4, %v5510_v6  ;;  %v8313_v1 = vpop.f32.mrb[152].mxu1  ;;  %v14613_v61 = vpop.f32.mrb[180].mxu0  ;;  %v15430_v4 = vld [vmem:[#allocation62_spill] sm:$0xff] }
 0x8ca   : > { %15425 = vst [vmem:[#allocation72_spill] sm:$0xff] %v14613_v61  ;;  %v5985_v52 = vadd.f32 %v8313_v1, %v14396_v22  ;;  %v5979_v3 = vpop.f32.mrb[153].mxu1  ;;  %v14618_v28 = vpop.f32.mrb[181].mxu0  ;;  %v5515_v51 = vadd.f32 %v15430_v4, %v14434_v41 }
 0x8cb   : > { %15427 = vst [vmem:[#allocation30_spill] sm:$0xff] %v14618_v28  ;;  %v5980_v49 = vadd.f32 %v5979_v3, %v14391_v55  ;;  %v15432_v28 = vld [vmem:[#allocation49_spill] sm:$0xff] }
 0x8cc   : > { %v14623_v23 = vadd.f32 %v5985_v52, %v5513_v7  ;;  %v5514_v18 = vadd.f32 %v15432_v28, %v14434_v41 }
 0x8cd   : > { %v14625_v19 = vadd.f32 %v5980_v49, %v5512_v48  ;;  %v8316_v33 = vpop.f32.mrb[154].mxu1  ;;  %v14627_v6 = vpop.f32.mrb[182].mxu0  ;;  %v15434_v49 = vld [vmem:[#allocation66_spill] sm:$0xff] }
 0x8ce   : > { %15429 = vst [vmem:[#allocation28_spill] sm:$0xff] %v14627_v6  ;;  %v5995_v22 = vadd.f32 %v8316_v33, %v14406_v9  ;;  %v5989_v1 = vpop.f32.mrb[155].mxu1  ;;  %v14632_v61 = vpop.f32.mrb[183].mxu0  ;;  %v5517_v4 = vadd.f32 %v15434_v49, %v14434_v41 }
 0x8cf   : > { %15431 = vst [vmem:[#allocation73_spill] sm:$0xff] %v14632_v61  ;;  %v5990_v55 = vadd.f32 %v5989_v1, %v14401_v5  ;;  %v15436_v61 = vld [vmem:[#allocation64_spill] sm:$0xff] }
 0x8d0   : > { %v14637_v7 = vadd.f32 %v5995_v22, %v5515_v51  ;;  %v5516_v28 = vadd.f32 %v15436_v61, %v14434_v41 }
 0x8d1   : > { %v14639_v52 = vadd.f32 %v5990_v55, %v5514_v18  ;;  %v8319_v3 = vpop.f32.mrb[156].mxu1  ;;  %v14641_v48 = vpop.f32.mrb[184].mxu0  ;;  %v15438_v55 = vld [vmem:[#allocation70_spill] sm:$0xff] }
 0x8d2   : > { %15433 = vst [vmem:[#allocation34_spill] sm:$0xff] %v14641_v48  ;;  %v6005_v9 = vadd.f32 %v8319_v3, %v14416_v60  ;;  %v5999_v33 = vpop.f32.mrb[157].mxu1  ;;  %v14646_v6 = vpop.f32.mrb[185].mxu0  ;;  %v5519_v49 = vadd.f32 %v15438_v55, %v14434_v41 }
 0x8d3   : > { %15435 = vst [vmem:[#allocation32_spill] sm:$0xff] %v14646_v6  ;;  %v6000_v5 = vadd.f32 %v5999_v33, %v14411_v53  ;;  %v15439_v6 = vld [vmem:[#allocation68_spill] sm:$0xff] }
 0x8d4   : > { %v14651_v51 = vadd.f32 %v6005_v9, %v5517_v4  ;;  %v5518_v61 = vadd.f32 %v15439_v6, %v14434_v41 }
 0x8d5   : > { %v14653_v22 = vadd.f32 %v6000_v5, %v5516_v28  ;;  %v8322_v1 = vpop.f32.mrb[158].mxu1  ;;  %v14655_v18 = vpop.f32.mrb[186].mxu0 }
 0x8d6   : > { %15437 = vst [vmem:[#allocation38_spill] sm:$0xff] %v14655_v18  ;;  %v6015_v60 = vadd.f32 %v8322_v1, %v14426_v35  ;;  %v6009_v3 = vpop.f32.mrb[159].mxu1  ;;  %v14660_v48 = vpop.f32.mrb[187].mxu0 }
 0x8d7   : > { %v6010_v53 = vadd.f32 %v6009_v3, %v14421_v15 }
 0x8d8   : > { %v14665_v4 = vadd.f32 %v6015_v60, %v5519_v49 }
 0x8d9   : > { %v14667_v9 = vadd.f32 %v6010_v53, %v5518_v61  ;;  %v8357_v33 = vpop.f32.mrb[160].mxu1  ;;  %v14669_v28 = vpop.f32.mrb[188].mxu0 }
 0x8da   : > { %v6396_v5 = vadd.f32 %v8357_v33, %v14227_v31  ;;  %v6390_v55 = vpop.f32.mrb[161].mxu1  ;;  %v14672_v18 = vpop.f32.mrb[189].mxu0 }
 0x8db   : > { %v6391_v35 = vadd.f32 %v6390_v55, %v14214_v38 }
 0x8dc   : > { %v14676_v1 = vadd.f32 %v6396_v5, %v14445_v24 }
 0x8dd   : > { %v14679_v41 = vadd.f32 %v6391_v35, %v14447_v20  ;;  %v8360_v15 = vpop.f32.mrb[162].mxu1 }
 0x8de   : > { %v6406_v6 = vadd.f32 %v8360_v15, %v14253_v10  ;;  %v6400_v49 = vpop.f32.mrb[163].mxu1 }
 0x8df   : > { %v6401_v60 = vadd.f32 %v6400_v49, %v14240_v62 }
 0x8e0   : > { %v14684_v3 = vadd.f32 %v6406_v6, %v14458_v13  ;;  %v15440_v6 = vld [vmem:[#allocation74_spill] sm:$0xff] }
 0x8e1   : > { %v14687_v31 = vadd.f32 %v6401_v60, %v14460_v21  ;;  %v8363_v61 = vpop.f32.mrb[164].mxu1 }
 0x8e2   : > { %v6416_v38 = vadd.f32 %v8363_v61, %v14279_v30  ;;  %v6410_v24 = vpop.f32.mrb[165].mxu1 }
 0x8e3   : > { %v6411_v53 = vadd.f32 %v6410_v24, %v14266_v34 }
 0x8e4   : > { %v14692_v20 = vadd.f32 %v6416_v38, %v14473_v16  ;;  %v15442_v38 = vld [vmem:[#allocation25_spill] sm:$0xff] }
 0x8e5   : > { %v14695_v10 = vadd.f32 %v6411_v53, %v14475_v14  ;;  %v8366_v33 = vpop.f32.mrb[166].mxu1 }
 0x8e6   : > { %v6426_v62 = vadd.f32 %v8366_v33, %v14305_v58  ;;  %v6420_v13 = vpop.f32.mrb[167].mxu1  ;;  %v15443_v33 = vld [vmem:[#allocation31_spill] sm:$0xff] }
 0x8e7   : > { %v6421_v5 = vadd.f32 %v6420_v13, %v14292_v63  ;;  %v15444_v13 = vld [vmem:[#allocation29_spill] sm:$0xff] }
 0x8e8   : > { %v14700_v21 = vadd.f32 %v6426_v62, %v14488_v40 }
 0x8e9   : > { %v14703_v30 = vadd.f32 %v6421_v5, %v14490_v37  ;;  %v8369_v55 = vpop.f32.mrb[168].mxu1 }
 0x8ea   : > { %v6436_v34 = vadd.f32 %v8369_v55, %v14328_v44  ;;  %v6430_v16 = vpop.f32.mrb[169].mxu1 }
 0x8eb   : > { %v6431_v35 = vadd.f32 %v6430_v16, %v14319_v17  ;;  %v15441_v17 = vld [vmem:[#allocation27_spill] sm:$0xff] }
 0x8ec   : > { %v14708_v14 = vadd.f32 %v6436_v34, %v14503_v12  ;;  %v15445_v16 = vld [vmem:[#allocation35_spill] sm:$0xff] }
 0x8ed   : > { %v14711_v58 = vadd.f32 %v6431_v35, %v14505_v27  ;;  %v8372_v15 = vpop.f32.mrb[170].mxu1 }
 0x8ee   : > { %v6446_v63 = vadd.f32 %v8372_v15, %v14338_v59  ;;  %v6440_v40 = vpop.f32.mrb[171].mxu1  ;;  %v15446_v15 = vld [vmem:[#allocation33_spill] sm:$0xff] }
 0x8ef   : > { %v6441_v49 = vadd.f32 %v6440_v40, %v15440_v6 }
 0x8f0   : > { %v14716_v37 = vadd.f32 %v6446_v63, %v14518_v54 }
 0x8f1   : > { %v14719_v44 = vadd.f32 %v6441_v49, %v14520_v32  ;;  %v8375_v60 = vpop.f32.mrb[172].mxu1  ;;  %v15447_v49 = vld [vmem:[#allocation39_spill] sm:$0xff] }
 0x8f2   : > { %v6456_v61 = vadd.f32 %v8375_v60, %v15441_v17  ;;  %v6450_v12 = vpop.f32.mrb[173].mxu1  ;;  %v15448_v17 = vld [vmem:[#allocation37_spill] sm:$0xff] }
 0x8f3   : > { %v6451_v24 = vadd.f32 %v6450_v12, %v15442_v38 }
 0x8f4   : > { %v14724_v27 = vadd.f32 %v6456_v61, %v14533_v29 }
 0x8f5   : > { %v14727_v59 = vadd.f32 %v6451_v24, %v14536_v2  ;;  %v8378_v53 = vpop.f32.mrb[174].mxu1  ;;  %v15449_v24 = vld [vmem:[#allocation43_spill] sm:$0xff] }
 0x8f6   : > { %v6466_v62 = vadd.f32 %v8378_v53, %v15443_v33  ;;  %v6460_v54 = vpop.f32.mrb[175].mxu1  ;;  %v15450_v33 = vld [vmem:[#allocation41_spill] sm:$0xff] }
 0x8f7   : > { %v6461_v5 = vadd.f32 %v6460_v54, %v15444_v13 }
 0x8f8   : > { %v14732_v32 = vadd.f32 %v6466_v62, %v14549_v36 }
 0x8f9   : > { %v14735_v55 = vadd.f32 %v6461_v5, %v14553_v11  ;;  %v8381_v34 = vpop.f32.mrb[176].mxu1  ;;  %v15451_v5 = vld [vmem:[#allocation56_spill] sm:$0xff] }
 0x8fa   : > { %v6476_v35 = vadd.f32 %v8381_v34, %v15445_v16  ;;  %v6470_v29 = vpop.f32.mrb[177].mxu1  ;;  %v15452_v16 = vld [vmem:[#allocation45_spill] sm:$0xff] }
 0x8fb   : > { %v6471_v63 = vadd.f32 %v6470_v29, %v15446_v15 }
 0x8fc   : > { %v14740_v2 = vadd.f32 %v6476_v35, %v14565_v25 }
 0x8fd   : > { %v14743_v40 = vadd.f32 %v6471_v63, %v14568_v50  ;;  %v8384_v6 = vpop.f32.mrb[178].mxu1  ;;  %v15453_v63 = vld [vmem:[#allocation48_spill] sm:$0xff] }
 0x8fe   : > { %v6486_v60 = vadd.f32 %v8384_v6, %v15447_v49  ;;  %v6480_v36 = vpop.f32.mrb[179].mxu1  ;;  %v15454_v49 = vld [vmem:[#allocation51_spill] sm:$0xff] }
 0x8ff   : > { %v6481_v61 = vadd.f32 %v6480_v36, %v15448_v17 }
 0x900   : > { %v14748_v11 = vadd.f32 %v6486_v60, %v14581_v45 }
 0x901   : > { %v14751_v12 = vadd.f32 %v6481_v61, %v14583_v43  ;;  %v8387_v38 = vpop.f32.mrb[180].mxu1  ;;  %v15455_v61 = vld [vmem:[#allocation58_spill] sm:$0xff] }
 0x902   : > { %v6496_v53 = vadd.f32 %v8387_v38, %v15449_v24  ;;  %v6490_v25 = vpop.f32.mrb[181].mxu1  ;;  %v15456_v24 = vld [vmem:[#allocation57_spill] sm:$0xff] }
 0x903   : > { %v6491_v62 = vadd.f32 %v6490_v25, %v15450_v33 }
 0x904   : > { %v14756_v50 = vadd.f32 %v6496_v53, %v14595_v57 }
 0x905   : > { %v14759_v54 = vadd.f32 %v6491_v62, %v14597_v26  ;;  %v8390_v13 = vpop.f32.mrb[182].mxu1  ;;  %v15457_v62 = vld [vmem:[#allocation61_spill] sm:$0xff] }
 0x906   : > { %v6506_v34 = vadd.f32 %v8390_v13, %v15451_v5  ;;  %v6500_v45 = vpop.f32.mrb[183].mxu1  ;;  %v15458_v5 = vld [vmem:[#allocation59_spill] sm:$0xff] }
 0x907   : > { %v6501_v35 = vadd.f32 %v6500_v45, %v15452_v16 }
 0x908   : > { %v14764_v43 = vadd.f32 %v6506_v34, %v14609_v56 }
 0x909   : > { %v14767_v29 = vadd.f32 %v6501_v35, %v14611_v39  ;;  %v8393_v15 = vpop.f32.mrb[184].mxu1  ;;  %v15459_v35 = vld [vmem:[#allocation18_spill] sm:$0xff] }
 0x90a   : > { %v6516_v6 = vadd.f32 %v8393_v15, %v15453_v63  ;;  %v6510_v57 = vpop.f32.mrb[185].mxu1  ;;  %v15460_v63 = vld [vmem:[#allocation63_spill] sm:$0xff] }
 0x90b   : > { %v6511_v60 = vadd.f32 %v6510_v57, %v15454_v49 }
 0x90c   : > { %v14772_v26 = vadd.f32 %v6516_v6, %v14623_v23 }
 0x90d   : > { %v14775_v36 = vadd.f32 %v6511_v60, %v14625_v19  ;;  %v8396_v17 = vpop.f32.mrb[186].mxu1 }
 0x90e   : > { %v6526_v38 = vadd.f32 %v8396_v17, %v15455_v61  ;;  %v6520_v56 = vpop.f32.mrb[187].mxu1  ;;  %v15461_v17 = vld [vmem:[#allocation15_spill] sm:$0xff] }
 0x90f   : > { %v6521_v53 = vadd.f32 %v6520_v56, %v15456_v24 }
 0x910   : > { %v14780_v39 = vadd.f32 %v6526_v38, %v14637_v7 }
 0x911   : > { %v14783_v25 = vadd.f32 %v6521_v53, %v14639_v52  ;;  %v8399_v33 = vpop.f32.mrb[188].mxu1 }
 0x912   : > { %v6536_v13 = vadd.f32 %v8399_v33, %v15457_v62  ;;  %v6530_v23 = vpop.f32.mrb[189].mxu1  ;;  %v15463_v62 = vld [vmem:[#allocation65_spill] sm:$0xff] }
 0x913   : > { %v6531_v34 = vadd.f32 %v6530_v23, %v15458_v5 }
 0x914   : > { %v14788_v19 = vadd.f32 %v6536_v13, %v14651_v51  ;;  %v14795_v6 = vpop.f32.mrb[190].mxu0 }
 0x915   : > { %v14791_v45 = vadd.f32 %v6531_v34, %v14653_v22  ;;  %v8402_v16 = vpop.f32.mrb[190].mxu1  ;;  %v14800_v49 = vpop.f32.mrb[191].mxu0  ;;  %v15464_v34 = vld [vmem:[#allocation60_spill] sm:$0xff] }
 0x916   : > { %v6546_v7 = vadd.f32 %v8402_v16, %v15459_v35  ;;  %v6540_v15 = vpop.f32.mrb[191].mxu1 }
 0x917   : > { %v6541_v52 = vadd.f32 %v6540_v15, %v15460_v63 }
 0x918   : > { %v14798_v57 = vadd.f32 %v6546_v7, %v14665_v4  ;;  %v15462_v4 = vld [vmem:[#allocation16_spill] sm:$0xff] }
 0x919   : > { %v14803_v60 = vadd.f32 %v6541_v52, %v14667_v9  ;;  %v6696_v51 = vpop.f32.mrb[192].mxu1 }
 0x91a   : > { %v6922_v22 = vadd.f32 %v15461_v17, %v6696_v51  ;;  %v6698_v61 = vpop.f32.mrb[193].mxu1 }
 0x91c   : > { %v7080_v38 = vadd.f32 %v6922_v22, %v14679_v41 }
 0x91d   : > { %v6701_v56 = vpop.f32.mrb[194].mxu1 }
 0x91e   : > { %7112 = vst [vmem:[%s14809_s20] sm:$0xff] %v7080_v38  ;;  %v6927_v24 = vadd.f32 %v15462_v4, %v6701_v56  ;;  %v6703_v53 = vpop.f32.mrb[195].mxu1 }
 0x920   : > { %v7081_v9 = vadd.f32 %v6927_v24, %v14676_v1  ;;  %v15465_v1 = vld [vmem:[#allocation17_spill] sm:$0xff] }
 0x921   : > { %v6706_v33 = vpop.f32.mrb[196].mxu1 }
 0x922   : > { %7113 = vst [vmem:[%s14809_s20 + $0x8] sm:$0xff] %v7081_v9  ;;  %v6932_v13 = vadd.f32 %v15463_v62, %v6706_v33  ;;  %v6708_v41 = vpop.f32.mrb[197].mxu1 }
 0x924   : > { %v7082_v23 = vadd.f32 %v6932_v13, %v14687_v31  ;;  %v15466_v31 = vld [vmem:[#allocation20_spill] sm:$0xff] }
 0x925   : > { %v6711_v5 = vpop.f32.mrb[198].mxu1 }
 0x926   : > { %7114 = vst [vmem:[%s14809_s20 + $0x10] sm:$0xff] %v7082_v23  ;;  %v6937_v16 = vadd.f32 %v15464_v34, %v6711_v5  ;;  %v6713_v35 = vpop.f32.mrb[199].mxu1 }
 0x928   : > { %v7083_v7 = vadd.f32 %v6937_v16, %v14684_v3  ;;  %v15467_v3 = vld [vmem:[#allocation22_spill] sm:$0xff] }
 0x929   : > { %v6716_v15 = vpop.f32.mrb[200].mxu1 }
 0x92a   : > { %7115 = vst [vmem:[%s14809_s20 + $0x18] sm:$0xff] %v7083_v7  ;;  %v6942_v63 = vadd.f32 %v15465_v1, %v6716_v15  ;;  %v6718_v52 = vpop.f32.mrb[201].mxu1 }
 0x92c   : > { %v7084_v51 = vadd.f32 %v6942_v63, %v14695_v10  ;;  %v15468_v10 = vld [vmem:[#allocation67_spill] sm:$0xff] }
 0x92d   : > { %v6721_v17 = vpop.f32.mrb[202].mxu1 }
 0x92e   : > { %7116 = vst [vmem:[%s14809_s20 + $0x20] sm:$0xff] %v7084_v51  ;;  %v6947_v22 = vadd.f32 %v15466_v31, %v6721_v17  ;;  %v6723_v61 = vpop.f32.mrb[203].mxu1 }
 0x930   : > { %v7085_v38 = vadd.f32 %v6947_v22, %v14692_v20  ;;  %v15469_v20 = vld [vmem:[#allocation69_spill] sm:$0xff] }
 0x931   : > { %v6726_v56 = vpop.f32.mrb[204].mxu1 }
 0x932   : > { %7117 = vst [vmem:[%s14809_s20 + $0x28] sm:$0xff] %v7085_v38  ;;  %v6952_v4 = vadd.f32 %v15467_v3, %v6726_v56  ;;  %v6728_v24 = vpop.f32.mrb[205].mxu1 }
 0x934   : > { %v7086_v53 = vadd.f32 %v6952_v4, %v14703_v30  ;;  %v15470_v30 = vld [vmem:[#allocation19_spill] sm:$0xff] }
 0x935   : > { %v6731_v9 = vpop.f32.mrb[206].mxu1 }
 0x936   : > { %7118 = vst [vmem:[%s14809_s20 + $0x30] sm:$0xff] %v7086_v53  ;;  %v6957_v33 = vadd.f32 %v15468_v10, %v6731_v9  ;;  %v6733_v62 = vpop.f32.mrb[207].mxu1 }
 0x938   : > { %v7087_v13 = vadd.f32 %v6957_v33, %v14700_v21  ;;  %v15471_v21 = vld [vmem:[#allocation21_spill] sm:$0xff] }
 0x939   : > { %v6736_v41 = vpop.f32.mrb[208].mxu1 }
 0x93a   : > { %7119 = vst [vmem:[%s14809_s20 + $0x38] sm:$0xff] %v7087_v13  ;;  %v6962_v23 = vadd.f32 %v15469_v20, %v6736_v41  ;;  %v6738_v5 = vpop.f32.mrb[209].mxu1 }
 0x93c   : > { %v7088_v34 = vadd.f32 %v6962_v23, %v14711_v58  ;;  %v15472_v58 = vld [vmem:[#allocation24_spill] sm:$0xff] }
 0x93d   : > { %v6741_v16 = vpop.f32.mrb[210].mxu1 }
 0x93e   : > { %7120 = vst [vmem:[%s14809_s20 + $0x40] sm:$0xff] %v7088_v34  ;;  %v6967_v35 = vadd.f32 %v15470_v30, %v6741_v16  ;;  %v6743_v7 = vpop.f32.mrb[211].mxu1 }
 0x940   : > { %v7089_v15 = vadd.f32 %v6967_v35, %v14708_v14 }
 0x941   : > { %v6746_v1 = vpop.f32.mrb[212].mxu1 }
 0x942   : > { %7121 = vst [vmem:[%s14809_s20 + $0x48] sm:$0xff] %v7089_v15  ;;  %v6972_v63 = vadd.f32 %v15471_v21, %v6746_v1  ;;  %v6748_v52 = vpop.f32.mrb[213].mxu1 }
 0x944   : > { %v7090_v51 = vadd.f32 %v6972_v63, %v14719_v44  ;;  %v15473_v44 = vld [vmem:[#allocation71_spill] sm:$0xff] }
 0x945   : > { %v6751_v17 = vpop.f32.mrb[214].mxu1 }
 0x946   : > { %7122 = vst [vmem:[%s14809_s20 + $0x50] sm:$0xff] %v7090_v51  ;;  %v6977_v31 = vadd.f32 %v15472_v58, %v6751_v17  ;;  %v6753_v22 = vpop.f32.mrb[215].mxu1 }
 0x948   : > { %v7091_v61 = vadd.f32 %v6977_v31, %v14716_v37 }
 0x949   : > { %v6756_v38 = vpop.f32.mrb[216].mxu1 }
 0x94a   : > { %7123 = vst [vmem:[%s14809_s20 + $0x58] sm:$0xff] %v7091_v61  ;;  %v6982_v14 = vadd.f32 %v14560_v8, %v6756_v38  ;;  %v6758_v56 = vpop.f32.mrb[217].mxu1 }
 0x94c   : > { %v7092_v3 = vadd.f32 %v6982_v14, %v14727_v59 }
 0x94d   : > { %v6761_v4 = vpop.f32.mrb[218].mxu1 }
 0x94e   : > { %7124 = vst [vmem:[%s14809_s20 + $0x60] sm:$0xff] %v7092_v3  ;;  %v6987_v24 = vadd.f32 %v15473_v44, %v6761_v4  ;;  %v6763_v53 = vpop.f32.mrb[219].mxu1 }
 0x950   : > { %v7093_v9 = vadd.f32 %v6987_v24, %v14724_v27 }
 0x951   : > { %v6766_v10 = vpop.f32.mrb[220].mxu1 }
 0x952   : > { %7125 = vst [vmem:[%s14809_s20 + $0x68] sm:$0xff] %v7093_v9  ;;  %v6992_v37 = vadd.f32 %v14576_v42, %v6766_v10  ;;  %v6768_v33 = vpop.f32.mrb[221].mxu1 }
 0x954   : > { %v7094_v62 = vadd.f32 %v6992_v37, %v14735_v55 }
 0x955   : > { %v6771_v8 = vpop.f32.mrb[222].mxu1 }
 0x956   : > { %7126 = vst [vmem:[%s14809_s20 + $0x70] sm:$0xff] %v7094_v62  ;;  %v6997_v59 = vadd.f32 %v14570_v0, %v6771_v8  ;;  %v6773_v13 = vpop.f32.mrb[223].mxu1 }
 0x958   : > { %v7095_v41 = vadd.f32 %v6997_v59, %v14732_v32  ;;  %v15474_v32 = vld [vmem:[#allocation23_spill] sm:$0xff] }
 0x959   : > { %v6776_v20 = vpop.f32.mrb[224].mxu1 }
 0x95a   : > { %7127 = vst [vmem:[%s14809_s20 + $0x78] sm:$0xff] %v7095_v41  ;;  %v7002_v27 = vadd.f32 %v14590_v47, %v6776_v20  ;;  %v6778_v23 = vpop.f32.mrb[225].mxu1 }
 0x95c   : > { %v7096_v5 = vadd.f32 %v7002_v27, %v14743_v40  ;;  %v15475_v40 = vld [vmem:[#allocation26_spill] sm:$0xff] }
 0x95d   : > { %v6781_v42 = vpop.f32.mrb[226].mxu1 }
 0x95e   : > { %7128 = vst [vmem:[%s14809_s20 + $0x80] sm:$0xff] %v7096_v5  ;;  %v7007_v55 = vadd.f32 %v14585_v46, %v6781_v42  ;;  %v6783_v34 = vpop.f32.mrb[227].mxu1 }
 0x960   : > { %v7097_v16 = vadd.f32 %v7007_v55, %v14740_v2  ;;  %v15476_v2 = vld [vmem:[#allocation30_spill] sm:$0xff] }
 0x961   : > { %v6786_v0 = vpop.f32.mrb[228].mxu1 }
 0x962   : > { %7129 = vst [vmem:[%s14809_s20 + $0x88] sm:$0xff] %v7097_v16  ;;  %v7012_v30 = vadd.f32 %v15474_v32, %v6786_v0  ;;  %v6788_v35 = vpop.f32.mrb[229].mxu1 }
 0x964   : > { %v7098_v7 = vadd.f32 %v7012_v30, %v14751_v12  ;;  %v15477_v12 = vld [vmem:[#allocation72_spill] sm:$0xff] }
 0x965   : > { %v6791_v47 = vpop.f32.mrb[230].mxu1 }
 0x966   : > { %7130 = vst [vmem:[%s14809_s20 + $0x90] sm:$0xff] %v7098_v7  ;;  %v7017_v15 = vadd.f32 %v15475_v40, %v6791_v47  ;;  %v6793_v1 = vpop.f32.mrb[231].mxu1 }
 0x968   : > { %v7099_v21 = vadd.f32 %v7017_v15, %v14748_v11  ;;  %v15478_v11 = vld [vmem:[#allocation73_spill] sm:$0xff] }
 0x969   : > { %v6796_v46 = vpop.f32.mrb[232].mxu1 }
 0x96a   : > { %7131 = vst [vmem:[%s14809_s20 + $0x98] sm:$0xff] %v7099_v21  ;;  %v7022_v63 = vadd.f32 %v15476_v2, %v6796_v46  ;;  %v6798_v52 = vpop.f32.mrb[233].mxu1 }
 0x96c   : > { %v7100_v51 = vadd.f32 %v7022_v63, %v14759_v54  ;;  %v15479_v54 = vld [vmem:[#allocation28_spill] sm:$0xff] }
 0x96d   : > { %v6801_v17 = vpop.f32.mrb[234].mxu1 }
 0x96e   : > { %7132 = vst [vmem:[%s14809_s20 + $0xa0] sm:$0xff] %v7100_v51  ;;  %v7027_v58 = vadd.f32 %v15477_v12, %v6801_v17  ;;  %v6803_v31 = vpop.f32.mrb[235].mxu1 }
 0x970   : > { %v7101_v22 = vadd.f32 %v7027_v58, %v14756_v50  ;;  %v15480_v50 = vld [vmem:[#allocation32_spill] sm:$0xff] }
 0x971   : > { %v6806_v61 = vpop.f32.mrb[236].mxu1 }
 0x972   : > { %7133 = vst [vmem:[%s14809_s20 + $0xa8] sm:$0xff] %v7101_v22  ;;  %v7032_v38 = vadd.f32 %v15478_v11, %v6806_v61  ;;  %v6808_v14 = vpop.f32.mrb[237].mxu1 }
 0x974   : > { %v7102_v56 = vadd.f32 %v7032_v38, %v14767_v29  ;;  %v15481_v29 = vld [vmem:[#allocation34_spill] sm:$0xff] }
 0x975   : > { %v6811_v3 = vpop.f32.mrb[238].mxu1 }
 0x976   : > { %7134 = vst [vmem:[%s14809_s20 + $0xb0] sm:$0xff] %v7102_v56  ;;  %v7037_v4 = vadd.f32 %v15479_v54, %v6811_v3  ;;  %v6813_v44 = vpop.f32.mrb[239].mxu1 }
 0x978   : > { %v7103_v24 = vadd.f32 %v7037_v4, %v14764_v43 }
 0x979   : > { %v6816_v53 = vpop.f32.mrb[240].mxu1 }
 0x97a   : > { %7135 = vst [vmem:[%s14809_s20 + $0xb8] sm:$0xff] %v7103_v24  ;;  %v7042_v9 = vadd.f32 %v15480_v50, %v6816_v53  ;;  %v6818_v10 = vpop.f32.mrb[241].mxu1 }
 0x97c   : > { %v7104_v37 = vadd.f32 %v7042_v9, %v14775_v36  ;;  %v15482_v36 = vld [vmem:[#allocation38_spill] sm:$0xff] }
 0x97d   : > { %v6821_v33 = vpop.f32.mrb[242].mxu1 }
 0x97e   : > { %7136 = vst [vmem:[%s14809_s20 + $0xc0] sm:$0xff] %v7104_v37  ;;  %v7047_v62 = vadd.f32 %v15481_v29, %v6821_v33  ;;  %v6823_v8 = vpop.f32.mrb[243].mxu1 }
 0x980   : > { %v7105_v59 = vadd.f32 %v7047_v62, %v14772_v26 }
 0x981   : > { %v6826_v13 = vpop.f32.mrb[244].mxu1 }
 0x982   : > { %7137 = vst [vmem:[%s14809_s20 + $0xc8] sm:$0xff] %v7105_v59  ;;  %v7052_v43 = vadd.f32 %v14660_v48, %v6826_v13  ;;  %v6828_v41 = vpop.f32.mrb[245].mxu1 }
 0x984   : > { %v7106_v20 = vadd.f32 %v7052_v43, %v14783_v25 }
 0x985   : > { %v6831_v27 = vpop.f32.mrb[246].mxu1 }
 0x986   : > { %7138 = vst [vmem:[%s14809_s20 + $0xd0] sm:$0xff] %v7106_v20  ;;  %v7057_v23 = vadd.f32 %v15482_v36, %v6831_v27  ;;  %v6833_v5 = vpop.f32.mrb[247].mxu1 }
 0x988   : > { %v7107_v42 = vadd.f32 %v7057_v23, %v14780_v39 }
 0x989   : > { %v6836_v55 = vpop.f32.mrb[248].mxu1 }
 0x98a   : > { %7139 = vst [vmem:[%s14809_s20 + $0xd8] sm:$0xff] %v7107_v42  ;;  %v7062_v26 = vadd.f32 %v14672_v18, %v6836_v55  ;;  %v6838_v34 = vpop.f32.mrb[249].mxu1 }
 0x98c   : > { %v7108_v48 = vadd.f32 %v7062_v26, %v14791_v45 }
 0x98d   : > { %v6841_v16 = vpop.f32.mrb[250].mxu1 }
 0x98e   : > { %7140 = vst [vmem:[%s14809_s20 + $0xe0] sm:$0xff] %v7108_v48  ;;  %v7067_v25 = vadd.f32 %v14669_v28, %v6841_v16  ;;  %v6843_v0 = vpop.f32.mrb[251].mxu1 }
 0x990   : > { %v7109_v32 = vadd.f32 %v7067_v25, %v14788_v19 }
 0x991   : > { %v6846_v39 = vpop.f32.mrb[252].mxu1 }
 0x992   : > { %7141 = vst [vmem:[%s14809_s20 + $0xe8] sm:$0xff] %v7109_v32  ;;  %v7072_v30 = vadd.f32 %v14800_v49, %v6846_v39  ;;  %v6848_v35 = vpop.f32.mrb[253].mxu1 }
 0x994   : > { %v7110_v18 = vadd.f32 %v7072_v30, %v14803_v60 }
 0x995   : > { %v6851_v45 = vpop.f32.mrb[254].mxu1 }
 0x996   : > { %7142 = vst [vmem:[%s14809_s20 + $0xf0] sm:$0xff] %v7110_v18  ;;  %v7077_v7 = vadd.f32 %v14795_v6, %v6851_v45  ;;  %v6853_v28 = vpop.f32.mrb[255].mxu1 }
 0x998   : > { %v7111_v19 = vadd.f32 %v7077_v7, %v14798_v57 }
 0x99a   : > { %7143 = vst [vmem:[%s14809_s20 + $0xf8] sm:$0xff] %v7111_v19 }
 0x99b   : > { %9727 = shalt.err (!%p9724_p7)
}
 0x99c   : > { %s9728_s23 = scalar_lea.hbm %s14908_s27, 4096  ;;  %s9732_s20 = scalar_lea.hbm %s14965_s9, 8192 }
 0x99d   : > { %p9729_p9 = scmp.ne.s32.totalorder %s14908_s27, %s9728_s23  ;;  %p9733_p5 = scmp.lt.u32.totalorder %s14908_s27, %s14965_s9 }
 0x99e   : > { %p9734_p11 = scmp.lt.u32.totalorder %s9732_s20, %s9728_s23  ;;  %p9736_p4 = scmp.lt.u32.totalorder %s9728_s23, %s14908_s27 }
 0x99f   : > { %p9730_p1 = pnand %p9729_p9, %p9941_p12 }
 0x9a0   : > { %p9735_p2 = por %p9734_p11, %p9733_p5 }
 0x9a1   : > { %p9731_p0 = pneg %p9730_p1 }
 0x9a2   : > { %p9737_p6 = por %p9736_p4, %p9735_p2 }
 0x9a4   : > { %p9738_p8 = pnand %p9737_p6, %p9731_p0 }
 0x9a6   : > { %9741 = shalt.err (!%p9738_p8)
}
 0x9a7   : > { %s9795_s22 = smov 128   ;;  %s9796_s17 = smov 8  }
 0x9a8   : > { %9433 = dma.vmem_to_hbm [thread:$0]  (%p9941_p12), %s14910_s25, 4096, %s14908_s27, %s7145_s13, %s9795_s22, %s9795_s22, %s9796_s17  }
 0x9a9 PF: > { %s15483_s16 = sld [smem:[#allocation13_spill]]  ;;  %s7173_s21 = sand.u32 1, %s9772_s30  }
 0x9aa   : > { %p15485_p13 = scmp.ge.s32.totalorder %s9784_s12, 2  ;;  %s7174_s15 = scalar_lea.sflag [#allocation6], %s7173_s21 }
 0x9af   : > { %p15484_p10 = scmp.ne.s32.totalorder %s15483_s16, 0 }
 0x9b1   : > { %p9444_p3 = pnand %p15485_p13, %p15484_p10 }
 0x9b3   : > { %9767 = dma.done.wait (!%p9444_p3), %s7174_s15, 4096  }
 0x9b4   : > { %9769 = vsyncadd (!%p9444_p3), %s7174_s15, 4294963200  ;;  %s15486_s12 = sld [smem:[#allocation14_spill]]  ;;  %s15487_s30 = smov %s9776_s10 }
 0x9b5   : > { %s15488_s10 = smov %s9780_s11  ;;  %s15489_s11 = smov %s9937_s28 }
 0x9ba   : > { %p23_p7 = scmp.ge.s32.totalorder %s15486_s12, 4  }
 0x9bc   :  { %25 = sbr.rel (!%p23_p7) target bundleno = 6 (0x6), region = 117 }
 0x9c3   :  { %7179 = vsyncpa [#allocation5], 1 }
 0x9c4   :  { %7181 = vsyncpa [#allocation5 + $0x1], 1 }
 0x9c5   :  { %7182 = vsyncpa [#allocation8], 1 }
 0x9c6   :  { %7183 = vsyncpa [#allocation6], 1 }
 0x9c7   :  { %7185 = vsyncpa [#allocation6 + $0x1], 1 }

</bundles_post_ra>
